<compile_context>
chip_gen: v7x
topology: tpu7x:2x2x1
jax: 0.10.0
libtpu: 0.0.40
codegen_flags: <defaults>
</compile_context>

<pallas_src>
import functools
import math

import jax
import jax.numpy as jnp
import numpy as np
from jax.experimental import pallas as pl
from jax.experimental.pallas import tpu as pltpu

SLOPE = 0.01  # LeakyReLU negative slope (torch default)


def _round_up(v, m):
    return ((v + m - 1) // m) * m


# ----------------------------------------------------------------------------
# Geometry: every per-stage "row space" (s2d input slab, conv outputs and the
# intermediate slab) uses the same per-image block of S = (Ho+2)*P rows with
# pitch P, so batch blocking and all conv taps are plain shifted row slices.
# ----------------------------------------------------------------------------
def _make_geometry(h, w, batch_block):
    geoms = []
    for _ in range(3):
        ho, wo = h // 2, w // 2
        p = _round_up(wo + 2, 8)              # row pitch (multiple of 8)
        s = (ho + 2) * p                      # rows per image
        m = batch_block * s                   # GEMM M for this stage
        rin = _round_up(m + p + 1, 8)         # rows of the s2d input slab
        rmid = _round_up(m + 2 * p + 2, 8)    # rows of the intermediate slab
        geoms.append(dict(Ho=ho, Wo=wo, P=p, S=s, M=m, Rin=rin, Rmid=rmid))
        h, w = ho, wo
    return geoms


# ----------------------------------------------------------------------------
# Fused Pallas kernel
# ----------------------------------------------------------------------------
def _stage_convs(load_in, w1_ref, b1_ref, w2_ref, b2_ref, mask_ref, y1_ref, g):
    """conv(3x3,s2) -> LReLU -> conv(3x3,s1) -> LReLU, all on in-VMEM row slabs."""
    p, m = g["P"], g["M"]
    dch = w1_ref.shape[-1]
    mask = mask_ref[...]                                    # (M, 1) f32

    # Only the guard bands of the bf16 intermediate slab are cleared; the data
    # region [P+1, P+1+M) is fully rewritten below.           [review #6]
    y1_ref[0:p + 1, :] = jnp.zeros((p + 1, dch), y1_ref.dtype)
    y1_ref[p + 1 + m:, :] = jnp.zeros(
        (y1_ref.shape[0] - p - 1 - m, dch), y1_ref.dtype)

    # conv A: 3x3 stride-2 conv == 2x2 stride-1 conv over the space-to-depth
    # slab -> 4 contiguous shifted-slice GEMMs (bf16 MXU, f32 accumulation).
    acc = jnp.zeros((m, dch), jnp.float32)
    for dh in range(2):
        for dw in range(2):
            off = dh * p + dw
            acc = acc + jnp.dot(load_in(off, m), w1_ref[dh * 2 + dw],
                                preferred_element_type=jnp.float32)
    acc = acc + b1_ref[...]
    acc = jnp.maximum(acc, SLOPE * acc) * mask              # LReLU + pad mask
    y1_ref[p + 1:p + 1 + m, :] = acc.astype(jnp.bfloat16)   # bf16 slab [#5]

    # conv B: 3x3 stride-1 conv over the in-VMEM slab -> 9 shifted GEMMs.
    acc2 = jnp.zeros((m, dch), jnp.float32)
    for kh in range(3):
        for kw in range(3):
            off = kh * p + kw
            acc2 = acc2 + jnp.dot(y1_ref[off:off + m, :], w2_ref[kh * 3 + kw],
                                  preferred_element_type=jnp.float32)
    acc2 = acc2 + b2_ref[...]
    return jnp.maximum(acc2, SLOPE * acc2) * mask


def _repack_to_next_slab(sel_ref, acc2, slab_ref):
    """Exact 0/1 selection GEMMs: this stage's output rows -> next stage's
    space-to-depth input slab (padding rows come out as zeros for free)."""
    src = acc2.astype(jnp.bfloat16)
    d = src.shape[-1]
    for blk in range(4):
        v = jnp.dot(sel_ref[blk], src, preferred_element_type=jnp.float32)
        slab_ref[:, blk * d:(blk + 1) * d] = v.astype(jnp.bfloat16)


def _disc_kernel(x_ref,
                 w1a, b1a, w2a, b2a, ma,
                 w1b, b1b, w2b, b2b, mb,
                 w1c, b1c, w2c, b2c, mc,
                 sel0, sel1, wh_ref, bh_ref,
                 out_ref,
                 slab1, slab2, y1a, y1b, y1c,
                 *, geom):
    g0, g1, g2 = geom

    acc = _stage_convs(lambda off, m: x_ref[0, off:off + m, :],
                       w1a, b1a, w2a, b2a, ma, y1a, g0)
    _repack_to_next_slab(sel0, acc, slab1)

    acc = _stage_convs(lambda off, m: slab1[off:off + m, :],
                       w1b, b1b, w2b, b2b, mb, y1b, g1)
    _repack_to_next_slab(sel1, acc, slab2)

    acc = _stage_convs(lambda off, m: slab2[off:off + m, :],
                       w1c, b1c, w2c, b2c, mc, y1c, g2)

    # 1x1 / Cout=1 patch head: VPU multiply + lane reduction (no N=1 MXU GEMM).
    head = jnp.sum(acc * wh_ref[...], axis=-1, keepdims=True) + bh_ref[...]
    out_ref[0, :, :] = (head * mc[...]).astype(out_ref.dtype)


# ----------------------------------------------------------------------------
# Host-side (trace-time) helpers: the only JAX glue left is on the raw input.
# ----------------------------------------------------------------------------
def _prep_input_slab(x_nchw, g, batch_block, cin_pad):
    """pad + space-to-depth + linearise the raw input into the stage-0 slab."""
    n, c, _, _ = x_nchw.shape
    y = jnp.transpose(x_nchw, (0, 2, 3, 1)).astype(jnp.float32)   # NHWC
    y = jnp.pad(y, ((0, 0), (0, 0), (0, 0), (0, cin_pad - c)))
    y = jnp.pad(y, ((0, 0), (1, 1), (1, 1), (0, 0)))
    hs, ws = g["Ho"] + 1, g["Wo"] + 1
    y = y.reshape(n, hs, 2, ws, 2, cin_pad).transpose(0, 1, 3, 2, 4, 5)
    y = y.reshape(n, hs, ws, 4 * cin_pad)
    y = jnp.pad(y, ((0, 0), (0, (g["Ho"] + 2) - hs), (0, g["P"] - ws), (0, 0)))
    y = y.reshape(n // batch_block, batch_block * g["S"], 4 * cin_pad)
    y = jnp.pad(y, ((0, 0), (0, g["Rin"] - batch_block * g["S"]), (0, 0)))
    return y.astype(jnp.bfloat16)


def _row_mask(g):
    q = np.arange(g["M"]) % g["S"]
    valid = ((q // g["P"]) < g["Ho"]) & ((q % g["P"]) < g["Wo"])
    return valid.astype(np.float32)[:, None]


def _build_selector(g_src, g_dst, batch_block):
    """0/1 matrices mapping stage-s conv-B output rows to the next stage's
    space-to-depth input slab: block (a*2+b), dst row si*P'+sj <- src value at
    spatial (2si+a-1, 2sj+b-1) (out-of-range -> all-zero row == zero padding)."""
    sel = np.zeros((4, g_dst["Rin"], g_src["M"]), np.float32)
    for a in (0, 1):
        for b in (0, 1):
            blk = a * 2 + b
            for img in range(batch_block):
                for si in range(g_dst["Ho"] + 1):
                    i = 2 * si + a - 1
                    if i < 0 or i >= g_src["Ho"]:
                        continue
                    for sj in range(g_dst["Wo"] + 1):
                        j = 2 * sj + b - 1
                        if j < 0 or j >= g_src["Wo"]:
                            continue
                        dst = img * g_dst["S"] + si * g_dst["P"] + sj
                        src = img * g_src["S"] + i * g_src["P"] + j
                        sel[blk, dst, src] = 1.0
    return sel


# ----------------------------------------------------------------------------
# Discriminator forward (patch=True)
# ----------------------------------------------------------------------------
def discriminator_forward(kparams, x_nchw, *, batch_block=2):
    n, _, h, w = x_nchw.shape
    assert h % 8 == 0 and w % 8 == 0, "need 3 stride-2 halvings"
    bb = max(1, min(batch_block, n))
    n_pad = _round_up(n, bb)
    if n_pad != n:
        x_nchw = jnp.pad(x_nchw, ((0, n_pad - n), (0, 0), (0, 0), (0, 0)))

    geom = _make_geometry(h, w, bb)
    g0, g1, g2 = geom
    stages = kparams["stages"]
    wh, bh = kparams["head"]
    cin_pads = [stages[s][0].shape[1] // 4 for s in range(3)]
    dch = [stages[s][0].shape[-1] for s in range(3)]

    x_slab = _prep_input_slab(x_nchw, g0, bb, cin_pads[0])
    masks = [jnp.asarray(_row_mask(g), jnp.float32) for g in geom]
    sels = [jnp.asarray(_build_selector(geom[s], geom[s + 1], bb), jnp.bfloat16)
            for s in range(2)]

    inputs = [x_slab]
    in_specs = [pl.BlockSpec((1, g0["Rin"], 4 * cin_pads[0]),
                             lambda i: (i, 0, 0))]
    for s in range(3):
        w1, b1, w2, b2 = stages[s]
        inputs += [w1, b1, w2, b2, masks[s]]
        in_specs += [
            pl.BlockSpec(w1.shape, lambda i: (0, 0, 0)),
            pl.BlockSpec(b1.shape, lambda i: (0, 0)),
            pl.BlockSpec(w2.shape, lambda i: (0, 0, 0)),
            pl.BlockSpec(b2.shape, lambda i: (0, 0)),
            pl.BlockSpec(masks[s].shape, lambda i: (0, 0)),
        ]
    inputs += [sels[0], sels[1], wh, bh]
    in_specs += [
        pl.BlockSpec(sels[0].shape, lambda i: (0, 0, 0)),
        pl.BlockSpec(sels[1].shape, lambda i: (0, 0, 0)),
        pl.BlockSpec(wh.shape, lambda i: (0, 0)),
        pl.BlockSpec(bh.shape, lambda i: (0, 0)),
    ]

    out = pl.pallas_call(
        functools.partial(_disc_kernel, geom=tuple(geom)),
        grid=(n_pad // bb,),
        in_specs=in_specs,
        out_specs=pl.BlockSpec((1, g2["M"], 1), lambda i: (i, 0, 0)),
        out_shape=jax.ShapeDtypeStruct((n_pad // bb, g2["M"], 1), jnp.float32),
        scratch_shapes=[
            pltpu.VMEM((g1["Rin"], 4 * cin_pads[1]), jnp.bfloat16),  # slab 1
            pltpu.VMEM((g2["Rin"], 4 * cin_pads[2]), jnp.bfloat16),  # slab 2
            pltpu.VMEM((g0["Rmid"], dch[0]), jnp.bfloat16),          # y1 stage 0
            pltpu.VMEM((g1["Rmid"], dch[1]), jnp.bfloat16),          # y1 stage 1
            pltpu.VMEM((g2["Rmid"], dch[2]), jnp.bfloat16),          # y1 stage 2
        ],
        compiler_params=pltpu.CompilerParams(
            dimension_semantics=("parallel",),
            vmem_limit_bytes=32 * 1024 * 1024),
    )(*inputs)

    y = out.reshape(n_pad, g2["S"])
    y = y.reshape(n_pad, g2["Ho"] + 2, g2["P"])[:, :g2["Ho"], :g2["Wo"]]
    return y[:n][:, None, :, :]                       # (N, 1, H/8, W/8)


# ----------------------------------------------------------------------------
# Parameters (deterministic synthetic init) + spectral norm folding
# ----------------------------------------------------------------------------
def spectral_normalize(w_oihw, key, n_iter=50, eps=1e-12):
    cout = w_oihw.shape[0]
    wm = w_oihw.reshape(cout, -1)
    u = jax.random.normal(key, (cout,), dtype=jnp.float32)
    u = u / (jnp.linalg.norm(u) + eps)
    v = None
    for _ in range(n_iter):
        v = wm.T @ u
        v = v / (jnp.linalg.norm(v) + eps)
        u = wm @ v
        u = u / (jnp.linalg.norm(u) + eps)
    sigma = u @ (wm @ v)
    return w_oihw / sigma


def init_conv(key, cout, cin, k):
    kw_, kb_, ku_ = jax.random.split(key, 3)
    fan_in = cin * k * k
    bound = 1.0 / math.sqrt(fan_in)
    w = jax.random.uniform(kw_, (cout, cin, k, k), jnp.float32, -bound, bound)
    b = jax.random.uniform(kb_, (cout,), jnp.float32, -bound, bound)
    w = spectral_normalize(w, ku_)
    return jnp.transpose(w, (2, 3, 1, 0)), b        # OIHW -> HWIO


def init_params(key, channel=32):
    params = []
    in_ch = 3
    for idx in range(3):
        out_ch = channel * 2 ** idx
        key, k1, k2 = jax.random.split(key, 3)
        params.append(init_conv(k1, out_ch, in_ch, 3))   # stride-2 conv
        params.append(init_conv(k2, out_ch, out_ch, 3))  # stride-1 conv
        in_ch = out_ch
    key, kh = jax.random.split(key)
    params.append(init_conv(kh, 1, in_ch, 1))            # 1x1 patch head
    return params


def _split_stride2_weight(w_hwio, cin_pad):
    """(3,3,Cin,Cout) HWIO -> (4, 4*cin_pad, Cout) weights of the equivalent
    stride-1 2x2 conv over the space-to-depth input (channel order (a,b,c))."""
    kh_, kw_, cin, cout = w_hwio.shape
    w4 = jnp.zeros((4, 4, cin_pad, cout), w_hwio.dtype)
    w4 = w4.at[:kh_, :kw_, :cin, :].set(w_hwio)
    w4 = w4.reshape(2, 2, 2, 2, cin_pad, cout)     # (dh, a, dw, b, c, o)
    w4 = w4.transpose(0, 2, 1, 3, 4, 5)            # (dh, dw, a, b, c, o)
    return w4.reshape(4, 4 * cin_pad, cout)


def prepare_kernel_params(params, channel=32):
    stages = []
    in_ch = 3
    for s in range(3):
        out_ch = channel * 2 ** s
        w_a, b_a = params[2 * s]
        w_b, b_b = params[2 * s + 1]
        cin_pad = 8 if s == 0 else in_ch
        w1 = _split_stride2_weight(w_a, cin_pad).astype(jnp.bfloat16)
        w2 = w_b.reshape(9, out_ch, out_ch).astype(jnp.bfloat16)
        stages.append((w1, b_a.reshape(1, -1).astype(jnp.float32),
                       w2, b_b.reshape(1, -1).astype(jnp.float32)))
        in_ch = out_ch
    w_h, b_h = params[6]
    wh = w_h[0, 0, :, 0].reshape(1, -1).astype(jnp.float32)
    bh = b_h.reshape(1, 1).astype(jnp.float32)
    return {"stages": stages, "head": (wh, bh)}


# ----------------------------------------------------------------------------
# Pure-JAX reference (lax.conv, mirroring the kernel's bf16 rounding points)
# ----------------------------------------------------------------------------
def _leaky(x):
    return jnp.maximum(x, SLOPE * x)


def _ref_conv(x, w_hwio, b, stride, padding):
    y = jax.lax.conv_general_dilated(
        x, w_hwio, window_strides=(stride, stride),
        padding=((padding, padding), (padding, padding)),
        dimension_numbers=("NHWC", "HWIO", "NHWC"),
        precision=jax.lax.Precision.HIGHEST)
    return y + b.reshape(1, 1, 1, -1)


def reference_forward(params, x_nchw):
    q = lambda t: t.astype(jnp.bfloat16).astype(jnp.float32)
    x = q(jnp.transpose(x_nchw, (0, 2, 3, 1)).astype(jnp.float32))
    for s in range(3):
        w_a, b_a = params[2 * s]
        w_b, b_b = params[2 * s + 1]
        x = q(_leaky(_ref_conv(x, q(w_a), b_a, 2, 1)))
        x = _leaky(_ref_conv(x, q(w_b), b_b, 1, 1))
        if s < 2:
            x = q(x)
    w_h, b_h = params[6]
    y = _ref_conv(x, w_h, b_h, 1, 0)
    return jnp.transpose(y, (0, 3, 1, 2))


if __name__ == "__main__":
    key = jax.random.PRNGKey(0)
    kp, kx = jax.random.split(key)

    params = init_params(kp, channel=32)
    kparams = prepare_kernel_params(params, channel=32)
    x = jax.random.normal(kx, (2, 3, 16, 16), dtype=jnp.float32)

    fwd = jax.jit(functools.partial(discriminator_forward, batch_block=2))
    out = jax.block_until_ready(fwd(kparams, x))
    assert out.shape == (2, 1, 2, 2), out.shape

    ref = jax.block_until_ready(reference_forward(params, x))
    err = float(jnp.max(jnp.abs(out - ref)))
    scale = float(jnp.max(jnp.abs(ref)))
    assert err <= 2e-2 * scale + 2e-3, (err, scale)

    print("KERNEL_OK")
</pallas_src>

<mosaic_0001>
module attributes {stable_mosaic.version = 11 : i64} {
  func.func @_disc_kernel(%arg0: i32, %arg1: memref<1x344x32xbf16, #tpu.memory_space<vmem>>, %arg2: memref<4x32x32xbf16, #tpu.memory_space<vmem>>, %arg3: memref<1x32xf32, #tpu.memory_space<vmem>>, %arg4: memref<9x32x32xbf16, #tpu.memory_space<vmem>>, %arg5: memref<1x32xf32, #tpu.memory_space<vmem>>, %arg6: memref<320x1xf32, #tpu.memory_space<vmem>>, %arg7: memref<4x128x64xbf16, #tpu.memory_space<vmem>>, %arg8: memref<1x64xf32, #tpu.memory_space<vmem>>, %arg9: memref<9x64x64xbf16, #tpu.memory_space<vmem>>, %arg10: memref<1x64xf32, #tpu.memory_space<vmem>>, %arg11: memref<96x1xf32, #tpu.memory_space<vmem>>, %arg12: memref<4x256x128xbf16, #tpu.memory_space<vmem>>, %arg13: memref<1x128xf32, #tpu.memory_space<vmem>>, %arg14: memref<9x128x128xbf16, #tpu.memory_space<vmem>>, %arg15: memref<1x128xf32, #tpu.memory_space<vmem>>, %arg16: memref<64x1xf32, #tpu.memory_space<vmem>>, %arg17: memref<4x112x320xbf16, #tpu.memory_space<vmem>>, %arg18: memref<4x80x96xbf16, #tpu.memory_space<vmem>>, %arg19: memref<1x128xf32, #tpu.memory_space<vmem>>, %arg20: memref<1x1xf32, #tpu.memory_space<vmem>>, %arg21: memref<1x64x1xf32, #tpu.memory_space<vmem>>, %arg22: memref<112x128xbf16, #tpu.memory_space<vmem>>, %arg23: memref<80x256xbf16, #tpu.memory_space<vmem>>, %arg24: memref<360x32xbf16, #tpu.memory_space<vmem>>, %arg25: memref<120x64xbf16, #tpu.memory_space<vmem>>, %arg26: memref<88x128xbf16, #tpu.memory_space<vmem>>) attributes {dimension_semantics = [#tpu.dimension_semantics<parallel>], iteration_bounds = array<i64: 1>, scalar_prefetch = 0 : i64, scratch_operands = 5 : i64, tpu.core_type = #tpu.core_type<tc>, window_params = [{transform_indices = @transform_0, window_bounds = array<i64: 1, 344, 32>}, {pipeline_mode = #tpu.pipeline_mode<synchronous>, transform_indices = @transform_1, window_bounds = array<i64: 4, 32, 32>}, {pipeline_mode = #tpu.pipeline_mode<synchronous>, transform_indices = @transform_2, window_bounds = array<i64: 1, 32>}, {pipeline_mode = #tpu.pipeline_mode<synchronous>, transform_indices = @transform_3, window_bounds = array<i64: 9, 32, 32>}, {pipeline_mode = #tpu.pipeline_mode<synchronous>, transform_indices = @transform_4, window_bounds = array<i64: 1, 32>}, {pipeline_mode = #tpu.pipeline_mode<synchronous>, transform_indices = @transform_5, window_bounds = array<i64: 320, 1>}, {pipeline_mode = #tpu.pipeline_mode<synchronous>, transform_indices = @transform_6, window_bounds = array<i64: 4, 128, 64>}, {pipeline_mode = #tpu.pipeline_mode<synchronous>, transform_indices = @transform_7, window_bounds = array<i64: 1, 64>}, {pipeline_mode = #tpu.pipeline_mode<synchronous>, transform_indices = @transform_8, window_bounds = array<i64: 9, 64, 64>}, {pipeline_mode = #tpu.pipeline_mode<synchronous>, transform_indices = @transform_9, window_bounds = array<i64: 1, 64>}, {pipeline_mode = #tpu.pipeline_mode<synchronous>, transform_indices = @transform_10, window_bounds = array<i64: 96, 1>}, {pipeline_mode = #tpu.pipeline_mode<synchronous>, transform_indices = @transform_11, window_bounds = array<i64: 4, 256, 128>}, {pipeline_mode = #tpu.pipeline_mode<synchronous>, transform_indices = @transform_12, window_bounds = array<i64: 1, 128>}, {pipeline_mode = #tpu.pipeline_mode<synchronous>, transform_indices = @transform_13, window_bounds = array<i64: 9, 128, 128>}, {pipeline_mode = #tpu.pipeline_mode<synchronous>, transform_indices = @transform_14, window_bounds = array<i64: 1, 128>}, {pipeline_mode = #tpu.pipeline_mode<synchronous>, transform_indices = @transform_15, window_bounds = array<i64: 64, 1>}, {pipeline_mode = #tpu.pipeline_mode<synchronous>, transform_indices = @transform_16, window_bounds = array<i64: 4, 112, 320>}, {pipeline_mode = #tpu.pipeline_mode<synchronous>, transform_indices = @transform_17, window_bounds = array<i64: 4, 80, 96>}, {pipeline_mode = #tpu.pipeline_mode<synchronous>, transform_indices = @transform_18, window_bounds = array<i64: 1, 128>}, {pipeline_mode = #tpu.pipeline_mode<synchronous>, transform_indices = @transform_19, window_bounds = array<i64: 1, 1>}, {transform_indices = @transform_20, window_bounds = array<i64: 1, 64, 1>}]} {
    %c0 = arith.constant 0 : index
    %c0_0 = arith.constant 0 : index
    %0 = vector.load %arg6[%c0, %c0_0] : memref<320x1xf32, #tpu.memory_space<vmem>>, vector<320x1xf32>
    %cst = arith.constant 0.000000e+00 : bf16
    %1 = vector.broadcast %cst : bf16 to vector<17x32xbf16>
    %c0_1 = arith.constant 0 : index
    %c0_2 = arith.constant 0 : index
    %2 = vector.load %arg24[%c0_1, %c0_2] : memref<360x32xbf16, #tpu.memory_space<vmem>>, vector<17x32xbf16>
    tpu.vector_store %arg24[%c0_1, %c0_2], %1 {strides = array<i32>} : memref<360x32xbf16, #tpu.memory_space<vmem>>, vector<17x32xbf16>,
    %cst_3 = arith.constant 0.000000e+00 : bf16
    %3 = vector.broadcast %cst_3 : bf16 to vector<23x32xbf16>
    %c337 = arith.constant 337 : index
    %c0_4 = arith.constant 0 : index
    %4 = vector.load %arg24[%c337, %c0_4] : memref<360x32xbf16, #tpu.memory_space<vmem>>, vector<23x32xbf16>
    tpu.vector_store %arg24[%c337, %c0_4], %3 {strides = array<i32>} : memref<360x32xbf16, #tpu.memory_space<vmem>>, vector<23x32xbf16>,
    %cst_5 = arith.constant 0.000000e+00 : f32
    %5 = vector.broadcast %cst_5 : f32 to vector<320x32xf32>
    %c0_6 = arith.constant 0 : index
    %c0_7 = arith.constant 0 : index
    %c0_8 = arith.constant 0 : index
    %6 = vector.load %arg1[%c0_6, %c0_7, %c0_8] : memref<1x344x32xbf16, #tpu.memory_space<vmem>>, vector<1x320x32xbf16>
    %7 = vector.shape_cast %6 : vector<1x320x32xbf16> to vector<320x32xbf16>
    %c0_9 = arith.constant 0 : index
    %c0_10 = arith.constant 0 : index
    %c0_11 = arith.constant 0 : index
    %8 = vector.load %arg2[%c0_9, %c0_10, %c0_11] : memref<4x32x32xbf16, #tpu.memory_space<vmem>>, vector<1x32x32xbf16>
    %9 = vector.shape_cast %8 : vector<1x32x32xbf16> to vector<32x32xbf16>
    %cst_12 = arith.constant dense<0.000000e+00> : vector<320x32xf32>
    %10 = tpu.matmul %7, %9, %cst_12 {dimension_numbers = #tpu.dot_dimension_numbers<[1], [0], [0], [1], [0, 0, 1, 1], [], []>} : vector<320x32xbf16>, vector<32x32xbf16>, vector<320x32xf32> -> vector<320x32xf32>
    %11 = arith.addf %5, %10 : vector<320x32xf32>
    %c0_13 = arith.constant 0 : index
    %c1 = arith.constant 1 : index
    %c0_14 = arith.constant 0 : index
    %12 = vector.load %arg1[%c0_13, %c1, %c0_14] : memref<1x344x32xbf16, #tpu.memory_space<vmem>>, vector<1x320x32xbf16>
    %13 = vector.shape_cast %12 : vector<1x320x32xbf16> to vector<320x32xbf16>
    %c1_15 = arith.constant 1 : index
    %c0_16 = arith.constant 0 : index
    %c0_17 = arith.constant 0 : index
    %14 = vector.load %arg2[%c1_15, %c0_16, %c0_17] : memref<4x32x32xbf16, #tpu.memory_space<vmem>>, vector<1x32x32xbf16>
    %15 = vector.shape_cast %14 : vector<1x32x32xbf16> to vector<32x32xbf16>
    %cst_18 = arith.constant dense<0.000000e+00> : vector<320x32xf32>
    %16 = tpu.matmul %13, %15, %cst_18 {dimension_numbers = #tpu.dot_dimension_numbers<[1], [0], [0], [1], [0, 0, 1, 1], [], []>} : vector<320x32xbf16>, vector<32x32xbf16>, vector<320x32xf32> -> vector<320x32xf32>
    %17 = arith.addf %11, %16 : vector<320x32xf32>
    %c0_19 = arith.constant 0 : index
    %c16 = arith.constant 16 : index
    %c0_20 = arith.constant 0 : index
    %18 = vector.load %arg1[%c0_19, %c16, %c0_20] : memref<1x344x32xbf16, #tpu.memory_space<vmem>>, vector<1x320x32xbf16>
    %19 = vector.shape_cast %18 : vector<1x320x32xbf16> to vector<320x32xbf16>
    %c2 = arith.constant 2 : index
    %c0_21 = arith.constant 0 : index
    %c0_22 = arith.constant 0 : index
    %20 = vector.load %arg2[%c2, %c0_21, %c0_22] : memref<4x32x32xbf16, #tpu.memory_space<vmem>>, vector<1x32x32xbf16>
    %21 = vector.shape_cast %20 : vector<1x32x32xbf16> to vector<32x32xbf16>
    %cst_23 = arith.constant dense<0.000000e+00> : vector<320x32xf32>
    %22 = tpu.matmul %19, %21, %cst_23 {dimension_numbers = #tpu.dot_dimension_numbers<[1], [0], [0], [1], [0, 0, 1, 1], [], []>} : vector<320x32xbf16>, vector<32x32xbf16>, vector<320x32xf32> -> vector<320x32xf32>
    %23 = arith.addf %17, %22 : vector<320x32xf32>
    %c0_24 = arith.constant 0 : index
    %c17 = arith.constant 17 : index
    %c0_25 = arith.constant 0 : index
    %24 = vector.load %arg1[%c0_24, %c17, %c0_25] : memref<1x344x32xbf16, #tpu.memory_space<vmem>>, vector<1x320x32xbf16>
    %25 = vector.shape_cast %24 : vector<1x320x32xbf16> to vector<320x32xbf16>
    %c3 = arith.constant 3 : index
    %c0_26 = arith.constant 0 : index
    %c0_27 = arith.constant 0 : index
    %26 = vector.load %arg2[%c3, %c0_26, %c0_27] : memref<4x32x32xbf16, #tpu.memory_space<vmem>>, vector<1x32x32xbf16>
    %27 = vector.shape_cast %26 : vector<1x32x32xbf16> to vector<32x32xbf16>
    %cst_28 = arith.constant dense<0.000000e+00> : vector<320x32xf32>
    %28 = tpu.matmul %25, %27, %cst_28 {dimension_numbers = #tpu.dot_dimension_numbers<[1], [0], [0], [1], [0, 0, 1, 1], [], []>} : vector<320x32xbf16>, vector<32x32xbf16>, vector<320x32xf32> -> vector<320x32xf32>
    %29 = arith.addf %23, %28 : vector<320x32xf32>
    %c0_29 = arith.constant 0 : index
    %c0_30 = arith.constant 0 : index
    %30 = vector.load %arg3[%c0_29, %c0_30] : memref<1x32xf32, #tpu.memory_space<vmem>>, vector<1x32xf32>
    %31 = vector.broadcast %30 : vector<1x32xf32> to vector<320x32xf32>
    %32 = arith.addf %29, %31 : vector<320x32xf32>
    %cst_31 = arith.constant 0.00999999977 : f32
    %33 = vector.broadcast %cst_31 : f32 to vector<320x32xf32>
    %34 = arith.mulf %33, %32 : vector<320x32xf32>
    %35 = arith.maximumf %32, %34 : vector<320x32xf32>
    %36 = vector.broadcast %0 : vector<320x1xf32> to vector<320x32xf32>
    %37 = arith.mulf %35, %36 : vector<320x32xf32>
    %38 = arith.truncf %37 : vector<320x32xf32> to vector<320x32xbf16>
    %c17_32 = arith.constant 17 : index
    %c0_33 = arith.constant 0 : index
    %39 = vector.load %arg24[%c17_32, %c0_33] : memref<360x32xbf16, #tpu.memory_space<vmem>>, vector<320x32xbf16>
    tpu.vector_store %arg24[%c17_32, %c0_33], %38 {strides = array<i32>} : memref<360x32xbf16, #tpu.memory_space<vmem>>, vector<320x32xbf16>,
    %cst_34 = arith.constant 0.000000e+00 : f32
    %40 = vector.broadcast %cst_34 : f32 to vector<320x32xf32>
    %c0_35 = arith.constant 0 : index
    %c0_36 = arith.constant 0 : index
    %41 = vector.load %arg24[%c0_35, %c0_36] : memref<360x32xbf16, #tpu.memory_space<vmem>>, vector<320x32xbf16>
    %c0_37 = arith.constant 0 : index
    %c0_38 = arith.constant 0 : index
    %c0_39 = arith.constant 0 : index
    %42 = vector.load %arg4[%c0_37, %c0_38, %c0_39] : memref<9x32x32xbf16, #tpu.memory_space<vmem>>, vector<1x32x32xbf16>
    %43 = vector.shape_cast %42 : vector<1x32x32xbf16> to vector<32x32xbf16>
    %cst_40 = arith.constant dense<0.000000e+00> : vector<320x32xf32>
    %44 = tpu.matmul %41, %43, %cst_40 {dimension_numbers = #tpu.dot_dimension_numbers<[1], [0], [0], [1], [0, 0, 1, 1], [], []>} : vector<320x32xbf16>, vector<32x32xbf16>, vector<320x32xf32> -> vector<320x32xf32>
    %45 = arith.addf %40, %44 : vector<320x32xf32>
    %c1_41 = arith.constant 1 : index
    %c0_42 = arith.constant 0 : index
    %46 = vector.load %arg24[%c1_41, %c0_42] : memref<360x32xbf16, #tpu.memory_space<vmem>>, vector<320x32xbf16>
    %c1_43 = arith.constant 1 : index
    %c0_44 = arith.constant 0 : index
    %c0_45 = arith.constant 0 : index
    %47 = vector.load %arg4[%c1_43, %c0_44, %c0_45] : memref<9x32x32xbf16, #tpu.memory_space<vmem>>, vector<1x32x32xbf16>
    %48 = vector.shape_cast %47 : vector<1x32x32xbf16> to vector<32x32xbf16>
    %cst_46 = arith.constant dense<0.000000e+00> : vector<320x32xf32>
    %49 = tpu.matmul %46, %48, %cst_46 {dimension_numbers = #tpu.dot_dimension_numbers<[1], [0], [0], [1], [0, 0, 1, 1], [], []>} : vector<320x32xbf16>, vector<32x32xbf16>, vector<320x32xf32> -> vector<320x32xf32>
    %50 = arith.addf %45, %49 : vector<320x32xf32>
    %c2_47 = arith.constant 2 : index
    %c0_48 = arith.constant 0 : index
    %51 = vector.load %arg24[%c2_47, %c0_48] : memref<360x32xbf16, #tpu.memory_space<vmem>>, vector<320x32xbf16>
    %c2_49 = arith.constant 2 : index
    %c0_50 = arith.constant 0 : index
    %c0_51 = arith.constant 0 : index
    %52 = vector.load %arg4[%c2_49, %c0_50, %c0_51] : memref<9x32x32xbf16, #tpu.memory_space<vmem>>, vector<1x32x32xbf16>
    %53 = vector.shape_cast %52 : vector<1x32x32xbf16> to vector<32x32xbf16>
    %cst_52 = arith.constant dense<0.000000e+00> : vector<320x32xf32>
    %54 = tpu.matmul %51, %53, %cst_52 {dimension_numbers = #tpu.dot_dimension_numbers<[1], [0], [0], [1], [0, 0, 1, 1], [], []>} : vector<320x32xbf16>, vector<32x32xbf16>, vector<320x32xf32> -> vector<320x32xf32>
    %55 = arith.addf %50, %54 : vector<320x32xf32>
    %c16_53 = arith.constant 16 : index
    %c0_54 = arith.constant 0 : index
    %56 = vector.load %arg24[%c16_53, %c0_54] : memref<360x32xbf16, #tpu.memory_space<vmem>>, vector<320x32xbf16>
    %c3_55 = arith.constant 3 : index
    %c0_56 = arith.constant 0 : index
    %c0_57 = arith.constant 0 : index
    %57 = vector.load %arg4[%c3_55, %c0_56, %c0_57] : memref<9x32x32xbf16, #tpu.memory_space<vmem>>, vector<1x32x32xbf16>
    %58 = vector.shape_cast %57 : vector<1x32x32xbf16> to vector<32x32xbf16>
    %cst_58 = arith.constant dense<0.000000e+00> : vector<320x32xf32>
    %59 = tpu.matmul %56, %58, %cst_58 {dimension_numbers = #tpu.dot_dimension_numbers<[1], [0], [0], [1], [0, 0, 1, 1], [], []>} : vector<320x32xbf16>, vector<32x32xbf16>, vector<320x32xf32> -> vector<320x32xf32>
    %60 = arith.addf %55, %59 : vector<320x32xf32>
    %c17_59 = arith.constant 17 : index
    %c0_60 = arith.constant 0 : index
    %61 = vector.load %arg24[%c17_59, %c0_60] : memref<360x32xbf16, #tpu.memory_space<vmem>>, vector<320x32xbf16>
    %c4 = arith.constant 4 : index
    %c0_61 = arith.constant 0 : index
    %c0_62 = arith.constant 0 : index
    %62 = vector.load %arg4[%c4, %c0_61, %c0_62] : memref<9x32x32xbf16, #tpu.memory_space<vmem>>, vector<1x32x32xbf16>
    %63 = vector.shape_cast %62 : vector<1x32x32xbf16> to vector<32x32xbf16>
    %cst_63 = arith.constant dense<0.000000e+00> : vector<320x32xf32>
    %64 = tpu.matmul %61, %63, %cst_63 {dimension_numbers = #tpu.dot_dimension_numbers<[1], [0], [0], [1], [0, 0, 1, 1], [], []>} : vector<320x32xbf16>, vector<32x32xbf16>, vector<320x32xf32> -> vector<320x32xf32>
    %65 = arith.addf %60, %64 : vector<320x32xf32>
    %c18 = arith.constant 18 : index
    %c0_64 = arith.constant 0 : index
    %66 = vector.load %arg24[%c18, %c0_64] : memref<360x32xbf16, #tpu.memory_space<vmem>>, vector<320x32xbf16>
    %c5 = arith.constant 5 : index
    %c0_65 = arith.constant 0 : index
    %c0_66 = arith.constant 0 : index
    %67 = vector.load %arg4[%c5, %c0_65, %c0_66] : memref<9x32x32xbf16, #tpu.memory_space<vmem>>, vector<1x32x32xbf16>
    %68 = vector.shape_cast %67 : vector<1x32x32xbf16> to vector<32x32xbf16>
    %cst_67 = arith.constant dense<0.000000e+00> : vector<320x32xf32>
    %69 = tpu.matmul %66, %68, %cst_67 {dimension_numbers = #tpu.dot_dimension_numbers<[1], [0], [0], [1], [0, 0, 1, 1], [], []>} : vector<320x32xbf16>, vector<32x32xbf16>, vector<320x32xf32> -> vector<320x32xf32>
    %70 = arith.addf %65, %69 : vector<320x32xf32>
    %c32 = arith.constant 32 : index
    %c0_68 = arith.constant 0 : index
    %71 = vector.load %arg24[%c32, %c0_68] : memref<360x32xbf16, #tpu.memory_space<vmem>>, vector<320x32xbf16>
    %c6 = arith.constant 6 : index
    %c0_69 = arith.constant 0 : index
    %c0_70 = arith.constant 0 : index
    %72 = vector.load %arg4[%c6, %c0_69, %c0_70] : memref<9x32x32xbf16, #tpu.memory_space<vmem>>, vector<1x32x32xbf16>
    %73 = vector.shape_cast %72 : vector<1x32x32xbf16> to vector<32x32xbf16>
    %cst_71 = arith.constant dense<0.000000e+00> : vector<320x32xf32>
    %74 = tpu.matmul %71, %73, %cst_71 {dimension_numbers = #tpu.dot_dimension_numbers<[1], [0], [0], [1], [0, 0, 1, 1], [], []>} : vector<320x32xbf16>, vector<32x32xbf16>, vector<320x32xf32> -> vector<320x32xf32>
    %75 = arith.addf %70, %74 : vector<320x32xf32>
    %c33 = arith.constant 33 : index
    %c0_72 = arith.constant 0 : index
    %76 = vector.load %arg24[%c33, %c0_72] : memref<360x32xbf16, #tpu.memory_space<vmem>>, vector<320x32xbf16>
    %c7 = arith.constant 7 : index
    %c0_73 = arith.constant 0 : index
    %c0_74 = arith.constant 0 : index
    %77 = vector.load %arg4[%c7, %c0_73, %c0_74] : memref<9x32x32xbf16, #tpu.memory_space<vmem>>, vector<1x32x32xbf16>
    %78 = vector.shape_cast %77 : vector<1x32x32xbf16> to vector<32x32xbf16>
    %cst_75 = arith.constant dense<0.000000e+00> : vector<320x32xf32>
    %79 = tpu.matmul %76, %78, %cst_75 {dimension_numbers = #tpu.dot_dimension_numbers<[1], [0], [0], [1], [0, 0, 1, 1], [], []>} : vector<320x32xbf16>, vector<32x32xbf16>, vector<320x32xf32> -> vector<320x32xf32>
    %80 = arith.addf %75, %79 : vector<320x32xf32>
    %c34 = arith.constant 34 : index
    %c0_76 = arith.constant 0 : index
    %81 = vector.load %arg24[%c34, %c0_76] : memref<360x32xbf16, #tpu.memory_space<vmem>>, vector<320x32xbf16>
    %c8 = arith.constant 8 : index
    %c0_77 = arith.constant 0 : index
    %c0_78 = arith.constant 0 : index
    %82 = vector.load %arg4[%c8, %c0_77, %c0_78] : memref<9x32x32xbf16, #tpu.memory_space<vmem>>, vector<1x32x32xbf16>
    %83 = vector.shape_cast %82 : vector<1x32x32xbf16> to vector<32x32xbf16>
    %cst_79 = arith.constant dense<0.000000e+00> : vector<320x32xf32>
    %84 = tpu.matmul %81, %83, %cst_79 {dimension_numbers = #tpu.dot_dimension_numbers<[1], [0], [0], [1], [0, 0, 1, 1], [], []>} : vector<320x32xbf16>, vector<32x32xbf16>, vector<320x32xf32> -> vector<320x32xf32>
    %85 = arith.addf %80, %84 : vector<320x32xf32>
    %c0_80 = arith.constant 0 : index
    %c0_81 = arith.constant 0 : index
    %86 = vector.load %arg5[%c0_80, %c0_81] : memref<1x32xf32, #tpu.memory_space<vmem>>, vector<1x32xf32>
    %87 = vector.broadcast %86 : vector<1x32xf32> to vector<320x32xf32>
    %88 = arith.addf %85, %87 : vector<320x32xf32>
    %cst_82 = arith.constant 0.00999999977 : f32
    %89 = vector.broadcast %cst_82 : f32 to vector<320x32xf32>
    %90 = arith.mulf %89, %88 : vector<320x32xf32>
    %91 = arith.maximumf %88, %90 : vector<320x32xf32>
    %92 = vector.broadcast %0 : vector<320x1xf32> to vector<320x32xf32>
    %93 = arith.mulf %91, %92 : vector<320x32xf32>
    %94 = arith.truncf %93 : vector<320x32xf32> to vector<320x32xbf16>
    %c0_83 = arith.constant 0 : index
    %c0_84 = arith.constant 0 : index
    %c0_85 = arith.constant 0 : index
    %95 = vector.load %arg17[%c0_83, %c0_84, %c0_85] : memref<4x112x320xbf16, #tpu.memory_space<vmem>>, vector<1x112x320xbf16>
    %96 = vector.shape_cast %95 : vector<1x112x320xbf16> to vector<112x320xbf16>
    %cst_86 = arith.constant dense<0.000000e+00> : vector<112x32xf32>
    %97 = tpu.matmul %96, %94, %cst_86 {dimension_numbers = #tpu.dot_dimension_numbers<[1], [0], [0], [1], [0, 0, 1, 1], [], []>} : vector<112x320xbf16>, vector<320x32xbf16>, vector<112x32xf32> -> vector<112x32xf32>
    %98 = arith.truncf %97 : vector<112x32xf32> to vector<112x32xbf16>
    %c0_87 = arith.constant 0 : index
    %c0_88 = arith.constant 0 : index
    %99 = vector.load %arg22[%c0_87, %c0_88] : memref<112x128xbf16, #tpu.memory_space<vmem>>, vector<112x32xbf16>
    tpu.vector_store %arg22[%c0_87, %c0_88], %98 {strides = array<i32>} : memref<112x128xbf16, #tpu.memory_space<vmem>>, vector<112x32xbf16>,
    %c1_89 = arith.constant 1 : index
    %c0_90 = arith.constant 0 : index
    %c0_91 = arith.constant 0 : index
    %100 = vector.load %arg17[%c1_89, %c0_90, %c0_91] : memref<4x112x320xbf16, #tpu.memory_space<vmem>>, vector<1x112x320xbf16>
    %101 = vector.shape_cast %100 : vector<1x112x320xbf16> to vector<112x320xbf16>
    %cst_92 = arith.constant dense<0.000000e+00> : vector<112x32xf32>
    %102 = tpu.matmul %101, %94, %cst_92 {dimension_numbers = #tpu.dot_dimension_numbers<[1], [0], [0], [1], [0, 0, 1, 1], [], []>} : vector<112x320xbf16>, vector<320x32xbf16>, vector<112x32xf32> -> vector<112x32xf32>
    %103 = arith.truncf %102 : vector<112x32xf32> to vector<112x32xbf16>
    %c0_93 = arith.constant 0 : index
    %c32_94 = arith.constant 32 : index
    %104 = vector.load %arg22[%c0_93, %c32_94] : memref<112x128xbf16, #tpu.memory_space<vmem>>, vector<112x32xbf16>
    tpu.vector_store %arg22[%c0_93, %c32_94], %103 {strides = array<i32>} : memref<112x128xbf16, #tpu.memory_space<vmem>>, vector<112x32xbf16>,
    %c2_95 = arith.constant 2 : index
    %c0_96 = arith.constant 0 : index
    %c0_97 = arith.constant 0 : index
    %105 = vector.load %arg17[%c2_95, %c0_96, %c0_97] : memref<4x112x320xbf16, #tpu.memory_space<vmem>>, vector<1x112x320xbf16>
    %106 = vector.shape_cast %105 : vector<1x112x320xbf16> to vector<112x320xbf16>
    %cst_98 = arith.constant dense<0.000000e+00> : vector<112x32xf32>
    %107 = tpu.matmul %106, %94, %cst_98 {dimension_numbers = #tpu.dot_dimension_numbers<[1], [0], [0], [1], [0, 0, 1, 1], [], []>} : vector<112x320xbf16>, vector<320x32xbf16>, vector<112x32xf32> -> vector<112x32xf32>
    %108 = arith.truncf %107 : vector<112x32xf32> to vector<112x32xbf16>
    %c0_99 = arith.constant 0 : index
    %c64 = arith.constant 64 : index
    %109 = vector.load %arg22[%c0_99, %c64] : memref<112x128xbf16, #tpu.memory_space<vmem>>, vector<112x32xbf16>
    tpu.vector_store %arg22[%c0_99, %c64], %108 {strides = array<i32>} : memref<112x128xbf16, #tpu.memory_space<vmem>>, vector<112x32xbf16>,
    %c3_100 = arith.constant 3 : index
    %c0_101 = arith.constant 0 : index
    %c0_102 = arith.constant 0 : index
    %110 = vector.load %arg17[%c3_100, %c0_101, %c0_102] : memref<4x112x320xbf16, #tpu.memory_space<vmem>>, vector<1x112x320xbf16>
    %111 = vector.shape_cast %110 : vector<1x112x320xbf16> to vector<112x320xbf16>
    %cst_103 = arith.constant dense<0.000000e+00> : vector<112x32xf32>
    %112 = tpu.matmul %111, %94, %cst_103 {dimension_numbers = #tpu.dot_dimension_numbers<[1], [0], [0], [1], [0, 0, 1, 1], [], []>} : vector<112x320xbf16>, vector<320x32xbf16>, vector<112x32xf32> -> vector<112x32xf32>
    %113 = arith.truncf %112 : vector<112x32xf32> to vector<112x32xbf16>
    %c0_104 = arith.constant 0 : index
    %c96 = arith.constant 96 : index
    %114 = vector.load %arg22[%c0_104, %c96] : memref<112x128xbf16, #tpu.memory_space<vmem>>, vector<112x32xbf16>
    tpu.vector_store %arg22[%c0_104, %c96], %113 {strides = array<i32>} : memref<112x128xbf16, #tpu.memory_space<vmem>>, vector<112x32xbf16>,
    %c0_105 = arith.constant 0 : index
    %c0_106 = arith.constant 0 : index
    %115 = vector.load %arg11[%c0_105, %c0_106] : memref<96x1xf32, #tpu.memory_space<vmem>>, vector<96x1xf32>
    %cst_107 = arith.constant 0.000000e+00 : bf16
    %116 = vector.broadcast %cst_107 : bf16 to vector<9x64xbf16>
    %c0_108 = arith.constant 0 : index
    %c0_109 = arith.constant 0 : index
    %117 = vector.load %arg25[%c0_108, %c0_109] : memref<120x64xbf16, #tpu.memory_space<vmem>>, vector<9x64xbf16>
    tpu.vector_store %arg25[%c0_108, %c0_109], %116 {strides = array<i32>} : memref<120x64xbf16, #tpu.memory_space<vmem>>, vector<9x64xbf16>,
    %cst_110 = arith.constant 0.000000e+00 : bf16
    %118 = vector.broadcast %cst_110 : bf16 to vector<15x64xbf16>
    %c105 = arith.constant 105 : index
    %c0_111 = arith.constant 0 : index
    %119 = vector.load %arg25[%c105, %c0_111] : memref<120x64xbf16, #tpu.memory_space<vmem>>, vector<15x64xbf16>
    tpu.vector_store %arg25[%c105, %c0_111], %118 {strides = array<i32>} : memref<120x64xbf16, #tpu.memory_space<vmem>>, vector<15x64xbf16>,
    %cst_112 = arith.constant 0.000000e+00 : f32
    %120 = vector.broadcast %cst_112 : f32 to vector<96x64xf32>
    %c0_113 = arith.constant 0 : index
    %c0_114 = arith.constant 0 : index
    %121 = vector.load %arg22[%c0_113, %c0_114] : memref<112x128xbf16, #tpu.memory_space<vmem>>, vector<96x128xbf16>
    %c0_115 = arith.constant 0 : index
    %c0_116 = arith.constant 0 : index
    %c0_117 = arith.constant 0 : index
    %122 = vector.load %arg7[%c0_115, %c0_116, %c0_117] : memref<4x128x64xbf16, #tpu.memory_space<vmem>>, vector<1x128x64xbf16>
    %123 = vector.shape_cast %122 : vector<1x128x64xbf16> to vector<128x64xbf16>
    %cst_118 = arith.constant dense<0.000000e+00> : vector<96x64xf32>
    %124 = tpu.matmul %121, %123, %cst_118 {dimension_numbers = #tpu.dot_dimension_numbers<[1], [0], [0], [1], [0, 0, 1, 1], [], []>} : vector<96x128xbf16>, vector<128x64xbf16>, vector<96x64xf32> -> vector<96x64xf32>
    %125 = arith.addf %120, %124 : vector<96x64xf32>
    %c1_119 = arith.constant 1 : index
    %c0_120 = arith.constant 0 : index
    %126 = vector.load %arg22[%c1_119, %c0_120] : memref<112x128xbf16, #tpu.memory_space<vmem>>, vector<96x128xbf16>
    %c1_121 = arith.constant 1 : index
    %c0_122 = arith.constant 0 : index
    %c0_123 = arith.constant 0 : index
    %127 = vector.load %arg7[%c1_121, %c0_122, %c0_123] : memref<4x128x64xbf16, #tpu.memory_space<vmem>>, vector<1x128x64xbf16>
    %128 = vector.shape_cast %127 : vector<1x128x64xbf16> to vector<128x64xbf16>
    %cst_124 = arith.constant dense<0.000000e+00> : vector<96x64xf32>
    %129 = tpu.matmul %126, %128, %cst_124 {dimension_numbers = #tpu.dot_dimension_numbers<[1], [0], [0], [1], [0, 0, 1, 1], [], []>} : vector<96x128xbf16>, vector<128x64xbf16>, vector<96x64xf32> -> vector<96x64xf32>
    %130 = arith.addf %125, %129 : vector<96x64xf32>
    %c8_125 = arith.constant 8 : index
    %c0_126 = arith.constant 0 : index
    %131 = vector.load %arg22[%c8_125, %c0_126] : memref<112x128xbf16, #tpu.memory_space<vmem>>, vector<96x128xbf16>
    %c2_127 = arith.constant 2 : index
    %c0_128 = arith.constant 0 : index
    %c0_129 = arith.constant 0 : index
    %132 = vector.load %arg7[%c2_127, %c0_128, %c0_129] : memref<4x128x64xbf16, #tpu.memory_space<vmem>>, vector<1x128x64xbf16>
    %133 = vector.shape_cast %132 : vector<1x128x64xbf16> to vector<128x64xbf16>
    %cst_130 = arith.constant dense<0.000000e+00> : vector<96x64xf32>
    %134 = tpu.matmul %131, %133, %cst_130 {dimension_numbers = #tpu.dot_dimension_numbers<[1], [0], [0], [1], [0, 0, 1, 1], [], []>} : vector<96x128xbf16>, vector<128x64xbf16>, vector<96x64xf32> -> vector<96x64xf32>
    %135 = arith.addf %130, %134 : vector<96x64xf32>
    %c9 = arith.constant 9 : index
    %c0_131 = arith.constant 0 : index
    %136 = vector.load %arg22[%c9, %c0_131] : memref<112x128xbf16, #tpu.memory_space<vmem>>, vector<96x128xbf16>
    %c3_132 = arith.constant 3 : index
    %c0_133 = arith.constant 0 : index
    %c0_134 = arith.constant 0 : index
    %137 = vector.load %arg7[%c3_132, %c0_133, %c0_134] : memref<4x128x64xbf16, #tpu.memory_space<vmem>>, vector<1x128x64xbf16>
    %138 = vector.shape_cast %137 : vector<1x128x64xbf16> to vector<128x64xbf16>
    %cst_135 = arith.constant dense<0.000000e+00> : vector<96x64xf32>
    %139 = tpu.matmul %136, %138, %cst_135 {dimension_numbers = #tpu.dot_dimension_numbers<[1], [0], [0], [1], [0, 0, 1, 1], [], []>} : vector<96x128xbf16>, vector<128x64xbf16>, vector<96x64xf32> -> vector<96x64xf32>
    %140 = arith.addf %135, %139 : vector<96x64xf32>
    %c0_136 = arith.constant 0 : index
    %c0_137 = arith.constant 0 : index
    %141 = vector.load %arg8[%c0_136, %c0_137] : memref<1x64xf32, #tpu.memory_space<vmem>>, vector<1x64xf32>
    %142 = vector.broadcast %141 : vector<1x64xf32> to vector<96x64xf32>
    %143 = arith.addf %140, %142 : vector<96x64xf32>
    %cst_138 = arith.constant 0.00999999977 : f32
    %144 = vector.broadcast %cst_138 : f32 to vector<96x64xf32>
    %145 = arith.mulf %144, %143 : vector<96x64xf32>
    %146 = arith.maximumf %143, %145 : vector<96x64xf32>
    %147 = vector.broadcast %115 : vector<96x1xf32> to vector<96x64xf32>
    %148 = arith.mulf %146, %147 : vector<96x64xf32>
    %149 = arith.truncf %148 : vector<96x64xf32> to vector<96x64xbf16>
    %c9_139 = arith.constant 9 : index
    %c0_140 = arith.constant 0 : index
    %150 = vector.load %arg25[%c9_139, %c0_140] : memref<120x64xbf16, #tpu.memory_space<vmem>>, vector<96x64xbf16>
    tpu.vector_store %arg25[%c9_139, %c0_140], %149 {strides = array<i32>} : memref<120x64xbf16, #tpu.memory_space<vmem>>, vector<96x64xbf16>,
    %cst_141 = arith.constant 0.000000e+00 : f32
    %151 = vector.broadcast %cst_141 : f32 to vector<96x64xf32>
    %c0_142 = arith.constant 0 : index
    %c0_143 = arith.constant 0 : index
    %152 = vector.load %arg25[%c0_142, %c0_143] : memref<120x64xbf16, #tpu.memory_space<vmem>>, vector<96x64xbf16>
    %c0_144 = arith.constant 0 : index
    %c0_145 = arith.constant 0 : index
    %c0_146 = arith.constant 0 : index
    %153 = vector.load %arg9[%c0_144, %c0_145, %c0_146] : memref<9x64x64xbf16, #tpu.memory_space<vmem>>, vector<1x64x64xbf16>
    %154 = vector.shape_cast %153 : vector<1x64x64xbf16> to vector<64x64xbf16>
    %cst_147 = arith.constant dense<0.000000e+00> : vector<96x64xf32>
    %155 = tpu.matmul %152, %154, %cst_147 {dimension_numbers = #tpu.dot_dimension_numbers<[1], [0], [0], [1], [0, 0, 1, 1], [], []>} : vector<96x64xbf16>, vector<64x64xbf16>, vector<96x64xf32> -> vector<96x64xf32>
    %156 = arith.addf %151, %155 : vector<96x64xf32>
    %c1_148 = arith.constant 1 : index
    %c0_149 = arith.constant 0 : index
    %157 = vector.load %arg25[%c1_148, %c0_149] : memref<120x64xbf16, #tpu.memory_space<vmem>>, vector<96x64xbf16>
    %c1_150 = arith.constant 1 : index
    %c0_151 = arith.constant 0 : index
    %c0_152 = arith.constant 0 : index
    %158 = vector.load %arg9[%c1_150, %c0_151, %c0_152] : memref<9x64x64xbf16, #tpu.memory_space<vmem>>, vector<1x64x64xbf16>
    %159 = vector.shape_cast %158 : vector<1x64x64xbf16> to vector<64x64xbf16>
    %cst_153 = arith.constant dense<0.000000e+00> : vector<96x64xf32>
    %160 = tpu.matmul %157, %159, %cst_153 {dimension_numbers = #tpu.dot_dimension_numbers<[1], [0], [0], [1], [0, 0, 1, 1], [], []>} : vector<96x64xbf16>, vector<64x64xbf16>, vector<96x64xf32> -> vector<96x64xf32>
    %161 = arith.addf %156, %160 : vector<96x64xf32>
    %c2_154 = arith.constant 2 : index
    %c0_155 = arith.constant 0 : index
    %162 = vector.load %arg25[%c2_154, %c0_155] : memref<120x64xbf16, #tpu.memory_space<vmem>>, vector<96x64xbf16>
    %c2_156 = arith.constant 2 : index
    %c0_157 = arith.constant 0 : index
    %c0_158 = arith.constant 0 : index
    %163 = vector.load %arg9[%c2_156, %c0_157, %c0_158] : memref<9x64x64xbf16, #tpu.memory_space<vmem>>, vector<1x64x64xbf16>
    %164 = vector.shape_cast %163 : vector<1x64x64xbf16> to vector<64x64xbf16>
    %cst_159 = arith.constant dense<0.000000e+00> : vector<96x64xf32>
    %165 = tpu.matmul %162, %164, %cst_159 {dimension_numbers = #tpu.dot_dimension_numbers<[1], [0], [0], [1], [0, 0, 1, 1], [], []>} : vector<96x64xbf16>, vector<64x64xbf16>, vector<96x64xf32> -> vector<96x64xf32>
    %166 = arith.addf %161, %165 : vector<96x64xf32>
    %c8_160 = arith.constant 8 : index
    %c0_161 = arith.constant 0 : index
    %167 = vector.load %arg25[%c8_160, %c0_161] : memref<120x64xbf16, #tpu.memory_space<vmem>>, vector<96x64xbf16>
    %c3_162 = arith.constant 3 : index
    %c0_163 = arith.constant 0 : index
    %c0_164 = arith.constant 0 : index
    %168 = vector.load %arg9[%c3_162, %c0_163, %c0_164] : memref<9x64x64xbf16, #tpu.memory_space<vmem>>, vector<1x64x64xbf16>
    %169 = vector.shape_cast %168 : vector<1x64x64xbf16> to vector<64x64xbf16>
    %cst_165 = arith.constant dense<0.000000e+00> : vector<96x64xf32>
    %170 = tpu.matmul %167, %169, %cst_165 {dimension_numbers = #tpu.dot_dimension_numbers<[1], [0], [0], [1], [0, 0, 1, 1], [], []>} : vector<96x64xbf16>, vector<64x64xbf16>, vector<96x64xf32> -> vector<96x64xf32>
    %171 = arith.addf %166, %170 : vector<96x64xf32>
    %c9_166 = arith.constant 9 : index
    %c0_167 = arith.constant 0 : index
    %172 = vector.load %arg25[%c9_166, %c0_167] : memref<120x64xbf16, #tpu.memory_space<vmem>>, vector<96x64xbf16>
    %c4_168 = arith.constant 4 : index
    %c0_169 = arith.constant 0 : index
    %c0_170 = arith.constant 0 : index
    %173 = vector.load %arg9[%c4_168, %c0_169, %c0_170] : memref<9x64x64xbf16, #tpu.memory_space<vmem>>, vector<1x64x64xbf16>
    %174 = vector.shape_cast %173 : vector<1x64x64xbf16> to vector<64x64xbf16>
    %cst_171 = arith.constant dense<0.000000e+00> : vector<96x64xf32>
    %175 = tpu.matmul %172, %174, %cst_171 {dimension_numbers = #tpu.dot_dimension_numbers<[1], [0], [0], [1], [0, 0, 1, 1], [], []>} : vector<96x64xbf16>, vector<64x64xbf16>, vector<96x64xf32> -> vector<96x64xf32>
    %176 = arith.addf %171, %175 : vector<96x64xf32>
    %c10 = arith.constant 10 : index
    %c0_172 = arith.constant 0 : index
    %177 = vector.load %arg25[%c10, %c0_172] : memref<120x64xbf16, #tpu.memory_space<vmem>>, vector<96x64xbf16>
    %c5_173 = arith.constant 5 : index
    %c0_174 = arith.constant 0 : index
    %c0_175 = arith.constant 0 : index
    %178 = vector.load %arg9[%c5_173, %c0_174, %c0_175] : memref<9x64x64xbf16, #tpu.memory_space<vmem>>, vector<1x64x64xbf16>
    %179 = vector.shape_cast %178 : vector<1x64x64xbf16> to vector<64x64xbf16>
    %cst_176 = arith.constant dense<0.000000e+00> : vector<96x64xf32>
    %180 = tpu.matmul %177, %179, %cst_176 {dimension_numbers = #tpu.dot_dimension_numbers<[1], [0], [0], [1], [0, 0, 1, 1], [], []>} : vector<96x64xbf16>, vector<64x64xbf16>, vector<96x64xf32> -> vector<96x64xf32>
    %181 = arith.addf %176, %180 : vector<96x64xf32>
    %c16_177 = arith.constant 16 : index
    %c0_178 = arith.constant 0 : index
    %182 = vector.load %arg25[%c16_177, %c0_178] : memref<120x64xbf16, #tpu.memory_space<vmem>>, vector<96x64xbf16>
    %c6_179 = arith.constant 6 : index
    %c0_180 = arith.constant 0 : index
    %c0_181 = arith.constant 0 : index
    %183 = vector.load %arg9[%c6_179, %c0_180, %c0_181] : memref<9x64x64xbf16, #tpu.memory_space<vmem>>, vector<1x64x64xbf16>
    %184 = vector.shape_cast %183 : vector<1x64x64xbf16> to vector<64x64xbf16>
    %cst_182 = arith.constant dense<0.000000e+00> : vector<96x64xf32>
    %185 = tpu.matmul %182, %184, %cst_182 {dimension_numbers = #tpu.dot_dimension_numbers<[1], [0], [0], [1], [0, 0, 1, 1], [], []>} : vector<96x64xbf16>, vector<64x64xbf16>, vector<96x64xf32> -> vector<96x64xf32>
    %186 = arith.addf %181, %185 : vector<96x64xf32>
    %c17_183 = arith.constant 17 : index
    %c0_184 = arith.constant 0 : index
    %187 = vector.load %arg25[%c17_183, %c0_184] : memref<120x64xbf16, #tpu.memory_space<vmem>>, vector<96x64xbf16>
    %c7_185 = arith.constant 7 : index
    %c0_186 = arith.constant 0 : index
    %c0_187 = arith.constant 0 : index
    %188 = vector.load %arg9[%c7_185, %c0_186, %c0_187] : memref<9x64x64xbf16, #tpu.memory_space<vmem>>, vector<1x64x64xbf16>
    %189 = vector.shape_cast %188 : vector<1x64x64xbf16> to vector<64x64xbf16>
    %cst_188 = arith.constant dense<0.000000e+00> : vector<96x64xf32>
    %190 = tpu.matmul %187, %189, %cst_188 {dimension_numbers = #tpu.dot_dimension_numbers<[1], [0], [0], [1], [0, 0, 1, 1], [], []>} : vector<96x64xbf16>, vector<64x64xbf16>, vector<96x64xf32> -> vector<96x64xf32>
    %191 = arith.addf %186, %190 : vector<96x64xf32>
    %c18_189 = arith.constant 18 : index
    %c0_190 = arith.constant 0 : index
    %192 = vector.load %arg25[%c18_189, %c0_190] : memref<120x64xbf16, #tpu.memory_space<vmem>>, vector<96x64xbf16>
    %c8_191 = arith.constant 8 : index
    %c0_192 = arith.constant 0 : index
    %c0_193 = arith.constant 0 : index
    %193 = vector.load %arg9[%c8_191, %c0_192, %c0_193] : memref<9x64x64xbf16, #tpu.memory_space<vmem>>, vector<1x64x64xbf16>
    %194 = vector.shape_cast %193 : vector<1x64x64xbf16> to vector<64x64xbf16>
    %cst_194 = arith.constant dense<0.000000e+00> : vector<96x64xf32>
    %195 = tpu.matmul %192, %194, %cst_194 {dimension_numbers = #tpu.dot_dimension_numbers<[1], [0], [0], [1], [0, 0, 1, 1], [], []>} : vector<96x64xbf16>, vector<64x64xbf16>, vector<96x64xf32> -> vector<96x64xf32>
    %196 = arith.addf %191, %195 : vector<96x64xf32>
    %c0_195 = arith.constant 0 : index
    %c0_196 = arith.constant 0 : index
    %197 = vector.load %arg10[%c0_195, %c0_196] : memref<1x64xf32, #tpu.memory_space<vmem>>, vector<1x64xf32>
    %198 = vector.broadcast %197 : vector<1x64xf32> to vector<96x64xf32>
    %199 = arith.addf %196, %198 : vector<96x64xf32>
    %cst_197 = arith.constant 0.00999999977 : f32
    %200 = vector.broadcast %cst_197 : f32 to vector<96x64xf32>
    %201 = arith.mulf %200, %199 : vector<96x64xf32>
    %202 = arith.maximumf %199, %201 : vector<96x64xf32>
    %203 = vector.broadcast %115 : vector<96x1xf32> to vector<96x64xf32>
    %204 = arith.mulf %202, %203 : vector<96x64xf32>
    %205 = arith.truncf %204 : vector<96x64xf32> to vector<96x64xbf16>
    %c0_198 = arith.constant 0 : index
    %c0_199 = arith.constant 0 : index
    %c0_200 = arith.constant 0 : index
    %206 = vector.load %arg18[%c0_198, %c0_199, %c0_200] : memref<4x80x96xbf16, #tpu.memory_space<vmem>>, vector<1x80x96xbf16>
    %207 = vector.shape_cast %206 : vector<1x80x96xbf16> to vector<80x96xbf16>
    %cst_201 = arith.constant dense<0.000000e+00> : vector<80x64xf32>
    %208 = tpu.matmul %207, %205, %cst_201 {dimension_numbers = #tpu.dot_dimension_numbers<[1], [0], [0], [1], [0, 0, 1, 1], [], []>} : vector<80x96xbf16>, vector<96x64xbf16>, vector<80x64xf32> -> vector<80x64xf32>
    %209 = arith.truncf %208 : vector<80x64xf32> to vector<80x64xbf16>
    %c0_202 = arith.constant 0 : index
    %c0_203 = arith.constant 0 : index
    %210 = vector.load %arg23[%c0_202, %c0_203] : memref<80x256xbf16, #tpu.memory_space<vmem>>, vector<80x64xbf16>
    tpu.vector_store %arg23[%c0_202, %c0_203], %209 {strides = array<i32>} : memref<80x256xbf16, #tpu.memory_space<vmem>>, vector<80x64xbf16>,
    %c1_204 = arith.constant 1 : index
    %c0_205 = arith.constant 0 : index
    %c0_206 = arith.constant 0 : index
    %211 = vector.load %arg18[%c1_204, %c0_205, %c0_206] : memref<4x80x96xbf16, #tpu.memory_space<vmem>>, vector<1x80x96xbf16>
    %212 = vector.shape_cast %211 : vector<1x80x96xbf16> to vector<80x96xbf16>
    %cst_207 = arith.constant dense<0.000000e+00> : vector<80x64xf32>
    %213 = tpu.matmul %212, %205, %cst_207 {dimension_numbers = #tpu.dot_dimension_numbers<[1], [0], [0], [1], [0, 0, 1, 1], [], []>} : vector<80x96xbf16>, vector<96x64xbf16>, vector<80x64xf32> -> vector<80x64xf32>
    %214 = arith.truncf %213 : vector<80x64xf32> to vector<80x64xbf16>
    %c0_208 = arith.constant 0 : index
    %c64_209 = arith.constant 64 : index
    %215 = vector.load %arg23[%c0_208, %c64_209] : memref<80x256xbf16, #tpu.memory_space<vmem>>, vector<80x64xbf16>
    tpu.vector_store %arg23[%c0_208, %c64_209], %214 {strides = array<i32>} : memref<80x256xbf16, #tpu.memory_space<vmem>>, vector<80x64xbf16>,
    %c2_210 = arith.constant 2 : index
    %c0_211 = arith.constant 0 : index
    %c0_212 = arith.constant 0 : index
    %216 = vector.load %arg18[%c2_210, %c0_211, %c0_212] : memref<4x80x96xbf16, #tpu.memory_space<vmem>>, vector<1x80x96xbf16>
    %217 = vector.shape_cast %216 : vector<1x80x96xbf16> to vector<80x96xbf16>
    %cst_213 = arith.constant dense<0.000000e+00> : vector<80x64xf32>
    %218 = tpu.matmul %217, %205, %cst_213 {dimension_numbers = #tpu.dot_dimension_numbers<[1], [0], [0], [1], [0, 0, 1, 1], [], []>} : vector<80x96xbf16>, vector<96x64xbf16>, vector<80x64xf32> -> vector<80x64xf32>
    %219 = arith.truncf %218 : vector<80x64xf32> to vector<80x64xbf16>
    %c0_214 = arith.constant 0 : index
    %c128 = arith.constant 128 : index
    %220 = vector.load %arg23[%c0_214, %c128] : memref<80x256xbf16, #tpu.memory_space<vmem>>, vector<80x64xbf16>
    tpu.vector_store %arg23[%c0_214, %c128], %219 {strides = array<i32>} : memref<80x256xbf16, #tpu.memory_space<vmem>>, vector<80x64xbf16>,
    %c3_215 = arith.constant 3 : index
    %c0_216 = arith.constant 0 : index
    %c0_217 = arith.constant 0 : index
    %221 = vector.load %arg18[%c3_215, %c0_216, %c0_217] : memref<4x80x96xbf16, #tpu.memory_space<vmem>>, vector<1x80x96xbf16>
    %222 = vector.shape_cast %221 : vector<1x80x96xbf16> to vector<80x96xbf16>
    %cst_218 = arith.constant dense<0.000000e+00> : vector<80x64xf32>
    %223 = tpu.matmul %222, %205, %cst_218 {dimension_numbers = #tpu.dot_dimension_numbers<[1], [0], [0], [1], [0, 0, 1, 1], [], []>} : vector<80x96xbf16>, vector<96x64xbf16>, vector<80x64xf32> -> vector<80x64xf32>
    %224 = arith.truncf %223 : vector<80x64xf32> to vector<80x64xbf16>
    %c0_219 = arith.constant 0 : index
    %c192 = arith.constant 192 : index
    %225 = vector.load %arg23[%c0_219, %c192] : memref<80x256xbf16, #tpu.memory_space<vmem>>, vector<80x64xbf16>
    tpu.vector_store %arg23[%c0_219, %c192], %224 {strides = array<i32>} : memref<80x256xbf16, #tpu.memory_space<vmem>>, vector<80x64xbf16>,
    %c0_220 = arith.constant 0 : index
    %c0_221 = arith.constant 0 : index
    %226 = vector.load %arg16[%c0_220, %c0_221] : memref<64x1xf32, #tpu.memory_space<vmem>>, vector<64x1xf32>
    %cst_222 = arith.constant 0.000000e+00 : bf16
    %227 = vector.broadcast %cst_222 : bf16 to vector<9x128xbf16>
    %c0_223 = arith.constant 0 : index
    %c0_224 = arith.constant 0 : index
    %228 = vector.load %arg26[%c0_223, %c0_224] : memref<88x128xbf16, #tpu.memory_space<vmem>>, vector<9x128xbf16>
    tpu.vector_store %arg26[%c0_223, %c0_224], %227 {strides = array<i32>} : memref<88x128xbf16, #tpu.memory_space<vmem>>, vector<9x128xbf16>,
    %cst_225 = arith.constant 0.000000e+00 : bf16
    %229 = vector.broadcast %cst_225 : bf16 to vector<15x128xbf16>
    %c73 = arith.constant 73 : index
    %c0_226 = arith.constant 0 : index
    %230 = vector.load %arg26[%c73, %c0_226] : memref<88x128xbf16, #tpu.memory_space<vmem>>, vector<15x128xbf16>
    tpu.vector_store %arg26[%c73, %c0_226], %229 {strides = array<i32>} : memref<88x128xbf16, #tpu.memory_space<vmem>>, vector<15x128xbf16>,
    %cst_227 = arith.constant 0.000000e+00 : f32
    %231 = vector.broadcast %cst_227 : f32 to vector<64x128xf32>
    %c0_228 = arith.constant 0 : index
    %c0_229 = arith.constant 0 : index
    %232 = vector.load %arg23[%c0_228, %c0_229] : memref<80x256xbf16, #tpu.memory_space<vmem>>, vector<64x256xbf16>
    %c0_230 = arith.constant 0 : index
    %c0_231 = arith.constant 0 : index
    %c0_232 = arith.constant 0 : index
    %233 = vector.load %arg12[%c0_230, %c0_231, %c0_232] : memref<4x256x128xbf16, #tpu.memory_space<vmem>>, vector<1x256x128xbf16>
    %234 = vector.shape_cast %233 : vector<1x256x128xbf16> to vector<256x128xbf16>
    %cst_233 = arith.constant dense<0.000000e+00> : vector<64x128xf32>
    %235 = tpu.matmul %232, %234, %cst_233 {dimension_numbers = #tpu.dot_dimension_numbers<[1], [0], [0], [1], [0, 0, 1, 1], [], []>} : vector<64x256xbf16>, vector<256x128xbf16>, vector<64x128xf32> -> vector<64x128xf32>
    %236 = arith.addf %231, %235 : vector<64x128xf32>
    %c1_234 = arith.constant 1 : index
    %c0_235 = arith.constant 0 : index
    %237 = vector.load %arg23[%c1_234, %c0_235] : memref<80x256xbf16, #tpu.memory_space<vmem>>, vector<64x256xbf16>
    %c1_236 = arith.constant 1 : index
    %c0_237 = arith.constant 0 : index
    %c0_238 = arith.constant 0 : index
    %238 = vector.load %arg12[%c1_236, %c0_237, %c0_238] : memref<4x256x128xbf16, #tpu.memory_space<vmem>>, vector<1x256x128xbf16>
    %239 = vector.shape_cast %238 : vector<1x256x128xbf16> to vector<256x128xbf16>
    %cst_239 = arith.constant dense<0.000000e+00> : vector<64x128xf32>
    %240 = tpu.matmul %237, %239, %cst_239 {dimension_numbers = #tpu.dot_dimension_numbers<[1], [0], [0], [1], [0, 0, 1, 1], [], []>} : vector<64x256xbf16>, vector<256x128xbf16>, vector<64x128xf32> -> vector<64x128xf32>
    %241 = arith.addf %236, %240 : vector<64x128xf32>
    %c8_240 = arith.constant 8 : index
    %c0_241 = arith.constant 0 : index
    %242 = vector.load %arg23[%c8_240, %c0_241] : memref<80x256xbf16, #tpu.memory_space<vmem>>, vector<64x256xbf16>
    %c2_242 = arith.constant 2 : index
    %c0_243 = arith.constant 0 : index
    %c0_244 = arith.constant 0 : index
    %243 = vector.load %arg12[%c2_242, %c0_243, %c0_244] : memref<4x256x128xbf16, #tpu.memory_space<vmem>>, vector<1x256x128xbf16>
    %244 = vector.shape_cast %243 : vector<1x256x128xbf16> to vector<256x128xbf16>
    %cst_245 = arith.constant dense<0.000000e+00> : vector<64x128xf32>
    %245 = tpu.matmul %242, %244, %cst_245 {dimension_numbers = #tpu.dot_dimension_numbers<[1], [0], [0], [1], [0, 0, 1, 1], [], []>} : vector<64x256xbf16>, vector<256x128xbf16>, vector<64x128xf32> -> vector<64x128xf32>
    %246 = arith.addf %241, %245 : vector<64x128xf32>
    %c9_246 = arith.constant 9 : index
    %c0_247 = arith.constant 0 : index
    %247 = vector.load %arg23[%c9_246, %c0_247] : memref<80x256xbf16, #tpu.memory_space<vmem>>, vector<64x256xbf16>
    %c3_248 = arith.constant 3 : index
    %c0_249 = arith.constant 0 : index
    %c0_250 = arith.constant 0 : index
    %248 = vector.load %arg12[%c3_248, %c0_249, %c0_250] : memref<4x256x128xbf16, #tpu.memory_space<vmem>>, vector<1x256x128xbf16>
    %249 = vector.shape_cast %248 : vector<1x256x128xbf16> to vector<256x128xbf16>
    %cst_251 = arith.constant dense<0.000000e+00> : vector<64x128xf32>
    %250 = tpu.matmul %247, %249, %cst_251 {dimension_numbers = #tpu.dot_dimension_numbers<[1], [0], [0], [1], [0, 0, 1, 1], [], []>} : vector<64x256xbf16>, vector<256x128xbf16>, vector<64x128xf32> -> vector<64x128xf32>
    %251 = arith.addf %246, %250 : vector<64x128xf32>
    %c0_252 = arith.constant 0 : index
    %c0_253 = arith.constant 0 : index
    %252 = vector.load %arg13[%c0_252, %c0_253] : memref<1x128xf32, #tpu.memory_space<vmem>>, vector<1x128xf32>
    %253 = vector.broadcast %252 : vector<1x128xf32> to vector<64x128xf32>
    %254 = arith.addf %251, %253 : vector<64x128xf32>
    %cst_254 = arith.constant 0.00999999977 : f32
    %255 = vector.broadcast %cst_254 : f32 to vector<64x128xf32>
    %256 = arith.mulf %255, %254 : vector<64x128xf32>
    %257 = arith.maximumf %254, %256 : vector<64x128xf32>
    %258 = vector.broadcast %226 : vector<64x1xf32> to vector<64x128xf32>
    %259 = arith.mulf %257, %258 : vector<64x128xf32>
    %260 = arith.truncf %259 : vector<64x128xf32> to vector<64x128xbf16>
    %c9_255 = arith.constant 9 : index
    %c0_256 = arith.constant 0 : index
    %261 = vector.load %arg26[%c9_255, %c0_256] : memref<88x128xbf16, #tpu.memory_space<vmem>>, vector<64x128xbf16>
    tpu.vector_store %arg26[%c9_255, %c0_256], %260 {strides = array<i32>} : memref<88x128xbf16, #tpu.memory_space<vmem>>, vector<64x128xbf16>,
    %cst_257 = arith.constant 0.000000e+00 : f32
    %262 = vector.broadcast %cst_257 : f32 to vector<64x128xf32>
    %c0_258 = arith.constant 0 : index
    %c0_259 = arith.constant 0 : index
    %263 = vector.load %arg26[%c0_258, %c0_259] : memref<88x128xbf16, #tpu.memory_space<vmem>>, vector<64x128xbf16>
    %c0_260 = arith.constant 0 : index
    %c0_261 = arith.constant 0 : index
    %c0_262 = arith.constant 0 : index
    %264 = vector.load %arg14[%c0_260, %c0_261, %c0_262] : memref<9x128x128xbf16, #tpu.memory_space<vmem>>, vector<1x128x128xbf16>
    %265 = vector.shape_cast %264 : vector<1x128x128xbf16> to vector<128x128xbf16>
    %cst_263 = arith.constant dense<0.000000e+00> : vector<64x128xf32>
    %266 = tpu.matmul %263, %265, %cst_263 {dimension_numbers = #tpu.dot_dimension_numbers<[1], [0], [0], [1], [0, 0, 1, 1], [], []>} : vector<64x128xbf16>, vector<128x128xbf16>, vector<64x128xf32> -> vector<64x128xf32>
    %267 = arith.addf %262, %266 : vector<64x128xf32>
    %c1_264 = arith.constant 1 : index
    %c0_265 = arith.constant 0 : index
    %268 = vector.load %arg26[%c1_264, %c0_265] : memref<88x128xbf16, #tpu.memory_space<vmem>>, vector<64x128xbf16>
    %c1_266 = arith.constant 1 : index
    %c0_267 = arith.constant 0 : index
    %c0_268 = arith.constant 0 : index
    %269 = vector.load %arg14[%c1_266, %c0_267, %c0_268] : memref<9x128x128xbf16, #tpu.memory_space<vmem>>, vector<1x128x128xbf16>
    %270 = vector.shape_cast %269 : vector<1x128x128xbf16> to vector<128x128xbf16>
    %cst_269 = arith.constant dense<0.000000e+00> : vector<64x128xf32>
    %271 = tpu.matmul %268, %270, %cst_269 {dimension_numbers = #tpu.dot_dimension_numbers<[1], [0], [0], [1], [0, 0, 1, 1], [], []>} : vector<64x128xbf16>, vector<128x128xbf16>, vector<64x128xf32> -> vector<64x128xf32>
    %272 = arith.addf %267, %271 : vector<64x128xf32>
    %c2_270 = arith.constant 2 : index
    %c0_271 = arith.constant 0 : index
    %273 = vector.load %arg26[%c2_270, %c0_271] : memref<88x128xbf16, #tpu.memory_space<vmem>>, vector<64x128xbf16>
    %c2_272 = arith.constant 2 : index
    %c0_273 = arith.constant 0 : index
    %c0_274 = arith.constant 0 : index
    %274 = vector.load %arg14[%c2_272, %c0_273, %c0_274] : memref<9x128x128xbf16, #tpu.memory_space<vmem>>, vector<1x128x128xbf16>
    %275 = vector.shape_cast %274 : vector<1x128x128xbf16> to vector<128x128xbf16>
    %cst_275 = arith.constant dense<0.000000e+00> : vector<64x128xf32>
    %276 = tpu.matmul %273, %275, %cst_275 {dimension_numbers = #tpu.dot_dimension_numbers<[1], [0], [0], [1], [0, 0, 1, 1], [], []>} : vector<64x128xbf16>, vector<128x128xbf16>, vector<64x128xf32> -> vector<64x128xf32>
    %277 = arith.addf %272, %276 : vector<64x128xf32>
    %c8_276 = arith.constant 8 : index
    %c0_277 = arith.constant 0 : index
    %278 = vector.load %arg26[%c8_276, %c0_277] : memref<88x128xbf16, #tpu.memory_space<vmem>>, vector<64x128xbf16>
    %c3_278 = arith.constant 3 : index
    %c0_279 = arith.constant 0 : index
    %c0_280 = arith.constant 0 : index
    %279 = vector.load %arg14[%c3_278, %c0_279, %c0_280] : memref<9x128x128xbf16, #tpu.memory_space<vmem>>, vector<1x128x128xbf16>
    %280 = vector.shape_cast %279 : vector<1x128x128xbf16> to vector<128x128xbf16>
    %cst_281 = arith.constant dense<0.000000e+00> : vector<64x128xf32>
    %281 = tpu.matmul %278, %280, %cst_281 {dimension_numbers = #tpu.dot_dimension_numbers<[1], [0], [0], [1], [0, 0, 1, 1], [], []>} : vector<64x128xbf16>, vector<128x128xbf16>, vector<64x128xf32> -> vector<64x128xf32>
    %282 = arith.addf %277, %281 : vector<64x128xf32>
    %c9_282 = arith.constant 9 : index
    %c0_283 = arith.constant 0 : index
    %283 = vector.load %arg26[%c9_282, %c0_283] : memref<88x128xbf16, #tpu.memory_space<vmem>>, vector<64x128xbf16>
    %c4_284 = arith.constant 4 : index
    %c0_285 = arith.constant 0 : index
    %c0_286 = arith.constant 0 : index
    %284 = vector.load %arg14[%c4_284, %c0_285, %c0_286] : memref<9x128x128xbf16, #tpu.memory_space<vmem>>, vector<1x128x128xbf16>
    %285 = vector.shape_cast %284 : vector<1x128x128xbf16> to vector<128x128xbf16>
    %cst_287 = arith.constant dense<0.000000e+00> : vector<64x128xf32>
    %286 = tpu.matmul %283, %285, %cst_287 {dimension_numbers = #tpu.dot_dimension_numbers<[1], [0], [0], [1], [0, 0, 1, 1], [], []>} : vector<64x128xbf16>, vector<128x128xbf16>, vector<64x128xf32> -> vector<64x128xf32>
    %287 = arith.addf %282, %286 : vector<64x128xf32>
    %c10_288 = arith.constant 10 : index
    %c0_289 = arith.constant 0 : index
    %288 = vector.load %arg26[%c10_288, %c0_289] : memref<88x128xbf16, #tpu.memory_space<vmem>>, vector<64x128xbf16>
    %c5_290 = arith.constant 5 : index
    %c0_291 = arith.constant 0 : index
    %c0_292 = arith.constant 0 : index
    %289 = vector.load %arg14[%c5_290, %c0_291, %c0_292] : memref<9x128x128xbf16, #tpu.memory_space<vmem>>, vector<1x128x128xbf16>
    %290 = vector.shape_cast %289 : vector<1x128x128xbf16> to vector<128x128xbf16>
    %cst_293 = arith.constant dense<0.000000e+00> : vector<64x128xf32>
    %291 = tpu.matmul %288, %290, %cst_293 {dimension_numbers = #tpu.dot_dimension_numbers<[1], [0], [0], [1], [0, 0, 1, 1], [], []>} : vector<64x128xbf16>, vector<128x128xbf16>, vector<64x128xf32> -> vector<64x128xf32>
    %292 = arith.addf %287, %291 : vector<64x128xf32>
    %c16_294 = arith.constant 16 : index
    %c0_295 = arith.constant 0 : index
    %293 = vector.load %arg26[%c16_294, %c0_295] : memref<88x128xbf16, #tpu.memory_space<vmem>>, vector<64x128xbf16>
    %c6_296 = arith.constant 6 : index
    %c0_297 = arith.constant 0 : index
    %c0_298 = arith.constant 0 : index
    %294 = vector.load %arg14[%c6_296, %c0_297, %c0_298] : memref<9x128x128xbf16, #tpu.memory_space<vmem>>, vector<1x128x128xbf16>
    %295 = vector.shape_cast %294 : vector<1x128x128xbf16> to vector<128x128xbf16>
    %cst_299 = arith.constant dense<0.000000e+00> : vector<64x128xf32>
    %296 = tpu.matmul %293, %295, %cst_299 {dimension_numbers = #tpu.dot_dimension_numbers<[1], [0], [0], [1], [0, 0, 1, 1], [], []>} : vector<64x128xbf16>, vector<128x128xbf16>, vector<64x128xf32> -> vector<64x128xf32>
    %297 = arith.addf %292, %296 : vector<64x128xf32>
    %c17_300 = arith.constant 17 : index
    %c0_301 = arith.constant 0 : index
    %298 = vector.load %arg26[%c17_300, %c0_301] : memref<88x128xbf16, #tpu.memory_space<vmem>>, vector<64x128xbf16>
    %c7_302 = arith.constant 7 : index
    %c0_303 = arith.constant 0 : index
    %c0_304 = arith.constant 0 : index
    %299 = vector.load %arg14[%c7_302, %c0_303, %c0_304] : memref<9x128x128xbf16, #tpu.memory_space<vmem>>, vector<1x128x128xbf16>
    %300 = vector.shape_cast %299 : vector<1x128x128xbf16> to vector<128x128xbf16>
    %cst_305 = arith.constant dense<0.000000e+00> : vector<64x128xf32>
    %301 = tpu.matmul %298, %300, %cst_305 {dimension_numbers = #tpu.dot_dimension_numbers<[1], [0], [0], [1], [0, 0, 1, 1], [], []>} : vector<64x128xbf16>, vector<128x128xbf16>, vector<64x128xf32> -> vector<64x128xf32>
    %302 = arith.addf %297, %301 : vector<64x128xf32>
    %c18_306 = arith.constant 18 : index
    %c0_307 = arith.constant 0 : index
    %303 = vector.load %arg26[%c18_306, %c0_307] : memref<88x128xbf16, #tpu.memory_space<vmem>>, vector<64x128xbf16>
    %c8_308 = arith.constant 8 : index
    %c0_309 = arith.constant 0 : index
    %c0_310 = arith.constant 0 : index
    %304 = vector.load %arg14[%c8_308, %c0_309, %c0_310] : memref<9x128x128xbf16, #tpu.memory_space<vmem>>, vector<1x128x128xbf16>
    %305 = vector.shape_cast %304 : vector<1x128x128xbf16> to vector<128x128xbf16>
    %cst_311 = arith.constant dense<0.000000e+00> : vector<64x128xf32>
    %306 = tpu.matmul %303, %305, %cst_311 {dimension_numbers = #tpu.dot_dimension_numbers<[1], [0], [0], [1], [0, 0, 1, 1], [], []>} : vector<64x128xbf16>, vector<128x128xbf16>, vector<64x128xf32> -> vector<64x128xf32>
    %307 = arith.addf %302, %306 : vector<64x128xf32>
    %c0_312 = arith.constant 0 : index
    %c0_313 = arith.constant 0 : index
    %308 = vector.load %arg15[%c0_312, %c0_313] : memref<1x128xf32, #tpu.memory_space<vmem>>, vector<1x128xf32>
    %309 = vector.broadcast %308 : vector<1x128xf32> to vector<64x128xf32>
    %310 = arith.addf %307, %309 : vector<64x128xf32>
    %cst_314 = arith.constant 0.00999999977 : f32
    %311 = vector.broadcast %cst_314 : f32 to vector<64x128xf32>
    %312 = arith.mulf %311, %310 : vector<64x128xf32>
    %313 = arith.maximumf %310, %312 : vector<64x128xf32>
    %314 = vector.broadcast %226 : vector<64x1xf32> to vector<64x128xf32>
    %315 = arith.mulf %313, %314 : vector<64x128xf32>
    %c0_315 = arith.constant 0 : index
    %c0_316 = arith.constant 0 : index
    %316 = vector.load %arg19[%c0_315, %c0_316] : memref<1x128xf32, #tpu.memory_space<vmem>>, vector<1x128xf32>
    %317 = vector.broadcast %316 : vector<1x128xf32> to vector<64x128xf32>
    %318 = arith.mulf %315, %317 : vector<64x128xf32>
    %cst_317 = arith.constant dense<0.000000e+00> : vector<64xf32>
    %319 = vector.multi_reduction <add>, %318, %cst_317 [1] : vector<64x128xf32> to vector<64xf32>
    %320 = vector.shape_cast %319 : vector<64xf32> to vector<64x1xf32>
    %c0_318 = arith.constant 0 : index
    %c0_319 = arith.constant 0 : index
    %321 = vector.load %arg20[%c0_318, %c0_319] : memref<1x1xf32, #tpu.memory_space<vmem>>, vector<1x1xf32>
    %322 = vector.broadcast %321 : vector<1x1xf32> to vector<64x1xf32>
    %323 = arith.addf %320, %322 : vector<64x1xf32>
    %c0_320 = arith.constant 0 : index
    %c0_321 = arith.constant 0 : index
    %324 = vector.load %arg16[%c0_320, %c0_321] : memref<64x1xf32, #tpu.memory_space<vmem>>, vector<64x1xf32>
    %325 = arith.mulf %323, %324 : vector<64x1xf32>
    %c0_322 = arith.constant 0 : index
    %c0_323 = arith.constant 0 : index
    %c0_324 = arith.constant 0 : index
    %326 = vector.load %arg21[%c0_322, %c0_323, %c0_324] : memref<1x64x1xf32, #tpu.memory_space<vmem>>, vector<1x64x1xf32>
    %327 = vector.shape_cast %326 : vector<1x64x1xf32> to vector<64x1xf32>
    %328 = vector.shape_cast %325 : vector<64x1xf32> to vector<1x64x1xf32>
    tpu.vector_store %arg21[%c0_322, %c0_323, %c0_324], %328 {strides = array<i32>} : memref<1x64x1xf32, #tpu.memory_space<vmem>>, vector<1x64x1xf32>,
    return
  }
  func.func @transform_0(%arg0: i32) -> (i32, i32, i32) {
    %c0_i32 = arith.constant 0 : i32
    %c0_i32_0 = arith.constant 0 : i32
    %c0_i32_1 = arith.constant 0 : i32
    return %arg0, %c0_i32, %c0_i32_0 : i32, i32, i32
  }
  func.func @transform_1(%arg0: i32) -> (i32, i32, i32) {
    %c0_i32 = arith.constant 0 : i32
    %c0_i32_0 = arith.constant 0 : i32
    %c0_i32_1 = arith.constant 0 : i32
    %c0_i32_2 = arith.constant 0 : i32
    return %c0_i32, %c0_i32_0, %c0_i32_1 : i32, i32, i32
  }
  func.func @transform_2(%arg0: i32) -> (i32, i32) {
    %c0_i32 = arith.constant 0 : i32
    %c0_i32_0 = arith.constant 0 : i32
    %c0_i32_1 = arith.constant 0 : i32
    return %c0_i32, %c0_i32_0 : i32, i32
  }
  func.func @transform_3(%arg0: i32) -> (i32, i32, i32) {
    %c0_i32 = arith.constant 0 : i32
    %c0_i32_0 = arith.constant 0 : i32
    %c0_i32_1 = arith.constant 0 : i32
    %c0_i32_2 = arith.constant 0 : i32
    return %c0_i32, %c0_i32_0, %c0_i32_1 : i32, i32, i32
  }
  func.func @transform_4(%arg0: i32) -> (i32, i32) {
    %c0_i32 = arith.constant 0 : i32
    %c0_i32_0 = arith.constant 0 : i32
    %c0_i32_1 = arith.constant 0 : i32
    return %c0_i32, %c0_i32_0 : i32, i32
  }
  func.func @transform_5(%arg0: i32) -> (i32, i32) {
    %c0_i32 = arith.constant 0 : i32
    %c0_i32_0 = arith.constant 0 : i32
    %c0_i32_1 = arith.constant 0 : i32
    return %c0_i32, %c0_i32_0 : i32, i32
  }
  func.func @transform_6(%arg0: i32) -> (i32, i32, i32) {
    %c0_i32 = arith.constant 0 : i32
    %c0_i32_0 = arith.constant 0 : i32
    %c0_i32_1 = arith.constant 0 : i32
    %c0_i32_2 = arith.constant 0 : i32
    return %c0_i32, %c0_i32_0, %c0_i32_1 : i32, i32, i32
  }
  func.func @transform_7(%arg0: i32) -> (i32, i32) {
    %c0_i32 = arith.constant 0 : i32
    %c0_i32_0 = arith.constant 0 : i32
    %c0_i32_1 = arith.constant 0 : i32
    return %c0_i32, %c0_i32_0 : i32, i32
  }
  func.func @transform_8(%arg0: i32) -> (i32, i32, i32) {
    %c0_i32 = arith.constant 0 : i32
    %c0_i32_0 = arith.constant 0 : i32
    %c0_i32_1 = arith.constant 0 : i32
    %c0_i32_2 = arith.constant 0 : i32
    return %c0_i32, %c0_i32_0, %c0_i32_1 : i32, i32, i32
  }
  func.func @transform_9(%arg0: i32) -> (i32, i32) {
    %c0_i32 = arith.constant 0 : i32
    %c0_i32_0 = arith.constant 0 : i32
    %c0_i32_1 = arith.constant 0 : i32
    return %c0_i32, %c0_i32_0 : i32, i32
  }
  func.func @transform_10(%arg0: i32) -> (i32, i32) {
    %c0_i32 = arith.constant 0 : i32
    %c0_i32_0 = arith.constant 0 : i32
    %c0_i32_1 = arith.constant 0 : i32
    return %c0_i32, %c0_i32_0 : i32, i32
  }
  func.func @transform_11(%arg0: i32) -> (i32, i32, i32) {
    %c0_i32 = arith.constant 0 : i32
    %c0_i32_0 = arith.constant 0 : i32
    %c0_i32_1 = arith.constant 0 : i32
    %c0_i32_2 = arith.constant 0 : i32
    return %c0_i32, %c0_i32_0, %c0_i32_1 : i32, i32, i32
  }
  func.func @transform_12(%arg0: i32) -> (i32, i32) {
    %c0_i32 = arith.constant 0 : i32
    %c0_i32_0 = arith.constant 0 : i32
    %c0_i32_1 = arith.constant 0 : i32
    return %c0_i32, %c0_i32_0 : i32, i32
  }
  func.func @transform_13(%arg0: i32) -> (i32, i32, i32) {
    %c0_i32 = arith.constant 0 : i32
    %c0_i32_0 = arith.constant 0 : i32
    %c0_i32_1 = arith.constant 0 : i32
    %c0_i32_2 = arith.constant 0 : i32
    return %c0_i32, %c0_i32_0, %c0_i32_1 : i32, i32, i32
  }
  func.func @transform_14(%arg0: i32) -> (i32, i32) {
    %c0_i32 = arith.constant 0 : i32
    %c0_i32_0 = arith.constant 0 : i32
    %c0_i32_1 = arith.constant 0 : i32
    return %c0_i32, %c0_i32_0 : i32, i32
  }
  func.func @transform_15(%arg0: i32) -> (i32, i32) {
    %c0_i32 = arith.constant 0 : i32
    %c0_i32_0 = arith.constant 0 : i32
    %c0_i32_1 = arith.constant 0 : i32
    return %c0_i32, %c0_i32_0 : i32, i32
  }
  func.func @transform_16(%arg0: i32) -> (i32, i32, i32) {
    %c0_i32 = arith.constant 0 : i32
    %c0_i32_0 = arith.constant 0 : i32
    %c0_i32_1 = arith.constant 0 : i32
    %c0_i32_2 = arith.constant 0 : i32
    return %c0_i32, %c0_i32_0, %c0_i32_1 : i32, i32, i32
  }
  func.func @transform_17(%arg0: i32) -> (i32, i32, i32) {
    %c0_i32 = arith.constant 0 : i32
    %c0_i32_0 = arith.constant 0 : i32
    %c0_i32_1 = arith.constant 0 : i32
    %c0_i32_2 = arith.constant 0 : i32
    return %c0_i32, %c0_i32_0, %c0_i32_1 : i32, i32, i32
  }
  func.func @transform_18(%arg0: i32) -> (i32, i32) {
    %c0_i32 = arith.constant 0 : i32
    %c0_i32_0 = arith.constant 0 : i32
    %c0_i32_1 = arith.constant 0 : i32
    return %c0_i32, %c0_i32_0 : i32, i32
  }
  func.func @transform_19(%arg0: i32) -> (i32, i32) {
    %c0_i32 = arith.constant 0 : i32
    %c0_i32_0 = arith.constant 0 : i32
    %c0_i32_1 = arith.constant 0 : i32
    return %c0_i32, %c0_i32_0 : i32, i32
  }
  func.func @transform_20(%arg0: i32) -> (i32, i32, i32) {
    %c0_i32 = arith.constant 0 : i32
    %c0_i32_0 = arith.constant 0 : i32
    %c0_i32_1 = arith.constant 0 : i32
    return %arg0, %c0_i32, %c0_i32_0 : i32, i32, i32
  }
}

</mosaic_0001>

<bundles_post_ra>
// kernel: discriminator_forward.1
= control target key start
LH: loop header
LB: loop body
LE: loop exit
PB: predicated region body
PF: predicated region fallthrough
CT: control target
= control target key end

     0   :  { %vm278_vm0 = vsmask.f32 7424  ;;  %vm455_vm1 = vcmask 261120   ;;  %vm8659_vm2 = vcmask 519168   ;;  %v19989_v4 = vmov 0   ;;  %s19992_s27 = smov 32   ;;  %s24683_s1 = inlined_call_operand.vmem [shape: bf16[4,32,32], index: 1, kind: input, shape index: {}]   ;;  %s24684_s0 = inlined_call_operand.vmem [shape: bf16[1,344,32], index: 0, kind: input, shape index: {}]   ;;  %s24685_s5 = inlined_call_operand.vmem [shape: f32[320,1], index: 5, kind: input, shape index: {}]   ;;  %s24686_s3 = inlined_call_operand.vmem [shape: bf16[9,32,32], index: 3, kind: input, shape index: {}]   ;;  %s24687_s2 = inlined_call_operand.vmem [shape: f32[1,32], index: 2, kind: input, shape index: {}]   ;;  %s24688_s16 = inlined_call_operand.vmem [shape: bf16[4,112,320], index: 16, kind: input, shape index: {}]   ;;  %s24689_s4 = inlined_call_operand.vmem [shape: f32[1,32], index: 4, kind: input, shape index: {}]   ;;  %s24690_s10 = inlined_call_operand.vmem [shape: f32[96,1], index: 10, kind: input, shape index: {}]   ;;  %s24691_s6 = inlined_call_operand.vmem [shape: bf16[4,128,64], index: 6, kind: input, shape index: {}]   ;;  %s24692_s8 = inlined_call_operand.vmem [shape: bf16[9,64,64], index: 8, kind: input, shape index: {}]   ;;  %s24693_s7 = inlined_call_operand.vmem [shape: f32[1,64], index: 7, kind: input, shape index: {}]   ;;  %s24694_s17 = inlined_call_operand.vmem [shape: bf16[4,80,96], index: 17, kind: input, shape index: {}]   ;;  %s24695_s9 = inlined_call_operand.vmem [shape: f32[1,64], index: 9, kind: input, shape index: {}]   ;;  %s24696_s15 = inlined_call_operand.vmem [shape: f32[64,1], index: 15, kind: input, shape index: {}]   ;;  %s24697_s11 = inlined_call_operand.vmem [shape: bf16[4,256,128], index: 11, kind: input, shape index: {}]   ;;  %s24698_s13 = inlined_call_operand.vmem [shape: bf16[9,128,128], index: 13, kind: input, shape index: {}]   ;;  %s24699_s12 = inlined_call_operand.vmem [shape: f32[1,128], index: 12, kind: input, shape index: {}]   ;;  %s24700_s19 = inlined_call_operand.<no memory space> [shape: f32[1,1], index: 19, kind: input, shape index: {}]   ;;  %s24701_s14 = inlined_call_operand.vmem [shape: f32[1,128], index: 14, kind: input, shape index: {}]   ;;  %s24702_s18 = inlined_call_operand.vmem [shape: f32[1,128], index: 18, kind: input, shape index: {}]   ;;  %s24703_s20 = inlined_call_operand.vmem [shape: f32[1,64,1], index: 20, kind: output, shape index: {}]  }
   0x1   :  { %24777 = sst [smem:[#allocation95_spill]] %s24683_s1  ;;  %19388 = vset.pattern.permute.xlu0 %v19989_v4  ;;  %11996 = vst [vmem:[#allocation6 + $0x28] sm:$0xf] %v19989_v4  ;;  %11986 = vst [vmem:[#allocation6] sm:$0xf] %v19989_v4  ;;  %19389 = vset.pattern.permute.xlu1 %v19989_v4  ;;  %vm111_vm3 = vcmask 253952  }
   0x2   :  { %24778 = sst [smem:[#allocation96_spill]] %s24684_s0  ;;  %s24782_s23 = sld [smem:[#allocation95_spill]]  ;;  %8671 = vst.msk [vmem:[#allocation5 + $0x38] sm:$0xf] %vm8659_vm2, %v19989_v4  ;;  %8660 = vst.msk [vmem:[#allocation5] sm:$0xf] %vm8659_vm2, %v19989_v4 }
   0x3   :  { %24779 = sst [smem:[#allocation97_spill]] %s24685_s5  ;;  %s24783_s26 = sld [smem:[#allocation96_spill]]  ;;  %vm112_vm4 = vsmask.f32 256  ;;  %vm108_vm6 = vcmask 257024   ;;  %vm3792_vm11 = vcmask 1046528  }
   0x4   :  { %24780 = sst [smem:[#allocation98_spill]] %s24686_s3  ;;  %s24784_s24 = sld [smem:[#allocation97_spill]]  ;;  %vm20631_vm5 = vmand %vm111_vm3, %vm112_vm4  ;;  %vm118_vm7 = vsmask.f32 7938  ;;  %109 = vst.msk [vmem:[#allocation4] sm:$0xf] %vm108_vm6, %v19989_v4 }
   0x5   :  { %24781 = sst [smem:[#allocation99_spill]] %s24687_s2  ;;  %vm20639_vm8 = vmand %vm108_vm6, %vm118_vm7  ;;  %110 = vst.msk [vmem:[#allocation4 + $0x4] sm:$0xf] %vm108_vm6, %v19989_v4  ;;  %s24790_s1 = sld [smem:[#allocation98_spill]]  ;;  %vm2509_vm9 = vsmask.f32 4368 }
   0x6   :  { %123 = vst.msk [vmem:[#allocation4 + $0xac] sm:$0xf] %vm108_vm6, %v19989_v4  ;;  %124 = vst.msk [vmem:[#allocation4 + $0xb0] sm:$0xf] %vm108_vm6, %v19989_v4  ;;  %s24793_s5 = sld [smem:[#allocation99_spill]]  ;;  %vm19991_vm12 = vmmov 0  }
   0x7   :  { %vm20773_vm10 = vmor %vm112_vm4, %vm2509_vm9  ;;  %vm7305_vm13 = vcmask 523264   ;;  %vm7887_vm14 = vcmask 523520   ;;  %s19994_s29 = smov 96   ;;  %vm8263_vm15 = vcmask 785920   ;;  %vm9060_vm3 = vcmask 1043456  }
   0x8   :  { %v20103_v0 = vld [vmem:[%s24782_s23] sm:$0xff]   ;;  %v20108_v1 = vld [vmem:[%s24782_s23 + $0x8] sm:$0xff]   ;;  %v19394_v5 = vld [vmem:[%s24782_s23 + $0x10] sm:$0xff]  }
   0x9   :  { %17434 = vmatprep.subr.bf16.mxu0 %v20103_v0  ;;  %v19392_v2 = vld [vmem:[%s24783_s26] sm:$0xff]   ;;  %v19393_v3 = vld [vmem:[%s24783_s26 + $0x8] sm:$0xff]   ;;  %v19395_v7 = vld [vmem:[%s24783_s26 + $0x10] sm:$0xff]   ;;  %17390 = vmatprep.subr.bf16.mxu1 %v19394_v5 }
   0xa   :  { %17435 = vmatpush3.bf16.msra.mxu0 %v20103_v0  ;;  %17438 = vmatprep.mubr.msk.bf16.mxu0 %vm455_vm1, %v19392_v2  ;;  %v280_v6 = vshrl.u32 %v19392_v2, 16  ;;  %v282_v8 = vshll.u32 %v19392_v2, 16  ;;  %v19396_v9 = vld [vmem:[%s24783_s26 + $0x18] sm:$0xff]   ;;  %v287_v10 = vshll.u32 %v19393_v3, 16  ;;  %v291_v14 = vshrl.u32 %v19393_v3, 16  ;;  %v19398_v16 = vld [vmem:[%s24783_s26 + $0x20] sm:$0xff]  }
   0xb   :  { %17436 = vmatprep.subr.bf16.mxu0 %v20108_v1  ;;  %17391 = vmatpush3.bf16.msra.mxu1 %v19394_v5  ;;  %v19397_v11 = vld [vmem:[%s24782_s23 + $0x18] sm:$0xff]   ;;  %v295_v15 = vshll.u32 %v19395_v7, 16  ;;  %v299_v20 = vshrl.u32 %v19395_v7, 16  ;;  %v303_v21 = vshll.u32 %v19396_v9, 16  ;;  %v19399_v23 = vld [vmem:[%s24783_s26 + $0x28] sm:$0xff]   ;;  %v307_v24 = vshrl.u32 %v19396_v9, 16 }
   0xc   :  { %v284_v12 = vrot.slane %v282_v8, 1  ;;  %v289_v13 = vrot.slane %v287_v10, 1  ;;  %17392 = vmatprep.subr.bf16.mxu1 %v19397_v11  ;;  %v311_v25 = vshll.u32 %v19398_v16, 16  ;;  %v19400_v29 = vld [vmem:[%s24783_s26 + $0x30] sm:$0xff]   ;;  %v19402_v30 = vld [vmem:[%s24782_s23 + $0x20] sm:$0xff]   ;;  %v315_v32 = vshrl.u32 %v19398_v16, 16 }
   0xd   :  { %v297_v19 = vrot.slane %v295_v15, 1  ;;  %v305_v28 = vrot.slane %v303_v21, 1  ;;  %v319_v34 = vshll.u32 %v19399_v23, 16  ;;  %v19403_v35 = vld [vmem:[%s24782_s23 + $0x28] sm:$0xff]   ;;  %v19401_v39 = vld [vmem:[%s24783_s26 + $0x38] sm:$0xff]   ;;  %v327_v40 = vshll.u32 %v19400_v29, 16 }
   0xe   :  { %17437 = vmatpush3.bf16.msra.mxu0 %v20108_v1  ;;  %v285_v17 = vor.u32 %v284_v12, %v280_v6  ;;  %v293_v18 = vor.u32 %v291_v14, %v289_v13  ;;  %v313_v31 = vrot.slane %v311_v25, 1  ;;  %v323_v42 = vshrl.u32 %v19399_v23, 16  ;;  %v20179_v47 = vld [vmem:[%s24783_s26 + $0x40] sm:$0xff]   ;;  %v20185_v51 = vld [vmem:[%s24783_s26 + $0x48] sm:$0xff]   ;;  %v20198_v59 = vld [vmem:[%s24783_s26 + $0x50] sm:$0xff]  }
   0xf   :  { %17393 = vmatpush3.bf16.msra.mxu1 %v19397_v11  ;;  %v301_v27 = vor.u32 %v299_v20, %v297_v19  ;;  %17478 = vmatprep.subr.bf16.mxu0 %v19402_v30  ;;  %v309_v36 = vor.u32 %v307_v24, %v305_v28  ;;  %v321_v38 = vrot.slane %v319_v34, 1  ;;  %v331_v44 = vshrl.u32 %v19400_v29, 16  ;;  %v19404_v60 = vld [vmem:[%s24783_s26 + $0x8] sm:$0xff]   ;;  %v19405_v5 = vld [vmem:[%s24783_s26 + $0x10] sm:$0xff]   ;;  %v19407_v10 = vld [vmem:[%s24783_s26 + $0x18] sm:$0xff]  }
  0x10   :  { %v290_v22 = vsel %vm278_vm0, %v285_v17, %v289_v13  ;;  %v298_v26 = vsel %vm278_vm0, %v293_v18, %v297_v19  ;;  %18742 = vmatprep.subr.bf16.mxu1 %v20103_v0  ;;  %v317_v37 = vor.u32 %v315_v32, %v313_v31  ;;  %v335_v45 = vshll.u32 %v19401_v39, 16  ;;  %v20233_v13 = vld [vmem:[%s24783_s26 + $0x68] sm:$0xff]   ;;  %v19429_v17 = vld [vmem:[%s24782_s23 + $0x30] sm:$0xff]  }
  0x11   :  { %17439 = vmatmul.mubr.msk.bf16.vlgmr.msra.gmra.mrb[0].mxu0 %vm455_vm1, %v19393_v3  ;;  %17394 = vmatprep.mubr.msk.bf16.mxu1 %vm455_vm1, %v290_v22  ;;  %v306_v33 = vsel %vm278_vm0, %v301_v27, %v305_v28  ;;  %v314_v41 = vsel %vm278_vm0, %v309_v36, %v313_v31  ;;  %v329_v46 = vrot.slane %v327_v40, 1  ;;  %v325_v48 = vor.u32 %v323_v42, %v321_v38  ;;  %v20252_v25 = vld [vmem:[%s24783_s26 + $0x70] sm:$0xff]   ;;  %v20282_v40 = vld [vmem:[%s24783_s26 + $0x80] sm:$0xff]  }
  0x12   :  { %17442 = vmatprep.mubr.msk.bf16.mxu0 %vm455_vm1, %v19395_v7  ;;  %17395 = vmatmul.mubr.msk.bf16.vlgmr.msra.gmra.mrb[0].mxu1 %vm455_vm1, %v298_v26  ;;  %v322_v43 = vsel %vm278_vm0, %v317_v37, %v321_v38  ;;  %v337_v50 = vrot.slane %v335_v45, 1  ;;  %v343_v52 = vshll.u32 %v20179_v47, 16  ;;  %v339_v54 = vshrl.u32 %v19401_v39, 16  ;;  %v19411_v26 = vld [vmem:[%s24783_s26 + $0x28] sm:$0xff]   ;;  %v19438_v37 = vld [vmem:[%s24782_s23 + $0x38] sm:$0xff]   ;;  %v19412_v38 = vld [vmem:[%s24783_s26 + $0x30] sm:$0xff]  }
  0x13   :  { %17398 = vmatprep.mubr.msk.bf16.mxu1 %vm455_vm1, %v306_v33  ;;  %17479 = vmatpush3.bf16.msra.mxu0 %v19402_v30  ;;  %v333_v49 = vor.u32 %v331_v44, %v329_v46  ;;  %v330_v53 = vsel %vm278_vm0, %v325_v48, %v329_v46  ;;  %v347_v56 = vshrl.u32 %v20179_v47, 16  ;;  %v351_v57 = vshll.u32 %v20185_v51, 16  ;;  %v20291_v45 = vld [vmem:[%s24783_s26 + $0x88] sm:$0xff]   ;;  %v68_v48 = vld [vmem:[%s24784_s24] sm:$0xff] }
  0x14   :  { %17480 = vmatprep.subr.bf16.mxu0 %v19403_v35  ;;  %18744 = vmatpush3.bf16.msra.mxu1 %v20103_v0  ;;  %v345_v58 = vrot.slane %v343_v52, 1  ;;  %v341_v61 = vor.u32 %v339_v54, %v337_v50  ;;  %v20207_v0 = vld [vmem:[%s24783_s26 + $0x58] sm:$0xff]   ;;  %v355_v3 = vshrl.u32 %v20185_v51, 16  ;;  %v363_v7 = vshrl.u32 %v20198_v59, 16 }
  0x15   :  { %18743 = vmatprep.subr.bf16.mxu1 %v20108_v1  ;;  %v338_v55 = vsel %vm278_vm0, %v333_v49, %v337_v50  ;;  %v353_v63 = vrot.slane %v351_v57, 1  ;;  %v367_v8 = vshll.u32 %v20207_v0, 16  ;;  %v371_v19 = vshrl.u32 %v20207_v0, 16  ;;  %2151 = vperm.xlu0 %19388, %v68_v48   ;;  %v84_v48 = vld [vmem:[%s24784_s24 + $0x80] sm:$0xff] }
  0x16   :  { %v349_v62 = vor.u32 %v347_v56, %v345_v58  ;;  %v346_v2 = vsel %vm278_vm0, %v341_v61, %v345_v58  ;;  %v383_v20 = vshll.u32 %v20233_v13, 16  ;;  %v391_v31 = vshll.u32 %v20252_v25, 16  ;;  %v19419_v56 = vld [vmem:[%s24783_s26 + $0x48] sm:$0xff]   ;;  %v20314_v58 = vld [vmem:[%s24783_s26 + $0x90] sm:$0xff]  }
  0x17   :  { %17481 = vmatpush3.bf16.msra.mxu0 %v19403_v35  ;;  %v357_v12 = vor.u32 %v355_v3, %v353_v63  ;;  %v369_v15 = vrot.slane %v367_v8, 1  ;;  %v387_v33 = vshrl.u32 %v20233_v13, 16  ;;  %v395_v34 = vshrl.u32 %v20252_v25, 16  ;;  %v69_v61 = vld [vmem:[%s24784_s24 + $0x8] sm:$0xff]  ;;  %v71_v3 = vld [vmem:[%s24784_s24 + $0x18] sm:$0xff] }
  0x18   :  { %18745 = vmatpush3.bf16.msra.mxu1 %v20108_v1  ;;  %v359_v1 = vshll.u32 %v20198_v59, 16  ;;  %v354_v6 = vsel %vm278_vm0, %v349_v62, %v353_v63  ;;  %17522 = vmatprep.subr.bf16.mxu0 %v19429_v17  ;;  %v385_v28 = vrot.slane %v383_v20, 1  ;;  %v407_v46 = vshll.u32 %v20282_v40, 16  ;;  %v20326_v63 = vld [vmem:[%s24783_s26 + $0x98] sm:$0xff]  }
  0x19   :  { %17443 = vmatmul.mubr.msk.bf16.gmra.mrb[4].mxu0 %vm455_vm1, %v19396_v9  ;;  %v20223_v9 = vld [vmem:[%s24783_s26 + $0x60] sm:$0xff]   ;;  %v373_v27 = vor.u32 %v371_v19, %v369_v15  ;;  %v415_v54 = vshll.u32 %v20291_v45, 16  ;;  %2156 = vperm.xlu0 %19388, %v69_v61   ;;  %v419_v8 = vshrl.u32 %v20291_v45, 16  ;;  %v19436_v61 = vld [vmem:[%s24783_s26 + $0x98] sm:$0xff]  }
  0x1a   :  { %17446 = vmatprep.mubr.msk.bf16.mxu0 %vm455_vm1, %v19398_v16  ;;  %17399 = vmatmul.mubr.msk.bf16.gmra.mrb[4].mxu1 %vm455_vm1, %v314_v41  ;;  %v361_v11 = vrot.slane %v359_v1, 1  ;;  %v375_v16 = vshll.u32 %v20223_v9, 16  ;;  %v379_v22 = vshrl.u32 %v20223_v9, 16  ;;  %v19415_v41 = vld [vmem:[%s24783_s26 + $0x38] sm:$0xff]   ;;  %v389_v42 = vor.u32 %v387_v33, %v385_v28  ;;  %v19424_v33 = vld [vmem:[%s24783_s26 + $0x60] sm:$0xff]  }
  0x1b   :  { %17402 = vmatprep.mubr.msk.bf16.mxu1 %vm455_vm1, %v322_v43  ;;  %v409_v57 = vrot.slane %v407_v46, 1  ;;  %v19431_v20 = vld [vmem:[%s24783_s26 + $0xa0] ss:$0 sps:$4 sm:$0x11]   ;;  %v83_v46 = vld [vmem:[%s24784_s24 + $0x78] sm:$0xff] }
  0x1c   :  { %v365_v14 = vor.u32 %v363_v7, %v361_v11  ;;  %v362_v18 = vsel %vm278_vm0, %v357_v12, %v361_v11  ;;  %v377_v24 = vrot.slane %v375_v16, 1  ;;  %v431_v12 = vshll.u32 %v20326_v63, 16  ;;  %v19420_v16 = vld [vmem:[%s24783_s26 + $0x50] sm:$0xff]  }
  0x1e   :  { %v370_v21 = vsel %vm278_vm0, %v365_v14, %v369_v15  ;;  %v381_v30 = vor.u32 %v379_v22, %v377_v24  ;;  %v378_v32 = vsel %vm278_vm0, %v373_v27, %v377_v24  ;;  %v73_v14 = vld [vmem:[%s24784_s24 + $0x28] sm:$0xff]  ;;  %v74_v15 = vld [vmem:[%s24784_s24 + $0x30] sm:$0xff]  ;;  %v433_v22 = vrot.slane %v431_v12, 1  ;;  %v76_v24 = vld [vmem:[%s24784_s24 + $0x40] sm:$0xff] }
  0x1f   :  { %v435_v27 = vshrl.u32 %v20326_v63, 16 }
  0x20   :  { %v386_v35 = vsel %vm278_vm0, %v381_v30, %v385_v28  ;;  %v439_v28 = vshll.u32 %v19431_v20, 16 }
  0x21   :  { %17447 = vmatmul.mubr.msk.bf16.gmra.mrb[8].mxu0 %vm455_vm1, %v19399_v23  ;;  %v19408_v23 = vld [vmem:[%s24783_s26 + $0x20] sm:$0xff]  }
  0x22   :  { %17450 = vmatprep.mubr.msk.bf16.mxu0 %vm455_vm1, %v19400_v29  ;;  %17403 = vmatmul.mubr.msk.bf16.gmra.mrb[8].mxu1 %vm455_vm1, %v330_v53  ;;  %v20262_v29 = vld [vmem:[%s24783_s26 + $0x78] sm:$0xff]   ;;  %v411_v53 = vshrl.u32 %v20282_v40, 16 }
  0x23   :  { %17406 = vmatprep.mubr.msk.bf16.mxu1 %vm455_vm1, %v338_v55  ;;  %v399_v36 = vshll.u32 %v20262_v29, 16  ;;  %v403_v50 = vshrl.u32 %v20262_v29, 16  ;;  %v19416_v55 = vld [vmem:[%s24783_s26 + $0x40] sm:$0xff]  }
  0x24   :  { %v413_v1 = vor.u32 %v411_v53, %v409_v57  ;;  %v19439_v53 = vld [vmem:[%s24783_s26 + $0x8] sm:$0xff]  }
  0x25   :  { %v401_v44 = vrot.slane %v399_v36, 1  ;;  %v441_v36 = vrot.slane %v439_v28, 1 }
  0x27   :  { %v405_v62 = vor.u32 %v403_v50, %v401_v44  ;;  %v19433_v50 = vld [vmem:[%s24783_s26 + $0x80] sm:$0xff]  }
  0x29   :  { %17451 = vmatmul.mubr.msk.bf16.gmra.mrb[12].mxu0 %vm455_vm1, %v19401_v39  ;;  %v393_v39 = vrot.slane %v391_v31, 1  ;;  %v410_v7 = vsel %vm278_vm0, %v405_v62, %v409_v57  ;;  %v77_v31 = vld [vmem:[%s24784_s24 + $0x48] sm:$0xff]  ;;  %v90_v57 = vld [vmem:[%s24784_s24 + $0xb0] sm:$0xff]  ;;  %v1554_v62 = vshrl.u32 %v19439_v53, 16 }
  0x2a   :  { %17482 = vmatprep.mubr.msk.bf16.mxu0 %vm455_vm1, %v19404_v60  ;;  %17407 = vmatmul.mubr.msk.bf16.gmra.mrb[12].mxu1 %vm455_vm1, %v346_v2  ;;  %v70_v60 = vld [vmem:[%s24784_s24 + $0x10] sm:$0xff]  ;;  %v417_v2 = vrot.slane %v415_v54, 1  ;;  %v87_v54 = vld [vmem:[%s24784_s24 + $0x98] sm:$0xff] }
  0x2b   :  { %17410 = vmatprep.mubr.msk.bf16.mxu1 %vm455_vm1, %v354_v6  ;;  %v397_v43 = vor.u32 %v395_v34, %v393_v39  ;;  %v394_v49 = vsel %vm278_vm0, %v389_v42, %v393_v39  ;;  %2161 = vperm.xlu1 %19389, %v70_v60   ;;  %v423_v6 = vshll.u32 %v20314_v58, 16  ;;  %v19427_v34 = vld [vmem:[%s24783_s26 + $0x68] sm:$0xff]   ;;  %v82_v42 = vld [vmem:[%s24784_s24 + $0x70] sm:$0xff] }
  0x2c   :  { %v418_v11 = vsel %vm278_vm0, %v413_v1, %v417_v2  ;;  %v421_v19 = vor.u32 %v419_v8, %v417_v2  ;;  %v19435_v60 = vld [vmem:[%s24783_s26 + $0x90] sm:$0xff]   ;;  %v93_v8 = vld [vmem:[%s24784_s24 + $0xc8] sm:$0xff] }
  0x2d   :  { %v402_v52 = vsel %vm278_vm0, %v397_v43, %v401_v44  ;;  %v19428_v43 = vld [vmem:[%s24783_s26 + $0x70] sm:$0xff]   ;;  %v19432_v44 = vld [vmem:[%s24783_s26 + $0x78] sm:$0xff]  }
  0x2f   :  { %2166 = vperm.xlu1 %19389, %v71_v3   ;;  %v91_v3 = vld [vmem:[%s24784_s24 + $0xb8] sm:$0xff] }
  0x31   :  { %17483 = vmatmul.mubr.msk.bf16.vlgmr.msra.gmra.mrb[0].mxu0 %vm455_vm1, %v19405_v5  ;;  %v72_v5 = vld [vmem:[%s24784_s24 + $0x20] sm:$0xff] }
  0x32   :  { %17486 = vmatprep.mubr.msk.bf16.mxu0 %vm455_vm1, %v19407_v10  ;;  %17523 = vmatpush3.bf16.msra.mxu0 %v19429_v17  ;;  %v427_v10 = vshrl.u32 %v20314_v58, 16  ;;  %v425_v17 = vrot.slane %v423_v6, 1 }
  0x33   :  { %17411 = vmatmul.mubr.msk.bf16.gmra.mrb[16].mxu1 %vm455_vm1, %v362_v18  ;;  %17524 = vmatprep.subr.bf16.mxu0 %v19438_v37  ;;  %v19423_v18 = vld [vmem:[%s24783_s26 + $0x58] sm:$0xff]  }
  0x34   :  { %17414 = vmatprep.mubr.msk.bf16.mxu1 %vm455_vm1, %v370_v21  ;;  %2171 = vperm.xlu0 %19388, %v72_v5   ;;  %v429_v21 = vor.u32 %v427_v10, %v425_v17  ;;  %v19441_v5 = vld [vmem:[%s24783_s26 + $0x18] sm:$0xff]   ;;  %v94_v10 = vld [vmem:[%s24784_s24 + $0xd0] sm:$0xff] }
  0x35   :  { %2176 = vperm.xlu1 %19389, %v73_v14   ;;  %v1569_v12 = vshll.u32 %v19441_v5, 16 }
  0x36   :  { %17525 = vmatpush3.bf16.msra.mxu0 %v19438_v37  ;;  %v434_v30 = vsel %vm278_vm0, %v429_v21, %v433_v22  ;;  %v79_v37 = vld [vmem:[%s24784_s24 + $0x58] sm:$0xff] }
  0x38   :  { %2181 = vperm.xlu0 %19388, %v74_v15  }
  0x39   :  { %17487 = vmatmul.mubr.msk.bf16.gmra.mrb[4].mxu0 %vm455_vm1, %v19408_v23  ;;  %v75_v23 = vld [vmem:[%s24784_s24 + $0x38] sm:$0xff] }
  0x3a   :  { %17490 = vmatprep.mubr.msk.bf16.mxu0 %vm455_vm1, %v19411_v26  ;;  %v426_v26 = vsel %vm278_vm0, %v421_v19, %v425_v17  ;;  %2186 = vperm.xlu1 %19389, %v75_v23   ;;  %v96_v19 = vld [vmem:[%s24784_s24 + $0xe0] sm:$0xff]  ;;  %v19444_v23 = vld [vmem:[%s24783_s26 + $0x30] sm:$0xff]  }
  0x3b   :  { %17415 = vmatmul.mubr.msk.bf16.gmra.mrb[20].mxu1 %vm455_vm1, %v378_v32  ;;  %v78_v32 = vld [vmem:[%s24784_s24 + $0x50] sm:$0xff] }
  0x3c   :  { %17418 = vmatprep.mubr.msk.bf16.mxu1 %vm455_vm1, %v386_v35  ;;  %2191 = vperm.xlu0 %19388, %v76_v24   ;;  %v437_v35 = vor.u32 %v435_v27, %v433_v22  ;;  %v97_v24 = vld [vmem:[%s24784_s24 + $0xe8] sm:$0xff] }
  0x3e   :  { %2196 = vperm.xlu1 %19389, %v77_v31   ;;  %v442_v39 = vsel %vm278_vm0, %v437_v35, %v441_v36 }
  0x40   :  { %2201 = vperm.xlu0 %19388, %v78_v32  }
  0x41   :  { %17491 = vmatmul.mubr.msk.bf16.gmra.mrb[8].mxu0 %vm455_vm1, %v19412_v38  ;;  %v80_v38 = vld [vmem:[%s24784_s24 + $0x60] sm:$0xff] }
  0x42   :  { %17494 = vmatprep.mubr.msk.bf16.mxu0 %vm455_vm1, %v19415_v41  ;;  %2206 = vperm.xlu1 %19389, %v79_v37   ;;  %v81_v41 = vld [vmem:[%s24784_s24 + $0x68] sm:$0xff] }
  0x43   :  { %17419 = vmatmul.mubr.msk.bf16.gmra.mrb[24].mxu1 %vm455_vm1, %v394_v49  ;;  %v86_v49 = vld [vmem:[%s24784_s24 + $0x90] sm:$0xff] }
  0x44   :  { %17422 = vmatprep.mubr.msk.bf16.mxu1 %vm455_vm1, %v402_v52  ;;  %2211 = vperm.xlu0 %19388, %v80_v38   ;;  %v19434_v52 = vld [vmem:[%s24783_s26 + $0x88] sm:$0xff]  }
  0x46   :  { %2216 = vperm.xlu1 %19389, %v81_v41   ;;  %v101_v41 = vld [vmem:[%s24784_s24 + $0x108] sm:$0xff] }
  0x48   :  { %2221 = vperm.xlu0 %19388, %v82_v42   ;;  %v102_v42 = vld [vmem:[%s24784_s24 + $0x110] sm:$0xff] }
  0x49   :  { %17495 = vmatmul.mubr.msk.bf16.gmra.mrb[12].mxu0 %vm455_vm1, %v19416_v55  ;;  %v1556_v55 = vshll.u32 %v19439_v53, 16 }
  0x4a   :  { %17498 = vmatprep.mubr.msk.bf16.mxu0 %vm455_vm1, %v19419_v56  ;;  %2226 = vperm.xlu1 %19389, %v83_v46   ;;  %v89_v56 = vld [vmem:[%s24784_s24 + $0xa8] sm:$0xff]  ;;  %v1597_v46 = vshrl.u32 %v19444_v23, 16 }
  0x4b   :  { %17423 = vmatmul.mubr.msk.bf16.gmra.mrb[28].mxu1 %vm455_vm1, %v410_v7  ;;  %v1558_v1 = vrot.slane %v1556_v55, 1  ;;  %v19442_v7 = vld [vmem:[%s24783_s26 + $0x20] sm:$0xff]   ;;  %v105_v55 = vld [vmem:[%s24784_s24 + $0x128] sm:$0xff] }
  0x4c   :  { %17426 = vmatprep.mubr.msk.bf16.mxu1 %vm455_vm1, %v418_v11  ;;  %2231 = vperm.xlu0 %19388, %v84_v48   ;;  %v19437_v11 = vld [vmem:[%s24783_s26 + $0xa0] sm:$0xff]   ;;  %v1577_v17 = vshll.u32 %v19442_v7, 16 }
  0x4e   :  { %v1579_v22 = vrot.slane %v1577_v17, 1  ;;  %v19451_v17 = vld [vmem:[%s24783_s26 + $0x68] sm:$0xff]  }
  0x50   :  { %2241 = vperm.xlu0 %19388, %v86_v49  }
  0x51   :  { %17499 = vmatmul.mubr.msk.bf16.gmra.mrb[16].mxu0 %vm455_vm1, %v19420_v16  ;;  %v1573_v16 = vshrl.u32 %v19441_v5, 16 }
  0x52   :  { %17502 = vmatprep.mubr.msk.bf16.mxu0 %vm455_vm1, %v19423_v18  ;;  %v95_v18 = vld [vmem:[%s24784_s24 + $0xd8] sm:$0xff] }
  0x53   :  { %17427 = vmatmul.mubr.msk.bf16.gmra.mrb[32].mxu1 %vm455_vm1, %v426_v26  ;;  %v98_v26 = vld [vmem:[%s24784_s24 + $0xf0] sm:$0xff] }
  0x54   :  { %17430 = vmatprep.mubr.msk.bf16.mxu1 %vm455_vm1, %v434_v30  ;;  %v1581_v30 = vshrl.u32 %v19442_v7, 16  ;;  %v19450_v7 = vld [vmem:[%s24783_s26 + $0x60] sm:$0xff]  }
  0x56   :  { %v1583_v36 = vor.u32 %v1581_v30, %v1579_v22 }
  0x59   :  { %17503 = vmatmul.mubr.msk.bf16.gmra.mrb[20].mxu0 %vm455_vm1, %v19424_v33  ;;  %v1593_v33 = vshll.u32 %v19444_v23, 16 }
  0x5a   :  { %17506 = vmatprep.mubr.msk.bf16.mxu0 %vm455_vm1, %v19427_v34  ;;  %v99_v34 = vld [vmem:[%s24784_s24 + $0xf8] sm:$0xff] }
  0x5b   :  { %17431 = vmatmul.mubr.msk.bf16.gmra.mrb[36].mxu1 %vm455_vm1, %v442_v39  ;;  %v1595_v38 = vrot.slane %v1593_v33, 1  ;;  %v19446_v39 = vld [vmem:[%s24783_s26 + $0x40] sm:$0xff]  }
  0x5c   :  { %17454 = vmatprep.mubr.msk.bf16.mxu1 %vm455_vm1, %v20179_v47  ;;  %v85_v47 = vld [vmem:[%s24784_s24 + $0x88] sm:$0xff]  ;;  %v1609_v49 = vshll.u32 %v19446_v39, 16  ;;  %v19454_v33 = vld [vmem:[%s24783_s26 + $0x80] sm:$0xff]  }
  0x5d   :  { %2236 = vperm.xlu1 %19389, %v85_v47   ;;  %v1599_v53 = vor.u32 %v1597_v46, %v1595_v38 }
  0x61   :  { %17507 = vmatmul.mubr.msk.bf16.gmra.mrb[24].mxu0 %vm455_vm1, %v19428_v43  ;;  %2246 = vperm.xlu1 %19389, %v87_v54  }
  0x62   :  { %17510 = vmatprep.mubr.msk.bf16.mxu0 %vm455_vm1, %v19432_v44 }
  0x63   :  { %17455 = vmatmul.mubr.msk.bf16.vlgmr.msra.gmra.mrb[16].mxu1 %vm455_vm1, %v20185_v51  ;;  %v88_v51 = vld [vmem:[%s24784_s24 + $0xa0] sm:$0xff] }
  0x64   :  { %17458 = vmatprep.mubr.msk.bf16.mxu1 %vm455_vm1, %v20198_v59  ;;  %v19440_v59 = vld [vmem:[%s24783_s26 + $0x10] sm:$0xff]   ;;  %2251 = vperm.xlu0 %19388, %v88_v51   ;;  %v1611_v51 = vrot.slane %v1609_v49, 1 }
  0x65   :  { %2256 = vperm.xlu1 %19389, %v89_v56   ;;  %v1561_v2 = vshll.u32 %v19440_v59, 16  ;;  %v1565_v14 = vshrl.u32 %v19440_v59, 16  ;;  %v19448_v59 = vld [vmem:[%s24783_s26 + $0x50] sm:$0xff]  }
  0x66   :  { %v106_v56 = vld [vmem:[%s24784_s24 + $0x130] sm:$0xff] }
  0x67   :  { %v1563_v6 = vrot.slane %v1561_v2, 1  ;;  %v1625_v2 = vshll.u32 %v19448_v59, 16 }
  0x68   :  { %2261 = vperm.xlu0 %19388, %v90_v57  }
  0x69   :  { %17511 = vmatmul.mubr.msk.bf16.gmra.mrb[28].mxu0 %vm455_vm1, %v19433_v50  ;;  %2266 = vperm.xlu1 %19389, %v91_v3   ;;  %v1567_v20 = vor.u32 %v1565_v14, %v1563_v6  ;;  %v103_v50 = vld [vmem:[%s24784_s24 + $0x118] sm:$0xff] }
  0x6a   :  { %17514 = vmatprep.mubr.msk.bf16.mxu0 %vm455_vm1, %v19434_v52  ;;  %v107_v3 = vld [vmem:[%s24784_s24 + $0x138] sm:$0xff] }
  0x6b   :  { %17459 = vmatmul.mubr.msk.bf16.gmra.mrb[20].mxu1 %vm455_vm1, %v20207_v0  ;;  %v92_v0 = vld [vmem:[%s24784_s24 + $0xc0] sm:$0xff] }
  0x6c   :  { %17462 = vmatprep.mubr.msk.bf16.mxu1 %vm455_vm1, %v20223_v9  ;;  %v1559_v9 = vor.u32 %v1558_v1, %v1554_v62  ;;  %2271 = vperm.xlu0 %19388, %v92_v0  }
  0x6d   :  { %2276 = vperm.xlu1 %19389, %v93_v8  }
  0x6e   :  { %v1564_v15 = vsel %vm278_vm0, %v1559_v9, %v1563_v6  ;;  %v1627_v6 = vrot.slane %v1625_v2, 1 }
  0x70   :  { %2281 = vperm.xlu0 %19388, %v94_v10  }
  0x71   :  { %17515 = vmatmul.mubr.msk.bf16.gmra.mrb[32].mxu0 %vm455_vm1, %v19435_v60  ;;  %2286 = vperm.xlu1 %19389, %v95_v18  }
  0x72   :  { %17518 = vmatprep.mubr.msk.bf16.mxu0 %vm455_vm1, %v19436_v61  ;;  %v1613_v61 = vshrl.u32 %v19446_v39, 16  ;;  %v19455_v39 = vld [vmem:[%s24783_s26 + $0x88] sm:$0xff]  }
  0x73   :  { %17463 = vmatmul.mubr.msk.bf16.gmra.mrb[24].mxu1 %vm455_vm1, %v20233_v13  ;;  %v1571_v13 = vrot.slane %v1569_v12, 1  ;;  %v1681_v46 = vshll.u32 %v19455_v39, 16 }
  0x74   :  { %17466 = vmatprep.mubr.msk.bf16.mxu1 %vm455_vm1, %v20252_v25  ;;  %v19443_v25 = vld [vmem:[%s24783_s26 + $0x28] sm:$0xff]   ;;  %2291 = vperm.xlu0 %19388, %v96_v19   ;;  %v1615_v5 = vor.u32 %v1613_v61, %v1611_v51 }
  0x75   :  { %v1575_v21 = vor.u32 %v1573_v16, %v1571_v13  ;;  %v1585_v27 = vshll.u32 %v19443_v25, 16  ;;  %v1572_v28 = vsel %vm278_vm0, %v1567_v20, %v1571_v13  ;;  %2296 = vperm.xlu1 %19389, %v97_v24   ;;  %v1589_v32 = vshrl.u32 %v19443_v25, 16  ;;  %v19452_v25 = vld [vmem:[%s24783_s26 + $0x70] sm:$0xff]  }
  0x76   :  { %v1649_v20 = vshll.u32 %v19451_v17, 16  ;;  %v1653_v24 = vshrl.u32 %v19451_v17, 16 }
  0x77   :  { %v1580_v31 = vsel %vm278_vm0, %v1575_v21, %v1579_v22  ;;  %v1587_v35 = vrot.slane %v1585_v27, 1  ;;  %v1645_v22 = vshrl.u32 %v19450_v7, 16 }
  0x78   :  { %2301 = vperm.xlu0 %19388, %v98_v26   ;;  %v1657_v26 = vshll.u32 %v19452_v25, 16  ;;  %v1651_v27 = vrot.slane %v1649_v20, 1 }
  0x79   :  { %17519 = vmatmul.mubr.msk.bf16.gmra.mrb[36].mxu0 %vm455_vm1, %v19437_v11  ;;  %2306 = vperm.xlu1 %19389, %v99_v34   ;;  %v1591_v37 = vor.u32 %v1589_v32, %v1587_v35  ;;  %v1588_v44 = vsel %vm278_vm0, %v1583_v36, %v1587_v35  ;;  %v1629_v11 = vshrl.u32 %v19448_v59, 16  ;;  %v1661_v35 = vshrl.u32 %v19452_v25, 16  ;;  %v19458_v59 = vld [vmem:[%s24783_s26 + $0xa0] sm:$0xff]  }
  0x7a   :  { %17526 = vmatprep.mubr.msk.bf16.mxu0 %vm455_vm1, %v1564_v15  ;;  %v1641_v15 = vshll.u32 %v19450_v7, 16  ;;  %v1659_v32 = vrot.slane %v1657_v26, 1 }
  0x7b   :  { %17467 = vmatmul.mubr.msk.bf16.gmra.mrb[28].mxu1 %vm455_vm1, %v20262_v29  ;;  %v100_v29 = vld [vmem:[%s24784_s24 + $0x100] sm:$0xff]  ;;  %v1596_v48 = vsel %vm278_vm0, %v1591_v37, %v1595_v38  ;;  %v1631_v18 = vor.u32 %v1629_v11, %v1627_v6  ;;  %v1673_v37 = vshll.u32 %v19454_v33, 16 }
  0x7c   :  { %17470 = vmatprep.mubr.msk.bf16.mxu1 %vm455_vm1, %v20282_v40  ;;  %v19445_v40 = vld [vmem:[%s24783_s26 + $0x38] sm:$0xff]   ;;  %2311 = vperm.xlu0 %19388, %v100_v29   ;;  %v1643_v13 = vrot.slane %v1641_v15, 1 }
  0x7d   :  { %v1601_v43 = vshll.u32 %v19445_v40, 16  ;;  %2316 = vperm.xlu1 %19389, %v101_v41   ;;  %v1605_v47 = vshrl.u32 %v19445_v40, 16  ;;  %v1663_v41 = vor.u32 %v1661_v35, %v1659_v32 }
  0x7e   :  { %v1647_v30 = vor.u32 %v1645_v22, %v1643_v13 }
  0x7f   :  { %v1603_v52 = vrot.slane %v1601_v43, 1  ;;  %v1675_v43 = vrot.slane %v1673_v37, 1 }
  0x80   :  { %2321 = vperm.xlu0 %19388, %v102_v42   ;;  %v1652_v29 = vsel %vm278_vm0, %v1647_v30, %v1651_v27 }
  0x81   :  { %17527 = vmatmul.mubr.msk.bf16.vlgmr.msra.gmra.mrb[0].mxu0 %vm455_vm1, %v1572_v28  ;;  %2326 = vperm.xlu1 %19389, %v103_v50   ;;  %v1607_v54 = vor.u32 %v1605_v47, %v1603_v52  ;;  %v1604_v60 = vsel %vm278_vm0, %v1599_v53, %v1603_v52  ;;  %v19453_v28 = vld [vmem:[%s24783_s26 + $0x78] sm:$0xff]   ;;  %v1677_v47 = vshrl.u32 %v19454_v33, 16  ;;  %v1685_v50 = vshrl.u32 %v19455_v39, 16 }
  0x82   :  { %17530 = vmatprep.mubr.msk.bf16.mxu0 %vm455_vm1, %v1580_v31  ;;  %v1655_v31 = vor.u32 %v1653_v24, %v1651_v27  ;;  %v1665_v34 = vshll.u32 %v19453_v28, 16  ;;  %v1669_v36 = vshrl.u32 %v19453_v28, 16  ;;  %v1683_v52 = vrot.slane %v1681_v46, 1 }
  0x83   :  { %17471 = vmatmul.mubr.msk.bf16.gmra.mrb[32].mxu1 %vm455_vm1, %v20291_v45  ;;  %v104_v45 = vld [vmem:[%s24784_s24 + $0x120] sm:$0xff]  ;;  %v1612_v62 = vsel %vm278_vm0, %v1607_v54, %v1611_v51  ;;  %v1679_v53 = vor.u32 %v1677_v47, %v1675_v43 }
  0x84   :  { %17474 = vmatprep.mubr.msk.bf16.mxu1 %vm455_vm1, %v20314_v58  ;;  %v19447_v58 = vld [vmem:[%s24783_s26 + $0x48] sm:$0xff]   ;;  %2331 = vperm.xlu0 %19388, %v104_v45   ;;  %v1660_v40 = vsel %vm278_vm0, %v1655_v31, %v1659_v32  ;;  %v1667_v38 = vrot.slane %v1665_v34, 1  ;;  %v1687_v54 = vor.u32 %v1685_v50, %v1683_v52  ;;  %v19460_v31 = vld [vmem:[%s24790_s1 + $0x10] sm:$0xff]  }
  0x85   :  { %v1617_v57 = vshll.u32 %v19447_v58, 16  ;;  %2336 = vperm.xlu1 %19389, %v105_v55   ;;  %v1621_v1 = vshrl.u32 %v19447_v58, 16  ;;  %v19457_v58 = vld [vmem:[%s24783_s26 + $0x98] sm:$0xff]   ;;  %17566 = vmatprep.subr.bf16.mxu1 %v19460_v31  ;;  %v2957_v50 = vld [vmem:[#allocation4 + $0x4] sm:$0xf] }
  0x86   :  { %v1671_v42 = vor.u32 %v1669_v36, %v1667_v38  ;;  %v1697_v55 = vshll.u32 %v19457_v58, 16  ;;  %v1701_v61 = vshrl.u32 %v19457_v58, 16  ;;  %17567 = vmatpush3.bf16.msra.mxu1 %v19460_v31 }
  0x87   :  { %v1619_v0 = vrot.slane %v1617_v57, 1 }
  0x88   :  { %2341 = vperm.xlu0 %19388, %v106_v56   ;;  %v1676_v49 = vsel %vm278_vm0, %v1671_v42, %v1675_v43  ;;  %v1684_v56 = vsel %vm278_vm0, %v1679_v53, %v1683_v52 }
  0x89   :  { %17531 = vmatmul.mubr.msk.bf16.gmra.mrb[4].mxu0 %vm455_vm1, %v1588_v44  ;;  %2346 = vperm.xlu1 %19389, %v107_v3   ;;  %v1623_v9 = vor.u32 %v1621_v1, %v1619_v0  ;;  %v1620_v10 = vsel %vm278_vm0, %v1615_v5, %v1619_v0  ;;  %v19456_v44 = vld [vmem:[%s24783_s26 + $0x90] sm:$0xff]   ;;  %v1699_v1 = vrot.slane %v1697_v55, 1  ;;  %v19459_v3 = vld [vmem:[%s24783_s26 + $0xa8] ss:$0 sps:$4 sm:$0x11]  }
  0x8a   :  { %17534 = vmatprep.mubr.msk.bf16.mxu0 %vm455_vm1, %v1596_v48  ;;  %v1668_v48 = vsel %vm278_vm0, %v1663_v41, %v1667_v38  ;;  %v1689_v45 = vshll.u32 %v19456_v44, 16  ;;  %v1693_v57 = vshrl.u32 %v19456_v44, 16 }
  0x8b   :  { %17475 = vmatmul.mubr.msk.bf16.gmra.mrb[36].mxu1 %vm455_vm1, %v20326_v63  ;;  %v19449_v63 = vld [vmem:[%s24783_s26 + $0x58] sm:$0xff]   ;;  %v1628_v12 = vsel %vm278_vm0, %v1623_v9, %v1627_v6  ;;  %v1703_v0 = vor.u32 %v1701_v61, %v1699_v1  ;;  %v1709_v9 = vshrl.u32 %v19458_v59, 16  ;;  %v1713_v6 = vshll.u32 %v19459_v3, 16 }
  0x8c   :  { %v1633_v8 = vshll.u32 %v19449_v63, 16  ;;  %v1637_v14 = vshrl.u32 %v19449_v63, 16  ;;  %v1691_v51 = vrot.slane %v1689_v45, 1 }
  0x8e   :  { %v1635_v16 = vrot.slane %v1633_v8, 1  ;;  %v1695_v2 = vor.u32 %v1693_v57, %v1691_v51 }
  0x90   :  { %v1639_v19 = vor.u32 %v1637_v14, %v1635_v16  ;;  %v1636_v21 = vsel %vm278_vm0, %v1631_v18, %v1635_v16  ;;  %v1700_v5 = vsel %vm278_vm0, %v1695_v2, %v1699_v1  ;;  %v114_v14 = vld [vmem:[#allocation4 + $0x8] sm:$0x1] }
  0x91   :  { %17535 = vmatmul.mubr.msk.bf16.gmra.mrb[8].mxu0 %vm455_vm1, %v1604_v60  ;;  %v1692_v60 = vsel %vm278_vm0, %v1687_v54, %v1691_v51  ;;  %v115_v15 = vsel %vm20631_vm5, 0, %v114_v14  ;;  %v120_v16 = vld [vmem:[#allocation4 + $0xa8] sm:$0xf] }
  0x92   :  { %17538 = vmatprep.mubr.msk.bf16.mxu0 %vm455_vm1, %v1612_v62  ;;  %v1644_v23 = vsel %vm278_vm0, %v1639_v19, %v1643_v13  ;;  %v1705_v62 = vshll.u32 %v19458_v59, 16  ;;  %116 = vst [vmem:[#allocation4 + $0x8] sm:$0x1] %v115_v15  ;;  %v121_v18 = vsel %vm20639_vm8, 0, %v120_v16  ;;  %v20722_v59 = vld [vmem:[%s24793_s5] ss:$0 sm:$0xff] }
  0x93   :  { %122 = vst [vmem:[#allocation4 + $0xa8] sm:$0xf] %v121_v18 }
  0x94   :  { %v1707_v63 = vrot.slane %v1705_v62, 1  ;;  %v20707_v47 = vpop.permute.xlu0 %2151 }
  0x95   :  { %24791 = vst [vmem:[#allocation9_spill] sm:$0xff] %v20707_v47 }
  0x96   :  { %v1708_v7 = vsel %vm278_vm0, %v1703_v0, %v1707_v63  ;;  %v1711_v8 = vor.u32 %v1709_v9, %v1707_v63 }
  0x98   :  { %v20724_v55 = vpop.permute.xlu0 %2156 }
  0x99   :  { %17539 = vmatmul.mubr.msk.bf16.gmra.mrb[12].mxu0 %vm455_vm1, %v1620_v10  ;;  %v1715_v10 = vrot.slane %v1713_v6, 1  ;;  %24794 = vst [vmem:[#allocation11_spill] sm:$0xff] %v20724_v55 }
  0x9a   :  { %17542 = vmatprep.mubr.msk.bf16.mxu0 %vm455_vm1, %v1628_v12  ;;  %v24785_v12 = vmov 0 }
  0x9b   :  { %v1716_v11 = vsel %vm278_vm0, %v1711_v8, %v1715_v10  ;;  %v24786_v12 = vsel %vm20631_vm5, 4294967295, %v24785_v12 }
  0x9c   :  { %24787 = vst [vmem:[#allocation8_spill] sm:$0xff] %v24786_v12 }
  0xa1   :  { %17543 = vmatmul.mubr.msk.bf16.gmra.mrb[16].mxu0 %vm455_vm1, %v1636_v21 }
  0xa2   :  { %17546 = vmatprep.mubr.msk.bf16.mxu0 %vm455_vm1, %v1644_v23 }
  0xa9   :  { %17547 = vmatmul.mubr.msk.bf16.gmra.mrb[20].mxu0 %vm455_vm1, %v1652_v29  ;;  %v19461_v29 = vld [vmem:[%s24790_s1 + $0x18] sm:$0xff]  }
  0xaa   :  { %17550 = vmatprep.mubr.msk.bf16.mxu0 %vm455_vm1, %v1660_v40  ;;  %17568 = vmatprep.subr.bf16.mxu1 %v19461_v29  ;;  %v20727_v1 = vpop.permute.xlu1 %2161 }
  0xab   :  { %17569 = vmatpush3.bf16.msra.mxu1 %v19461_v29  ;;  %24795 = vst [vmem:[#allocation12_spill] sm:$0xff] %v20727_v1 }
  0xb1   :  { %17551 = vmatmul.mubr.msk.bf16.gmra.mrb[24].mxu0 %vm455_vm1, %v1668_v48 }
  0xb2   :  { %17554 = vmatprep.mubr.msk.bf16.mxu0 %vm455_vm1, %v1676_v49  ;;  %v2956_v49 = vld [vmem:[#allocation4] sm:$0xf] }
  0xb3   :  { %v20715_v53 = vcombine.low %v2956_v49, %v2957_v50  ;;  %v20740_v18 = vpop.permute.xlu0 %2171  ;;  %v20744_v49 = vpop.permute.xlu1 %2166 }
  0xb4   :  { %24798 = vst [vmem:[#allocation15_spill] sm:$0xff] %v20740_v18  ;;  %24800 = vst [vmem:[#allocation17_spill] sm:$0xff] %v20744_v49 }
  0xb5   :  { %24792 = vst [vmem:[#allocation10_spill] sm:$0xff] %v20715_v53  ;;  %v3112_v62 = vshll.u32 %v20715_v53, 16  ;;  %v3110_v15 = vshrl.u32 %v20715_v53, 16 }
  0xb7   :  { %v3114_v16 = vrot.slane %v3112_v62, 1 }
  0xb9   :  { %17555 = vmatmul.mubr.msk.bf16.gmra.mrb[28].mxu0 %vm455_vm1, %v1684_v56 }
  0xba   :  { %17558 = vmatprep.mubr.msk.bf16.mxu0 %vm455_vm1, %v1692_v60 }
  0xc1   :  { %17559 = vmatmul.mubr.msk.bf16.gmra.mrb[32].mxu0 %vm455_vm1, %v1700_v5 }
  0xc2   :  { %17562 = vmatprep.mubr.msk.bf16.mxu0 %vm455_vm1, %v1708_v7 }
  0xc9   :  { %17563 = vmatmul.mubr.msk.bf16.gmra.mrb[36].mxu0 %vm455_vm1, %v1716_v11 }
  0xe5   :  { %v17396_v19 = vpop.f32.mrb[0].mxu1 }
  0xe6   :  { %v550_v13 = vpop.f32.mrb[1].mxu1 }
  0xe7   :  { %v17397_v25 = vpop.f32.mrb[2].mxu1 }
  0xe8   :  { %v553_v20 = vpop.f32.mrb[3].mxu1 }
  0xed   :  { %v20653_v21 = vpop.f32.mrb[4].mxu1 }
  0xee   :  { %v20655_v22 = vpop.f32.mrb[5].mxu1 }
  0xef   :  { %v20657_v23 = vpop.f32.mrb[6].mxu1 }
  0xf0   :  { %v20659_v24 = vpop.f32.mrb[7].mxu1 }
  0xf5   :  { %v20661_v26 = vpop.f32.mrb[8].mxu1 }
  0xf6   :  { %v20663_v27 = vpop.f32.mrb[9].mxu1 }
  0xf7   :  { %v20665_v4 = vpop.f32.mrb[10].mxu1 }
  0xf8   :  { %v20667_v28 = vpop.f32.mrb[11].mxu1 }
  0xfd   :  { %v20669_v30 = vpop.f32.mrb[12].mxu1 }
  0xfe   :  { %v20674_v32 = vpop.f32.mrb[13].mxu1 }
  0xff   :  { %v20676_v33 = vpop.f32.mrb[14].mxu1 }
 0x100   :  { %v20678_v34 = vpop.f32.mrb[15].mxu1 }
 0x136   :  { %v20683_v35 = vpop.f32.mrb[16].mxu1 }
 0x137   :  { %v20685_v40 = vpop.f32.mrb[17].mxu1 }
 0x138   :  { %v20687_v36 = vpop.f32.mrb[18].mxu1 }
 0x139   :  { %v20689_v37 = vpop.f32.mrb[19].mxu1 }
 0x13e   :  { %v20691_v38 = vpop.f32.mrb[20].mxu1 }
 0x13f   :  { %v20693_v39 = vpop.f32.mrb[21].mxu1 }
 0x140   :  { %v20695_v41 = vpop.f32.mrb[22].mxu1 }
 0x141   :  { %v20697_v42 = vpop.f32.mrb[23].mxu1 }
 0x146   :  { %v20699_v43 = vpop.f32.mrb[24].mxu1 }
 0x147   :  { %v20701_v44 = vpop.f32.mrb[25].mxu1 }
 0x148   :  { %v20703_v46 = vpop.f32.mrb[26].mxu1 }
 0x149   :  { %v20705_v48 = vpop.f32.mrb[27].mxu1 }
 0x14e   :  { %v20709_v45 = vpop.f32.mrb[28].mxu1 }
 0x14f   :  { %v20711_v52 = vpop.f32.mrb[29].mxu1 }
 0x150   :  { %v20713_v58 = vpop.f32.mrb[30].mxu1 }
 0x151   :  { %v20717_v54 = vpop.f32.mrb[31].mxu1 }
 0x154   :  { %v17528_v51 = vpop.f32.mrb[0].mxu0 }
 0x155   :  { %v18746_v56 = vadd.f32 %v17528_v51, %v17396_v19  ;;  %v1823_v57 = vpop.f32.mrb[1].mxu0 }
 0x156   :  { %v18747_v60 = vadd.f32 %v1823_v57, %v550_v13  ;;  %v17529_v61 = vpop.f32.mrb[2].mxu0  ;;  %v20731_v9 = vpop.f32.mrb[32].mxu1 }
 0x157   :  { %v2031_v2 = vadd.f32 %v18746_v56, %v20722_v59  ;;  %v18748_v3 = vadd.f32 %v17529_v61, %v17397_v25  ;;  %v1826_v0 = vpop.f32.mrb[3].mxu0  ;;  %v20734_v8 = vpop.f32.mrb[33].mxu1 }
 0x158   :  { %v2029_v63 = vadd.f32 %v18747_v60, %v20722_v59  ;;  %v18749_v5 = vadd.f32 %v1826_v0, %v553_v20  ;;  %24796 = vst [vmem:[#allocation13_spill] sm:$0xff] %v20734_v8  ;;  %v20737_v14 = vpop.f32.mrb[34].mxu1 }
 0x159   :  { %v2071_v6 = vmul.f32 0.01, %v2031_v2  ;;  %v2032_v7 = vadd.f32 %v18748_v3, %v20722_v59  ;;  %24797 = vst [vmem:[#allocation14_spill] sm:$0xff] %v20737_v14  ;;  %v20742_v25 = vpop.f32.mrb[35].mxu1  ;;  %v20750_v3 = vor.u32 %v3114_v16, %v3110_v15 }
 0x15a   :  { %v2069_v10 = vmul.f32 0.01, %v2029_v63  ;;  %v2030_v11 = vadd.f32 %v18749_v5, %v20722_v59  ;;  %24799 = vst [vmem:[#allocation16_spill] sm:$0xff] %v20742_v25 }
 0x15b   :  { %v2111_v19 = vmax.f32 %v2031_v2, %v2071_v6  ;;  %v2072_v13 = vmul.f32 0.01, %v2032_v7 }
 0x15c   :  { %v2109_v20 = vmax.f32 %v2029_v63, %v2069_v10  ;;  %v2070_v31 = vmul.f32 0.01, %v2030_v11  ;;  %v17532_v29 = vpop.f32.mrb[4].mxu0 }
 0x15d   :  { %v2351_v50 = vmul.f32 %v20727_v1, %v2111_v19  ;;  %v2112_v51 = vmax.f32 %v2032_v7, %v2072_v13  ;;  %v18750_v56 = vadd.f32 %v17532_v29, %v20653_v21  ;;  %v1839_v57 = vpop.f32.mrb[5].mxu0 }
 0x15e   :  { %v2349_v60 = vmul.f32 %v20707_v47, %v2109_v20  ;;  %v2110_v61 = vmax.f32 %v2030_v11, %v2070_v31  ;;  %v18751_v62 = vadd.f32 %v1839_v57, %v20655_v22  ;;  %v17533_v2 = vpop.f32.mrb[6].mxu0  ;;  %v20758_v13 = vpop.f32.mrb[36].mxu1 }
 0x15f   :  { %v16312_v0 = vpack.c.bf16 %v2351_v50, %v2351_v50  ;;  %v2352_v63 = vmul.f32 %v20744_v49, %v2112_v51  ;;  %v2035_v5 = vadd.f32 %v18750_v56, %v20722_v59  ;;  %v18752_v6 = vadd.f32 %v17533_v2, %v20657_v23  ;;  %v1842_v10 = vpop.f32.mrb[7].mxu0  ;;  %24801 = vst [vmem:[#allocation18_spill] sm:$0xff] %v20758_v13  ;;  %v20760_v22 = vpop.permute.xlu0 %2181 }
 0x160   :  { %v16310_v7 = vpack.c.bf16 %v2349_v60, %v2349_v60  ;;  %v2350_v21 = vmul.f32 %v20724_v55, %v2110_v61  ;;  %v2033_v19 = vadd.f32 %v18751_v62, %v20722_v59  ;;  %v18753_v11 = vadd.f32 %v1842_v10, %v20659_v24  ;;  %24802 = vst [vmem:[#allocation19_spill] sm:$0xff] %v20760_v22  ;;  %v20762_v29 = vpop.f32.mrb[37].mxu1  ;;  %v20766_v60 = vpop.permute.xlu1 %2176 }
 0x161   :  { %v2529_v15 = vshrl.u32 %v16312_v0, 16  ;;  %v2532_v16 = vshll.u32 %v16312_v0, 16  ;;  %v16313_v20 = vpack.c.bf16 %v2352_v63, %v2352_v63  ;;  %v2075_v31 = vmul.f32 0.01, %v2035_v5  ;;  %24803 = vst [vmem:[#allocation20_spill] sm:$0xff] %v20762_v29  ;;  %v20764_v57 = vpop.f32.mrb[38].mxu1 }
 0x162   :  { %v2512_v50 = vshrl.u32 %v16310_v7, 16  ;;  %v2515_v23 = vshll.u32 %v16310_v7, 16  ;;  %v16311_v51 = vpack.c.bf16 %v2350_v21, %v2350_v21  ;;  %v2073_v56 = vmul.f32 0.01, %v2033_v19  ;;  %24804 = vst [vmem:[#allocation21_spill] sm:$0xff] %v20764_v57  ;;  %24805 = vst [vmem:[#allocation22_spill] sm:$0xff] %v20766_v60 }
 0x163   :  { %v2531_v61 = vrot.slane %v2529_v15, 7  ;;  %v2538_v24 = vshrl.u32 %v16313_v20, 16  ;;  %v2541_v62 = vshll.u32 %v16313_v20, 16  ;;  %v2115_v2 = vmax.f32 %v2035_v5, %v2075_v31  ;;  %v20768_v10 = vpop.f32.mrb[39].mxu1  ;;  %v2911_v7 = vld [vmem:[#allocation4 + $0x8] sm:$0xf] }
 0x164   :  { %24806 = vst [vmem:[#allocation23_spill] sm:$0xff] %v20768_v10  ;;  %v2514_v55 = vrot.slane %v2512_v50, 7  ;;  %v2520_v0 = vshrl.u32 %v16311_v51, 16  ;;  %v2523_v63 = vshll.u32 %v16311_v51, 16  ;;  %v2113_v47 = vmax.f32 %v2033_v19, %v2073_v56  ;;  %v17536_v49 = vpop.f32.mrb[8].mxu0  ;;  %v20778_v51 = vpop.permute.xlu0 %2191 }
 0x165   :  { %v2534_v1 = vor.u32 %v2532_v16, %v2531_v61  ;;  %v2536_v53 = vrot.slane %v2531_v61, 4  ;;  %v2540_v21 = vrot.slane %v2538_v24, 7  ;;  %v2355_v12 = vmul.f32 %v20760_v22, %v2115_v2  ;;  %v1855_v57 = vpop.f32.mrb[9].mxu0  ;;  %24810 = vst [vmem:[#allocation25_spill] sm:$0xff] %v20778_v51 }
 0x166   :  { %v24807_v15 = vmov 0  ;;  %v2517_v5 = vor.u32 %v2515_v23, %v2514_v55  ;;  %v2518_v20 = vrot.slane %v2514_v55, 4  ;;  %v2522_v31 = vrot.slane %v2520_v0, 7  ;;  %v17537_v19 = vpop.f32.mrb[10].mxu0  ;;  %v20783_v23 = vpop.permute.xlu1 %2186 }
 0x167   :  { %v24808_v15 = vsel %vm20773_vm10, 4294967295, %v24807_v15  ;;  %v2353_v50 = vmul.f32 %v20740_v18, %v2113_v47  ;;  %v2543_v16 = vor.u32 %v2541_v62, %v2540_v21  ;;  %v2545_v56 = vrot.slane %v2540_v21, 4  ;;  %v1858_v2 = vpop.f32.mrb[11].mxu0  ;;  %24811 = vst [vmem:[#allocation26_spill] sm:$0xff] %v20783_v23 }
 0x168   :  { %24809 = vst [vmem:[#allocation24_spill] sm:$0xff] %v24808_v15  ;;  %v16316_v61 = vpack.c.bf16 %v2355_v12, %v2355_v12  ;;  %v2036_v24 = vadd.f32 %v18752_v6, %v20722_v59  ;;  %v2912_v22 = vsel %vm20639_vm8, %v2517_v5, %v2911_v7  ;;  %v2525_v10 = vor.u32 %v2523_v63, %v2522_v31  ;;  %v20790_v12 = vld [vmem:[%s24790_s1] sm:$0xff]   ;;  %vm23112_vm8 = vmand %vm8659_vm2, %vm118_vm7 }
 0x169   :  { %v2527_v29 = vrot.slane %v2522_v31, 4  ;;  %v16314_v13 = vpack.c.bf16 %v2353_v50, %v2353_v50  ;;  %2913 = vst [vmem:[#allocation4 + $0x8] sm:$0xf] %v2912_v22  ;;  %v2544_v47 = vsel %vm20773_vm10, %v2536_v53, %v2543_v16  ;;  %v2034_v21 = vadd.f32 %v18753_v11, %v20722_v59  ;;  %17610 = vmatprep.subr.bf16.mxu1 %v20790_v12 }
 0x16a   :  { %v2565_v55 = vshrl.u32 %v16316_v61, 16  ;;  %v2568_v0 = vshll.u32 %v16316_v61, 16  ;;  %v2076_v62 = vmul.f32 0.01, %v2036_v24  ;;  %2916 = vst.msk [vmem:[#allocation4 + $0x14] sm:$0xf] %vm108_vm6, %v2544_v47  ;;  %v2526_v17 = vsel %vm20773_vm10, %v2518_v20, %v2525_v10  ;;  %v20809_v20 = vpop.permute.xlu0 %2201 }
 0x16b   :  { %v2535_v6 = vsel %vm20773_vm10, %v2527_v29, %v2534_v1  ;;  %v2547_v22 = vshrl.u32 %v16314_v13, 16  ;;  %v2550_v63 = vshll.u32 %v16314_v13, 16  ;;  %2914 = vst.msk [vmem:[#allocation4 + $0xc] sm:$0xf] %vm108_vm6, %v2526_v17  ;;  %v18754_v5 = vadd.f32 %v17536_v49, %v20661_v26  ;;  %24812 = vst [vmem:[#allocation27_spill] sm:$0xff] %v20809_v20 }
 0x16c   :  { %2915 = vst.msk [vmem:[#allocation4 + $0x10] sm:$0xf] %vm108_vm6, %v2535_v6  ;;  %v20799_v53 = vrot.slane %v2565_v55, 7  ;;  %v2116_v7 = vmax.f32 %v2036_v24, %v2076_v62  ;;  %v18755_v10 = vadd.f32 %v1855_v57, %v20663_v27  ;;  %v18756_v1 = vadd.f32 %v17537_v19, %v20665_v4  ;;  %v17540_v29 = vpop.f32.mrb[12].mxu0  ;;  %v20822_v19 = vpop.permute.xlu1 %2196 }
 0x16d   :  { %v20804_v31 = vrot.slane %v2547_v22, 7  ;;  %v18757_v13 = vadd.f32 %v1858_v2, %v20667_v28  ;;  %v2074_v49 = vmul.f32 0.01, %v2034_v21  ;;  %v1871_v16 = vpop.f32.mrb[13].mxu0  ;;  %v2039_v4 = vadd.f32 %v18754_v5, %v20722_v59  ;;  %24813 = vst [vmem:[#allocation28_spill] sm:$0xff] %v20822_v19 }
 0x16e   :  { %v20812_v50 = vor.u32 %v2568_v0, %v20799_v53  ;;  %v2572_v11 = vrot.slane %v20799_v53, 4  ;;  %v2356_v26 = vmul.f32 %v20783_v23, %v2116_v7  ;;  %v2037_v28 = vadd.f32 %v18755_v10, %v20722_v59  ;;  %v20820_v57 = vpop.f32.mrb[14].mxu0 }
 0x16f   :  { %v2552_v61 = vor.u32 %v2550_v63, %v20804_v31  ;;  %v2114_v2 = vmax.f32 %v2034_v21, %v2074_v49  ;;  %v2040_v47 = vadd.f32 %v18756_v1, %v20722_v59  ;;  %v2038_v55 = vadd.f32 %v18757_v13, %v20722_v59  ;;  %v20826_v0 = vpop.f32.mrb[15].mxu0 }
 0x170   :  { %v16317_v24 = vpack.c.bf16 %v2356_v26, %v2356_v26  ;;  %v2079_v17 = vmul.f32 0.01, %v2039_v4  ;;  %v2077_v6 = vmul.f32 0.01, %v2037_v28  ;;  %v18758_v22 = vadd.f32 %v17540_v29, %v20669_v30  ;;  %v20834_v26 = vpop.permute.xlu0 %2211 }
 0x171   :  { %v2553_v62 = vsel %vm20773_vm10, %v2545_v56, %v2552_v61  ;;  %v2354_v7 = vmul.f32 %v20766_v60, %v2114_v2  ;;  %v2080_v21 = vmul.f32 0.01, %v2040_v47  ;;  %v2078_v1 = vmul.f32 0.01, %v2038_v55  ;;  %24814 = vst [vmem:[#allocation29_spill] sm:$0xff] %v20834_v26 }
 0x172   :  { %2917 = vst.msk [vmem:[#allocation4 + $0x18] sm:$0xf] %vm108_vm6, %v2553_v62  ;;  %v2574_v63 = vshrl.u32 %v16317_v24, 16  ;;  %v2577_v53 = vshll.u32 %v16317_v24, 16  ;;  %v2119_v5 = vmax.f32 %v2039_v4, %v2079_v17  ;;  %v2117_v10 = vmax.f32 %v2037_v28, %v2077_v6  ;;  %v20841_v4 = vpop.permute.xlu1 %2206 }
 0x173   :  { %v2043_v13 = vadd.f32 %v18758_v22, %v20722_v59  ;;  %v16315_v56 = vpack.c.bf16 %v2354_v7, %v2354_v7  ;;  %v2120_v61 = vmax.f32 %v2040_v47, %v2080_v21  ;;  %v18759_v30 = vadd.f32 %v1871_v16, %v20674_v32  ;;  %24815 = vst [vmem:[#allocation30_spill] sm:$0xff] %v20841_v4 }
 0x174   :  { %v20836_v49 = vrot.slane %v2574_v63, 7  ;;  %v2359_v29 = vmul.f32 %v20809_v20, %v2119_v5  ;;  %v2357_v24 = vmul.f32 %v20778_v51, %v2117_v10  ;;  %v2118_v62 = vmax.f32 %v2038_v55, %v2078_v1  ;;  %v17544_v27 = vpop.f32.mrb[16].mxu0  ;;  %v20855_v51 = vpop.permute.xlu0 %2221 }
 0x175   :  { %v2083_v2 = vmul.f32 0.01, %v2043_v13  ;;  %v2556_v6 = vshrl.u32 %v16315_v56, 16  ;;  %v2559_v22 = vshll.u32 %v16315_v56, 16  ;;  %v20845_v63 = vpop.f32.mrb[17].mxu0  ;;  %v2360_v32 = vmul.f32 %v20841_v4, %v2120_v61  ;;  %24816 = vst [vmem:[#allocation31_spill] sm:$0xff] %v20855_v51 }
 0x176   :  { %v2579_v28 = vor.u32 %v2577_v53, %v20836_v49  ;;  %v16320_v47 = vpack.c.bf16 %v2359_v29, %v2359_v29  ;;  %v16318_v7 = vpack.c.bf16 %v2357_v24, %v2357_v24  ;;  %v2358_v16 = vmul.f32 %v20822_v19, %v2118_v62  ;;  %v20849_v21 = vpop.f32.mrb[18].mxu0 }
 0x177   :  { %v2558_v5 = vrot.slane %v2556_v6, 7  ;;  %v2123_v10 = vmax.f32 %v2043_v13, %v2083_v2  ;;  %v2041_v53 = vadd.f32 %v18759_v30, %v20722_v59  ;;  %v1890_v1 = vpop.f32.mrb[19].mxu0  ;;  %v16321_v19 = vpack.c.bf16 %v2360_v32, %v2360_v32 }
 0x178   :  { %v2580_v55 = vsel %vm20773_vm10, %v2572_v11, %v2579_v28  ;;  %v2601_v56 = vshrl.u32 %v16320_v47, 16  ;;  %v2604_v17 = vshll.u32 %v16320_v47, 16  ;;  %v2583_v29 = vshrl.u32 %v16318_v7, 16 }
 0x179   :  { %2920 = vst.msk [vmem:[#allocation4 + $0x24] sm:$0xf] %vm108_vm6, %v2580_v55  ;;  %v2586_v24 = vshll.u32 %v16318_v7, 16  ;;  %v2561_v61 = vor.u32 %v2559_v22, %v2558_v5  ;;  %v2563_v62 = vrot.slane %v2558_v5, 4  ;;  %v16319_v4 = vpack.c.bf16 %v2358_v16, %v2358_v16  ;;  %v20879_v5 = vpop.permute.xlu1 %2216 }
 0x17a   :  { %v20857_v20 = vrot.slane %v2601_v56, 7  ;;  %v20859_v11 = vrot.slane %v2583_v29, 7  ;;  %v2363_v13 = vmul.f32 %v20855_v51, %v2123_v10  ;;  %v2081_v30 = vmul.f32 0.01, %v2041_v53  ;;  %24818 = vst [vmem:[#allocation32_spill] sm:$0xff] %v20879_v5 }
 0x17b   :  { %v24817_v2 = vrot.slane %v20804_v31, 4  ;;  %v2571_v6 = vsel %vm20773_vm10, %v2563_v62, %v20812_v50  ;;  %v2610_v22 = vshrl.u32 %v16321_v19, 16  ;;  %v2613_v47 = vshll.u32 %v16321_v19, 16 }
 0x17c   :  { %2919 = vst.msk [vmem:[#allocation4 + $0x20] sm:$0xf] %vm108_vm6, %v2571_v6  ;;  %v20872_v7 = vor.u32 %v2604_v17, %v20857_v20  ;;  %v20876_v31 = vor.u32 %v2586_v24, %v20859_v11  ;;  %v17548_v55 = vpop.f32.mrb[20].mxu0  ;;  %v2592_v19 = vshrl.u32 %v16319_v4, 16  ;;  %v2595_v10 = vshll.u32 %v16319_v4, 16 }
 0x17d   :  { %v2562_v28 = vsel %vm20773_vm10, %v24817_v2, %v2561_v61  ;;  %v20881_v50 = vrot.slane %v2610_v22, 7  ;;  %v16324_v56 = vpack.c.bf16 %v2363_v13, %v2363_v13  ;;  %v20883_v29 = vpop.f32.mrb[21].mxu0  ;;  %v2121_v61 = vmax.f32 %v2041_v53, %v2081_v30 }
 0x17e   :  { %2918 = vst.msk [vmem:[#allocation4 + $0x1c] sm:$0xf] %vm108_vm6, %v2562_v28  ;;  %v18760_v17 = vadd.f32 %v20820_v57, %v20676_v33  ;;  %v18761_v24 = vadd.f32 %v20826_v0, %v20678_v34  ;;  %v18762_v62 = vadd.f32 %v17544_v27, %v20683_v35  ;;  %v20890_v2 = vpop.f32.mrb[22].mxu0  ;;  %v20892_v28 = vpop.permute.xlu0 %2231  ;;  %v20898_v13 = vrot.slane %v2592_v19, 7  ;;  %v19463_v19 = vld [vmem:[#allocation4 + $0x8] sm:$0xff]  }
 0x17f   :  { %24819 = vst [vmem:[#allocation33_spill] sm:$0xff] %v20892_v28  ;;  %v20895_v6 = vor.u32 %v2613_v47, %v20881_v50  ;;  %v2637_v53 = vshrl.u32 %v16324_v56, 16  ;;  %v20900_v30 = vpop.f32.mrb[23].mxu0  ;;  %v2640_v33 = vshll.u32 %v16324_v56, 16  ;;  %v2361_v57 = vmul.f32 %v20834_v26, %v2121_v61 }
 0x180   :  { %v2044_v34 = vadd.f32 %v18760_v17, %v20722_v59  ;;  %v2042_v35 = vadd.f32 %v18761_v24, %v20722_v59  ;;  %v20906_v27 = vor.u32 %v2595_v10, %v20898_v13  ;;  %v20912_v47 = vadd.f32 %v18762_v62, %v20722_v59  ;;  %v20916_v17 = vpop.permute.xlu1 %2226 }
 0x181   :  { %v20909_v22 = vrot.slane %v2637_v53, 7  ;;  %v16322_v4 = vpack.c.bf16 %v2361_v57, %v2361_v57  ;;  %v18763_v61 = vadd.f32 %v20845_v63, %v20685_v40  ;;  %24821 = vst [vmem:[#allocation35_spill] sm:$0xff] %v20916_v17  ;;  %v18765_v62 = vadd.f32 %v1890_v1, %v20689_v37 }
 0x182   :  { %v2084_v32 = vmul.f32 0.01, %v2044_v34  ;;  %v2082_v56 = vmul.f32 0.01, %v2042_v35  ;;  %v20923_v53 = vmul.f32 0.01, %v20912_v47  ;;  %v20928_v60 = vpop.permute.xlu0 %2241 }
 0x183   :  { %24820 = vst [vmem:[#allocation34_spill] sm:$0xff] %v20909_v22  ;;  %v20919_v24 = vor.u32 %v2640_v33, %v20909_v22  ;;  %v2619_v0 = vshrl.u32 %v16322_v4, 16  ;;  %v2622_v16 = vshll.u32 %v16322_v4, 16  ;;  %24822 = vst [vmem:[#allocation36_spill] sm:$0xff] %v20928_v60  ;;  %v2045_v63 = vadd.f32 %v18763_v61, %v20722_v59  ;;  %v20940_v4 = vld [vmem:[#allocation4 + $0x10] sm:$0xff]  }
 0x184   :  { %v2124_v57 = vmax.f32 %v2044_v34, %v2084_v32  ;;  %v2122_v26 = vmax.f32 %v2042_v35, %v2082_v56  ;;  %v20926_v51 = vpop.f32.mrb[24].mxu0  ;;  %v2046_v33 = vadd.f32 %v18765_v62, %v20722_v59  ;;  %v3117_v10 = vshll.u32 %v19463_v19, 16 }
 0x185   :  { %v20934_v18 = vpop.f32.mrb[25].mxu0  ;;  %v20936_v23 = vrot.slane %v2619_v0, 7  ;;  %v3121_v32 = vshrl.u32 %v19463_v19, 16  ;;  %v2085_v35 = vmul.f32 0.01, %v2045_v63  ;;  %v18766_v61 = vadd.f32 %v17548_v55, %v20691_v38  ;;  %v21487_v15 = vld [vmem:[#allocation4 + $0x18] sm:$0xff]  }
 0x186   :  { %v2364_v37 = vmul.f32 %v20916_v17, %v2124_v57  ;;  %v2362_v1 = vmul.f32 %v20879_v5, %v2122_v26  ;;  %v20942_v34 = vpop.f32.mrb[26].mxu0  ;;  %v2086_v56 = vmul.f32 0.01, %v2046_v33  ;;  %v3119_v40 = vrot.slane %v3117_v10, 1  ;;  %v20951_v26 = vpop.permute.xlu1 %2236 }
 0x187   :  { %v20945_v62 = vpop.f32.mrb[27].mxu0  ;;  %v20948_v25 = vor.u32 %v2622_v16, %v20936_v23  ;;  %24823 = vst [vmem:[#allocation37_spill] sm:$0xff] %v20951_v26  ;;  %v2125_v19 = vmax.f32 %v2045_v63, %v2085_v35  ;;  %v20956_v16 = vpop.permute.xlu0 %2251  ;;  %v3125_v63 = vshll.u32 %v20940_v4, 16 }
 0x188   :  { %v16325_v57 = vpack.c.bf16 %v2364_v37, %v2364_v37  ;;  %v16323_v17 = vpack.c.bf16 %v2362_v1, %v2362_v1  ;;  %v2126_v5 = vmax.f32 %v2046_v33, %v2086_v56  ;;  %v3120_v14 = vsel %vm278_vm0, %v20750_v3, %v3119_v40  ;;  %24824 = vst [vmem:[#allocation38_spill] sm:$0xff] %v20956_v16 }
 0x189   :  { %v3123_v8 = vor.u32 %v3121_v32, %v3119_v40  ;;  %17570 = vmatprep.mubr.msk.bf16.mxu1 %vm455_vm1, %v3120_v14  ;;  %v2365_v0 = vmul.f32 %v20892_v28, %v2125_v19  ;;  %v2051_v1 = vadd.f32 %v18766_v61, %v20722_v59  ;;  %v18764_v40 = vadd.f32 %v20849_v21, %v20687_v36 }
 0x18a   :  { %v2646_v10 = vshrl.u32 %v16325_v57, 16  ;;  %v2649_v22 = vshll.u32 %v16325_v57, 16  ;;  %v2628_v38 = vshrl.u32 %v16323_v17, 16  ;;  %v2631_v55 = vshll.u32 %v16323_v17, 16 }
 0x18b   :  { %v2366_v37 = vmul.f32 %v20951_v26, %v2126_v5  ;;  %v18767_v14 = vadd.f32 %v20883_v29, %v20693_v39  ;;  %v16326_v32 = vpack.c.bf16 %v2365_v0, %v2365_v0  ;;  %v2091_v56 = vmul.f32 0.01, %v2051_v1  ;;  %v20984_v39 = vpop.permute.xlu1 %2246  ;;  %v20994_v28 = vpop.permute.xlu0 %2261 }
 0x18c   :  { %v20962_v33 = vrot.slane %v2646_v10, 7  ;;  %v20964_v3 = vrot.slane %v2628_v38, 7  ;;  %v20970_v17 = vpop.f32.mrb[28].mxu0  ;;  %v3127_v5 = vrot.slane %v3125_v63, 1  ;;  %24828 = vst [vmem:[#allocation42_spill] sm:$0xff] %v20984_v39  ;;  %v2048_v26 = vadd.f32 %v18764_v40, %v20722_v59  ;;  %24829 = vst [vmem:[#allocation43_spill] sm:$0xff] %v20994_v28 }
 0x18d   :  { %v16327_v35 = vpack.c.bf16 %v2366_v37, %v2366_v37  ;;  %v20972_v57 = vpop.f32.mrb[29].mxu0  ;;  %v2655_v29 = vshrl.u32 %v16326_v32, 16  ;;  %v2658_v0 = vshll.u32 %v16326_v32, 16  ;;  %v2131_v19 = vmax.f32 %v2051_v1, %v2091_v56 }
 0x18e   :  { %24825 = vst [vmem:[#allocation39_spill] sm:$0xff] %v20962_v33  ;;  %24826 = vst [vmem:[#allocation40_spill] sm:$0xff] %v20964_v3  ;;  %v20975_v61 = vor.u32 %v2649_v22, %v20962_v33  ;;  %v20979_v10 = vor.u32 %v2631_v55, %v20964_v3  ;;  %v20982_v21 = vpop.f32.mrb[30].mxu0  ;;  %v19484_v22 = vld [vmem:[%s24790_s1 + $0x8] sm:$0xff]   ;;  %v3128_v55 = vsel %vm278_vm0, %v3123_v8, %v3127_v5  ;;  %v21005_v8 = vld [vmem:[#allocation4 + $0x18] sm:$0xff]  }
 0x18f   :  { %v2664_v38 = vshrl.u32 %v16327_v35, 16  ;;  %v2667_v37 = vshll.u32 %v16327_v35, 16  ;;  %v20986_v63 = vpop.f32.mrb[31].mxu0  ;;  %v2049_v36 = vadd.f32 %v18767_v14, %v20722_v59  ;;  %v20996_v33 = vrot.slane %v2655_v29, 7  ;;  %17571 = vmatmul.mubr.msk.bf16.vlgmr.msra.gmra.mrb[40].mxu1 %vm455_vm1, %v3128_v55 }
 0x190   :  { %24827 = vst [vmem:[#allocation41_spill] sm:$0xff] %v20975_v61  ;;  %v24831_v35 = vmax.f32 %v20912_v47, %v20923_v53  ;;  %v18768_v1 = vadd.f32 %v20890_v2, %v20695_v41  ;;  %v2371_v40 = vmul.f32 %v20994_v28, %v2131_v19  ;;  %v2088_v14 = vmul.f32 0.01, %v2048_v26  ;;  %17611 = vmatpush3.bf16.msra.mxu1 %v20790_v12 }
 0x191   :  { %24830 = vst [vmem:[#allocation44_spill] sm:$0xff] %v20996_v33  ;;  %v2666_v32 = vrot.slane %v2664_v38, 7  ;;  %v2089_v56 = vmul.f32 0.01, %v2049_v36  ;;  %v18769_v29 = vadd.f32 %v20900_v30, %v20697_v42  ;;  %v21012_v38 = vor.u32 %v2658_v0, %v20996_v33  ;;  %17612 = vmatprep.subr.bf16.mxu1 %v19484_v22 }
 0x192   :  { %v2367_v61 = vmul.f32 %v20928_v60, %v24831_v35  ;;  %v16332_v41 = vpack.c.bf16 %v2371_v40, %v2371_v40  ;;  %v2128_v2 = vmax.f32 %v2048_v26, %v2088_v14  ;;  %v21019_v60 = vpop.permute.xlu1 %2256  ;;  %v2052_v42 = vadd.f32 %v18768_v1, %v20722_v59 }
 0x193   :  { %24832 = vst [vmem:[#allocation45_spill] sm:$0xff] %v21012_v38  ;;  %v21015_v53 = vor.u32 %v2667_v37, %v2666_v32  ;;  %v2671_v55 = vrot.slane %v2666_v32, 4  ;;  %v2129_v35 = vmax.f32 %v2049_v36, %v2089_v56  ;;  %24834 = vst [vmem:[#allocation47_spill] sm:$0xff] %v21019_v60  ;;  %v2050_v12 = vadd.f32 %v18769_v29, %v20722_v59 }
 0x194   :  { %v16328_v19 = vpack.c.bf16 %v2367_v61, %v2367_v61  ;;  %v21017_v28 = vpop.f32.mrb[32].mxu0  ;;  %v3129_v30 = vshrl.u32 %v20940_v4, 16  ;;  %v3133_v0 = vshll.u32 %v21005_v8, 16  ;;  %v2709_v32 = vshrl.u32 %v16332_v41, 16  ;;  %17613 = vmatpush3.bf16.msra.mxu1 %v19484_v22 }
 0x195   :  { %24833 = vst [vmem:[#allocation46_spill] sm:$0xff] %v21015_v53  ;;  %v21025_v37 = vpop.f32.mrb[33].mxu0  ;;  %v2712_v47 = vshll.u32 %v16332_v41, 16  ;;  %v2368_v26 = vmul.f32 %v20984_v39, %v2128_v2  ;;  %v2369_v61 = vmul.f32 %v20956_v16, %v2129_v35  ;;  %v2092_v1 = vmul.f32 0.01, %v2052_v42 }
 0x196   :  { %24835 = vst [vmem:[#allocation48_spill] sm:$0xff] %v21025_v37  ;;  %v21029_v36 = vpop.f32.mrb[34].mxu0  ;;  %v2673_v40 = vshrl.u32 %v16328_v19, 16  ;;  %v2676_v14 = vshll.u32 %v16328_v19, 16  ;;  %v2090_v56 = vmul.f32 0.01, %v2050_v12  ;;  %v3131_v53 = vor.u32 %v3129_v30, %v3127_v5  ;;  %v21039_v39 = vpop.permute.xlu1 %2266 }
 0x197   :  { %24836 = vst [vmem:[#allocation49_spill] sm:$0xff] %v21029_v36  ;;  %v21031_v29 = vrot.slane %v2709_v32, 7  ;;  %v16329_v4 = vpack.c.bf16 %v2368_v26, %v2368_v26  ;;  %v16330_v33 = vpack.c.bf16 %v2369_v61, %v2369_v61  ;;  %v21033_v38 = vpop.f32.mrb[35].mxu0  ;;  %v2132_v41 = vmax.f32 %v2052_v42, %v2092_v1  ;;  %24837 = vst [vmem:[#allocation50_spill] sm:$0xff] %v21039_v39 }
 0x198   :  { %v2675_v37 = vrot.slane %v2673_v40, 7  ;;  %v2130_v3 = vmax.f32 %v2050_v12, %v2090_v56  ;;  %v3135_v2 = vrot.slane %v3133_v0, 1 }
 0x199   :  { %v21036_v35 = vor.u32 %v2712_v47, %v21031_v29  ;;  %v2716_v22 = vrot.slane %v21031_v29, 4  ;;  %v2682_v16 = vshrl.u32 %v16329_v4, 16  ;;  %v2685_v19 = vshll.u32 %v16329_v4, 16  ;;  %v21046_v47 = vpop.permute.xlu0 %2271 }
 0x19a   :  { %v2678_v32 = vor.u32 %v2676_v14, %v2675_v37  ;;  %v2680_v36 = vrot.slane %v2675_v37, 4  ;;  %v2691_v26 = vshrl.u32 %v16330_v33, 16  ;;  %v2694_v61 = vshll.u32 %v16330_v33, 16  ;;  %24838 = vst [vmem:[#allocation51_spill] sm:$0xff] %v21046_v47 }
 0x19b   :  { %v2684_v5 = vrot.slane %v2682_v16, 7  ;;  %v2372_v30 = vmul.f32 %v21039_v39, %v2132_v41  ;;  %v2370_v42 = vmul.f32 %v21019_v60, %v2130_v3  ;;  %v3136_v12 = vsel %vm278_vm0, %v3131_v53, %v3135_v2  ;;  %v21053_v16 = vld [vmem:[#allocation4 + $0x20] sm:$0xff]  }
 0x19c   :  { %v21044_v0 = vpop.f32.mrb[36].mxu0  ;;  %v2679_v40 = vsel %vm20773_vm10, %v2671_v55, %v2678_v32  ;;  %v2693_v1 = vrot.slane %v2691_v26, 7  ;;  %17574 = vmatprep.mubr.msk.bf16.mxu1 %vm455_vm1, %v3136_v12  ;;  %v18770_v33 = vadd.f32 %v20926_v51, %v20699_v43  ;;  %v3137_v37 = vshrl.u32 %v21005_v8, 16 }
 0x19d   :  { %v21056_v3 = vpop.f32.mrb[37].mxu0  ;;  %v2687_v53 = vor.u32 %v2685_v19, %v2684_v5  ;;  %v2689_v14 = vrot.slane %v2684_v5, 4  ;;  %2931 = vst.msk [vmem:[#allocation4 + $0x50] sm:$0xf] %vm108_vm6, %v2679_v40  ;;  %v16333_v56 = vpack.c.bf16 %v2372_v30, %v2372_v30  ;;  %v16331_v29 = vpack.c.bf16 %v2370_v42, %v2370_v42 }
 0x19e   :  { %v21059_v4 = vpop.f32.mrb[38].mxu0  ;;  %v2696_v55 = vor.u32 %v2694_v61, %v2693_v1  ;;  %v2698_v41 = vrot.slane %v2693_v1, 4  ;;  %v2055_v32 = vadd.f32 %v18770_v33, %v20722_v59  ;;  %v3139_v26 = vor.u32 %v3137_v37, %v3135_v2  ;;  %v21077_v33 = vpop.permute.xlu0 %2281 }
 0x19f   :  { %v21062_v43 = vpop.f32.mrb[39].mxu0  ;;  %v2688_v51 = vsel %vm20773_vm10, %v2680_v36, %v2687_v53  ;;  %v2718_v8 = vshrl.u32 %v16333_v56, 16  ;;  %v2721_v12 = vshll.u32 %v16333_v56, 16  ;;  %v2700_v19 = vshrl.u32 %v16331_v29, 16  ;;  %24839 = vst [vmem:[#allocation52_spill] sm:$0xff] %v21077_v33 }
 0x1a0   :  { %v2697_v5 = vsel %vm20773_vm10, %v2689_v14, %v2696_v55  ;;  %2932 = vst.msk [vmem:[#allocation4 + $0x54] sm:$0xf] %vm108_vm6, %v2688_v51  ;;  %v2703_v30 = vshll.u32 %v16331_v29, 16  ;;  %v2095_v42 = vmul.f32 0.01, %v2055_v32  ;;  %v3141_v61 = vshll.u32 %v21053_v16, 16  ;;  %v21086_v55 = vpop.permute.xlu1 %2276 }
 0x1a1   :  { %2933 = vst.msk [vmem:[#allocation4 + $0x58] sm:$0xf] %vm108_vm6, %v2697_v5  ;;  %v21071_v2 = vrot.slane %v2718_v8, 7  ;;  %v2702_v40 = vrot.slane %v2700_v19, 7  ;;  %v18771_v36 = vadd.f32 %v20934_v18, %v20701_v44  ;;  %v18772_v1 = vadd.f32 %v20942_v34, %v20703_v46  ;;  %24841 = vst [vmem:[#allocation53_spill] sm:$0xff] %v21086_v55 }
 0x1a2   :  { %v2135_v37 = vmax.f32 %v2055_v32, %v2095_v42  ;;  %v3143_v53 = vrot.slane %v3141_v61, 1  ;;  %v18773_v14 = vadd.f32 %v20945_v62, %v20705_v48  ;;  %v24840_v56 = vrot.slane %v20836_v49, 4 }
 0x1a3   :  { %v2723_v44 = vor.u32 %v2721_v12, %v21071_v2  ;;  %v2725_v18 = vrot.slane %v21071_v2, 4  ;;  %v2705_v46 = vor.u32 %v2703_v30, %v2702_v40  ;;  %v2707_v34 = vrot.slane %v2702_v40, 4 }
 0x1a4   :  { %v2589_v29 = vsel %vm20773_vm10, %v24840_v56, %v20876_v31  ;;  %v2375_v32 = vmul.f32 %v21077_v33, %v2135_v37  ;;  %v3144_v48 = vsel %vm278_vm0, %v3139_v26, %v3143_v53  ;;  %v2053_v62 = vadd.f32 %v18771_v36, %v20722_v59  ;;  %v21121_v36 = vpop.permute.xlu0 %2291 }
 0x1a5   :  { %2921 = vst.msk [vmem:[#allocation4 + $0x28] sm:$0xf] %vm108_vm6, %v2589_v29  ;;  %v2056_v49 = vadd.f32 %v18772_v1, %v20722_v59  ;;  %v2724_v31 = vsel %vm20773_vm10, %v2716_v22, %v2723_v44  ;;  %v2706_v51 = vsel %vm20773_vm10, %v2698_v41, %v2705_v46  ;;  %v2715_v8 = vsel %vm20773_vm10, %v2707_v34, %v21036_v35 }
 0x1a6   :  { %17575 = vmatmul.mubr.msk.bf16.gmra.mrb[44].mxu1 %vm455_vm1, %v3144_v48  ;;  %v2054_v12 = vadd.f32 %v18773_v14, %v20722_v59  ;;  %2936 = vst.msk [vmem:[#allocation4 + $0x64] sm:$0xf] %vm108_vm6, %v2724_v31  ;;  %2934 = vst.msk [vmem:[#allocation4 + $0x5c] sm:$0xf] %vm108_vm6, %v2706_v51  ;;  %v16336_v26 = vpack.c.bf16 %v2375_v32, %v2375_v32  ;;  %v2093_v19 = vmul.f32 0.01, %v2053_v62  ;;  %v21124_v14 = vpop.permute.xlu1 %2286 }
 0x1a7   :  { %2935 = vst.msk [vmem:[#allocation4 + $0x60] sm:$0xf] %vm108_vm6, %v2715_v8  ;;  %v2096_v22 = vmul.f32 0.01, %v2056_v49  ;;  %v24842_v41 = vrot.slane %v20859_v11, 4  ;;  %v3145_v30 = vshrl.u32 %v21053_v16, 16  ;;  %v18774_v42 = vadd.f32 %v20970_v17, %v20709_v45 }
 0x1a8   :  { %v2094_v35 = vmul.f32 0.01, %v2054_v12  ;;  %v24843_v61 = vrot.slane %v20898_v13, 4  ;;  %24844 = vst [vmem:[#allocation54_spill] sm:$0xff] %v21121_v36  ;;  %v2745_v11 = vshrl.u32 %v16336_v26, 16  ;;  %v2748_v1 = vshll.u32 %v16336_v26, 16 }
 0x1a9   :  { %v2598_v5 = vsel %vm20773_vm10, %v24842_v41, %v20906_v27  ;;  %v2133_v37 = vmax.f32 %v2053_v62, %v2093_v19  ;;  %v2136_v27 = vmax.f32 %v2056_v49, %v2096_v22  ;;  %24845 = vst [vmem:[#allocation55_spill] sm:$0xff] %v21124_v14  ;;  %v3147_v56 = vor.u32 %v3145_v30, %v3143_v53 }
 0x1aa   :  { %2922 = vst.msk [vmem:[#allocation4 + $0x2c] sm:$0xf] %vm108_vm6, %v2598_v5  ;;  %v2607_v40 = vsel %vm20773_vm10, %v24843_v61, %v20872_v7  ;;  %v2134_v16 = vmax.f32 %v2054_v12, %v2094_v35  ;;  %v2059_v45 = vadd.f32 %v18774_v42, %v20722_v59  ;;  %v24846_v13 = vrot.slane %v20857_v20, 4  ;;  %v21155_v61 = vpop.permute.xlu1 %2296 }
 0x1ab   :  { %2923 = vst.msk [vmem:[#allocation4 + $0x30] sm:$0xf] %vm108_vm6, %v2607_v40  ;;  %v2747_v17 = vrot.slane %v2745_v11, 7  ;;  %v2373_v29 = vmul.f32 %v21046_v47, %v2133_v37  ;;  %v2376_v44 = vmul.f32 %v21124_v14, %v2136_v27  ;;  %v18775_v46 = vadd.f32 %v20972_v57, %v20711_v52  ;;  %v21144_v52 = vpop.permute.xlu0 %2301  ;;  %24848 = vst [vmem:[#allocation57_spill] sm:$0xff] %v21155_v61 }
 0x1ac   :  { %v2616_v7 = vsel %vm20773_vm10, %v24846_v13, %v20895_v6  ;;  %v2374_v53 = vmul.f32 %v21086_v55, %v2134_v16  ;;  %v2099_v34 = vmul.f32 0.01, %v2059_v45  ;;  %v18776_v32 = vadd.f32 %v20982_v21, %v20713_v58  ;;  %24847 = vst [vmem:[#allocation56_spill] sm:$0xff] %v21144_v52 }
 0x1ad   :  { %2924 = vst.msk [vmem:[#allocation4 + $0x34] sm:$0xf] %vm108_vm6, %v2616_v7  ;;  %v18777_v20 = vadd.f32 %v20986_v63, %v20717_v54  ;;  %v2750_v6 = vor.u32 %v2748_v1, %v2747_v17  ;;  %v2752_v48 = vrot.slane %v2747_v17, 4  ;;  %v16334_v62 = vpack.c.bf16 %v2373_v29, %v2373_v29  ;;  %v21150_v63 = vld [vmem:[%s24793_s5] ss:$0 sm:$0xff] }
 0x1ae   :  { %v16337_v49 = vpack.c.bf16 %v2376_v44, %v2376_v44  ;;  %v16335_v31 = vpack.c.bf16 %v2374_v53, %v2374_v53  ;;  %v2139_v51 = vmax.f32 %v2059_v45, %v2099_v34  ;;  %v2057_v8 = vadd.f32 %v18775_v46, %v20722_v59 }
 0x1af   :  { %v2060_v12 = vadd.f32 %v18776_v32, %v20722_v59  ;;  %v2727_v57 = vshrl.u32 %v16334_v62, 16  ;;  %v2730_v26 = vshll.u32 %v16334_v62, 16  ;;  %v2058_v5 = vadd.f32 %v21150_v63, %v18777_v20 }
 0x1b0   :  { %v2754_v19 = vshrl.u32 %v16337_v49, 16  ;;  %v2757_v22 = vshll.u32 %v16337_v49, 16  ;;  %v2736_v58 = vshrl.u32 %v16335_v31, 16  ;;  %v2739_v21 = vshll.u32 %v16335_v31, 16 }
 0x1b1   :  { %v19467_v41 = vld [vmem:[#allocation4 + $0x28] sm:$0xff]   ;;  %v2379_v54 = vmul.f32 %v21144_v52, %v2139_v51  ;;  %v2729_v35 = vrot.slane %v2727_v57, 7  ;;  %v2097_v30 = vmul.f32 0.01, %v2057_v8  ;;  %v2100_v42 = vmul.f32 0.01, %v2060_v12 }
 0x1b2   :  { %v21153_v59 = vrot.slane %v2754_v19, 7  ;;  %v2738_v40 = vrot.slane %v2736_v58, 7  ;;  %v3149_v11 = vshll.u32 %v19467_v41, 16  ;;  %v3153_v27 = vshrl.u32 %v19467_v41, 16 }
 0x1b3   :  { %v16340_v1 = vpack.c.bf16 %v2379_v54, %v2379_v54  ;;  %v2732_v16 = vor.u32 %v2730_v26, %v2729_v35  ;;  %v2734_v45 = vrot.slane %v2729_v35, 4  ;;  %v2137_v51 = vmax.f32 %v2057_v8, %v2097_v30  ;;  %v21180_v26 = vpop.permute.xlu1 %2306  ;;  %v24852_v30 = vld [vmem:[#allocation40_spill] sm:$0xff] }
 0x1b4   :  { %v21157_v37 = vld [vmem:[#allocation4 + $0x30] sm:$0xff]   ;;  %v2759_v13 = vor.u32 %v2757_v22, %v21153_v59  ;;  %v2761_v7 = vrot.slane %v21153_v59, 4  ;;  %v2741_v17 = vor.u32 %v2739_v21, %v2738_v40  ;;  %v2743_v29 = vrot.slane %v2738_v40, 4  ;;  %24849 = vst [vmem:[#allocation58_spill] sm:$0xff] %v21180_v26  ;;  %v21215_v40 = vpop.permute.xlu0 %2311 }
 0x1b5   :  { %v3151_v44 = vrot.slane %v3149_v11, 1  ;;  %v2781_v46 = vshrl.u32 %v16340_v1, 16  ;;  %v2733_v53 = vsel %vm20773_vm10, %v2725_v18, %v2732_v16  ;;  %v2784_v32 = vshll.u32 %v16340_v1, 16  ;;  %24854 = vst [vmem:[#allocation40_spill] sm:$0xff] %v21215_v40  ;;  %v24856_v16 = vld [vmem:[#allocation34_spill] sm:$0xff] }
 0x1b6   :  { %v2760_v34 = vsel %vm20773_vm10, %v2752_v48, %v2759_v13  ;;  %v3157_v20 = vshll.u32 %v21157_v37, 16  ;;  %2937 = vst.msk [vmem:[#allocation4 + $0x68] sm:$0xf] %vm108_vm6, %v2733_v53  ;;  %v2742_v62 = vsel %vm20773_vm10, %v2734_v45, %v2741_v17  ;;  %v2751_v49 = vsel %vm20773_vm10, %v2743_v29, %v2750_v6  ;;  %v24858_v13 = vld [vmem:[#allocation13_spill] sm:$0xff] }
 0x1b7   :  { %2940 = vst.msk [vmem:[#allocation4 + $0x74] sm:$0xf] %vm108_vm6, %v2760_v34  ;;  %v3152_v2 = vsel %vm278_vm0, %v3147_v56, %v3151_v44  ;;  %v21175_v31 = vrot.slane %v2781_v46, 7  ;;  %2938 = vst.msk [vmem:[#allocation4 + $0x6c] sm:$0xf] %vm108_vm6, %v2742_v62  ;;  %v3155_v18 = vor.u32 %v3153_v27, %v3151_v44  ;;  %v2140_v57 = vmax.f32 %v2060_v12, %v2100_v42  ;;  %v24855_v27 = vld [vmem:[#allocation41_spill] sm:$0xff] }
 0x1b8   :  { %2939 = vst.msk [vmem:[#allocation4 + $0x70] sm:$0xf] %vm108_vm6, %v2751_v49  ;;  %17578 = vmatprep.mubr.msk.bf16.mxu1 %vm455_vm1, %v3152_v2  ;;  %v3159_v48 = vrot.slane %v3157_v20, 1  ;;  %v2098_v56 = vmul.f32 0.01, %v2058_v5  ;;  %v24850_v22 = vrot.slane %v20881_v50, 4  ;;  %v2377_v41 = vmul.f32 %v21121_v36, %v2137_v51 }
 0x1b9   :  { %v21183_v19 = vor.u32 %v2784_v32, %v21175_v31  ;;  %v2788_v6 = vrot.slane %v21175_v31, 4  ;;  %v2380_v8 = vmul.f32 %v21180_v26, %v2140_v57  ;;  %v24851_v12 = vrot.slane %v20936_v23, 4  ;;  %v21203_v50 = vld [vmem:[%s24790_s1 + $0x20] sm:$0xff]   ;;  %v24860_v44 = vld [vmem:[#allocation14_spill] sm:$0xff]  ;;  %v24861_v46 = vld [vmem:[#allocation49_spill] sm:$0xff] }
 0x1ba   :  { %v2625_v58 = vsel %vm20773_vm10, %v24850_v22, %v20948_v25  ;;  %v3160_v21 = vsel %vm278_vm0, %v3155_v18, %v3159_v48  ;;  %v2138_v25 = vmax.f32 %v2058_v5, %v2098_v56  ;;  %v3161_v35 = vshrl.u32 %v21157_v37, 16  ;;  %17654 = vmatprep.subr.bf16.mxu1 %v21203_v50  ;;  %v24863_v22 = vld [vmem:[#allocation45_spill] sm:$0xff] }
 0x1bb   :  { %v2634_v54 = vsel %vm20773_vm10, %v24851_v12, %v20979_v10  ;;  %2925 = vst.msk [vmem:[#allocation4 + $0x38] sm:$0xf] %vm108_vm6, %v2625_v58  ;;  %17579 = vmatmul.mubr.msk.bf16.gmra.mrb[48].mxu1 %vm455_vm1, %v3160_v21  ;;  %v18778_v23 = vadd.f32 %v21017_v28, %v20731_v9  ;;  %v24853_v10 = vrot.slane %v24852_v30, 4  ;;  %v16338_v11 = vpack.c.bf16 %v2377_v41, %v2377_v41  ;;  %v24859_v9 = vld [vmem:[#allocation48_spill] sm:$0xff]  ;;  %v24864_v58 = vld [vmem:[#allocation39_spill] sm:$0xff] }
 0x1bc   :  { %2926 = vst.msk [vmem:[#allocation4 + $0x3c] sm:$0xf] %vm108_vm6, %v2634_v54  ;;  %v16341_v1 = vpack.c.bf16 %v2380_v8, %v2380_v8  ;;  %v24857_v5 = vrot.slane %v24856_v16, 4  ;;  %v18779_v28 = vadd.f32 %v24859_v9, %v24858_v13  ;;  %v2378_v17 = vmul.f32 %v21155_v61, %v2138_v25 }
 0x1bd   :  { %v2643_v42 = vsel %vm20773_vm10, %v24853_v10, %v20919_v24  ;;  %v3163_v24 = vor.u32 %v3161_v35, %v3159_v48  ;;  %v2063_v29 = vadd.f32 %v21150_v63, %v18778_v23  ;;  %v18780_v53 = vadd.f32 %v24861_v46, %v24860_v44  ;;  %v24862_v48 = vld [vmem:[#allocation16_spill] sm:$0xff]  ;;  %v21243_v35 = vpop.permute.xlu1 %2316  ;;  %v21245_v23 = vpop.permute.xlu0 %2321 }
 0x1be   :  { %v2652_v45 = vsel %vm20773_vm10, %v24857_v5, %v24855_v27  ;;  %2927 = vst.msk [vmem:[#allocation4 + $0x40] sm:$0xf] %vm108_vm6, %v2643_v42  ;;  %v2763_v34 = vshrl.u32 %v16338_v11, 16  ;;  %v2766_v32 = vshll.u32 %v16338_v11, 16  ;;  %v2790_v20 = vshrl.u32 %v16341_v1, 16  ;;  %24866 = vst [vmem:[#allocation41_spill] sm:$0xff] %v21243_v35 }
 0x1bf   :  { %2928 = vst.msk [vmem:[#allocation4 + $0x44] sm:$0xf] %vm108_vm6, %v2652_v45  ;;  %v2793_v62 = vshll.u32 %v16341_v1, 16  ;;  %v16339_v49 = vpack.c.bf16 %v2378_v17, %v2378_v17  ;;  %v2103_v2 = vmul.f32 0.01, %v2063_v29  ;;  %v2061_v31 = vadd.f32 %v21150_v63, %v18779_v28  ;;  %24867 = vst [vmem:[#allocation34_spill] sm:$0xff] %v21245_v23 }
 0x1c0   :  { %v2064_v18 = vadd.f32 %v21150_v63, %v18780_v53  ;;  %v2765_v51 = vrot.slane %v2763_v34, 7  ;;  %v21233_v57 = vrot.slane %v2790_v20, 7  ;;  %v18781_v56 = vadd.f32 %v21033_v38, %v24862_v48 }
 0x1c1   :  { %v24865_v21 = vrot.slane %v24864_v58, 4  ;;  %v2772_v8 = vshrl.u32 %v16339_v49, 16  ;;  %v2775_v12 = vshll.u32 %v16339_v49, 16  ;;  %v2143_v54 = vmax.f32 %v2063_v29, %v2103_v2  ;;  %v21272_v2 = vpop.permute.xlu1 %2326 }
 0x1c2   :  { %v2101_v25 = vmul.f32 0.01, %v2061_v31  ;;  %v2768_v30 = vor.u32 %v2766_v32, %v2765_v51  ;;  %v2770_v10 = vrot.slane %v2765_v51, 4  ;;  %v2795_v38 = vor.u32 %v2793_v62, %v21233_v57  ;;  %24868 = vst [vmem:[#allocation13_spill] sm:$0xff] %v21272_v2 }
 0x1c3   :  { %v2661_v41 = vsel %vm20773_vm10, %v24865_v21, %v24863_v22  ;;  %v2797_v42 = vrot.slane %v21233_v57, 4  ;;  %v21249_v11 = vld [vmem:[#allocation4 + $0x38] sm:$0xff]   ;;  %v2774_v1 = vrot.slane %v2772_v8, 7  ;;  %v2383_v27 = vmul.f32 %v21245_v23, %v2143_v54  ;;  %v24869_v21 = vld [vmem:[#allocation46_spill] sm:$0xff] }
 0x1c4   :  { %2929 = vst.msk [vmem:[#allocation4 + $0x48] sm:$0xf] %vm108_vm6, %v2661_v41  ;;  %v2141_v16 = vmax.f32 %v2061_v31, %v2101_v25  ;;  %v2104_v5 = vmul.f32 0.01, %v2064_v18  ;;  %v2769_v45 = vsel %vm20773_vm10, %v2761_v7, %v2768_v30  ;;  %v2796_v13 = vsel %vm20773_vm10, %v2788_v6, %v2795_v38  ;;  %v24870_v41 = vld [vmem:[#allocation44_spill] sm:$0xff] }
 0x1c5   :  { %v3165_v9 = vshll.u32 %v21249_v11, 16  ;;  %v3169_v17 = vshrl.u32 %v21249_v11, 16  ;;  %2941 = vst.msk [vmem:[#allocation4 + $0x78] sm:$0xf] %vm108_vm6, %v2769_v45  ;;  %2944 = vst.msk [vmem:[#allocation4 + $0x84] sm:$0xf] %vm108_vm6, %v2796_v13  ;;  %v2777_v29 = vor.u32 %v2775_v12, %v2774_v1  ;;  %v16344_v46 = vpack.c.bf16 %v2383_v27, %v2383_v27 }
 0x1c6   :  { %v21259_v28 = vld [vmem:[#allocation4 + $0x40] sm:$0xff]   ;;  %v2779_v44 = vrot.slane %v2774_v1, 4  ;;  %v2381_v59 = vmul.f32 %v21215_v40, %v2141_v16  ;;  %v2144_v34 = vmax.f32 %v2064_v18, %v2104_v5  ;;  %v2062_v6 = vadd.f32 %v21150_v63, %v18781_v56  ;;  %v21277_v56 = vld [vmem:[#allocation4 + $0x50] sm:$0xff]  }
 0x1c7   :  { %v3167_v53 = vrot.slane %v3165_v9, 1  ;;  %v3173_v7 = vshll.u32 %v21259_v28, 16  ;;  %v2778_v32 = vsel %vm20773_vm10, %v2770_v10, %v2777_v29  ;;  %v2817_v62 = vshrl.u32 %v16344_v46, 16  ;;  %v24872_v45 = vld [vmem:[#allocation18_spill] sm:$0xff] }
 0x1c8   :  { %v2787_v20 = vsel %vm20773_vm10, %v2779_v44, %v21183_v19  ;;  %v2820_v49 = vshll.u32 %v16344_v46, 16  ;;  %2942 = vst.msk [vmem:[#allocation4 + $0x7c] sm:$0xf] %vm108_vm6, %v2778_v32  ;;  %v16342_v48 = vpack.c.bf16 %v2381_v59, %v2381_v59  ;;  %v2384_v19 = vmul.f32 %v21272_v2, %v2144_v34  ;;  %v24874_v59 = vld [vmem:[#allocation20_spill] sm:$0xff] }
 0x1c9   :  { %2943 = vst.msk [vmem:[#allocation4 + $0x80] sm:$0xf] %vm108_vm6, %v2787_v20  ;;  %v3168_v31 = vsel %vm278_vm0, %v3163_v24, %v3167_v53  ;;  %v3171_v18 = vor.u32 %v3169_v17, %v3167_v53  ;;  %v3175_v51 = vrot.slane %v3173_v7, 1  ;;  %v2819_v22 = vrot.slane %v2817_v62, 7  ;;  %v21293_v17 = vpop.permute.xlu0 %2331 }
 0x1ca   :  { %17582 = vmatprep.mubr.msk.bf16.mxu1 %vm455_vm1, %v3168_v31  ;;  %v2102_v58 = vmul.f32 0.01, %v2062_v6  ;;  %v24871_v8 = vrot.slane %v24870_v41, 4  ;;  %v2799_v24 = vshrl.u32 %v16342_v48, 16  ;;  %v2802_v25 = vshll.u32 %v16342_v48, 16  ;;  %24873 = vst [vmem:[#allocation48_spill] sm:$0xff] %v21293_v17 }
 0x1cb   :  { %v3176_v54 = vsel %vm278_vm0, %v3171_v18, %v3175_v51  ;;  %v3177_v30 = vshrl.u32 %v21259_v28, 16  ;;  %v2822_v10 = vor.u32 %v2820_v49, %v2819_v22  ;;  %v2824_v38 = vrot.slane %v2819_v22, 4  ;;  %v24875_v49 = vld [vmem:[#allocation21_spill] sm:$0xff] }
 0x1cc   :  { %v2670_v12 = vsel %vm20773_vm10, %v24871_v8, %v24869_v21  ;;  %17583 = vmatmul.mubr.msk.bf16.gmra.mrb[52].mxu1 %vm455_vm1, %v3176_v54  ;;  %v16345_v1 = vpack.c.bf16 %v2384_v19, %v2384_v19  ;;  %v2142_v27 = vmax.f32 %v2062_v6, %v2102_v58  ;;  %v2801_v16 = vrot.slane %v2799_v24, 7  ;;  %v21311_v19 = vpop.permute.xlu1 %2336 }
 0x1cd   :  { %2930 = vst.msk [vmem:[#allocation4 + $0x4c] sm:$0xf] %vm108_vm6, %v2670_v12  ;;  %v3179_v5 = vor.u32 %v3177_v30, %v3175_v51  ;;  %v18782_v13 = vadd.f32 %v21044_v0, %v24872_v45  ;;  %v3189_v9 = vshll.u32 %v21277_v56, 16  ;;  %v18783_v53 = vadd.f32 %v21056_v3, %v24874_v59  ;;  %v24876_v3 = vld [vmem:[#allocation23_spill] sm:$0xff]  ;;  %24877 = vst [vmem:[#allocation14_spill] sm:$0xff] %v21311_v19  ;;  %v21320_v54 = vpop.permute.xlu0 %2341  ;;  %v21330_v59 = vld [vmem:[#allocation4 + $0x60] sm:$0xff]  }
 0x1ce   :  { %v2826_v29 = vshrl.u32 %v16345_v1, 16  ;;  %v2829_v44 = vshll.u32 %v16345_v1, 16  ;;  %v2382_v46 = vmul.f32 %v21243_v35, %v2142_v27  ;;  %v2804_v7 = vor.u32 %v2802_v25, %v2801_v16  ;;  %24878 = vst [vmem:[#allocation49_spill] sm:$0xff] %v21320_v54 }
 0x1cf   :  { %v2806_v34 = vrot.slane %v2801_v16, 4  ;;  %v2067_v6 = vadd.f32 %v21150_v63, %v18782_v13  ;;  %v3191_v32 = vrot.slane %v3189_v9, 1  ;;  %v2065_v0 = vadd.f32 %v21150_v63, %v18783_v53  ;;  %v21328_v9 = vld [vmem:[#allocation4 + $0x58] sm:$0xff]  }
 0x1d0   :  { %v21299_v20 = vrot.slane %v2826_v29, 7  ;;  %v16343_v62 = vpack.c.bf16 %v2382_v46, %v2382_v46  ;;  %v18784_v31 = vadd.f32 %v21059_v4, %v24875_v49  ;;  %v2805_v18 = vsel %vm20773_vm10, %v2797_v42, %v2804_v7 }
 0x1d1   :  { %v2107_v51 = vmul.f32 0.01, %v2067_v6  ;;  %v18785_v48 = vadd.f32 %v21062_v43, %v24876_v3  ;;  %v3193_v22 = vshrl.u32 %v21277_v56, 16  ;;  %2945 = vst.msk [vmem:[#allocation4 + $0x88] sm:$0xf] %vm108_vm6, %v2805_v18 }
 0x1d2   :  { %v2831_v58 = vor.u32 %v2829_v44, %v21299_v20  ;;  %v2833_v21 = vrot.slane %v21299_v20, 4  ;;  %v2808_v4 = vshrl.u32 %v16343_v62, 16  ;;  %v2811_v41 = vshll.u32 %v16343_v62, 16  ;;  %v21333_v62 = vpop.permute.xlu1 %2346 }
 0x1d3   :  { %v2147_v8 = vmax.f32 %v2067_v6, %v2107_v51  ;;  %v2105_v42 = vmul.f32 0.01, %v2065_v0  ;;  %v2068_v12 = vadd.f32 %v21150_v63, %v18784_v31  ;;  %v2066_v43 = vadd.f32 %v21150_v63, %v18785_v48  ;;  %24879 = vst [vmem:[#allocation16_spill] sm:$0xff] %v21333_v62 }
 0x1d4   :  { %v21316_v57 = vld [vmem:[#allocation4 + $0x48] sm:$0xff]   ;;  %v2832_v24 = vsel %vm20773_vm10, %v2824_v38, %v2831_v58  ;;  %v2810_v25 = vrot.slane %v2808_v4, 7  ;;  %v3195_v46 = vor.u32 %v3193_v22, %v3191_v32 }
 0x1d5   :  { %v3181_v30 = vshll.u32 %v21316_v57, 16  ;;  %v3185_v1 = vshrl.u32 %v21316_v57, 16  ;;  %2948 = vst.msk [vmem:[#allocation4 + $0x94] sm:$0xf] %vm108_vm6, %v2832_v24  ;;  %v2387_v27 = vmul.f32 %v21320_v54, %v2147_v8  ;;  %v2145_v16 = vmax.f32 %v2065_v0, %v2105_v42  ;;  %v21503_v54 = vld [vmem:[#allocation4 + $0x20] sm:$0xff]  }
 0x1d6   :  { %v2108_v45 = vmul.f32 0.01, %v2068_v12  ;;  %v2106_v13 = vmul.f32 0.01, %v2066_v43  ;;  %v2813_v63 = vor.u32 %v2811_v41, %v2810_v25  ;;  %v2815_v29 = vrot.slane %v2810_v25, 4  ;;  %v21350_v25 = vld [vmem:[#allocation4 + $0x68] sm:$0xff]  }
 0x1d7   :  { %v3183_v44 = vrot.slane %v3181_v30, 1  ;;  %v16348_v38 = vpack.c.bf16 %v2387_v27, %v2387_v27  ;;  %v2385_v53 = vmul.f32 %v21293_v17, %v2145_v16  ;;  %v3205_v24 = vshll.u32 %v21330_v59, 16 }
 0x1d8   :  { %v2148_v7 = vmax.f32 %v2068_v12, %v2108_v45  ;;  %v2146_v6 = vmax.f32 %v2066_v43, %v2106_v13  ;;  %v2814_v0 = vsel %vm20773_vm10, %v2806_v34, %v2813_v63  ;;  %v2823_v49 = vsel %vm20773_vm10, %v2815_v29, %v2822_v10  ;;  %v21353_v45 = vld [vmem:[#allocation4 + $0x70] sm:$0xff]   ;;  %v2953_v63 = vld [vmem:[#allocation4 + $0xa8] sm:$0x1] }
 0x1d9   :  { %v3184_v31 = vsel %vm278_vm0, %v3179_v5, %v3183_v44  ;;  %v3187_v18 = vor.u32 %v3185_v1, %v3183_v44  ;;  %2946 = vst.msk [vmem:[#allocation4 + $0x8c] sm:$0xf] %vm108_vm6, %v2814_v0  ;;  %2947 = vst.msk [vmem:[#allocation4 + $0x90] sm:$0xf] %vm108_vm6, %v2823_v49  ;;  %v2853_v51 = vshrl.u32 %v16348_v38, 16  ;;  %v2856_v3 = vshll.u32 %v16348_v38, 16 }
 0x1da   :  { %17586 = vmatprep.mubr.msk.bf16.mxu1 %vm455_vm1, %v3184_v31  ;;  %v16346_v48 = vpack.c.bf16 %v2385_v53, %v2385_v53  ;;  %v2388_v22 = vmul.f32 %v21333_v62, %v2148_v7  ;;  %v2386_v34 = vmul.f32 %v21311_v19, %v2146_v6  ;;  %v3197_v10 = vshll.u32 %v21328_v9, 16  ;;  %v21356_v53 = vld [vmem:[#allocation4 + $0x78] sm:$0xff]  }
 0x1db   :  { %v3192_v58 = vsel %vm278_vm0, %v3187_v18, %v3191_v32  ;;  %v3201_v5 = vshrl.u32 %v21328_v9, 16  ;;  %v2855_v4 = vrot.slane %v2853_v51, 7  ;;  %v3209_v32 = vshrl.u32 %v21330_v59, 16 }
 0x1dc   :  { %17587 = vmatmul.mubr.msk.bf16.gmra.mrb[56].mxu1 %vm455_vm1, %v3192_v58  ;;  %v2835_v41 = vshrl.u32 %v16346_v48, 16  ;;  %v2838_v8 = vshll.u32 %v16346_v48, 16  ;;  %v16349_v42 = vpack.c.bf16 %v2388_v22, %v2388_v22  ;;  %v16347_v12 = vpack.c.bf16 %v2386_v34, %v2386_v34 }
 0x1dd   :  { %v3199_v43 = vrot.slane %v3197_v10, 1  ;;  %v2858_v30 = vor.u32 %v2856_v3, %v2855_v4  ;;  %v2860_v1 = vrot.slane %v2855_v4, 4  ;;  %v3207_v18 = vrot.slane %v3205_v24, 1 }
 0x1de   :  { %v2837_v27 = vrot.slane %v2835_v41, 7  ;;  %v2862_v16 = vshrl.u32 %v16349_v42, 16  ;;  %v2865_v13 = vshll.u32 %v16349_v42, 16  ;;  %v2844_v29 = vshrl.u32 %v16347_v12, 16  ;;  %v21368_v41 = vld [vmem:[#allocation4 + $0x80] sm:$0xff]  }
 0x1df   :  { %v2847_v44 = vshll.u32 %v16347_v12, 16  ;;  %v3200_v38 = vsel %vm278_vm0, %v3195_v46, %v3199_v43  ;;  %v3203_v49 = vor.u32 %v3201_v5, %v3199_v43  ;;  %v3213_v51 = vshll.u32 %v21350_v25, 16 }
 0x1e0   :  { %v2840_v7 = vor.u32 %v2838_v8, %v2837_v27  ;;  %v2842_v6 = vrot.slane %v2837_v27, 4  ;;  %v2864_v0 = vrot.slane %v2862_v16, 7  ;;  %17590 = vmatprep.mubr.msk.bf16.mxu1 %vm455_vm1, %v3200_v38  ;;  %v2846_v31 = vrot.slane %v2844_v29, 7 }
 0x1e1   :  { %v3217_v3 = vshrl.u32 %v21350_v25, 16  ;;  %v3221_v58 = vshll.u32 %v21353_v45, 16  ;;  %v3208_v5 = vsel %vm278_vm0, %v3203_v49, %v3207_v18  ;;  %v3211_v4 = vor.u32 %v3209_v32, %v3207_v18 }
 0x1e2   :  { %v2841_v48 = vsel %vm20773_vm10, %v2833_v21, %v2840_v7  ;;  %v2867_v46 = vor.u32 %v2865_v13, %v2864_v0  ;;  %v2869_v22 = vrot.slane %v2864_v0, 4  ;;  %v2849_v34 = vor.u32 %v2847_v44, %v2846_v31  ;;  %v21385_v13 = vld [vmem:[#allocation4 + $0x88] sm:$0xff]  }
 0x1e3   :  { %2949 = vst.msk [vmem:[#allocation4 + $0x98] sm:$0xf] %vm108_vm6, %v2841_v48  ;;  %v2851_v10 = vrot.slane %v2846_v31, 4  ;;  %v3215_v21 = vrot.slane %v3213_v51, 1  ;;  %v3223_v12 = vrot.slane %v3221_v58, 1  ;;  %v3229_v32 = vshll.u32 %v21356_v53, 16 }
 0x1e4   :  { %v2868_v8 = vsel %vm20773_vm10, %v2860_v1, %v2867_v46  ;;  %v2954_v42 = vsel %vm20631_vm5, %v2869_v22, %v2953_v63  ;;  %17591 = vmatmul.mubr.msk.bf16.gmra.mrb[60].mxu1 %vm455_vm1, %v3208_v5  ;;  %v2850_v43 = vsel %vm20773_vm10, %v2842_v6, %v2849_v34  ;;  %v3225_v16 = vshrl.u32 %v21353_v45, 16  ;;  %v21392_v6 = vld [vmem:[#allocation4 + $0x90] sm:$0xff]  }
 0x1e5   :  { %2952 = vst.msk [vmem:[#allocation4 + $0xa4] sm:$0xf] %vm108_vm6, %v2868_v8  ;;  %2955 = vst [vmem:[#allocation4 + $0xa8] sm:$0x1] %v2954_v42  ;;  %v2859_v24 = vsel %vm20773_vm10, %v2851_v10, %v2858_v30  ;;  %v3216_v1 = vsel %vm278_vm0, %v3211_v4, %v3215_v21  ;;  %v3219_v27 = vor.u32 %v3217_v3, %v3215_v21  ;;  %v3231_v63 = vrot.slane %v3229_v32, 1 }
 0x1e6   :  { %2950 = vst.msk [vmem:[#allocation4 + $0x9c] sm:$0xf] %vm108_vm6, %v2850_v43  ;;  %2951 = vst.msk [vmem:[#allocation4 + $0xa0] sm:$0xf] %vm108_vm6, %v2859_v24  ;;  %17594 = vmatprep.mubr.msk.bf16.mxu1 %vm455_vm1, %v3216_v1  ;;  %v3237_v29 = vshll.u32 %v21368_v41, 16  ;;  %v3227_v44 = vor.u32 %v3225_v16, %v3223_v12  ;;  %v3245_v7 = vshll.u32 %v21385_v13, 16 }
 0x1e7   :  { %v3224_v30 = vsel %vm278_vm0, %v3219_v27, %v3223_v12  ;;  %v3233_v0 = vshrl.u32 %v21356_v53, 16  ;;  %v3241_v18 = vshrl.u32 %v21368_v41, 16  ;;  %v3253_v46 = vshll.u32 %v21392_v6, 16 }
 0x1e8   :  { %v3232_v38 = vsel %vm278_vm0, %v3227_v44, %v3231_v63  ;;  %v3239_v49 = vrot.slane %v3237_v29, 1  ;;  %v3247_v51 = vrot.slane %v3245_v7, 1  ;;  %v3249_v10 = vshrl.u32 %v21385_v13, 16  ;;  %v19486_v29 = vld [vmem:[%s24790_s1 + $0x28] sm:$0xff]   ;;  %v21423_v44 = vld [vmem:[#allocation4 + $0x10] sm:$0xff]   ;;  %v21429_v7 = vld [vmem:[#allocation4 + $0x8] sm:$0xff]  }
 0x1e9   :  { %v3235_v31 = vor.u32 %v3233_v0, %v3231_v63  ;;  %v3255_v5 = vrot.slane %v3253_v46, 1  ;;  %v3257_v8 = vshrl.u32 %v21392_v6, 16  ;;  %v24881_v63 = vld [vmem:[#allocation10_spill] sm:$0xff]  ;;  %v21433_v0 = vld [vmem:[#allocation4 + $0x20] sm:$0xff]   ;;  %v21449_v46 = vld [vmem:[#allocation4 + $0x38] sm:$0xff]   ;;  %vm8661_vm6 = vcmask 516096  }
 0x1ea   :  { %v3243_v48 = vor.u32 %v3241_v18, %v3239_v49  ;;  %v3251_v4 = vor.u32 %v3249_v10, %v3247_v51  ;;  %v21437_v18 = vld [vmem:[#allocation4 + $0x10] sm:$0xff]   ;;  %vm9239_vm5 = vsmask.f32 3328  ;;  %vm23117_vm9 = vmand %vm8661_vm6, %vm112_vm4 }
 0x1eb   :  { %v3240_v22 = vsel %vm278_vm0, %v3235_v31, %v3239_v49  ;;  %v3259_v21 = vor.u32 %v3257_v8, %v3255_v5  ;;  %v21435_v49 = vld [vmem:[#allocation4 + $0x28] sm:$0xff]   ;;  %v5217_v8 = vrot.slane %v21423_v44, 1 }
 0x1ec   :  { %17595 = vmatmul.mubr.msk.bf16.gmra.mrb[64].mxu1 %vm455_vm1, %v3224_v30  ;;  %v3248_v58 = vsel %vm278_vm0, %v3243_v48, %v3247_v51  ;;  %v3256_v12 = vsel %vm278_vm0, %v3251_v4, %v3255_v5  ;;  %v21425_v30 = vld [vmem:[#allocation4 + $0xc] sm:$0xf]  ;;  %v5207_v31 = vld [vmem:[#allocation4 + $0x8] sm:$0xe]  ;;  %v21442_v51 = vld [vmem:[#allocation4 + $0x30] sm:$0xff]  }
 0x1ed   :  { %17598 = vmatprep.mubr.msk.bf16.mxu1 %vm455_vm1, %v3232_v38  ;;  %v21398_v3 = vld [vmem:[#allocation4 + $0x98] sm:$0xff]   ;;  %v21408_v42 = vld [vmem:[#allocation4 + $0xa0] ss:$0 sps:$4 sm:$0x11]   ;;  %v21447_v48 = vld [vmem:[%s24790_s1 + $0x30] sm:$0xff]   ;;  %v15218_v10 = vcombine.low %v5207_v31, %v21425_v30 }
 0x1ee   :  { %v3261_v34 = vshll.u32 %v21398_v3, 16  ;;  %v3265_v24 = vshrl.u32 %v21398_v3, 16  ;;  %v3269_v32 = vshll.u32 %v21408_v42, 16  ;;  %v21427_v38 = vld [vmem:[#allocation4 + $0x18] sm:$0xff]   ;;  %v21460_v5 = vld [vmem:[#allocation4 + $0x68] sm:$0xff]   ;;  %v21462_v4 = vld [vmem:[#allocation4 + $0x70] sm:$0xff]  }
 0x1ef   :  { %v21491_v19 = vld [vmem:[#allocation4 + $0x98] sm:$0xff]   ;;  %v21507_v35 = vld [vmem:[#allocation4 + $0xa0] sm:$0xff]   ;;  %v5239_v36 = vrot.slane %v21460_v5, 1  ;;  %v5241_v26 = vrot.slane %v21462_v4, 1 }
 0x1f0   :  { %v3263_v20 = vrot.slane %v3261_v34, 1  ;;  %v3271_v27 = vrot.slane %v3269_v32, 1  ;;  %v21455_v34 = vld [vmem:[#allocation4 + $0x58] sm:$0xff]   ;;  %v5221_v32 = vrot.slane %v21433_v0, 1  ;;  %24887 = vst [vmem:[#allocation20_spill] sm:$0xff] %v21507_v35  ;;  %v5251_v39 = vrot.slane %v21491_v19, 1 }
 0x1f1   :  { %v5235_v2 = vrot.slane %v21455_v34, 1  ;;  %v21540_v33 = vsel %vm3792_vm11, %v5239_v36, %v5241_v26 }
 0x1f2   :  { %v3264_v43 = vsel %vm278_vm0, %v3259_v21, %v3263_v20  ;;  %v3267_v1 = vor.u32 %v3265_v24, %v3263_v20  ;;  %v21465_v20 = vld [vmem:[#allocation4 + $0x48] sm:$0xff]   ;;  %v21467_v21 = vld [vmem:[#allocation4 + $0x78] sm:$0xff]   ;;  %v21471_v24 = vld [vmem:[#allocation4 + $0x80] sm:$0xff]   ;;  %24896 = vst [vmem:[#allocation63_spill] sm:$0xff] %v21540_v33 }
 0x1f3   :  { %v5243_v47 = vrot.slane %v21467_v21, 1 }
 0x1f4   :  { %17599 = vmatmul.mubr.msk.bf16.gmra.mrb[68].mxu1 %vm455_vm1, %v3240_v22  ;;  %v3272_v16 = vsel %vm278_vm0, %v3267_v1, %v3271_v27  ;;  %v21451_v22 = vld [vmem:[#allocation4 + $0x40] sm:$0xff]   ;;  %v5223_v1 = vrot.slane %v21435_v49, 1  ;;  %v5225_v27 = vrot.slane %v21442_v51, 1 }
 0x1f5   :  { %17602 = vmatprep.mubr.msk.bf16.mxu1 %vm455_vm1, %v3248_v58  ;;  %v21453_v58 = vld [vmem:[#allocation4 + $0x50] sm:$0xff]   ;;  %v21544_v60 = vsel %vm3792_vm11, %v5241_v26, %v5243_v47 }
 0x1f6   :  { %v21497_v62 = vsel %vm3792_vm11, %v5221_v32, %v5223_v1  ;;  %24897 = vst [vmem:[#allocation64_spill] sm:$0xff] %v21544_v60  ;;  %v21563_v60 = vld [vmem:[#allocation4 + $0x28] sm:$0xff]  }
 0x1f7   :  { %24885 = vst [vmem:[#allocation44_spill] sm:$0xff] %v21497_v62 }
 0x1fc   :  { %17603 = vmatmul.mubr.msk.bf16.gmra.mrb[72].mxu1 %vm455_vm1, %v3256_v12  ;;  %v5216_v12 = vrot.slane %v15218_v10, 1  ;;  %v5227_v10 = vrot.slane %v21449_v46, 1 }
 0x1fd   :  { %17606 = vmatprep.mubr.msk.bf16.mxu1 %vm455_vm1, %v3264_v43  ;;  %v5219_v43 = vrot.slane %v21427_v38, 1 }
 0x1fe   :  { %v21510_v40 = vsel %vm3792_vm11, %v5225_v27, %v5227_v10 }
 0x1ff   :  { %v21484_v31 = vsel %vm3792_vm11, %v5217_v8, %v5219_v43  ;;  %v21494_v17 = vsel %vm3792_vm11, %v5219_v43, %v5221_v32  ;;  %24888 = vst [vmem:[#allocation21_spill] sm:$0xff] %v21510_v40  ;;  %v5231_v43 = vrot.slane %v21465_v20, 1  ;;  %v5233_v32 = vrot.slane %v21453_v58, 1  ;;  %v21618_v40 = vld [vmem:[#allocation4 + $0x78] sm:$0xff]  }
 0x200   :  { %24883 = vst [vmem:[#allocation39_spill] sm:$0xff] %v21484_v31  ;;  %24884 = vst [vmem:[#allocation46_spill] sm:$0xff] %v21494_v17  ;;  %v21630_v31 = vld [vmem:[#allocation4 + $0x88] sm:$0xff]  }
 0x201   :  { %v21527_v52 = vsel %vm3792_vm11, %v5231_v43, %v5233_v32  ;;  %v21530_v55 = vsel %vm3792_vm11, %v5233_v32, %v5235_v2 }
 0x202   :  { %24892 = vst [vmem:[#allocation59_spill] sm:$0xff] %v21527_v52  ;;  %24893 = vst [vmem:[#allocation60_spill] sm:$0xff] %v21530_v55 }
 0x204   :  { %17607 = vmatmul.mubr.msk.bf16.gmra.mrb[76].mxu1 %vm455_vm1, %v3272_v16  ;;  %v21476_v16 = vld [vmem:[#allocation4 + $0x88] sm:$0xff]  }
 0x205   :  { %17614 = vmatprep.mubr.msk.bf16.mxu1 %vm455_vm1, %v24881_v63  ;;  %v21478_v63 = vld [vmem:[#allocation4 + $0x90] sm:$0xff]  }
 0x206   :  { %v5249_v32 = vrot.slane %v21478_v63, 1 }
 0x208   :  { %v21561_v26 = vsel %vm3792_vm11, %v5249_v32, %v5251_v39 }
 0x209   :  { %24901 = vst [vmem:[#allocation68_spill] sm:$0xff] %v21561_v26  ;;  %v21600_v26 = vld [vmem:[#allocation4 + $0x48] sm:$0xff]  }
 0x20a   :  { %24911 = vst [vmem:[#allocation78_spill] sm:$0xff] %v21600_v26 }
 0x20c   :  { %17615 = vmatmul.mubr.msk.bf16.vlgmr.msra.gmra.mrb[40].mxu1 %vm455_vm1, %v21429_v7 }
 0x20d   :  { %17618 = vmatprep.mubr.msk.bf16.mxu1 %vm455_vm1, %v21437_v18  ;;  %17655 = vmatpush3.bf16.msra.mxu1 %v21203_v50  ;;  %v21458_v50 = vld [vmem:[#allocation4 + $0x60] sm:$0xff]  }
 0x20e   :  { %17656 = vmatprep.subr.bf16.mxu1 %v19486_v29  ;;  %v5237_v61 = vrot.slane %v21458_v50, 1 }
 0x210   :  { %v21537_v14 = vsel %vm3792_vm11, %v5237_v61, %v5239_v36 }
 0x211   :  { %17657 = vmatpush3.bf16.msra.mxu1 %v19486_v29  ;;  %v21481_v29 = vsel %vm3792_vm11, %v5216_v12, %v5217_v8  ;;  %v21500_v12 = vsel %vm3792_vm11, %v5223_v1, %v5225_v27  ;;  %v5229_v8 = vrot.slane %v21451_v22, 1  ;;  %v21515_v1 = vld [vmem:[#allocation4 + $0xa8] ss:$0 sps:$4 sm:$0x11]   ;;  %24895 = vst [vmem:[#allocation62_spill] sm:$0xff] %v21537_v14 }
 0x212   :  { %17698 = vmatprep.subr.bf16.mxu1 %v21447_v48  ;;  %24882 = vst [vmem:[#allocation45_spill] sm:$0xff] %v21481_v29  ;;  %24886 = vst [vmem:[#allocation18_spill] sm:$0xff] %v21500_v12  ;;  %v5255_v14 = vrot.slane %v21515_v1, 1  ;;  %v21620_v12 = vld [vmem:[#allocation4 + $0x80] sm:$0xff]   ;;  %v21632_v29 = vld [vmem:[#allocation4 + $0x90] sm:$0xff]  }
 0x213   :  { %24889 = vst [vmem:[#allocation23_spill] sm:$0xff] %v21515_v1  ;;  %v21518_v23 = vsel %vm3792_vm11, %v5227_v10, %v5229_v8  ;;  %v21524_v27 = vsel %vm3792_vm11, %v5229_v8, %v5231_v43  ;;  %v21534_v10 = vsel %vm3792_vm11, %v5235_v2, %v5237_v61  ;;  %v5245_v8 = vrot.slane %v21471_v24, 1 }
 0x214   :  { %17619 = vmatmul.mubr.msk.bf16.gmra.mrb[44].mxu1 %vm455_vm1, %v21487_v15  ;;  %24890 = vst [vmem:[#allocation8_spill] sm:$0xff] %v21518_v23  ;;  %24891 = vst [vmem:[#allocation10_spill] sm:$0xff] %v21524_v27  ;;  %v5247_v43 = vrot.slane %v21476_v16, 1  ;;  %v5253_v61 = vrot.slane %v21507_v35, 1  ;;  %v21610_v27 = vld [vmem:[#allocation4 + $0x60] sm:$0xff]  }
 0x215   :  { %17622 = vmatprep.mubr.msk.bf16.mxu1 %vm455_vm1, %v21503_v54  ;;  %24894 = vst [vmem:[#allocation61_spill] sm:$0xff] %v21534_v10  ;;  %v21550_v2 = vsel %vm3792_vm11, %v5243_v47, %v5245_v8  ;;  %v21607_v10 = vld [vmem:[#allocation4 + $0x58] sm:$0xff]  }
 0x216   :  { %24898 = vst [vmem:[#allocation65_spill] sm:$0xff] %v21550_v2  ;;  %v21555_v36 = vsel %vm3792_vm11, %v5245_v8, %v5247_v43  ;;  %v21558_v33 = vsel %vm3792_vm11, %v5247_v43, %v5249_v32  ;;  %v21568_v47 = vsel %vm3792_vm11, %v5251_v39, %v5253_v61  ;;  %v21571_v2 = vsel %vm3792_vm11, %v5253_v61, %v5255_v14  ;;  %v21583_v39 = vld [vmem:[#allocation4 + $0x14] sm:$0xf]  ;;  %v21585_v8 = vld [vmem:[#allocation4 + $0x18] sm:$0xff]   ;;  %v6630_v14 = vld [vmem:[#allocation4 + $0x10] sm:$0xe] }
 0x217   :  { %24899 = vst [vmem:[#allocation66_spill] sm:$0xff] %v21555_v36  ;;  %24900 = vst [vmem:[#allocation67_spill] sm:$0xff] %v21558_v33  ;;  %v21587_v43 = vld [vmem:[#allocation4 + $0x20] sm:$0xff]   ;;  %v21591_v32 = vld [vmem:[#allocation4 + $0x30] sm:$0xff]   ;;  %v6640_v33 = vrot.slane %v21585_v8, 1 }
 0x218   :  { %24902 = vst [vmem:[#allocation69_spill] sm:$0xff] %v21568_v47  ;;  %24903 = vst [vmem:[#allocation70_spill] sm:$0xff] %v21571_v2  ;;  %v21593_v61 = vld [vmem:[#allocation4 + $0x38] sm:$0xff]   ;;  %v21595_v2 = vld [vmem:[#allocation4 + $0x40] sm:$0xff]   ;;  %v15338_v47 = vcombine.low %v6630_v14, %v21583_v39  ;;  %v6642_v52 = vrot.slane %v21587_v43, 1 }
 0x219   :  { %24904 = vst [vmem:[#allocation71_spill] sm:$0xff] %v21583_v39  ;;  %24905 = vst [vmem:[#allocation72_spill] sm:$0xff] %v21585_v8  ;;  %v21605_v36 = vld [vmem:[#allocation4 + $0x50] sm:$0xff]   ;;  %v21612_v14 = vld [vmem:[#allocation4 + $0x68] sm:$0xff]   ;;  %v6646_v8 = vrot.slane %v21591_v32, 1  ;;  %v6650_v17 = vrot.slane %v21595_v2, 1 }
 0x21a   :  { %24906 = vst [vmem:[#allocation73_spill] sm:$0xff] %v21587_v43  ;;  %24908 = vst [vmem:[#allocation75_spill] sm:$0xff] %v21591_v32  ;;  %v6639_v55 = vrot.slane %v15338_v47, 1  ;;  %v21614_v39 = vld [vmem:[#allocation4 + $0x70] sm:$0xff]   ;;  %v21626_v47 = vsel %vm3792_vm11, %v6640_v33, %v6642_v52  ;;  %v6648_v43 = vrot.slane %v21593_v61, 1  ;;  %v6660_v1 = vrot.slane %v21612_v14, 1 }
 0x21b   :  { %24909 = vst [vmem:[#allocation76_spill] sm:$0xff] %v21593_v61  ;;  %24910 = vst [vmem:[#allocation77_spill] sm:$0xff] %v21595_v2  ;;  %v6662_v35 = vrot.slane %v21614_v39, 1 }
 0x21c   :  { %17623 = vmatmul.mubr.msk.bf16.gmra.mrb[48].mxu1 %vm455_vm1, %v21563_v60  ;;  %24912 = vst [vmem:[#allocation79_spill] sm:$0xff] %v21614_v39  ;;  %v21623_v62 = vsel %vm3792_vm11, %v6639_v55, %v6640_v33  ;;  %24914 = vst [vmem:[#allocation81_spill] sm:$0xff] %v21626_v47  ;;  %v6652_v55 = vrot.slane %v21600_v26, 1  ;;  %v21643_v33 = vld [vmem:[#allocation4 + $0xa0] sm:$0xff]   ;;  %v21645_v47 = vld [vmem:[#allocation4 + $0xa8] sm:$0xff]   ;;  %v21648_v2 = vsel %vm3792_vm11, %v6646_v8, %v6648_v43  ;;  %v6658_v26 = vrot.slane %v21610_v27, 1 }
 0x21d   :  { %17626 = vmatprep.mubr.msk.bf16.mxu1 %vm455_vm1, %v21157_v37  ;;  %v21589_v37 = vld [vmem:[#allocation4 + $0x28] sm:$0xff]   ;;  %24913 = vst [vmem:[#allocation80_spill] sm:$0xff] %v21623_v62  ;;  %v21641_v62 = vld [vmem:[#allocation4 + $0x98] sm:$0xff]   ;;  %24917 = vst [vmem:[#allocation84_spill] sm:$0xff] %v21648_v2  ;;  %v21651_v61 = vsel %vm3792_vm11, %v6648_v43, %v6650_v17  ;;  %v6666_v2 = vrot.slane %v21620_v12, 1  ;;  %v21680_v39 = vsel %vm3792_vm11, %v6660_v1, %v6662_v35 }
 0x21e   :  { %24907 = vst [vmem:[#allocation74_spill] sm:$0xff] %v21589_v37  ;;  %v6644_v23 = vrot.slane %v21589_v37, 1  ;;  %24918 = vst [vmem:[#allocation85_spill] sm:$0xff] %v21651_v61  ;;  %v6664_v61 = vrot.slane %v21618_v40, 1 }
 0x21f   :  { %24924 = vst [vmem:[#allocation91_spill] sm:$0xff] %v21680_v39  ;;  %v6676_v39 = vrot.slane %v21645_v47, 1 }
 0x220   :  { %v21635_v32 = vsel %vm3792_vm11, %v6642_v52, %v6644_v23  ;;  %v21638_v37 = vsel %vm3792_vm11, %v6644_v23, %v6646_v8  ;;  %v6654_v52 = vrot.slane %v21605_v36, 1  ;;  %v21655_v23 = vld [vmem:[#allocation4 + $0xb0] ss:$0 sps:$4 sm:$0x11]  }
 0x221   :  { %24915 = vst [vmem:[#allocation82_spill] sm:$0xff] %v21635_v32  ;;  %24916 = vst [vmem:[#allocation83_spill] sm:$0xff] %v21638_v37  ;;  %v6656_v32 = vrot.slane %v21607_v10, 1  ;;  %v21658_v37 = vsel %vm3792_vm11, %v6650_v17, %v6652_v55 }
 0x222   :  { %24919 = vst [vmem:[#allocation86_spill] sm:$0xff] %v21658_v37  ;;  %v21664_v8 = vsel %vm3792_vm11, %v6652_v55, %v6654_v52  ;;  %v21677_v37 = vsel %vm3792_vm11, %v6658_v26, %v6660_v1  ;;  %v6668_v55 = vrot.slane %v21630_v31, 1  ;;  %v6674_v1 = vrot.slane %v21643_v33, 1 }
 0x223   :  { %24920 = vst [vmem:[#allocation87_spill] sm:$0xff] %v21664_v8  ;;  %v21667_v43 = vsel %vm3792_vm11, %v6654_v52, %v6656_v32  ;;  %v21674_v17 = vsel %vm3792_vm11, %v6656_v32, %v6658_v26  ;;  %24923 = vst [vmem:[#allocation90_spill] sm:$0xff] %v21677_v37  ;;  %v21686_v52 = vsel %vm3792_vm11, %v6662_v35, %v6664_v61  ;;  %v6670_v32 = vrot.slane %v21632_v29, 1 }
 0x224   :  { %17627 = vmatmul.mubr.msk.bf16.gmra.mrb[52].mxu1 %vm455_vm1, %v21249_v11  ;;  %24921 = vst [vmem:[#allocation88_spill] sm:$0xff] %v21667_v43  ;;  %24922 = vst [vmem:[#allocation89_spill] sm:$0xff] %v21674_v17  ;;  %v21689_v43 = vsel %vm3792_vm11, %v6664_v61, %v6666_v2  ;;  %v6672_v17 = vrot.slane %v21641_v62, 1  ;;  %v21694_v26 = vsel %vm3792_vm11, %v6666_v2, %v6668_v55  ;;  %v6678_v37 = vrot.slane %v21655_v23, 1 }
 0x225   :  { %17630 = vmatprep.mubr.msk.bf16.mxu1 %vm455_vm1, %v21259_v28  ;;  %24925 = vst [vmem:[#allocation92_spill] sm:$0xff] %v21689_v43  ;;  %v21700_v8 = vsel %vm3792_vm11, %v6668_v55, %v6670_v32  ;;  %v21709_v43 = vsel %vm3792_vm11, %v6674_v1, %v6676_v39  ;;  %v3783_v55 = vld [vmem:[#allocation4] sm:$0xe] }
 0x226   :  { %v21703_v35 = vsel %vm3792_vm11, %v6670_v32, %v6672_v17  ;;  %v21706_v61 = vsel %vm3792_vm11, %v6672_v17, %v6674_v1  ;;  %v21712_v2 = vsel %vm3792_vm11, %v6676_v39, %v6678_v37  ;;  %v19987_v32 = vld [vmem:[#allocation4 + $0x4] sm:$0xf]  ;;  %v3794_v1 = vrot.slane %v21429_v7, 1 }
 0x227   :  { %24926 = vst [vmem:[#allocation93_spill] sm:$0xff] %v21703_v35  ;;  %24927 = vst [vmem:[#allocation94_spill] sm:$0xff] %v21712_v2  ;;  %v15098_v35 = vcombine.low %v3783_v55, %v19987_v32  ;;  %v3796_v37 = vrot.slane %v21437_v18, 1  ;;  %v3798_v2 = vrot.slane %v21487_v15, 1  ;;  %v19489_v55 = vld [vmem:[%s24790_s1 + $0x38] sm:$0xff]   ;;  %v19503_v18 = vld [vmem:[%s24790_s1 + $0x40] sm:$0xff]  }
 0x228   :  { %v3800_v15 = vrot.slane %v21503_v54, 1  ;;  %v3808_v54 = vrot.slane %v21259_v28, 1 }
 0x229   :  { %v3793_v17 = vrot.slane %v15098_v35, 1  ;;  %v3797_v32 = vsel %vm3792_vm11, %v3794_v1, %v3796_v37  ;;  %v3799_v7 = vsel %vm3792_vm11, %v3796_v37, %v3798_v2  ;;  %v3802_v35 = vrot.slane %v21563_v60, 1 }
 0x22a   :  { %v3806_v37 = vrot.slane %v21249_v11, 1  ;;  %v3812_v11 = vrot.slane %v21277_v56, 1 }
 0x22b   :  { %v3795_v39 = vsel %vm3792_vm11, %v3793_v17, %v3794_v1  ;;  %v3801_v17 = vsel %vm3792_vm11, %v3798_v2, %v3800_v15  ;;  %v3803_v1 = vsel %vm3792_vm11, %v3800_v15, %v3802_v35  ;;  %v3810_v2 = vrot.slane %v21316_v57, 1 }
 0x22c   :  { %17631 = vmatmul.mubr.msk.bf16.gmra.mrb[56].mxu1 %vm455_vm1, %v21316_v57  ;;  %v3814_v15 = vrot.slane %v21328_v9, 1  ;;  %v3816_v57 = vrot.slane %v21330_v59, 1 }
 0x22d   :  { %17634 = vmatprep.mubr.msk.bf16.mxu1 %vm455_vm1, %v21277_v56 }
 0x22e   :  { %v3815_v28 = vsel %vm3792_vm11, %v3812_v11, %v3814_v15 }
 0x234   :  { %17635 = vmatmul.mubr.msk.bf16.gmra.mrb[60].mxu1 %vm455_vm1, %v21328_v9  ;;  %v3820_v9 = vrot.slane %v21353_v45, 1 }
 0x235   :  { %17638 = vmatprep.mubr.msk.bf16.mxu1 %vm455_vm1, %v21330_v59 }
 0x23c   :  { %17639 = vmatmul.mubr.msk.bf16.gmra.mrb[64].mxu1 %vm455_vm1, %v21350_v25 }
 0x23d   :  { %17642 = vmatprep.mubr.msk.bf16.mxu1 %vm455_vm1, %v21353_v45 }
 0x244   :  { %17643 = vmatmul.mubr.msk.bf16.gmra.mrb[68].mxu1 %vm455_vm1, %v21356_v53 }
 0x245   :  { %17646 = vmatprep.mubr.msk.bf16.mxu1 %vm455_vm1, %v21368_v41 }
 0x24c   :  { %17647 = vmatmul.mubr.msk.bf16.gmra.mrb[72].mxu1 %vm455_vm1, %v21385_v13 }
 0x24d   :  { %17650 = vmatprep.mubr.msk.bf16.mxu1 %vm455_vm1, %v21392_v6 }
 0x254   :  { %17651 = vmatmul.mubr.msk.bf16.gmra.mrb[76].mxu1 %vm455_vm1, %v21398_v3 }
 0x255   :  { %17658 = vmatprep.mubr.msk.bf16.mxu1 %vm455_vm1, %v3795_v39 }
 0x25c   :  { %17659 = vmatmul.mubr.msk.bf16.vlgmr.msra.gmra.mrb[40].mxu1 %vm455_vm1, %v3797_v32 }
 0x25d   :  { %17662 = vmatprep.mubr.msk.bf16.mxu1 %vm455_vm1, %v3799_v7  ;;  %17699 = vmatpush3.bf16.msra.mxu1 %v21447_v48  ;;  %v19988_v48 = vld [vmem:[#allocation4 + $0x30] sm:$0xff]   ;;  %v3811_v7 = vsel %vm3792_vm11, %v3808_v54, %v3810_v2 }
 0x25e   :  { %17700 = vmatprep.subr.bf16.mxu1 %v19489_v55  ;;  %v3804_v39 = vrot.slane %v19988_v48, 1  ;;  %v3822_v48 = vrot.slane %v21356_v53, 1  ;;  %v3828_v53 = vrot.slane %v21392_v6, 1  ;;  %v19490_v6 = vld [vmem:[#allocation4 + $0x10] sm:$0xff]  }
 0x260   :  { %v3805_v32 = vsel %vm3792_vm11, %v3802_v35, %v3804_v39  ;;  %v3807_v60 = vsel %vm3792_vm11, %v3804_v39, %v3806_v37  ;;  %v3813_v35 = vsel %vm3792_vm11, %v3810_v2, %v3812_v11  ;;  %v3823_v59 = vsel %vm3792_vm11, %v3820_v9, %v3822_v48  ;;  %v19492_v11 = vld [vmem:[#allocation4 + $0x20] sm:$0xff]  }
 0x261   :  { %17701 = vmatpush3.bf16.msra.mxu1 %v19489_v55  ;;  %v3809_v55 = vsel %vm3792_vm11, %v3806_v37, %v3808_v54  ;;  %v3826_v37 = vrot.slane %v21385_v13, 1  ;;  %v3832_v13 = vrot.slane %v21408_v42, 1  ;;  %v19526_v42 = vld [vmem:[%s24790_s1 + $0x50] sm:$0xff]  }
 0x262   :  { %17742 = vmatprep.subr.bf16.mxu1 %v19503_v18 }
 0x263   :  { %v3829_v54 = vsel %vm3792_vm11, %v3826_v37, %v3828_v53 }
 0x264   :  { %17663 = vmatmul.mubr.msk.bf16.gmra.mrb[44].mxu1 %vm455_vm1, %v3801_v17  ;;  %v3818_v17 = vrot.slane %v21350_v25, 1  ;;  %v3824_v25 = vrot.slane %v21368_v41, 1 }
 0x265   :  { %17666 = vmatprep.mubr.msk.bf16.mxu1 %vm455_vm1, %v3803_v1  ;;  %v3817_v1 = vsel %vm3792_vm11, %v3814_v15, %v3816_v57  ;;  %v19493_v15 = vld [vmem:[#allocation4 + $0x28] sm:$0xff]  }
 0x266   :  { %v3819_v56 = vsel %vm3792_vm11, %v3816_v57, %v3818_v17  ;;  %v3821_v39 = vsel %vm3792_vm11, %v3818_v17, %v3820_v9  ;;  %v3827_v45 = vsel %vm3792_vm11, %v3824_v25, %v3826_v37  ;;  %v19497_v57 = vld [vmem:[#allocation4 + $0x48] sm:$0xff]   ;;  %v19498_v17 = vld [vmem:[#allocation4 + $0x50] sm:$0xff]  }
 0x267   :  { %v19501_v9 = vld [vmem:[#allocation4 + $0x68] sm:$0xff]  }
 0x268   :  { %v4589_v37 = vld [vmem:[#allocation4 + $0x8] sm:$0xf] }
 0x26c   :  { %17667 = vmatmul.mubr.msk.bf16.gmra.mrb[48].mxu1 %vm455_vm1, %v3805_v32  ;;  %v3825_v32 = vsel %vm3792_vm11, %v3822_v48, %v3824_v25  ;;  %v19502_v48 = vld [vmem:[#allocation4 + $0x70] sm:$0xff]   ;;  %v19506_v25 = vld [vmem:[#allocation4 + $0x88] sm:$0xff]  }
 0x26d   :  { %17670 = vmatprep.mubr.msk.bf16.mxu1 %vm455_vm1, %v3807_v60  ;;  %v3830_v60 = vrot.slane %v21398_v3, 1  ;;  %v19512_v3 = vld [vmem:[%s24790_s1 + $0x48] sm:$0xff]  }
 0x26f   :  { %v3831_v41 = vsel %vm3792_vm11, %v3828_v53, %v3830_v60  ;;  %v3833_v2 = vsel %vm3792_vm11, %v3830_v60, %v3832_v13  ;;  %v19507_v53 = vld [vmem:[#allocation4 + $0x90] sm:$0xff]   ;;  %v19508_v60 = vld [vmem:[#allocation4 + $0x98] sm:$0xff]   ;;  %v4746_v13 = vshll.u32 %v21423_v44, 16 }
 0x274   :  { %17671 = vmatmul.mubr.msk.bf16.gmra.mrb[52].mxu1 %vm455_vm1, %v3809_v55  ;;  %v19488_v55 = vld [vmem:[#allocation4 + $0x8] sm:$0xff]  }
 0x275   :  { %17674 = vmatprep.mubr.msk.bf16.mxu1 %vm455_vm1, %v3811_v7  ;;  %v19491_v7 = vld [vmem:[#allocation4 + $0x18] sm:$0xff]  }
 0x27c   :  { %17675 = vmatmul.mubr.msk.bf16.gmra.mrb[56].mxu1 %vm455_vm1, %v3813_v35  ;;  %v19494_v35 = vld [vmem:[#allocation4 + $0x30] sm:$0xff]  }
 0x27d   :  { %17678 = vmatprep.mubr.msk.bf16.mxu1 %vm455_vm1, %v3815_v28  ;;  %v19495_v28 = vld [vmem:[#allocation4 + $0x38] sm:$0xff]  }
 0x284   :  { %17679 = vmatmul.mubr.msk.bf16.gmra.mrb[60].mxu1 %vm455_vm1, %v3817_v1  ;;  %v19499_v1 = vld [vmem:[#allocation4 + $0x58] sm:$0xff]  }
 0x285   :  { %17682 = vmatprep.mubr.msk.bf16.mxu1 %vm455_vm1, %v3819_v56  ;;  %v19500_v56 = vld [vmem:[#allocation4 + $0x60] sm:$0xff]  }
 0x28c   :  { %17683 = vmatmul.mubr.msk.bf16.gmra.mrb[64].mxu1 %vm455_vm1, %v3821_v39  ;;  %v19504_v39 = vld [vmem:[#allocation4 + $0x78] sm:$0xff]  }
 0x28d   :  { %17686 = vmatprep.mubr.msk.bf16.mxu1 %vm455_vm1, %v3823_v59  ;;  %v19505_v59 = vld [vmem:[#allocation4 + $0x80] sm:$0xff]  }
 0x294   :  { %17687 = vmatmul.mubr.msk.bf16.gmra.mrb[68].mxu1 %vm455_vm1, %v3825_v32  ;;  %v15171_v32 = vcombine.low %v4589_v37, %v21425_v30  ;;  %v4786_v37 = vshll.u32 %v21449_v46, 16 }
 0x295   :  { %17690 = vmatprep.mubr.msk.bf16.mxu1 %vm455_vm1, %v3827_v45 }
 0x296   :  { %v4741_v45 = vshll.u32 %v15171_v32, 16 }
 0x29c   :  { %17691 = vmatmul.mubr.msk.bf16.gmra.mrb[72].mxu1 %vm455_vm1, %v3829_v54  ;;  %v4743_v54 = vrot.slane %v4741_v45, 1 }
 0x29d   :  { %17694 = vmatprep.mubr.msk.bf16.mxu1 %vm455_vm1, %v3831_v41  ;;  %v4739_v41 = vshrl.u32 %v15171_v32, 16 }
 0x2a4   :  { %17695 = vmatmul.mubr.msk.bf16.gmra.mrb[76].mxu1 %vm455_vm1, %v3833_v2  ;;  %v4744_v2 = vor.u32 %v4743_v54, %v4739_v41  ;;  %v4782_v54 = vshrl.u32 %v21442_v51, 16 }
 0x2a5   :  { %17702 = vmatprep.mubr.msk.bf16.mxu1 %vm455_vm1, %v19488_v55  ;;  %v4754_v55 = vshll.u32 %v21427_v38, 16 }
 0x2ac   :  { %17703 = vmatmul.mubr.msk.bf16.vlgmr.msra.gmra.mrb[40].mxu1 %vm455_vm1, %v19490_v6  ;;  %v19509_v6 = vld [vmem:[#allocation4 + $0xa0] sm:$0xff]  }
 0x2ad   :  { %17706 = vmatprep.mubr.msk.bf16.mxu1 %vm455_vm1, %v19491_v7  ;;  %17743 = vmatpush3.bf16.msra.mxu1 %v19503_v18  ;;  %v19496_v18 = vld [vmem:[#allocation4 + $0x40] sm:$0xff]   ;;  %v4756_v7 = vrot.slane %v4754_v55, 1 }
 0x2ae   :  { %17744 = vmatprep.subr.bf16.mxu1 %v19512_v3 }
 0x2b1   :  { %17745 = vmatpush3.bf16.msra.mxu1 %v19512_v3  ;;  %v4748_v3 = vrot.slane %v4746_v13, 1  ;;  %v4802_v13 = vshll.u32 %v21465_v20, 16 }
 0x2b2   :  { %17786 = vmatprep.subr.bf16.mxu1 %v19526_v42 }
 0x2b3   :  { %v4749_v30 = vsel %vm278_vm0, %v4744_v2, %v4748_v3 }
 0x2b4   :  { %17707 = vmatmul.mubr.msk.bf16.gmra.mrb[44].mxu1 %vm455_vm1, %v19492_v11  ;;  %v4758_v11 = vshrl.u32 %v21427_v38, 16 }
 0x2b5   :  { %17710 = vmatprep.mubr.msk.bf16.mxu1 %vm455_vm1, %v19493_v15  ;;  %v4762_v15 = vshll.u32 %v21433_v0, 16 }
 0x2bc   :  { %17711 = vmatmul.mubr.msk.bf16.gmra.mrb[48].mxu1 %vm455_vm1, %v19494_v35  ;;  %v4750_v35 = vshrl.u32 %v21423_v44, 16  ;;  %v4774_v44 = vshrl.u32 %v21435_v49, 16 }
 0x2bd   :  { %17714 = vmatprep.mubr.msk.bf16.mxu1 %vm455_vm1, %v19495_v28  ;;  %v4760_v28 = vor.u32 %v4758_v11, %v4756_v7 }
 0x2c4   :  { %17715 = vmatmul.mubr.msk.bf16.gmra.mrb[52].mxu1 %vm455_vm1, %v19496_v18  ;;  %v4770_v18 = vshll.u32 %v21435_v49, 16 }
 0x2c5   :  { %17718 = vmatprep.mubr.msk.bf16.mxu1 %vm455_vm1, %v19497_v57  ;;  %v4752_v57 = vor.u32 %v4750_v35, %v4748_v3 }
 0x2c6   :  { %v4772_v38 = vrot.slane %v4770_v18, 1 }
 0x2cc   :  { %17719 = vmatmul.mubr.msk.bf16.gmra.mrb[56].mxu1 %vm455_vm1, %v19498_v17  ;;  %v4764_v17 = vrot.slane %v4762_v15, 1  ;;  %v4818_v15 = vshll.u32 %v21455_v34, 16 }
 0x2cd   :  { %17722 = vmatprep.mubr.msk.bf16.mxu1 %vm455_vm1, %v19499_v1  ;;  %v19534_v1 = vld [vmem:[%s24790_s1 + $0x58] sm:$0xff]  }
 0x2d4   :  { %17723 = vmatmul.mubr.msk.bf16.gmra.mrb[60].mxu1 %vm455_vm1, %v19500_v56  ;;  %v4757_v56 = vsel %vm278_vm0, %v4752_v57, %v4756_v7  ;;  %v4810_v7 = vshll.u32 %v21453_v58, 16 }
 0x2d5   :  { %17726 = vmatprep.mubr.msk.bf16.mxu1 %vm455_vm1, %v19501_v9  ;;  %v4765_v9 = vsel %vm278_vm0, %v4760_v28, %v4764_v17 }
 0x2d6   :  { %v4812_v28 = vrot.slane %v4810_v7, 1 }
 0x2dc   :  { %17727 = vmatmul.mubr.msk.bf16.gmra.mrb[64].mxu1 %vm455_vm1, %v19502_v48  ;;  %v4778_v48 = vshll.u32 %v21442_v51, 16  ;;  %v4798_v51 = vshrl.u32 %v21451_v22, 16 }
 0x2dd   :  { %17730 = vmatprep.mubr.msk.bf16.mxu1 %vm455_vm1, %v19504_v39  ;;  %v21837_v39 = vld [vmem:[%s24790_s1 + $0x60] sm:$0xff]  }
 0x2de   :  { %v4780_v45 = vrot.slane %v4778_v48, 1 }
 0x2e0   :  { %v4784_v2 = vor.u32 %v4782_v54, %v4780_v45  ;;  %v4858_v54 = vshll.u32 %v21471_v24, 16 }
 0x2e4   :  { %17731 = vmatmul.mubr.msk.bf16.gmra.mrb[68].mxu1 %vm455_vm1, %v19505_v59  ;;  %v4766_v59 = vshrl.u32 %v21433_v0, 16  ;;  %v4794_v0 = vshll.u32 %v21451_v22, 16  ;;  %v4814_v22 = vshrl.u32 %v21453_v58, 16  ;;  %v4830_v58 = vshrl.u32 %v21458_v50, 16 }
 0x2e5   :  { %17734 = vmatprep.mubr.msk.bf16.mxu1 %vm455_vm1, %v19506_v25  ;;  %v4776_v25 = vor.u32 %v4774_v44, %v4772_v38 }
 0x2e6   :  { %v4768_v32 = vor.u32 %v4766_v59, %v4764_v17  ;;  %v4796_v55 = vrot.slane %v4794_v0, 1  ;;  %v4820_v17 = vrot.slane %v4818_v15, 1 }
 0x2e8   :  { %v4773_v49 = vsel %vm278_vm0, %v4768_v32, %v4772_v38  ;;  %v4800_v35 = vor.u32 %v4798_v51, %v4796_v55  ;;  %v4816_v38 = vor.u32 %v4814_v22, %v4812_v28  ;;  %v4882_v51 = vshll.u32 %v21491_v19, 16 }
 0x2ea   :  { %v4821_v48 = vsel %vm278_vm0, %v4816_v38, %v4820_v17 }
 0x2ec   :  { %17735 = vmatmul.mubr.msk.bf16.gmra.mrb[72].mxu1 %vm455_vm1, %v19507_v53  ;;  %v4788_v53 = vrot.slane %v4786_v37, 1  ;;  %v4842_v37 = vshll.u32 %v21462_v4, 16 }
 0x2ed   :  { %17738 = vmatprep.mubr.msk.bf16.mxu1 %vm455_vm1, %v19508_v60  ;;  %v4790_v60 = vshrl.u32 %v21449_v46, 16  ;;  %v4806_v46 = vshrl.u32 %v21465_v20, 16  ;;  %v4822_v20 = vshrl.u32 %v21455_v34, 16  ;;  %v4838_v34 = vshrl.u32 %v21460_v5, 16 }
 0x2ef   :  { %v4792_v41 = vor.u32 %v4790_v60, %v4788_v53 }
 0x2f1   :  { %v4797_v3 = vsel %vm278_vm0, %v4792_v41, %v4796_v55  ;;  %v4860_v55 = vrot.slane %v4858_v54, 1  ;;  %v24941_v54 = vld [vmem:[#allocation62_spill] sm:$0xff] }
 0x2f4   :  { %17739 = vmatmul.mubr.msk.bf16.gmra.mrb[76].mxu1 %vm455_vm1, %v19509_v6  ;;  %v4789_v6 = vsel %vm278_vm0, %v4784_v2, %v4788_v53 }
 0x2f5   :  { %17746 = vmatprep.mubr.msk.bf16.mxu1 %vm455_vm1, %v4749_v30  ;;  %v4804_v30 = vrot.slane %v4802_v13, 1  ;;  %v4866_v13 = vshll.u32 %v21476_v16, 16 }
 0x2f7   :  { %v4808_v11 = vor.u32 %v4806_v46, %v4804_v30  ;;  %v4805_v18 = vsel %vm278_vm0, %v4800_v35, %v4804_v30  ;;  %v4868_v30 = vrot.slane %v4866_v13, 1  ;;  %v4874_v46 = vshll.u32 %v21478_v63, 16  ;;  %v24944_v13 = vld [vmem:[#allocation65_spill] sm:$0xff] }
 0x2f9   :  { %v4813_v57 = vsel %vm278_vm0, %v4808_v11, %v4812_v28  ;;  %v4876_v15 = vrot.slane %v4874_v46, 1  ;;  %v19538_v46 = vld [vmem:[#allocation4 + $0x18] sm:$0xff]  }
 0x2fc   :  { %17747 = vmatmul.mubr.msk.bf16.vlgmr.msra.gmra.mrb[40].mxu1 %vm455_vm1, %v4757_v56  ;;  %v4824_v56 = vor.u32 %v4822_v20, %v4820_v17 }
 0x2fd   :  { %17750 = vmatprep.mubr.msk.bf16.mxu1 %vm455_vm1, %v4765_v9  ;;  %17787 = vmatpush3.bf16.msra.mxu1 %v19526_v42  ;;  %v4781_v42 = vsel %vm278_vm0, %v4776_v25, %v4780_v45  ;;  %v4834_v9 = vshll.u32 %v21460_v5, 16  ;;  %v4850_v45 = vshll.u32 %v21467_v21, 16  ;;  %v4854_v5 = vshrl.u32 %v21467_v21, 16 }
 0x2fe   :  { %17788 = vmatprep.subr.bf16.mxu1 %v19534_v1  ;;  %v4870_v21 = vshrl.u32 %v21476_v16, 16  ;;  %v4886_v16 = vshrl.u32 %v21491_v19, 16 }
 0x2ff   :  { %v4836_v25 = vrot.slane %v4834_v9, 1  ;;  %v4852_v0 = vrot.slane %v4850_v45, 1  ;;  %v24933_v45 = vld [vmem:[#allocation44_spill] sm:$0xff] }
 0x300   :  { %v4872_v7 = vor.u32 %v4870_v21, %v4868_v30  ;;  %v24949_v21 = vld [vmem:[#allocation70_spill] sm:$0xff] }
 0x301   :  { %17789 = vmatpush3.bf16.msra.mxu1 %v19534_v1  ;;  %v4826_v1 = vshll.u32 %v21458_v50, 16  ;;  %v4840_v32 = vor.u32 %v4838_v34, %v4836_v25  ;;  %v4846_v50 = vshrl.u32 %v21462_v4, 16  ;;  %v4856_v41 = vor.u32 %v4854_v5, %v4852_v0  ;;  %v19537_v34 = vld [vmem:[%s24790_s1 + $0x68] sm:$0xff]  }
 0x302   :  { %17830 = vmatprep.subr.bf16.mxu1 %v21837_v39  ;;  %v4862_v4 = vshrl.u32 %v21471_v24, 16  ;;  %v4877_v28 = vsel %vm278_vm0, %v4872_v7, %v4876_v15  ;;  %v4878_v24 = vshrl.u32 %v21478_v63, 16  ;;  %v24930_v63 = vld [vmem:[#allocation45_spill] sm:$0xff] }
 0x303   :  { %v4828_v44 = vrot.slane %v4826_v1, 1  ;;  %v24940_v5 = vld [vmem:[#allocation61_spill] sm:$0xff] }
 0x304   :  { %17751 = vmatmul.mubr.msk.bf16.gmra.mrb[44].mxu1 %vm455_vm1, %v4773_v49  ;;  %v4864_v11 = vor.u32 %v4862_v4, %v4860_v55  ;;  %v4880_v1 = vor.u32 %v4878_v24, %v4876_v15  ;;  %v19560_v4 = vld [vmem:[%s24790_s1 + $0x78] sm:$0xff]   ;;  %v19539_v7 = vld [vmem:[#allocation4 + $0x20] sm:$0xff]   ;;  %v19548_v24 = vld [vmem:[#allocation4 + $0x68] sm:$0xff]  }
 0x305   :  { %17754 = vmatprep.mubr.msk.bf16.mxu1 %vm455_vm1, %v4781_v42  ;;  %v4829_v59 = vsel %vm278_vm0, %v4824_v56, %v4828_v44  ;;  %v4832_v49 = vor.u32 %v4830_v58, %v4828_v44  ;;  %v4844_v42 = vrot.slane %v4842_v37, 1  ;;  %v24929_v44 = vld [vmem:[#allocation23_spill] sm:$0xff]  ;;  %v24932_v58 = vld [vmem:[#allocation46_spill] sm:$0xff] }
 0x306   :  { %v4869_v35 = vsel %vm278_vm0, %v4864_v11, %v4868_v30  ;;  %v24931_v37 = vld [vmem:[#allocation39_spill] sm:$0xff]  ;;  %v19540_v11 = vld [vmem:[#allocation4 + $0x28] sm:$0xff]  }
 0x307   :  { %v4837_v53 = vsel %vm278_vm0, %v4832_v49, %v4836_v25  ;;  %v4845_v60 = vsel %vm278_vm0, %v4840_v32, %v4844_v42  ;;  %v4848_v2 = vor.u32 %v4846_v50, %v4844_v42  ;;  %v19551_v32 = vld [vmem:[%s24790_s1 + $0x70] sm:$0xff]   ;;  %v24942_v50 = vld [vmem:[#allocation63_spill] sm:$0xff] }
 0x308   :  { %v24934_v49 = vld [vmem:[#allocation18_spill] sm:$0xff]  ;;  %v24935_v42 = vld [vmem:[#allocation21_spill] sm:$0xff] }
 0x309   :  { %v19536_v30 = vld [vmem:[#allocation4 + $0x10] sm:$0xff]  }
 0x30a   :  { %v19541_v15 = vld [vmem:[#allocation4 + $0x30] sm:$0xff]  }
 0x30c   :  { %17755 = vmatmul.mubr.msk.bf16.gmra.mrb[48].mxu1 %vm455_vm1, %v4789_v6  ;;  %v4853_v6 = vsel %vm278_vm0, %v4848_v2, %v4852_v0  ;;  %v24939_v0 = vld [vmem:[#allocation60_spill] sm:$0xff]  ;;  %v24945_v2 = vld [vmem:[#allocation66_spill] sm:$0xff] }
 0x30d   :  { %17758 = vmatprep.mubr.msk.bf16.mxu1 %vm455_vm1, %v4797_v3  ;;  %v4861_v3 = vsel %vm278_vm0, %v4856_v41, %v4860_v55  ;;  %v24943_v41 = vld [vmem:[#allocation64_spill] sm:$0xff]  ;;  %v24946_v55 = vld [vmem:[#allocation67_spill] sm:$0xff] }
 0x314   :  { %17759 = vmatmul.mubr.msk.bf16.gmra.mrb[52].mxu1 %vm455_vm1, %v4805_v18  ;;  %v4884_v18 = vrot.slane %v4882_v51, 1  ;;  %v19574_v51 = vld [vmem:[%s24790_s1 + $0x80] sm:$0xff]  }
 0x315   :  { %17762 = vmatprep.mubr.msk.bf16.mxu1 %vm455_vm1, %v4813_v57  ;;  %v24928_v57 = vld [vmem:[#allocation20_spill] sm:$0xff] }
 0x316   :  { %v4890_v17 = vshll.u32 %v24928_v57, 16  ;;  %v4888_v20 = vor.u32 %v4886_v16, %v4884_v18  ;;  %v4885_v56 = vsel %vm278_vm0, %v4880_v1, %v4884_v18  ;;  %v4894_v38 = vshrl.u32 %v24928_v57, 16  ;;  %v19544_v18 = vld [vmem:[#allocation4 + $0x48] sm:$0xff]   ;;  %v19545_v16 = vld [vmem:[#allocation4 + $0x50] sm:$0xff]   ;;  %v19546_v57 = vld [vmem:[#allocation4 + $0x58] sm:$0xff]  }
 0x317   :  { %v19550_v1 = vld [vmem:[#allocation4 + $0x78] sm:$0xff]  }
 0x318   :  { %v4892_v22 = vrot.slane %v4890_v17, 1  ;;  %v19547_v17 = vld [vmem:[#allocation4 + $0x60] sm:$0xff]  }
 0x31a   :  { %v4893_v9 = vsel %vm278_vm0, %v4888_v20, %v4892_v22  ;;  %v4896_v19 = vor.u32 %v4894_v38, %v4892_v22  ;;  %v19549_v20 = vld [vmem:[#allocation4 + $0x70] sm:$0xff]   ;;  %v19552_v22 = vld [vmem:[#allocation4 + $0x80] sm:$0xff]  }
 0x31b   :  { %v6012_v38 = vld [vmem:[#allocation4 + $0x10] sm:$0xf] }
 0x31c   :  { %17763 = vmatmul.mubr.msk.bf16.gmra.mrb[56].mxu1 %vm455_vm1, %v4821_v48  ;;  %v4898_v48 = vshll.u32 %v24929_v44, 16  ;;  %v24950_v44 = vld [vmem:[#allocation71_spill] sm:$0xff] }
 0x31d   :  { %17766 = vmatprep.mubr.msk.bf16.mxu1 %vm455_vm1, %v4829_v59 }
 0x31e   :  { %v4900_v59 = vrot.slane %v4898_v48, 1  ;;  %v15291_v48 = vcombine.low %v6012_v38, %v24950_v44 }
 0x320   :  { %v4901_v25 = vsel %vm278_vm0, %v4896_v19, %v4900_v59  ;;  %v19555_v19 = vld [vmem:[#allocation4 + $0x98] sm:$0xff]   ;;  %v6164_v59 = vshll.u32 %v15291_v48, 16 }
 0x324   :  { %17767 = vmatmul.mubr.msk.bf16.gmra.mrb[60].mxu1 %vm455_vm1, %v4837_v53  ;;  %v24936_v53 = vld [vmem:[#allocation8_spill] sm:$0xff] }
 0x325   :  { %17770 = vmatprep.mubr.msk.bf16.mxu1 %vm455_vm1, %v4845_v60  ;;  %v24938_v60 = vld [vmem:[#allocation59_spill] sm:$0xff] }
 0x32c   :  { %17771 = vmatmul.mubr.msk.bf16.gmra.mrb[64].mxu1 %vm455_vm1, %v4853_v6  ;;  %v24947_v6 = vld [vmem:[#allocation68_spill] sm:$0xff] }
 0x32d   :  { %17774 = vmatprep.mubr.msk.bf16.mxu1 %vm455_vm1, %v4861_v3  ;;  %v24948_v3 = vld [vmem:[#allocation69_spill] sm:$0xff] }
 0x334   :  { %17775 = vmatmul.mubr.msk.bf16.gmra.mrb[68].mxu1 %vm455_vm1, %v4869_v35  ;;  %v19542_v35 = vld [vmem:[#allocation4 + $0x38] sm:$0xff]  }
 0x335   :  { %17778 = vmatprep.mubr.msk.bf16.mxu1 %vm455_vm1, %v4877_v28  ;;  %v19543_v28 = vld [vmem:[#allocation4 + $0x40] sm:$0xff]  }
 0x33c   :  { %17779 = vmatmul.mubr.msk.bf16.gmra.mrb[72].mxu1 %vm455_vm1, %v4885_v56  ;;  %v19553_v56 = vld [vmem:[#allocation4 + $0x88] sm:$0xff]  }
 0x33d   :  { %17782 = vmatprep.mubr.msk.bf16.mxu1 %vm455_vm1, %v4893_v9  ;;  %v19554_v9 = vld [vmem:[#allocation4 + $0x90] sm:$0xff]  }
 0x344   :  { %17783 = vmatmul.mubr.msk.bf16.gmra.mrb[76].mxu1 %vm455_vm1, %v4901_v25  ;;  %v19556_v25 = vld [vmem:[#allocation4 + $0xa0] sm:$0xff]  }
 0x345   :  { %17790 = vmatprep.mubr.msk.bf16.mxu1 %vm455_vm1, %v24930_v63  ;;  %v24951_v63 = vld [vmem:[#allocation72_spill] sm:$0xff] }
 0x34c   :  { %17791 = vmatmul.mubr.msk.bf16.vlgmr.msra.gmra.mrb[40].mxu1 %vm455_vm1, %v24931_v37  ;;  %v6166_v37 = vrot.slane %v6164_v59, 1 }
 0x34d   :  { %17794 = vmatprep.mubr.msk.bf16.mxu1 %vm455_vm1, %v24932_v58  ;;  %17831 = vmatpush3.bf16.msra.mxu1 %v21837_v39  ;;  %v24937_v39 = vld [vmem:[#allocation10_spill] sm:$0xff]  ;;  %v6162_v58 = vshrl.u32 %v15291_v48, 16  ;;  %v6225_v48 = vshll.u32 %v21605_v36, 16 }
 0x34e   :  { %17832 = vmatprep.subr.bf16.mxu1 %v19537_v34 }
 0x351   :  { %17833 = vmatpush3.bf16.msra.mxu1 %v19537_v34  ;;  %v6169_v34 = vshll.u32 %v24951_v63, 16 }
 0x352   :  { %17874 = vmatprep.subr.bf16.mxu1 %v19551_v32 }
 0x354   :  { %17795 = vmatmul.mubr.msk.bf16.gmra.mrb[44].mxu1 %vm455_vm1, %v24933_v45  ;;  %v19557_v45 = vld [vmem:[#allocation4 + $0xa8] sm:$0xff]  }
 0x355   :  { %17798 = vmatprep.mubr.msk.bf16.mxu1 %vm455_vm1, %v24934_v49  ;;  %v6167_v49 = vor.u32 %v6166_v37, %v6162_v58  ;;  %v6229_v58 = vshrl.u32 %v21605_v36, 16  ;;  %v6245_v36 = vshrl.u32 %v21610_v27, 16 }
 0x35c   :  { %17799 = vmatmul.mubr.msk.bf16.gmra.mrb[48].mxu1 %vm455_vm1, %v24935_v42  ;;  %v24952_v42 = vld [vmem:[#allocation73_spill] sm:$0xff] }
 0x35d   :  { %17802 = vmatprep.mubr.msk.bf16.mxu1 %vm455_vm1, %v24936_v53  ;;  %v6177_v53 = vshll.u32 %v24952_v42, 16 }
 0x364   :  { %17803 = vmatmul.mubr.msk.bf16.gmra.mrb[52].mxu1 %vm455_vm1, %v24937_v39 }
 0x365   :  { %17806 = vmatprep.mubr.msk.bf16.mxu1 %vm455_vm1, %v24938_v60  ;;  %v24953_v60 = vld [vmem:[#allocation74_spill] sm:$0xff] }
 0x36c   :  { %17807 = vmatmul.mubr.msk.bf16.gmra.mrb[56].mxu1 %vm455_vm1, %v24939_v0  ;;  %v6185_v0 = vshll.u32 %v24953_v60, 16 }
 0x36d   :  { %17810 = vmatprep.mubr.msk.bf16.mxu1 %vm455_vm1, %v24940_v5  ;;  %v6173_v5 = vshrl.u32 %v24951_v63, 16 }
 0x374   :  { %17811 = vmatmul.mubr.msk.bf16.gmra.mrb[60].mxu1 %vm455_vm1, %v24941_v54  ;;  %v6179_v54 = vrot.slane %v6177_v53, 1 }
 0x375   :  { %17814 = vmatprep.mubr.msk.bf16.mxu1 %vm455_vm1, %v24942_v50 }
 0x37c   :  { %17815 = vmatmul.mubr.msk.bf16.gmra.mrb[64].mxu1 %vm455_vm1, %v24943_v41  ;;  %v6181_v41 = vshrl.u32 %v24952_v42, 16 }
 0x37d   :  { %17818 = vmatprep.mubr.msk.bf16.mxu1 %vm455_vm1, %v24944_v13  ;;  %v6187_v13 = vrot.slane %v6185_v0, 1 }
 0x384   :  { %17819 = vmatmul.mubr.msk.bf16.gmra.mrb[68].mxu1 %vm455_vm1, %v24945_v2  ;;  %v6183_v2 = vor.u32 %v6181_v41, %v6179_v54  ;;  %v24958_v41 = vld [vmem:[#allocation79_spill] sm:$0xff] }
 0x385   :  { %17822 = vmatprep.mubr.msk.bf16.mxu1 %vm455_vm1, %v24946_v55  ;;  %v24954_v55 = vld [vmem:[#allocation75_spill] sm:$0xff] }
 0x38c   :  { %17823 = vmatmul.mubr.msk.bf16.gmra.mrb[72].mxu1 %vm455_vm1, %v24947_v6  ;;  %v6193_v6 = vshll.u32 %v24954_v55, 16 }
 0x38d   :  { %17826 = vmatprep.mubr.msk.bf16.mxu1 %vm455_vm1, %v24948_v3  ;;  %v19582_v3 = vld [vmem:[%s24790_s1 + $0x88] sm:$0xff]  }
 0x394   :  { %17827 = vmatmul.mubr.msk.bf16.gmra.mrb[76].mxu1 %vm455_vm1, %v24949_v21  ;;  %v6188_v21 = vsel %vm278_vm0, %v6183_v2, %v6187_v13 }
 0x395   :  { %17834 = vmatprep.mubr.msk.bf16.mxu1 %vm455_vm1, %v19536_v30 }
 0x39c   :  { %17835 = vmatmul.mubr.msk.bf16.vlgmr.msra.gmra.mrb[40].mxu1 %vm455_vm1, %v19538_v46  ;;  %v24955_v46 = vld [vmem:[#allocation76_spill] sm:$0xff] }
 0x39d   :  { %17838 = vmatprep.mubr.msk.bf16.mxu1 %vm455_vm1, %v19539_v7  ;;  %17875 = vmatpush3.bf16.msra.mxu1 %v19551_v32  ;;  %v6171_v32 = vrot.slane %v6169_v34, 1  ;;  %v6189_v7 = vshrl.u32 %v24953_v60, 16  ;;  %v6227_v34 = vrot.slane %v6225_v48, 1  ;;  %v6237_v60 = vshrl.u32 %v21607_v10, 16 }
 0x39e   :  { %17876 = vmatprep.subr.bf16.mxu1 %v19560_v4 }
 0x39f   :  { %v6172_v39 = vsel %vm278_vm0, %v6167_v49, %v6171_v32  ;;  %v6175_v50 = vor.u32 %v6173_v5, %v6171_v32  ;;  %v6241_v49 = vshll.u32 %v21610_v27, 16  ;;  %v6261_v27 = vshrl.u32 %v24958_v41, 16 }
 0x3a1   :  { %17877 = vmatpush3.bf16.msra.mxu1 %v19560_v4  ;;  %v6180_v30 = vsel %vm278_vm0, %v6175_v50, %v6179_v54  ;;  %v6201_v4 = vshll.u32 %v24955_v46, 16  ;;  %v6243_v0 = vrot.slane %v6241_v49, 1 }
 0x3a2   :  { %17918 = vmatprep.subr.bf16.mxu1 %v19574_v51 }
 0x3a3   :  { %v6247_v50 = vor.u32 %v6245_v36, %v6243_v0  ;;  %v24967_v36 = vld [vmem:[#allocation88_spill] sm:$0xff] }
 0x3a4   :  { %17839 = vmatmul.mubr.msk.bf16.gmra.mrb[44].mxu1 %vm455_vm1, %v19540_v11  ;;  %v6195_v11 = vrot.slane %v6193_v6, 1  ;;  %v6265_v6 = vshll.u32 %v21618_v40, 16 }
 0x3a5   :  { %17842 = vmatprep.mubr.msk.bf16.mxu1 %vm455_vm1, %v19541_v15  ;;  %v6191_v15 = vor.u32 %v6189_v7, %v6187_v13  ;;  %v6257_v13 = vshll.u32 %v24958_v41, 16  ;;  %v24970_v41 = vld [vmem:[#allocation91_spill] sm:$0xff] }
 0x3ac   :  { %17843 = vmatmul.mubr.msk.bf16.gmra.mrb[48].mxu1 %vm455_vm1, %v19542_v35  ;;  %v6197_v35 = vshrl.u32 %v24954_v55, 16 }
 0x3ad   :  { %17846 = vmatprep.mubr.msk.bf16.mxu1 %vm455_vm1, %v19543_v28  ;;  %v6203_v28 = vrot.slane %v6201_v4, 1  ;;  %v6273_v4 = vshll.u32 %v21620_v12, 16 }
 0x3b4   :  { %17847 = vmatmul.mubr.msk.bf16.gmra.mrb[52].mxu1 %vm455_vm1, %v19544_v18  ;;  %v6199_v18 = vor.u32 %v6197_v35, %v6195_v11  ;;  %v6275_v35 = vrot.slane %v6273_v4, 1 }
 0x3b5   :  { %17850 = vmatprep.mubr.msk.bf16.mxu1 %vm455_vm1, %v19545_v16  ;;  %v24956_v16 = vld [vmem:[#allocation77_spill] sm:$0xff] }
 0x3bc   :  { %17851 = vmatmul.mubr.msk.bf16.gmra.mrb[56].mxu1 %vm455_vm1, %v19546_v57  ;;  %v6209_v57 = vshll.u32 %v24956_v16, 16 }
 0x3bd   :  { %17854 = vmatprep.mubr.msk.bf16.mxu1 %vm455_vm1, %v19547_v17  ;;  %v6196_v17 = vsel %vm278_vm0, %v6191_v15, %v6195_v11  ;;  %v6281_v15 = vshll.u32 %v21630_v31, 16 }
 0x3c4   :  { %17855 = vmatmul.mubr.msk.bf16.gmra.mrb[60].mxu1 %vm455_vm1, %v19548_v24  ;;  %v6204_v24 = vsel %vm278_vm0, %v6199_v18, %v6203_v28  ;;  %v6277_v18 = vshrl.u32 %v21620_v12, 16  ;;  %v6293_v12 = vshrl.u32 %v21632_v29, 16 }
 0x3c5   :  { %17858 = vmatprep.mubr.msk.bf16.mxu1 %vm455_vm1, %v19549_v20  ;;  %v24957_v20 = vld [vmem:[#allocation78_spill] sm:$0xff] }
 0x3c6   :  { %v6221_v63 = vshrl.u32 %v24957_v20, 16 }
 0x3cc   :  { %17859 = vmatmul.mubr.msk.bf16.gmra.mrb[64].mxu1 %vm455_vm1, %v19550_v1  ;;  %v6217_v1 = vshll.u32 %v24957_v20, 16 }
 0x3cd   :  { %17862 = vmatprep.mubr.msk.bf16.mxu1 %vm455_vm1, %v19552_v22  ;;  %v6211_v22 = vrot.slane %v6209_v57, 1  ;;  %v6279_v57 = vor.u32 %v6277_v18, %v6275_v35  ;;  %v24974_v18 = vld [vmem:[#allocation12_spill] sm:$0xff] }
 0x3ce   :  { %v6219_v38 = vrot.slane %v6217_v1, 1  ;;  %v6297_v1 = vshll.u32 %v21641_v62, 16 }
 0x3d0   :  { %v6223_v37 = vor.u32 %v6221_v63, %v6219_v38 }
 0x3d2   :  { %v6228_v42 = vsel %vm278_vm0, %v6223_v37, %v6227_v34 }
 0x3d4   :  { %17863 = vmatmul.mubr.msk.bf16.gmra.mrb[68].mxu1 %vm455_vm1, %v19553_v56 }
 0x3d5   :  { %17866 = vmatprep.mubr.msk.bf16.mxu1 %vm455_vm1, %v19554_v9  ;;  %v6213_v9 = vshrl.u32 %v24956_v16, 16  ;;  %v6283_v16 = vrot.slane %v6281_v15, 1 }
 0x3d7   :  { %v6215_v44 = vor.u32 %v6213_v9, %v6211_v22  ;;  %v6284_v20 = vsel %vm278_vm0, %v6279_v57, %v6283_v16  ;;  %v6305_v9 = vshll.u32 %v21643_v33, 16  ;;  %v24975_v57 = vld [vmem:[#allocation17_spill] sm:$0xff] }
 0x3d9   :  { %v6220_v59 = vsel %vm278_vm0, %v6215_v44, %v6219_v38 }
 0x3dc   :  { %17867 = vmatmul.mubr.msk.bf16.gmra.mrb[72].mxu1 %vm455_vm1, %v19555_v19 }
 0x3dd   :  { %17870 = vmatprep.mubr.msk.bf16.mxu1 %vm455_vm1, %v19556_v25  ;;  %v6233_v25 = vshll.u32 %v21607_v10, 16  ;;  %v6253_v10 = vshrl.u32 %v21612_v14, 16 }
 0x3df   :  { %v6235_v32 = vrot.slane %v6233_v25, 1  ;;  %v6313_v25 = vshll.u32 %v21645_v47, 16 }
 0x3e1   :  { %v6239_v5 = vor.u32 %v6237_v60, %v6235_v32  ;;  %v24963_v60 = vld [vmem:[#allocation84_spill] sm:$0xff] }
 0x3e3   :  { %v6244_v2 = vsel %vm278_vm0, %v6239_v5, %v6243_v0  ;;  %v24965_v0 = vld [vmem:[#allocation86_spill] sm:$0xff]  ;;  %v24966_v5 = vld [vmem:[#allocation87_spill] sm:$0xff] }
 0x3e4   :  { %17871 = vmatmul.mubr.msk.bf16.gmra.mrb[76].mxu1 %vm455_vm1, %v19557_v45  ;;  %v6231_v45 = vor.u32 %v6229_v58, %v6227_v34  ;;  %v6315_v34 = vrot.slane %v6313_v25, 1  ;;  %v6321_v58 = vshll.u32 %v21655_v23, 16  ;;  %v24961_v23 = vld [vmem:[#allocation82_spill] sm:$0xff] }
 0x3e5   :  { %17878 = vmatprep.mubr.msk.bf16.mxu1 %vm455_vm1, %v6172_v39  ;;  %v6249_v39 = vshll.u32 %v21612_v14, 16  ;;  %v6269_v14 = vshrl.u32 %v21618_v40, 16  ;;  %v6285_v40 = vshrl.u32 %v21630_v31, 16  ;;  %v6309_v31 = vshrl.u32 %v21643_v33, 16 }
 0x3e6   :  { %v6236_v53 = vsel %vm278_vm0, %v6231_v45, %v6235_v32  ;;  %v6317_v45 = vshrl.u32 %v21645_v47, 16  ;;  %v6323_v49 = vrot.slane %v6321_v58, 1  ;;  %v24964_v47 = vld [vmem:[#allocation85_spill] sm:$0xff] }
 0x3e7   :  { %v6251_v54 = vrot.slane %v6249_v39, 1  ;;  %v24962_v39 = vld [vmem:[#allocation83_spill] sm:$0xff] }
 0x3e9   :  { %v6252_v55 = vsel %vm278_vm0, %v6247_v50, %v6251_v54  ;;  %v24969_v50 = vld [vmem:[#allocation90_spill] sm:$0xff] }
 0x3ec   :  { %17879 = vmatmul.mubr.msk.bf16.vlgmr.msra.gmra.mrb[40].mxu1 %vm455_vm1, %v6180_v30  ;;  %v6255_v30 = vor.u32 %v6253_v10, %v6251_v54  ;;  %v24968_v54 = vld [vmem:[#allocation89_spill] sm:$0xff] }
 0x3ed   :  { %17882 = vmatprep.mubr.msk.bf16.mxu1 %vm455_vm1, %v6188_v21  ;;  %17919 = vmatpush3.bf16.msra.mxu1 %v19574_v51  ;;  %v6205_v51 = vshrl.u32 %v24955_v46, 16  ;;  %v6267_v21 = vrot.slane %v6265_v6, 1 }
 0x3ee   :  { %17920 = vmatprep.subr.bf16.mxu1 %v19582_v3 }
 0x3ef   :  { %v6207_v56 = vor.u32 %v6205_v51, %v6203_v28  ;;  %v6271_v28 = vor.u32 %v6269_v14, %v6267_v21 }
 0x3f1   :  { %17921 = vmatpush3.bf16.msra.mxu1 %v19582_v3  ;;  %v6212_v19 = vsel %vm278_vm0, %v6207_v56, %v6211_v22  ;;  %v6259_v3 = vrot.slane %v6257_v13, 1  ;;  %v6287_v22 = vor.u32 %v6285_v40, %v6283_v16  ;;  %v6299_v56 = vrot.slane %v6297_v1, 1  ;;  %v24971_v13 = vld [vmem:[#allocation92_spill] sm:$0xff]  ;;  %v24976_v1 = vld [vmem:[#allocation9_spill] sm:$0xff] }
 0x3f3   :  { %v6263_v46 = vor.u32 %v6261_v27, %v6259_v3  ;;  %v6260_v7 = vsel %vm278_vm0, %v6255_v30, %v6259_v3 }
 0x3f4   :  { %17883 = vmatmul.mubr.msk.bf16.gmra.mrb[44].mxu1 %vm455_vm1, %v6196_v17  ;;  %v6289_v17 = vshll.u32 %v21632_v29, 16 }
 0x3f5   :  { %17886 = vmatprep.mubr.msk.bf16.mxu1 %vm455_vm1, %v6204_v24  ;;  %v6268_v11 = vsel %vm278_vm0, %v6263_v46, %v6267_v21  ;;  %v6276_v24 = vsel %vm278_vm0, %v6271_v28, %v6275_v35 }
 0x3f6   :  { %v6291_v51 = vrot.slane %v6289_v17, 1 }
 0x3f8   :  { %v6295_v38 = vor.u32 %v6293_v12, %v6291_v51  ;;  %v6292_v44 = vsel %vm278_vm0, %v6287_v22, %v6291_v51  ;;  %v24977_v51 = vld [vmem:[#allocation11_spill] sm:$0xff] }
 0x3fa   :  { %v6300_v48 = vsel %vm278_vm0, %v6295_v38, %v6299_v56 }
 0x3fc   :  { %17887 = vmatmul.mubr.msk.bf16.gmra.mrb[48].mxu1 %vm455_vm1, %v6212_v19  ;;  %v6307_v19 = vrot.slane %v6305_v9, 1 }
 0x3fd   :  { %17890 = vmatprep.mubr.msk.bf16.mxu1 %vm455_vm1, %v6220_v59  ;;  %v6301_v59 = vshrl.u32 %v21641_v62, 16  ;;  %v6319_v62 = vor.u32 %v6317_v45, %v6315_v34  ;;  %v24978_v45 = vld [vmem:[#allocation19_spill] sm:$0xff] }
 0x3fe   :  { %v6311_v63 = vor.u32 %v6309_v31, %v6307_v19 }
 0x3ff   :  { %v6303_v29 = vor.u32 %v6301_v59, %v6299_v56  ;;  %v6324_v33 = vsel %vm278_vm0, %v6319_v62, %v6323_v49  ;;  %v24979_v49 = vld [vmem:[#allocation26_spill] sm:$0xff] }
 0x400   :  { %v6316_v32 = vsel %vm278_vm0, %v6311_v63, %v6315_v34 }
 0x401   :  { %v6308_v37 = vsel %vm278_vm0, %v6303_v29, %v6307_v19 }
 0x404   :  { %17891 = vmatmul.mubr.msk.bf16.gmra.mrb[52].mxu1 %vm455_vm1, %v6228_v42  ;;  %v24959_v42 = vld [vmem:[#allocation80_spill] sm:$0xff] }
 0x405   :  { %17894 = vmatprep.mubr.msk.bf16.mxu1 %vm455_vm1, %v6236_v53  ;;  %v24960_v53 = vld [vmem:[#allocation81_spill] sm:$0xff] }
 0x40c   :  { %17895 = vmatmul.mubr.msk.bf16.gmra.mrb[56].mxu1 %vm455_vm1, %v6244_v2  ;;  %v24972_v2 = vld [vmem:[#allocation93_spill] sm:$0xff] }
 0x40d   :  { %17898 = vmatprep.mubr.msk.bf16.mxu1 %vm455_vm1, %v6252_v55  ;;  %v24973_v55 = vld [vmem:[#allocation94_spill] sm:$0xff] }
 0x414   :  { %17899 = vmatmul.mubr.msk.bf16.gmra.mrb[60].mxu1 %vm455_vm1, %v6260_v7 }
 0x415   :  { %17902 = vmatprep.mubr.msk.bf16.mxu1 %vm455_vm1, %v6268_v11 }
 0x41c   :  { %17903 = vmatmul.mubr.msk.bf16.gmra.mrb[64].mxu1 %vm455_vm1, %v6276_v24 }
 0x41d   :  { %17906 = vmatprep.mubr.msk.bf16.mxu1 %vm455_vm1, %v6284_v20 }
 0x424   :  { %17907 = vmatmul.mubr.msk.bf16.gmra.mrb[68].mxu1 %vm455_vm1, %v6292_v44 }
 0x425   :  { %17910 = vmatprep.mubr.msk.bf16.mxu1 %vm455_vm1, %v6300_v48 }
 0x42c   :  { %17911 = vmatmul.mubr.msk.bf16.gmra.mrb[72].mxu1 %vm455_vm1, %v6308_v37 }
 0x42d   :  { %17914 = vmatprep.mubr.msk.bf16.mxu1 %vm455_vm1, %v6316_v32 }
 0x434   :  { %17915 = vmatmul.mubr.msk.bf16.gmra.mrb[76].mxu1 %vm455_vm1, %v6324_v33 }
 0x435   :  { %17922 = vmatprep.mubr.msk.bf16.mxu1 %vm455_vm1, %v24959_v42 }
 0x43c   :  { %17923 = vmatmul.mubr.msk.bf16.vlgmr.msra.gmra.mrb[40].mxu1 %vm455_vm1, %v24960_v53 }
 0x43d   :  { %17926 = vmatprep.mubr.msk.bf16.mxu1 %vm455_vm1, %v24961_v23  ;;  %v24980_v23 = vld [vmem:[#allocation15_spill] sm:$0xff] }
 0x444   :  { %17927 = vmatmul.mubr.msk.bf16.gmra.mrb[44].mxu1 %vm455_vm1, %v24962_v39 }
 0x445   :  { %17930 = vmatprep.mubr.msk.bf16.mxu1 %vm455_vm1, %v24963_v60  ;;  %v24981_v60 = vld [vmem:[#allocation22_spill] sm:$0xff] }
 0x44c   :  { %17931 = vmatmul.mubr.msk.bf16.gmra.mrb[48].mxu1 %vm455_vm1, %v24964_v47 }
 0x44d   :  { %17934 = vmatprep.mubr.msk.bf16.mxu1 %vm455_vm1, %v24965_v0 }
 0x454   :  { %17935 = vmatmul.mubr.msk.bf16.gmra.mrb[52].mxu1 %vm455_vm1, %v24966_v5 }
 0x455   :  { %17938 = vmatprep.mubr.msk.bf16.mxu1 %vm455_vm1, %v24967_v36 }
 0x45c   :  { %17939 = vmatmul.mubr.msk.bf16.gmra.mrb[56].mxu1 %vm455_vm1, %v24968_v54 }
 0x45d   :  { %17942 = vmatprep.mubr.msk.bf16.mxu1 %vm455_vm1, %v24969_v50 }
 0x464   :  { %17943 = vmatmul.mubr.msk.bf16.gmra.mrb[60].mxu1 %vm455_vm1, %v24970_v41 }
 0x465   :  { %17946 = vmatprep.mubr.msk.bf16.mxu1 %vm455_vm1, %v21686_v52  ;;  %v19585_v52 = vld [vmem:[%s24688_s16 + $0x4] ss:$12 sps:$4 sm:$0xff]  }
 0x466   :  { %7359 = vmatprep.mubr.bf16.mxu0 %v19585_v52 }
 0x46c   :  { %17947 = vmatmul.mubr.msk.bf16.gmra.mrb[64].mxu1 %vm455_vm1, %v24971_v13 }
 0x46d   :  { %17950 = vmatprep.mubr.msk.bf16.mxu1 %vm455_vm1, %v21694_v26 }
 0x474   :  { %17951 = vmatmul.mubr.msk.bf16.gmra.mrb[68].mxu1 %vm455_vm1, %v21700_v8  ;;  %v22107_v8 = vld [vmem:[%s24689_s4] ss:$0 sm:$0xff] }
 0x475   :  { %17954 = vmatprep.mubr.msk.bf16.mxu1 %vm455_vm1, %v24972_v2 }
 0x47c   :  { %17955 = vmatmul.mubr.msk.bf16.gmra.mrb[72].mxu1 %vm455_vm1, %v21706_v61 }
 0x47d   :  { %17958 = vmatprep.mubr.msk.bf16.mxu1 %vm455_vm1, %v21709_v43 }
 0x484   :  { %17959 = vmatmul.mubr.msk.bf16.gmra.mrb[76].mxu1 %vm455_vm1, %v24973_v55 }
 0x50f   :  { %v17924_v26 = vpop.f32.mrb[40].mxu1 }
 0x510   :  { %v6994_v6 = vadd.f32 %v17924_v26, %v22107_v8  ;;  %v6786_v61 = vpop.f32.mrb[41].mxu1 }
 0x511   :  { %v6992_v10 = vadd.f32 %v22107_v8, %v6786_v61  ;;  %v17925_v43 = vpop.f32.mrb[42].mxu1 }
 0x512   :  { %v7034_v3 = vmul.f32 0.01, %v6994_v6  ;;  %v6995_v30 = vadd.f32 %v17925_v43, %v22107_v8  ;;  %v6789_v27 = vpop.f32.mrb[43].mxu1 }
 0x513   :  { %v7032_v21 = vmul.f32 0.01, %v6992_v10  ;;  %v6993_v46 = vadd.f32 %v22107_v8, %v6789_v27 }
 0x514   :  { %v7074_v4 = vmax.f32 %v6994_v6, %v7034_v3  ;;  %v7035_v7 = vmul.f32 0.01, %v6995_v30 }
 0x515   :  { %v7072_v11 = vmax.f32 %v6992_v10, %v7032_v21  ;;  %v7033_v15 = vmul.f32 0.01, %v6993_v46  ;;  %v24983_v21 = vld [vmem:[#allocation30_spill] sm:$0xff] }
 0x516   :  { %v7075_v14 = vmax.f32 %v6995_v30, %v7035_v7  ;;  %v7114_v16 = vmul.f32 %v7074_v4, %v24974_v18  ;;  %v24982_v30 = vld [vmem:[#allocation27_spill] sm:$0xff] }
 0x517   :  { %v7073_v35 = vmax.f32 %v6993_v46, %v7033_v15  ;;  %v17928_v28 = vpop.f32.mrb[44].mxu1  ;;  %v7112_v40 = vmul.f32 %v7072_v11, %v24976_v1  ;;  %v24984_v11 = vld [vmem:[#allocation25_spill] sm:$0xff] }
 0x518   :  { %v7115_v17 = vmul.f32 %v7075_v14, %v24975_v57  ;;  %v6998_v24 = vadd.f32 %v17928_v28, %v22107_v8  ;;  %v6802_v20 = vpop.f32.mrb[45].mxu1  ;;  %v24985_v14 = vld [vmem:[#allocation28_spill] sm:$0xff] }
 0x519   :  { %v7113_v22 = vmul.f32 %v7073_v35, %v24977_v51  ;;  %v6996_v12 = vadd.f32 %v22107_v8, %v6802_v20  ;;  %v17929_v56 = vpop.f32.mrb[46].mxu1 }
 0x51a   :  { %v22119_v9 = vpack.c.bf16 %v7115_v17, %v7114_v16  ;;  %v7038_v38 = vmul.f32 0.01, %v6998_v24  ;;  %v6999_v44 = vadd.f32 %v17929_v56, %v22107_v8  ;;  %v6805_v48 = vpop.f32.mrb[47].mxu1 }
 0x51b   :  { %v22122_v19 = vpack.c.bf16 %v7113_v22, %v7112_v40  ;;  %v7036_v59 = vmul.f32 0.01, %v6996_v12  ;;  %v6997_v31 = vadd.f32 %v22107_v8, %v6805_v48 }
 0x51c   :  { %v7078_v25 = vmax.f32 %v6998_v24, %v7038_v38  ;;  %v7039_v29 = vmul.f32 0.01, %v6999_v44 }
 0x51d   :  { %v7076_v63 = vmax.f32 %v6996_v12, %v7036_v59  ;;  %v7037_v34 = vmul.f32 0.01, %v6997_v31  ;;  %v24986_v59 = vld [vmem:[#allocation31_spill] sm:$0xff] }
 0x51e   :  { %v7079_v37 = vmax.f32 %v6999_v44, %v7039_v29  ;;  %v7118_v62 = vmul.f32 %v7078_v25, %v24978_v45  ;;  %v24987_v25 = vld [vmem:[#allocation35_spill] sm:$0xff] }
 0x51f   :  { %v7077_v58 = vmax.f32 %v6997_v31, %v7037_v34  ;;  %v17932_v32 = vpop.f32.mrb[48].mxu1  ;;  %v7116_v39 = vmul.f32 %v7076_v63, %v24980_v23 }
 0x520   :  { %v7119_v33 = vmul.f32 %v7079_v37, %v24979_v49  ;;  %v7002_v42 = vadd.f32 %v17932_v32, %v22107_v8  ;;  %v6818_v53 = vpop.f32.mrb[49].mxu1  ;;  %v24988_v37 = vld [vmem:[#allocation29_spill] sm:$0xff]  ;;  %v24989_v32 = vld [vmem:[#allocation32_spill] sm:$0xff] }
 0x521   :  { %v7117_v47 = vmul.f32 %v7077_v58, %v24981_v60  ;;  %v7000_v0 = vadd.f32 %v22107_v8, %v6818_v53  ;;  %v17933_v5 = vpop.f32.mrb[50].mxu1 }
 0x522   :  { %v22131_v36 = vpack.c.bf16 %v7119_v33, %v7118_v62  ;;  %v7042_v54 = vmul.f32 0.01, %v7002_v42  ;;  %v7003_v50 = vadd.f32 %v17933_v5, %v22107_v8  ;;  %v6821_v41 = vpop.f32.mrb[51].mxu1 }
 0x523   :  { %v22134_v13 = vpack.c.bf16 %v7117_v47, %v7116_v39  ;;  %v7040_v2 = vmul.f32 0.01, %v7000_v0  ;;  %v7001_v55 = vadd.f32 %v22107_v8, %v6821_v41 }
 0x524   :  { %v7082_v52 = vmax.f32 %v7002_v42, %v7042_v54  ;;  %v7043_v26 = vmul.f32 0.01, %v7003_v50 }
 0x525   :  { %v7080_v6 = vmax.f32 %v7000_v0, %v7040_v2  ;;  %v7041_v61 = vmul.f32 0.01, %v7001_v55 }
 0x526   :  { %v7083_v10 = vmax.f32 %v7003_v50, %v7043_v26  ;;  %v7122_v27 = vmul.f32 %v7082_v52, %v24982_v30  ;;  %v24990_v52 = vld [vmem:[#allocation36_spill] sm:$0xff] }
 0x527   :  { %v7081_v43 = vmax.f32 %v7001_v55, %v7041_v61  ;;  %v17936_v3 = vpop.f32.mrb[52].mxu1  ;;  %v7120_v15 = vmul.f32 %v7080_v6, %v24984_v11  ;;  %v24991_v6 = vld [vmem:[#allocation42_spill] sm:$0xff] }
 0x528   :  { %v7123_v46 = vmul.f32 %v7083_v10, %v24983_v21  ;;  %v7006_v4 = vadd.f32 %v17936_v3, %v22107_v8  ;;  %v6834_v7 = vpop.f32.mrb[53].mxu1  ;;  %v24992_v3 = vld [vmem:[#allocation33_spill] sm:$0xff] }
 0x529   :  { %v7121_v35 = vmul.f32 %v7081_v43, %v24985_v14  ;;  %v7004_v28 = vadd.f32 %v22107_v8, %v6834_v7  ;;  %v17937_v18 = vpop.f32.mrb[54].mxu1 }
 0x52a   :  { %v22143_v16 = vpack.c.bf16 %v7123_v46, %v7122_v27  ;;  %v7046_v57 = vmul.f32 0.01, %v7006_v4  ;;  %v7007_v17 = vadd.f32 %v17937_v18, %v22107_v8  ;;  %v6837_v24 = vpop.f32.mrb[55].mxu1  ;;  %v24993_v27 = vld [vmem:[#allocation37_spill] sm:$0xff] }
 0x52b   :  { %v22146_v20 = vpack.c.bf16 %v7121_v35, %v7120_v15  ;;  %v7044_v1 = vmul.f32 0.01, %v7004_v28  ;;  %v7005_v40 = vadd.f32 %v22107_v8, %v6837_v24 }
 0x52c   :  { %v7086_v51 = vmax.f32 %v7006_v4, %v7046_v57  ;;  %v7047_v22 = vmul.f32 0.01, %v7007_v17 }
 0x52d   :  { %v7084_v12 = vmax.f32 %v7004_v28, %v7044_v1  ;;  %v7045_v56 = vmul.f32 0.01, %v7005_v40 }
 0x52e   :  { %v7087_v38 = vmax.f32 %v7007_v17, %v7047_v22  ;;  %v7126_v31 = vmul.f32 %v7086_v51, %v24986_v59 }
 0x52f   :  { %v7085_v44 = vmax.f32 %v7005_v40, %v7045_v56  ;;  %v17940_v48 = vpop.f32.mrb[56].mxu1  ;;  %v7124_v58 = vmul.f32 %v7084_v12, %v24988_v37  ;;  %v24994_v12 = vld [vmem:[#allocation43_spill] sm:$0xff] }
 0x530   :  { %v7127_v29 = vmul.f32 %v7087_v38, %v24987_v25  ;;  %v7010_v63 = vadd.f32 %v17940_v48, %v22107_v8  ;;  %v6850_v34 = vpop.f32.mrb[57].mxu1  ;;  %v24995_v38 = vld [vmem:[#allocation50_spill] sm:$0xff] }
 0x531   :  { %v7125_v45 = vmul.f32 %v7085_v44, %v24989_v32  ;;  %v7008_v62 = vadd.f32 %v22107_v8, %v6850_v34  ;;  %v17941_v49 = vpop.f32.mrb[58].mxu1 }
 0x532   :  { %v22155_v33 = vpack.c.bf16 %v7127_v29, %v7126_v31  ;;  %v7050_v42 = vmul.f32 0.01, %v7010_v63  ;;  %v7011_v53 = vadd.f32 %v17941_v49, %v22107_v8  ;;  %v6853_v23 = vpop.f32.mrb[59].mxu1  ;;  %v24996_v31 = vld [vmem:[#allocation38_spill] sm:$0xff]  ;;  %v24997_v29 = vld [vmem:[#allocation47_spill] sm:$0xff] }
 0x533   :  { %v22158_v39 = vpack.c.bf16 %v7125_v45, %v7124_v58  ;;  %v7048_v60 = vmul.f32 0.01, %v7008_v62  ;;  %v7009_v47 = vadd.f32 %v22107_v8, %v6853_v23 }
 0x534   :  { %v7090_v0 = vmax.f32 %v7010_v63, %v7050_v42  ;;  %v7051_v5 = vmul.f32 0.01, %v7011_v53 }
 0x535   :  { %v7088_v54 = vmax.f32 %v7008_v62, %v7048_v60  ;;  %v7049_v50 = vmul.f32 0.01, %v7009_v47 }
 0x536   :  { %v7091_v41 = vmax.f32 %v7011_v53, %v7051_v5  ;;  %v7130_v26 = vmul.f32 %v7090_v0, %v24990_v52 }
 0x537   :  { %v7089_v2 = vmax.f32 %v7009_v47, %v7049_v50  ;;  %v17944_v55 = vpop.f32.mrb[60].mxu1  ;;  %v7128_v30 = vmul.f32 %v7088_v54, %v24992_v3 }
 0x538   :  { %v7131_v61 = vmul.f32 %v7091_v41, %v24991_v6  ;;  %v7014_v10 = vadd.f32 %v17944_v55, %v22107_v8  ;;  %v6866_v43 = vpop.f32.mrb[61].mxu1  ;;  %v24998_v41 = vld [vmem:[#allocation52_spill] sm:$0xff]  ;;  %v24999_v55 = vld [vmem:[#allocation55_spill] sm:$0xff] }
 0x539   :  { %v7129_v21 = vmul.f32 %v7089_v2, %v24993_v27  ;;  %v7012_v46 = vadd.f32 %v22107_v8, %v6866_v43  ;;  %v17945_v4 = vpop.f32.mrb[62].mxu1  ;;  %v25001_v43 = vld [vmem:[#allocation53_spill] sm:$0xff] }
 0x53a   :  { %v22167_v7 = vpack.c.bf16 %v7131_v61, %v7130_v26  ;;  %v7054_v11 = vmul.f32 0.01, %v7014_v10  ;;  %v7015_v15 = vadd.f32 %v17945_v4, %v22107_v8  ;;  %v6869_v14 = vpop.f32.mrb[63].mxu1  ;;  %v25000_v61 = vld [vmem:[#allocation51_spill] sm:$0xff] }
 0x53b   :  { %v22170_v35 = vpack.c.bf16 %v7129_v21, %v7128_v30  ;;  %v7052_v28 = vmul.f32 0.01, %v7012_v46  ;;  %v7013_v18 = vadd.f32 %v22107_v8, %v6869_v14 }
 0x53c   :  { %v7094_v57 = vmax.f32 %v7014_v10, %v7054_v11  ;;  %v7055_v17 = vmul.f32 0.01, %v7015_v15 }
 0x53d   :  { %v7092_v24 = vmax.f32 %v7012_v46, %v7052_v28  ;;  %v7053_v1 = vmul.f32 0.01, %v7013_v18  ;;  %16656 = vmatprep.subr.bf16.mxu0 %v22170_v35 }
 0x53e   :  { %v7095_v40 = vmax.f32 %v7015_v15, %v7055_v17  ;;  %16657 = vmatpush3.bf16.msra.mxu0 %v22122_v19  ;;  %v7134_v56 = vmul.f32 %v7094_v57, %v24994_v12 }
 0x53f   :  { %v7093_v51 = vmax.f32 %v7013_v18, %v7053_v1  ;;  %v17948_v22 = vpop.f32.mrb[64].mxu1  ;;  %16658 = vmatprep.subr.bf16.mxu0 %v22167_v7  ;;  %v7132_v25 = vmul.f32 %v7092_v24, %v24996_v31 }
 0x540   :  { %v7135_v44 = vmul.f32 %v7095_v40, %v24995_v38  ;;  %v7018_v48 = vadd.f32 %v17948_v22, %v22107_v8  ;;  %v6882_v59 = vpop.f32.mrb[65].mxu1  ;;  %v25002_v22 = vld [vmem:[#allocation56_spill] sm:$0xff] }
 0x541   :  { %v7133_v63 = vmul.f32 %v7093_v51, %v24997_v29  ;;  %v7016_v34 = vadd.f32 %v22107_v8, %v6882_v59  ;;  %v17949_v37 = vpop.f32.mrb[66].mxu1  ;;  %v25004_v59 = vld [vmem:[#allocation54_spill] sm:$0xff] }
 0x542   :  { %v22182_v58 = vpack.c.bf16 %v7135_v44, %v7134_v56  ;;  %v7058_v32 = vmul.f32 0.01, %v7018_v48  ;;  %v7019_v45 = vadd.f32 %v17949_v37, %v22107_v8  ;;  %v6885_v62 = vpop.f32.mrb[67].mxu1  ;;  %16659 = vmatpush3.bf16.msra.mxu0 %v22119_v9  ;;  %v25003_v56 = vld [vmem:[#allocation58_spill] sm:$0xff] }
 0x543   :  { %v22186_v49 = vpack.c.bf16 %v7133_v63, %v7132_v25  ;;  %v7056_v42 = vmul.f32 0.01, %v7016_v34  ;;  %v7017_v53 = vadd.f32 %v22107_v8, %v6885_v62  ;;  %v25005_v25 = vld [vmem:[#allocation57_spill] sm:$0xff] }
 0x544   :  { %v7098_v23 = vmax.f32 %v7018_v48, %v7058_v32  ;;  %v7059_v60 = vmul.f32 0.01, %v7019_v45 }
 0x545   :  { %v7096_v47 = vmax.f32 %v7016_v34, %v7056_v42  ;;  %v7057_v0 = vmul.f32 0.01, %v7017_v53  ;;  %16660 = vmatprep.subr.bf16.mxu0 %v22186_v49 }
 0x546   :  { %v7099_v5 = vmax.f32 %v7019_v45, %v7059_v60  ;;  %16661 = vmatpush3.bf16.msra.mxu0 %v22134_v13  ;;  %v7138_v2 = vmul.f32 %v7098_v23, %v24998_v41 }
 0x547   :  { %v7097_v54 = vmax.f32 %v7017_v53, %v7057_v0  ;;  %v17952_v50 = vpop.f32.mrb[68].mxu1  ;;  %16662 = vmatprep.subr.bf16.mxu0 %v22182_v58  ;;  %v7136_v10 = vmul.f32 %v7096_v47, %v25000_v61 }
 0x548   :  { %v7139_v52 = vmul.f32 %v7099_v5, %v24999_v55  ;;  %v7022_v26 = vadd.f32 %v17952_v50, %v22107_v8  ;;  %v6898_v6 = vpop.f32.mrb[69].mxu1 }
 0x549   :  { %v7137_v3 = vmul.f32 %v7097_v54, %v25001_v43  ;;  %v7020_v30 = vadd.f32 %v22107_v8, %v6898_v6  ;;  %v17953_v27 = vpop.f32.mrb[70].mxu1 }
 0x54a   :  { %v22198_v21 = vpack.c.bf16 %v7139_v52, %v7138_v2  ;;  %v7062_v46 = vmul.f32 0.01, %v7022_v26  ;;  %v7023_v4 = vadd.f32 %v17953_v27, %v22107_v8  ;;  %v6901_v11 = vpop.f32.mrb[71].mxu1  ;;  %16663 = vmatpush3.bf16.msra.mxu0 %v22131_v36  ;;  %v25006_v2 = vld [vmem:[#allocation34_spill] sm:$0xff]  ;;  %v25007_v52 = vld [vmem:[#allocation13_spill] sm:$0xff] }
 0x54b   :  { %v22202_v15 = vpack.c.bf16 %v7137_v3, %v7136_v10  ;;  %v7060_v14 = vmul.f32 0.01, %v7020_v30  ;;  %v7021_v28 = vadd.f32 %v22107_v8, %v6901_v11  ;;  %v25008_v10 = vld [vmem:[#allocation40_spill] sm:$0xff]  ;;  %v25009_v3 = vld [vmem:[#allocation41_spill] sm:$0xff] }
 0x54c   :  { %v7102_v18 = vmax.f32 %v7022_v26, %v7062_v46  ;;  %v7063_v57 = vmul.f32 0.01, %v7023_v4 }
 0x54d   :  { %v7100_v17 = vmax.f32 %v7020_v30, %v7060_v14  ;;  %v7061_v24 = vmul.f32 0.01, %v7021_v28  ;;  %16664 = vmatprep.subr.bf16.mxu0 %v22202_v15 }
 0x54e   :  { %v7103_v1 = vmax.f32 %v7023_v4, %v7063_v57  ;;  %16665 = vmatpush3.bf16.msra.mxu0 %v22146_v20  ;;  %v7142_v12 = vmul.f32 %v7102_v18, %v25002_v22  ;;  %v19583_v4 = vld [vmem:[%s24688_s16] ss:$12 sps:$4 sm:$0xff]   ;;  %v19586_v57 = vld [vmem:[%s24688_s16 + $0x1c] ss:$12 sps:$4 sm:$0xff]  }
 0x54f   :  { %v7101_v40 = vmax.f32 %v7021_v28, %v7061_v24  ;;  %v17956_v51 = vpop.f32.mrb[72].mxu1  ;;  %16666 = vmatprep.subr.bf16.mxu0 %v22198_v21  ;;  %v7140_v31 = vmul.f32 %v7100_v17, %v25004_v59 }
 0x550   :  { %v7143_v38 = vmul.f32 %v7103_v1, %v25003_v56  ;;  %v7026_v44 = vadd.f32 %v17956_v51, %v22107_v8  ;;  %v6914_v48 = vpop.f32.mrb[73].mxu1 }
 0x551   :  { %v7141_v29 = vmul.f32 %v7101_v40, %v25005_v25  ;;  %v7024_v63 = vadd.f32 %v22107_v8, %v6914_v48  ;;  %v17957_v34 = vpop.f32.mrb[74].mxu1  ;;  %v19990_v40 = vmov 0.0   ;;  %v25010_v48 = vld [vmem:[#allocation49_spill] sm:$0xff] }
 0x552   :  { %v22214_v37 = vpack.c.bf16 %v7143_v38, %v7142_v12  ;;  %v7066_v32 = vmul.f32 0.01, %v7026_v44  ;;  %v7027_v45 = vadd.f32 %v17957_v34, %v22107_v8  ;;  %v6917_v62 = vpop.f32.mrb[75].mxu1  ;;  %16667 = vmatpush3.bf16.msra.mxu0 %v22143_v16 }
 0x553   :  { %v22218_v42 = vpack.c.bf16 %v7141_v29, %v7140_v31  ;;  %v7064_v53 = vmul.f32 0.01, %v7024_v63  ;;  %v7025_v23 = vadd.f32 %v22107_v8, %v6917_v62  ;;  %v25011_v31 = vld [vmem:[#allocation16_spill] sm:$0xff]  ;;  %v19589_v62 = vld [vmem:[%s24688_s16 + $0x34] ss:$12 sps:$4 sm:$0xff]  }
 0x554   :  { %v7106_v60 = vmax.f32 %v7026_v44, %v7066_v32  ;;  %v7067_v47 = vmul.f32 0.01, %v7027_v45  ;;  %v19588_v32 = vld [vmem:[%s24688_s16 + $0x18] ss:$12 sps:$4 sm:$0xff]  }
 0x555   :  { %v7104_v0 = vmax.f32 %v7024_v63, %v7064_v53  ;;  %v7065_v5 = vmul.f32 0.01, %v7025_v23  ;;  %16668 = vmatprep.subr.bf16.mxu0 %v22218_v42  ;;  %v25013_v63 = vld [vmem:[#allocation14_spill] sm:$0xff] }
 0x556   :  { %v7107_v54 = vmax.f32 %v7027_v45, %v7067_v47  ;;  %16669 = vmatpush3.bf16.msra.mxu0 %v22158_v39  ;;  %v7146_v55 = vmul.f32 %v7106_v60, %v25006_v2  ;;  %v19592_v60 = vld [vmem:[%s24688_s16 + $0x4c] ss:$12 sps:$4 sm:$0xff]   ;;  %v19594_v47 = vld [vmem:[%s24688_s16 + $0x48] ss:$12 sps:$4 sm:$0xff]   ;;  %v19603_v2 = vld [vmem:[%s24688_s16 + $0x90] ss:$12 sps:$4 sm:$0xff]  }
 0x557   :  { %v7105_v50 = vmax.f32 %v7025_v23, %v7065_v5  ;;  %v17960_v41 = vpop.f32.mrb[76].mxu1  ;;  %16670 = vmatprep.subr.bf16.mxu0 %v22214_v37  ;;  %v7144_v43 = vmul.f32 %v7104_v0, %v25008_v10  ;;  %v19591_v23 = vld [vmem:[%s24688_s16 + $0x30] ss:$12 sps:$4 sm:$0xff]   ;;  %v19597_v5 = vld [vmem:[%s24688_s16 + $0x60] ss:$12 sps:$4 sm:$0xff]  }
 0x558   :  { %v7147_v26 = vmul.f32 %v7107_v54, %v25007_v52  ;;  %v7030_v6 = vadd.f32 %v17960_v41, %v22107_v8  ;;  %v6930_v61 = vpop.f32.mrb[77].mxu1  ;;  %v19595_v0 = vld [vmem:[%s24688_s16 + $0x64] ss:$12 sps:$4 sm:$0xff]   ;;  %v19598_v54 = vld [vmem:[%s24688_s16 + $0x7c] ss:$12 sps:$4 sm:$0xff]  }
 0x559   :  { %v7145_v30 = vmul.f32 %v7105_v50, %v25009_v3  ;;  %v7028_v27 = vadd.f32 %v22107_v8, %v6930_v61  ;;  %v17961_v46 = vpop.f32.mrb[78].mxu1  ;;  %v19600_v50 = vld [vmem:[%s24688_s16 + $0x78] ss:$12 sps:$4 sm:$0xff]   ;;  %v19601_v41 = vld [vmem:[%s24688_s16 + $0x94] ss:$12 sps:$4 sm:$0xff]  }
 0x55a   :  { %v22233_v11 = vpack.c.bf16 %v7147_v26, %v7146_v55  ;;  %v7070_v14 = vmul.f32 0.01, %v7030_v6  ;;  %v7031_v28 = vadd.f32 %v17961_v46, %v22107_v8  ;;  %v6933_v18 = vpop.f32.mrb[79].mxu1  ;;  %16671 = vmatpush3.bf16.msra.mxu0 %v22155_v33  ;;  %v19604_v55 = vld [vmem:[%s24688_s16 + $0x8] ss:$12 sps:$4 sm:$0xff]  }
 0x55b   :  { %v22240_v17 = vpack.c.bf16 %v7145_v30, %v7144_v43  ;;  %v7068_v24 = vmul.f32 0.01, %v7028_v27  ;;  %v7029_v1 = vadd.f32 %v22107_v8, %v6933_v18  ;;  %17962 = vmatprep.subr.bf16.mxu0 %v19990_v40  ;;  %v25012_v8 = vld [vmem:[#allocation48_spill] sm:$0xff]  ;;  %v19622_v18 = vld [vmem:[%s24688_s16 + $0xf0] ss:$12 sps:$4 sm:$0xff]  }
 0x55c   :  { %v7110_v51 = vmax.f32 %v7030_v6, %v7070_v14  ;;  %v7071_v22 = vmul.f32 0.01, %v7031_v28  ;;  %v19605_v52 = vld [vmem:[%s24688_s16 + $0x20] ss:$12 sps:$4 sm:$0xff]   ;;  %v19606_v26 = vld [vmem:[%s24688_s16 + $0x38] ss:$12 sps:$4 sm:$0xff]  }
 0x55d   :  { %v7108_v12 = vmax.f32 %v7028_v27, %v7068_v24  ;;  %v7069_v56 = vmul.f32 0.01, %v7029_v1  ;;  %7360 = vmatmul.mubr.bf16.vlgmr.msra.gmra.mrb[40].mxu0 %v19583_v4  ;;  %v19607_v6 = vld [vmem:[%s24688_s16 + $0x50] ss:$12 sps:$4 sm:$0xff]   ;;  %v19608_v61 = vld [vmem:[%s24688_s16 + $0x68] ss:$12 sps:$4 sm:$0xff]  }
 0x55e   :  { %v7111_v38 = vmax.f32 %v7031_v28, %v7071_v22  ;;  %17963 = vmatpush3.bf16.msra.mxu0 %v22240_v17  ;;  %7367 = vmatprep.mubr.bf16.mxu0 %v19586_v57  ;;  %v7150_v59 = vmul.f32 %v7110_v51, %v25010_v48  ;;  %v19609_v10 = vld [vmem:[%s24688_s16 + $0x80] ss:$12 sps:$4 sm:$0xff]   ;;  %v19610_v43 = vld [vmem:[%s24688_s16 + $0x98] ss:$12 sps:$4 sm:$0xff]   ;;  %v19611_v30 = vld [vmem:[%s24688_s16 + $0xa8] ss:$12 sps:$4 sm:$0xff]  }
 0x55f   :  { %v7109_v44 = vmax.f32 %v7029_v1, %v7069_v56  ;;  %17964 = vmatprep.subr.bf16.mxu0 %v19990_v40  ;;  %v7148_v29 = vmul.f32 %v7108_v12, %v25012_v8  ;;  %v19613_v3 = vld [vmem:[%s24688_s16 + $0xac] ss:$12 sps:$4 sm:$0xff]   ;;  %v19614_v27 = vld [vmem:[%s24688_s16 + $0xc4] ss:$12 sps:$4 sm:$0xff]   ;;  %v19617_v4 = vld [vmem:[%s24688_s16 + $0xdc] ss:$12 sps:$4 sm:$0xff]  }
 0x560   :  { %v7151_v25 = vmul.f32 %v7111_v38, %v25011_v31  ;;  %v19616_v46 = vld [vmem:[%s24688_s16 + $0xc0] ss:$12 sps:$4 sm:$0xff]   ;;  %v19619_v14 = vld [vmem:[%s24688_s16 + $0xd8] ss:$12 sps:$4 sm:$0xff]   ;;  %v19625_v24 = vld [vmem:[%s24688_s16 + $0x108] ss:$12 sps:$4 sm:$0xff]  }
 0x561   :  { %v7149_v34 = vmul.f32 %v7109_v44, %v25013_v63  ;;  %v19620_v28 = vld [vmem:[%s24688_s16 + $0xf4] ss:$12 sps:$4 sm:$0xff]   ;;  %v19623_v57 = vld [vmem:[%s24688_s16 + $0x10c] ss:$12 sps:$4 sm:$0xff]   ;;  %v19626_v1 = vld [vmem:[%s24688_s16 + $0x124] ss:$12 sps:$4 sm:$0xff]  }
 0x562   :  { %v22253_v45 = vpack.c.bf16 %v7151_v25, %v7150_v59  ;;  %17965 = vmatpush3.bf16.msra.mxu0 %v22233_v11  ;;  %v19628_v51 = vld [vmem:[%s24688_s16 + $0x120] ss:$12 sps:$4 sm:$0xff]   ;;  %v19629_v22 = vld [vmem:[%s24688_s16 + $0x13c] ss:$12 sps:$4 sm:$0xff]   ;;  %v19631_v12 = vld [vmem:[%s24688_s16 + $0x138] ss:$12 sps:$4 sm:$0xff]  }
 0x563   :  { %v22259_v53 = vpack.c.bf16 %v7149_v34, %v7148_v29  ;;  %17966 = vmatprep.subr.bf16.mxu0 %v19990_v40  ;;  %v19632_v56 = vld [vmem:[%s24688_s16 + $0xb0] ss:$12 sps:$4 sm:$0xff]   ;;  %v19633_v38 = vld [vmem:[%s24688_s16 + $0xc8] ss:$12 sps:$4 sm:$0xff]   ;;  %v19634_v44 = vld [vmem:[%s24688_s16 + $0xe0] ss:$12 sps:$4 sm:$0xff]  }
 0x564   :  { %v19635_v48 = vld [vmem:[%s24688_s16 + $0xf8] ss:$12 sps:$4 sm:$0xff]   ;;  %v19636_v59 = vld [vmem:[%s24688_s16 + $0x110] ss:$12 sps:$4 sm:$0xff]   ;;  %v19637_v31 = vld [vmem:[%s24688_s16 + $0x128] ss:$12 sps:$4 sm:$0xff]  }
 0x565   :  { %7368 = vmatmul.mubr.bf16.gmra.mrb[44].mxu0 %v19588_v32  ;;  %v19638_v8 = vld [vmem:[%s24688_s16 + $0x140] ss:$12 sps:$4 sm:$0xff]  }
 0x566   :  { %17967 = vmatpush3.bf16.msra.mxu0 %v22259_v53  ;;  %7375 = vmatprep.mubr.bf16.mxu0 %v19589_v62  ;;  %v19641_v63 = vld [vmem:[%s24688_s16 + $0x154] ss:$12 sps:$4 sm:$0xff]  }
 0x567   :  { %17968 = vmatprep.subr.bf16.mxu0 %v19990_v40 }
 0x56a   :  { %17969 = vmatpush3.bf16.msra.mxu0 %v22253_v45 }
 0x56b   :  { %16725 = vmatprep.subr.bf16.mxu0 %v22170_v35 }
 0x56d   :  { %7376 = vmatmul.mubr.bf16.gmra.mrb[48].mxu0 %v19591_v23 }
 0x56e   :  { %7383 = vmatprep.mubr.bf16.mxu0 %v19592_v60 }
 0x575   :  { %7384 = vmatmul.mubr.bf16.gmra.mrb[52].mxu0 %v19594_v47  ;;  %v19639_v47 = vld [vmem:[%s24688_s16 + $0x150] ss:$12 sps:$4 sm:$0xff]  }
 0x576   :  { %7391 = vmatprep.mubr.bf16.mxu0 %v19595_v0 }
 0x57d   :  { %7392 = vmatmul.mubr.bf16.gmra.mrb[56].mxu0 %v19597_v5  ;;  %v19642_v5 = vld [vmem:[%s24688_s16 + $0x16c] ss:$12 sps:$4 sm:$0xff]  }
 0x57e   :  { %7399 = vmatprep.mubr.bf16.mxu0 %v19598_v54 }
 0x585   :  { %7400 = vmatmul.mubr.bf16.gmra.mrb[60].mxu0 %v19600_v50 }
 0x586   :  { %7407 = vmatprep.mubr.bf16.mxu0 %v19601_v41 }
 0x58d   :  { %7408 = vmatmul.mubr.bf16.gmra.mrb[64].mxu0 %v19603_v2 }
 0x58e   :  { %17970 = vmatprep.mubr.msk.bf16.mxu0 %vm19991_vm12, %v19990_v40 }
 0x595   :  { %17971 = vmatmul.mubr.msk.bf16.vlgmr.msra.gmra.mrb[68].mxu0 %vm7305_vm13, %v19604_v55 }
 0x596   :  { %16726 = vmatpush3.bf16.msra.mxu0 %v22122_v19  ;;  %17974 = vmatprep.mubr.msk.bf16.mxu0 %vm19991_vm12, %v19990_v40 }
 0x597   :  { %16727 = vmatprep.subr.bf16.mxu0 %v22167_v7 }
 0x59a   :  { %16728 = vmatpush3.bf16.msra.mxu0 %v22119_v9 }
 0x59b   :  { %16729 = vmatprep.subr.bf16.mxu0 %v22186_v49 }
 0x59d   :  { %17975 = vmatmul.mubr.msk.bf16.gmra.mrb[72].mxu0 %vm7305_vm13, %v19605_v52  ;;  %v19644_v52 = vld [vmem:[%s24688_s16 + $0x168] ss:$12 sps:$4 sm:$0xff]  }
 0x59e   :  { %16730 = vmatpush3.bf16.msra.mxu0 %v22134_v13  ;;  %17978 = vmatprep.mubr.msk.bf16.mxu0 %vm19991_vm12, %v19990_v40 }
 0x59f   :  { %16731 = vmatprep.subr.bf16.mxu0 %v22182_v58 }
 0x5a2   :  { %16732 = vmatpush3.bf16.msra.mxu0 %v22131_v36 }
 0x5a3   :  { %16733 = vmatprep.subr.bf16.mxu0 %v22202_v15 }
 0x5a5   :  { %17979 = vmatmul.mubr.msk.bf16.gmra.mrb[76].mxu0 %vm7305_vm13, %v19606_v26 }
 0x5a6   :  { %16734 = vmatpush3.bf16.msra.mxu0 %v22146_v20  ;;  %17982 = vmatprep.mubr.msk.bf16.mxu0 %vm19991_vm12, %v19990_v40 }
 0x5a7   :  { %16735 = vmatprep.subr.bf16.mxu0 %v22198_v21 }
 0x5aa   :  { %16736 = vmatpush3.bf16.msra.mxu0 %v22143_v16 }
 0x5ab   :  { %16737 = vmatprep.subr.bf16.mxu0 %v22218_v42 }
 0x5ad   :  { %17983 = vmatmul.mubr.msk.bf16.gmra.mrb[80].mxu0 %vm7305_vm13, %v19607_v6  ;;  %v19645_v6 = vld [vmem:[%s24688_s16 + $0x184] ss:$12 sps:$4 sm:$0xff]  }
 0x5ae   :  { %16738 = vmatpush3.bf16.msra.mxu0 %v22158_v39  ;;  %17986 = vmatprep.mubr.msk.bf16.mxu0 %vm19991_vm12, %v19990_v40 }
 0x5af   :  { %16739 = vmatprep.subr.bf16.mxu0 %v22214_v37 }
 0x5b2   :  { %16740 = vmatpush3.bf16.msra.mxu0 %v22155_v33 }
 0x5b3   :  { %17998 = vmatprep.subr.bf16.mxu0 %v19990_v40 }
 0x5b5   :  { %17987 = vmatmul.mubr.msk.bf16.gmra.mrb[84].mxu0 %vm7305_vm13, %v19608_v61 }
 0x5b6   :  { %17990 = vmatprep.mubr.msk.bf16.mxu0 %vm19991_vm12, %v19990_v40 }
 0x5bd   :  { %17991 = vmatmul.mubr.msk.bf16.gmra.mrb[88].mxu0 %vm7305_vm13, %v19609_v10 }
 0x5be   :  { %17994 = vmatprep.mubr.msk.bf16.mxu0 %vm19991_vm12, %v19990_v40 }
 0x5c5   :  { %17995 = vmatmul.mubr.msk.bf16.gmra.mrb[92].mxu0 %vm7305_vm13, %v19610_v43 }
 0x5c6   :  { %7706 = vmatprep.mubr.bf16.mxu0 %v19613_v3 }
 0x5cd   :  { %7707 = vmatmul.mubr.bf16.vlgmr.msra.gmra.mrb[96].mxu0 %v19611_v30 }
 0x5ce   :  { %17999 = vmatpush3.bf16.msra.mxu0 %v22240_v17  ;;  %7714 = vmatprep.mubr.bf16.mxu0 %v19614_v27  ;;  %v19647_v27 = vld [vmem:[%s24688_s16 + $0x180] ss:$12 sps:$4 sm:$0xff]  }
 0x5cf   :  { %18000 = vmatprep.subr.bf16.mxu0 %v19990_v40 }
 0x5d2   :  { %18001 = vmatpush3.bf16.msra.mxu0 %v22233_v11 }
 0x5d3   :  { %18002 = vmatprep.subr.bf16.mxu0 %v19990_v40 }
 0x5d5   :  { %7715 = vmatmul.mubr.bf16.gmra.mrb[100].mxu0 %v19616_v46 }
 0x5d6   :  { %18003 = vmatpush3.bf16.msra.mxu0 %v22259_v53  ;;  %7722 = vmatprep.mubr.bf16.mxu0 %v19617_v4  ;;  %v19648_v4 = vld [vmem:[%s24688_s16 + $0x19c] ss:$12 sps:$4 sm:$0xff]  }
 0x5d7   :  { %18004 = vmatprep.subr.bf16.mxu0 %v19990_v40 }
 0x5da   :  { %18005 = vmatpush3.bf16.msra.mxu0 %v22253_v45 }
 0x5db   :  { %16794 = vmatprep.subr.bf16.mxu0 %v22170_v35 }
 0x5dd   :  { %7723 = vmatmul.mubr.bf16.gmra.mrb[104].mxu0 %v19619_v14 }
 0x5de   :  { %7730 = vmatprep.mubr.bf16.mxu0 %v19620_v28 }
 0x5e5   :  { %7731 = vmatmul.mubr.bf16.gmra.mrb[108].mxu0 %v19622_v18 }
 0x5e6   :  { %7738 = vmatprep.mubr.bf16.mxu0 %v19623_v57 }
 0x5ed   :  { %7739 = vmatmul.mubr.bf16.gmra.mrb[112].mxu0 %v19625_v24 }
 0x5ee   :  { %7746 = vmatprep.mubr.bf16.mxu0 %v19626_v1  ;;  %v19650_v1 = vld [vmem:[%s24688_s16 + $0x198] ss:$12 sps:$4 sm:$0xff]  }
 0x5f5   :  { %7747 = vmatmul.mubr.bf16.gmra.mrb[116].mxu0 %v19628_v51 }
 0x5f6   :  { %7754 = vmatprep.mubr.bf16.mxu0 %v19629_v22  ;;  %v19651_v22 = vld [vmem:[%s24688_s16 + $0x1b4] ss:$12 sps:$4 sm:$0xff]  }
 0x5fd   :  { %7755 = vmatmul.mubr.bf16.gmra.mrb[120].mxu0 %v19631_v12 }
 0x5fe   :  { %18006 = vmatprep.mubr.msk.bf16.mxu0 %vm19991_vm12, %v19990_v40 }
 0x605   :  { %18007 = vmatmul.mubr.msk.bf16.vlgmr.msra.gmra.mrb[124].mxu0 %vm7305_vm13, %v19632_v56 }
 0x606   :  { %16795 = vmatpush3.bf16.msra.mxu0 %v22122_v19  ;;  %18010 = vmatprep.mubr.msk.bf16.mxu0 %vm19991_vm12, %v19990_v40 }
 0x607   :  { %16796 = vmatprep.subr.bf16.mxu0 %v22167_v7 }
 0x60a   :  { %16797 = vmatpush3.bf16.msra.mxu0 %v22119_v9 }
 0x60b   :  { %16798 = vmatprep.subr.bf16.mxu0 %v22186_v49 }
 0x60d   :  { %18011 = vmatmul.mubr.msk.bf16.gmra.mrb[128].mxu0 %vm7305_vm13, %v19633_v38 }
 0x60e   :  { %16799 = vmatpush3.bf16.msra.mxu0 %v22134_v13  ;;  %18014 = vmatprep.mubr.msk.bf16.mxu0 %vm19991_vm12, %v19990_v40 }
 0x60f   :  { %16800 = vmatprep.subr.bf16.mxu0 %v22182_v58 }
 0x612   :  { %16801 = vmatpush3.bf16.msra.mxu0 %v22131_v36 }
 0x613   :  { %16802 = vmatprep.subr.bf16.mxu0 %v22202_v15 }
 0x615   :  { %18015 = vmatmul.mubr.msk.bf16.gmra.mrb[132].mxu0 %vm7305_vm13, %v19634_v44 }
 0x616   :  { %16803 = vmatpush3.bf16.msra.mxu0 %v22146_v20  ;;  %18018 = vmatprep.mubr.msk.bf16.mxu0 %vm19991_vm12, %v19990_v40 }
 0x617   :  { %16804 = vmatprep.subr.bf16.mxu0 %v22198_v21 }
 0x61a   :  { %16805 = vmatpush3.bf16.msra.mxu0 %v22143_v16 }
 0x61b   :  { %16806 = vmatprep.subr.bf16.mxu0 %v22218_v42 }
 0x61d   :  { %18019 = vmatmul.mubr.msk.bf16.gmra.mrb[136].mxu0 %vm7305_vm13, %v19635_v48  ;;  %v19653_v48 = vld [vmem:[%s24688_s16 + $0x1b0] ss:$12 sps:$4 sm:$0xff]  }
 0x61e   :  { %16807 = vmatpush3.bf16.msra.mxu0 %v22158_v39  ;;  %18022 = vmatprep.mubr.msk.bf16.mxu0 %vm19991_vm12, %v19990_v40 }
 0x61f   :  { %16808 = vmatprep.subr.bf16.mxu0 %v22214_v37 }
 0x622   :  { %16809 = vmatpush3.bf16.msra.mxu0 %v22155_v33 }
 0x623   :  { %18034 = vmatprep.subr.bf16.mxu0 %v19990_v40 }
 0x625   :  { %18023 = vmatmul.mubr.msk.bf16.gmra.mrb[140].mxu0 %vm7305_vm13, %v19636_v59 }
 0x626   :  { %18026 = vmatprep.mubr.msk.bf16.mxu0 %vm19991_vm12, %v19990_v40 }
 0x62d   :  { %18027 = vmatmul.mubr.msk.bf16.gmra.mrb[144].mxu0 %vm7305_vm13, %v19637_v31 }
 0x62e   :  { %18030 = vmatprep.mubr.msk.bf16.mxu0 %vm19991_vm12, %v19990_v40 }
 0x630   :  { %v16672_v25 = vpop.f32.mrb[40].mxu0 }
 0x631   :  { %v16673_v29 = vpop.f32.mrb[41].mxu0 }
 0x632   :  { %v16675_v34 = vpop.f32.mrb[42].mxu0  ;;  %v22461_v32 = vadd.f32 %v16673_v29, %v16672_v25 }
 0x633   :  { %v16676_v62 = vpop.f32.mrb[43].mxu0 }
 0x634   :  { %v22463_v23 = vadd.f32 %v16676_v62, %v16675_v34 }
 0x635   :  { %18031 = vmatmul.mubr.msk.bf16.gmra.mrb[148].mxu0 %vm7305_vm13, %v19638_v8  ;;  %v19654_v8 = vld [vmem:[%s24688_s16 + $0x1cc] ss:$12 sps:$4 sm:$0xff]  }
 0x636   :  { %8082 = vmatprep.mubr.bf16.mxu0 %v19641_v63 }
 0x638   :  { %v16678_v60 = vpop.f32.mrb[44].mxu0 }
 0x639   :  { %v16679_v0 = vpop.f32.mrb[45].mxu0 }
 0x63a   :  { %v16681_v54 = vpop.f32.mrb[46].mxu0  ;;  %v22472_v50 = vadd.f32 %v16679_v0, %v16678_v60  ;;  %v19656_v60 = vld [vmem:[%s24688_s16 + $0x1c8] ss:$12 sps:$4 sm:$0xff]  }
 0x63b   :  { %v16682_v41 = vpop.f32.mrb[47].mxu0 }
 0x63c   :  { %v22474_v2 = vadd.f32 %v16682_v41, %v16681_v54 }
 0x63d   :  { %8083 = vmatmul.mubr.bf16.vlgmr.msra.gmra.mrb[152].mxu0 %v19639_v47 }
 0x63e   :  { %18035 = vmatpush3.bf16.msra.mxu0 %v22240_v17  ;;  %8090 = vmatprep.mubr.bf16.mxu0 %v19642_v5  ;;  %v19657_v5 = vld [vmem:[%s24688_s16 + $0x1e4] ss:$12 sps:$4 sm:$0xff]  }
 0x63f   :  { %18036 = vmatprep.subr.bf16.mxu0 %v19990_v40 }
 0x640   :  { %v16684_v55 = vpop.f32.mrb[48].mxu0 }
 0x641   :  { %v16685_v26 = vpop.f32.mrb[49].mxu0 }
 0x642   :  { %18037 = vmatpush3.bf16.msra.mxu0 %v22233_v11  ;;  %v16687_v61 = vpop.f32.mrb[50].mxu0  ;;  %v22485_v10 = vadd.f32 %v16685_v26, %v16684_v55 }
 0x643   :  { %18038 = vmatprep.subr.bf16.mxu0 %v19990_v40  ;;  %v16688_v43 = vpop.f32.mrb[51].mxu0 }
 0x644   :  { %v22488_v3 = vadd.f32 %v16688_v43, %v16687_v61 }
 0x645   :  { %8091 = vmatmul.mubr.bf16.gmra.mrb[156].mxu0 %v19644_v52 }
 0x646   :  { %18039 = vmatpush3.bf16.msra.mxu0 %v22259_v53  ;;  %8098 = vmatprep.mubr.bf16.mxu0 %v19645_v6  ;;  %v19659_v6 = vld [vmem:[%s24688_s16 + $0x1e0] ss:$12 sps:$4 sm:$0xff]  }
 0x647   :  { %18040 = vmatprep.subr.bf16.mxu0 %v19990_v40 }
 0x648   :  { %v16690_v30 = vpop.f32.mrb[52].mxu0 }
 0x649   :  { %v16691_v46 = vpop.f32.mrb[53].mxu0 }
 0x64a   :  { %18041 = vmatpush3.bf16.msra.mxu0 %v22253_v45  ;;  %v16693_v14 = vpop.f32.mrb[54].mxu0  ;;  %v22499_v28 = vadd.f32 %v16691_v46, %v16690_v30 }
 0x64b   :  { %16863 = vmatprep.subr.bf16.mxu0 %v22170_v35  ;;  %v16694_v18 = vpop.f32.mrb[55].mxu0 }
 0x64c   :  { %v22502_v57 = vadd.f32 %v16694_v18, %v16693_v14  ;;  %v19660_v14 = vld [vmem:[%s24688_s16 + $0x158] ss:$12 sps:$4 sm:$0xff]  }
 0x64d   :  { %8099 = vmatmul.mubr.bf16.gmra.mrb[160].mxu0 %v19647_v27 }
 0x64e   :  { %8106 = vmatprep.mubr.bf16.mxu0 %v19648_v4 }
 0x650   :  { %v16696_v24 = vpop.f32.mrb[56].mxu0 }
 0x651   :  { %v16697_v51 = vpop.f32.mrb[57].mxu0 }
 0x652   :  { %v16699_v12 = vpop.f32.mrb[58].mxu0  ;;  %v22510_v56 = vadd.f32 %v16697_v51, %v16696_v24 }
 0x653   :  { %v16700_v38 = vpop.f32.mrb[59].mxu0 }
 0x654   :  { %v22512_v35 = vadd.f32 %v16700_v38, %v16699_v12 }
 0x655   :  { %8107 = vmatmul.mubr.bf16.gmra.mrb[164].mxu0 %v19650_v1 }
 0x656   :  { %8114 = vmatprep.mubr.bf16.mxu0 %v19651_v22 }
 0x658   :  { %v16702_v44 = vpop.f32.mrb[60].mxu0 }
 0x659   :  { %v16703_v59 = vpop.f32.mrb[61].mxu0 }
 0x65a   :  { %v22517_v31 = vadd.f32 %v16703_v59, %v16702_v44  ;;  %v16705_v25 = vpop.f32.mrb[62].mxu0 }
 0x65b   :  { %v16706_v29 = vpop.f32.mrb[63].mxu0 }
 0x65c   :  { %v22522_v63 = vadd.f32 %v16706_v29, %v16705_v25 }
 0x65d   :  { %8115 = vmatmul.mubr.bf16.gmra.mrb[168].mxu0 %v19653_v48 }
 0x65e   :  { %8122 = vmatprep.mubr.bf16.mxu0 %v19654_v8 }
 0x660   :  { %v16708_v34 = vpop.f32.mrb[64].mxu0 }
 0x661   :  { %v16709_v62 = vpop.f32.mrb[65].mxu0 }
 0x662   :  { %v22527_v47 = vadd.f32 %v16709_v62, %v16708_v34  ;;  %v16711_v0 = vpop.f32.mrb[66].mxu0 }
 0x663   :  { %v16712_v54 = vpop.f32.mrb[67].mxu0 }
 0x664   :  { %v22532_v41 = vadd.f32 %v16712_v54, %v16711_v0 }
 0x665   :  { %8123 = vmatmul.mubr.bf16.gmra.mrb[172].mxu0 %v19656_v60 }
 0x666   :  { %8130 = vmatprep.mubr.bf16.mxu0 %v19657_v5 }
 0x668   :  { %v7450_v55 = vpop.f32.mrb[68].mxu0 }
 0x669   :  { %v7451_v52 = vadd.f32 %v22461_v32, %v7450_v55  ;;  %v17972_v26 = vpop.f32.mrb[69].mxu0 }
 0x66a   :  { %v7453_v61 = vpop.f32.mrb[70].mxu0 }
 0x66b   :  { %v7454_v43 = vadd.f32 %v22463_v23, %v7453_v61  ;;  %v17973_v30 = vpop.f32.mrb[71].mxu0 }
 0x66c   :  { %v19667_v30 = vld [vmem:[%s24688_s16 + $0x1f8] ss:$12 sps:$4 sm:$0xff]  }
 0x66d   :  { %v7505_v27 = vpack.c.bf16 %v7454_v43, %v7451_v52  ;;  %8131 = vmatmul.mubr.bf16.gmra.mrb[176].mxu0 %v19659_v6  ;;  %v19669_v52 = vld [vmem:[%s24688_s16 + $0x1fc] ss:$12 sps:$4 sm:$0xff]  }
 0x66e   :  { %18042 = vmatprep.mubr.msk.bf16.mxu0 %vm19991_vm12, %v19990_v40 }
 0x66f   :  { %7512 = vst.msk [vmem:[#allocation2] sm:$0xff] %vm455_vm1, %v7505_v27 }
 0x670   :  { %v7458_v46 = vpop.f32.mrb[72].mxu0 }
 0x671   :  { %v7459_v4 = vadd.f32 %v22472_v50, %v7458_v46  ;;  %v17976_v32 = vpop.f32.mrb[73].mxu0  ;;  %v19670_v46 = vld [vmem:[%s24688_s16 + $0x214] ss:$12 sps:$4 sm:$0xff]  }
 0x672   :  { %v7461_v18 = vpop.f32.mrb[74].mxu0 }
 0x673   :  { %v7462_v24 = vadd.f32 %v22474_v2, %v7461_v18  ;;  %v17977_v23 = vpop.f32.mrb[75].mxu0  ;;  %v19661_v2 = vld [vmem:[%s24688_s16 + $0x170] ss:$12 sps:$4 sm:$0xff]  }
 0x674   :  { %v19672_v23 = vld [vmem:[%s24688_s16 + $0x210] ss:$12 sps:$4 sm:$0xff]  }
 0x675   :  { %v7506_v1 = vpack.c.bf16 %v7462_v24, %v7459_v4  ;;  %18043 = vmatmul.mubr.msk.bf16.vlgmr.msra.gmra.mrb[180].mxu0 %vm7305_vm13, %v19660_v14 }
 0x676   :  { %16864 = vmatpush3.bf16.msra.mxu0 %v22122_v19  ;;  %18046 = vmatprep.mubr.msk.bf16.mxu0 %vm19991_vm12, %v19990_v40 }
 0x677   :  { %7513 = vst.msk [vmem:[#allocation2 + $0x8] sm:$0xff] %vm455_vm1, %v7506_v1  ;;  %16865 = vmatprep.subr.bf16.mxu0 %v22167_v7 }
 0x678   :  { %v7466_v50 = vpop.f32.mrb[76].mxu0 }
 0x679   :  { %v7467_v51 = vadd.f32 %v22485_v10, %v7466_v50  ;;  %v17980_v22 = vpop.f32.mrb[77].mxu0  ;;  %v19673_v50 = vld [vmem:[%s24688_s16 + $0x22c] ss:$12 sps:$4 sm:$0xff]  }
 0x67a   :  { %16866 = vmatpush3.bf16.msra.mxu0 %v22119_v9  ;;  %v7469_v12 = vpop.f32.mrb[78].mxu0 }
 0x67b   :  { %v7470_v19 = vadd.f32 %v22488_v3, %v7469_v12  ;;  %16867 = vmatprep.subr.bf16.mxu0 %v22186_v49  ;;  %v17981_v38 = vpop.f32.mrb[79].mxu0  ;;  %v19662_v49 = vld [vmem:[%s24688_s16 + $0x188] ss:$12 sps:$4 sm:$0xff]  }
 0x67c   :  { %v19676_v38 = vld [vmem:[%s24688_s16 + $0x244] ss:$12 sps:$4 sm:$0xff]  }
 0x67d   :  { %v7507_v44 = vpack.c.bf16 %v7470_v19, %v7467_v51  ;;  %18047 = vmatmul.mubr.msk.bf16.gmra.mrb[184].mxu0 %vm7305_vm13, %v19661_v2 }
 0x67e   :  { %16868 = vmatpush3.bf16.msra.mxu0 %v22134_v13  ;;  %18050 = vmatprep.mubr.msk.bf16.mxu0 %vm19991_vm12, %v19990_v40 }
 0x67f   :  { %7514 = vst.msk [vmem:[#allocation2 + $0x10] sm:$0xff] %vm455_vm1, %v7507_v44  ;;  %16869 = vmatprep.subr.bf16.mxu0 %v22182_v58 }
 0x680   :  { %v7474_v7 = vpop.f32.mrb[80].mxu0 }
 0x681   :  { %v7475_v9 = vadd.f32 %v22499_v28, %v7474_v7  ;;  %v17984_v10 = vpop.f32.mrb[81].mxu0 }
 0x682   :  { %16870 = vmatpush3.bf16.msra.mxu0 %v22131_v36  ;;  %v7477_v3 = vpop.f32.mrb[82].mxu0 }
 0x683   :  { %v7478_v13 = vadd.f32 %v22502_v57, %v7477_v3  ;;  %16871 = vmatprep.subr.bf16.mxu0 %v22202_v15  ;;  %v17985_v48 = vpop.f32.mrb[83].mxu0  ;;  %v19663_v15 = vld [vmem:[%s24688_s16 + $0x1a0] ss:$12 sps:$4 sm:$0xff]  }
 0x685   :  { %v7508_v59 = vpack.c.bf16 %v7478_v13, %v7475_v9  ;;  %18051 = vmatmul.mubr.msk.bf16.gmra.mrb[188].mxu0 %vm7305_vm13, %v19662_v49  ;;  %v19678_v49 = vld [vmem:[%s24688_s16 + $0x240] ss:$12 sps:$4 sm:$0xff]  }
 0x686   :  { %16872 = vmatpush3.bf16.msra.mxu0 %v22146_v20  ;;  %18054 = vmatprep.mubr.msk.bf16.mxu0 %vm19991_vm12, %v19990_v40 }
 0x687   :  { %7515 = vst.msk [vmem:[#allocation2 + $0x18] sm:$0xff] %vm455_vm1, %v7508_v59  ;;  %16873 = vmatprep.subr.bf16.mxu0 %v22198_v21 }
 0x688   :  { %v7482_v58 = vpop.f32.mrb[84].mxu0 }
 0x689   :  { %v7483_v36 = vadd.f32 %v22510_v56, %v7482_v58  ;;  %v17988_v28 = vpop.f32.mrb[85].mxu0 }
 0x68a   :  { %16874 = vmatpush3.bf16.msra.mxu0 %v22143_v16  ;;  %v7485_v57 = vpop.f32.mrb[86].mxu0  ;;  %v19681_v28 = vld [vmem:[%s24688_s16 + $0x258] ss:$12 sps:$4 sm:$0xff]  }
 0x68b   :  { %v7486_v20 = vadd.f32 %v22512_v35, %v7485_v57  ;;  %16875 = vmatprep.subr.bf16.mxu0 %v22218_v42  ;;  %v17989_v25 = vpop.f32.mrb[87].mxu0  ;;  %v19664_v42 = vld [vmem:[%s24688_s16 + $0x1b8] ss:$12 sps:$4 sm:$0xff]  }
 0x68c   :  { %v19682_v25 = vld [vmem:[%s24688_s16 + $0x274] ss:$12 sps:$4 sm:$0xff]  }
 0x68d   :  { %v7509_v8 = vpack.c.bf16 %v7486_v20, %v7483_v36  ;;  %18055 = vmatmul.mubr.msk.bf16.gmra.mrb[192].mxu0 %vm7305_vm13, %v19663_v15 }
 0x68e   :  { %16876 = vmatpush3.bf16.msra.mxu0 %v22158_v39  ;;  %18058 = vmatprep.mubr.msk.bf16.mxu0 %vm19991_vm12, %v19990_v40 }
 0x68f   :  { %7516 = vst.msk [vmem:[#allocation2 + $0x20] sm:$0xff] %vm455_vm1, %v7509_v8  ;;  %16877 = vmatprep.subr.bf16.mxu0 %v22214_v37 }
 0x690   :  { %v7490_v21 = vpop.f32.mrb[88].mxu0 }
 0x691   :  { %v7491_v16 = vadd.f32 %v22517_v31, %v7490_v21  ;;  %v17992_v56 = vpop.f32.mrb[89].mxu0 }
 0x692   :  { %16878 = vmatpush3.bf16.msra.mxu0 %v22155_v33  ;;  %v7493_v35 = vpop.f32.mrb[90].mxu0  ;;  %v19665_v33 = vld [vmem:[%s24688_s16 + $0x1d0] ss:$12 sps:$4 sm:$0xff]  }
 0x693   :  { %v7494_v39 = vadd.f32 %v22522_v63, %v7493_v35  ;;  %v17993_v29 = vpop.f32.mrb[91].mxu0  ;;  %18070 = vmatprep.subr.bf16.mxu0 %v19990_v40 }
 0x694   :  { %v19685_v29 = vld [vmem:[%s24688_s16 + $0x28c] ss:$12 sps:$4 sm:$0xff]  }
 0x695   :  { %v7510_v34 = vpack.c.bf16 %v7494_v39, %v7491_v16  ;;  %18059 = vmatmul.mubr.msk.bf16.gmra.mrb[196].mxu0 %vm7305_vm13, %v19664_v42  ;;  %v19684_v42 = vld [vmem:[%s24688_s16 + $0x270] ss:$12 sps:$4 sm:$0xff]  }
 0x696   :  { %18062 = vmatprep.mubr.msk.bf16.mxu0 %vm19991_vm12, %v19990_v40 }
 0x697   :  { %7517 = vst.msk [vmem:[#allocation2 + $0x28] sm:$0xff] %vm455_vm1, %v7510_v34 }
 0x698   :  { %v7498_v37 = vpop.f32.mrb[92].mxu0 }
 0x699   :  { %v7499_v31 = vadd.f32 %v22527_v47, %v7498_v37  ;;  %v17996_v62 = vpop.f32.mrb[93].mxu0  ;;  %v19666_v47 = vld [vmem:[%s24688_s16 + $0x1e8] ss:$12 sps:$4 sm:$0xff]  }
 0x69a   :  { %v7501_v63 = vpop.f32.mrb[94].mxu0 }
 0x69b   :  { %v7502_v60 = vadd.f32 %v22532_v41, %v7501_v63  ;;  %v17997_v0 = vpop.f32.mrb[95].mxu0  ;;  %v19687_v63 = vld [vmem:[%s24688_s16 + $0x288] ss:$12 sps:$4 sm:$0xff]  }
 0x69d   :  { %v7511_v5 = vpack.c.bf16 %v7502_v60, %v7499_v31  ;;  %18063 = vmatmul.mubr.msk.bf16.gmra.mrb[200].mxu0 %vm7305_vm13, %v19665_v33 }
 0x69e   :  { %18066 = vmatprep.mubr.msk.bf16.mxu0 %vm19991_vm12, %v19990_v40 }
 0x69f   :  { %7518 = vst.msk [vmem:[#allocation2 + $0x30] sm:$0xff] %vm455_vm1, %v7511_v5  ;;  %vm8639_vm1 = vcmask 1048320  }
 0x6a0   :  { %v16741_v54 = vpop.f32.mrb[96].mxu0 }
 0x6a1   :  { %v16742_v55 = vpop.f32.mrb[97].mxu0 }
 0x6a2   :  { %v22618_v41 = vadd.f32 %v16742_v55, %v16741_v54  ;;  %v16744_v26 = vpop.f32.mrb[98].mxu0 }
 0x6a3   :  { %v16745_v6 = vpop.f32.mrb[99].mxu0 }
 0x6a4   :  { %v22620_v61 = vadd.f32 %v16745_v6, %v16744_v26 }
 0x6a5   :  { %18067 = vmatmul.mubr.msk.bf16.gmra.mrb[204].mxu0 %vm7305_vm13, %v19666_v47 }
 0x6a6   :  { %8458 = vmatprep.mubr.bf16.mxu0 %v19669_v52 }
 0x6a8   :  { %v16747_v43 = vpop.f32.mrb[100].mxu0 }
 0x6a9   :  { %v16748_v27 = vpop.f32.mrb[101].mxu0 }
 0x6aa   :  { %v22629_v4 = vadd.f32 %v16748_v27, %v16747_v43  ;;  %v16750_v32 = vpop.f32.mrb[102].mxu0 }
 0x6ab   :  { %v16751_v14 = vpop.f32.mrb[103].mxu0 }
 0x6ac   :  { %v22631_v18 = vadd.f32 %v16751_v14, %v16750_v32 }
 0x6ad   :  { %8459 = vmatmul.mubr.bf16.vlgmr.msra.gmra.mrb[208].mxu0 %v19667_v30 }
 0x6ae   :  { %18071 = vmatpush3.bf16.msra.mxu0 %v22240_v17  ;;  %8466 = vmatprep.mubr.bf16.mxu0 %v19670_v46 }
 0x6af   :  { %18072 = vmatprep.subr.bf16.mxu0 %v19990_v40 }
 0x6b0   :  { %v16753_v24 = vpop.f32.mrb[104].mxu0 }
 0x6b1   :  { %v16754_v1 = vpop.f32.mrb[105].mxu0 }
 0x6b2   :  { %18073 = vmatpush3.bf16.msra.mxu0 %v22233_v11  ;;  %v22642_v51 = vadd.f32 %v16754_v1, %v16753_v24  ;;  %v16756_v22 = vpop.f32.mrb[106].mxu0  ;;  %v19675_v11 = vld [vmem:[%s24688_s16 + $0x228] ss:$12 sps:$4 sm:$0xff]  }
 0x6b3   :  { %18074 = vmatprep.subr.bf16.mxu0 %v19990_v40  ;;  %v16757_v17 = vpop.f32.mrb[107].mxu0 }
 0x6b4   :  { %v22645_v2 = vadd.f32 %v16757_v17, %v16756_v22 }
 0x6b5   :  { %8467 = vmatmul.mubr.bf16.gmra.mrb[212].mxu0 %v19672_v23 }
 0x6b6   :  { %18075 = vmatpush3.bf16.msra.mxu0 %v22259_v53  ;;  %8474 = vmatprep.mubr.bf16.mxu0 %v19673_v50 }
 0x6b7   :  { %18076 = vmatprep.subr.bf16.mxu0 %v19990_v40 }
 0x6b8   :  { %v16759_v12 = vpop.f32.mrb[108].mxu0 }
 0x6b9   :  { %v16760_v19 = vpop.f32.mrb[109].mxu0 }
 0x6ba   :  { %18077 = vmatpush3.bf16.msra.mxu0 %v22253_v45  ;;  %v22656_v44 = vadd.f32 %v16760_v19, %v16759_v12  ;;  %v16762_v7 = vpop.f32.mrb[110].mxu0  ;;  %v19679_v45 = vld [vmem:[%s24688_s16 + $0x25c] ss:$12 sps:$4 sm:$0xff]  }
 0x6bb   :  { %v16763_v9 = vpop.f32.mrb[111].mxu0 }
 0x6bc   :  { %v22658_v53 = vadd.f32 %v16763_v9, %v16762_v7 }
 0x6bd   :  { %8475 = vmatmul.mubr.bf16.gmra.mrb[216].mxu0 %v19675_v11 }
 0x6be   :  { %8482 = vmatprep.mubr.bf16.mxu0 %v19676_v38 }
 0x6c0   :  { %v16765_v10 = vpop.f32.mrb[112].mxu0 }
 0x6c1   :  { %v16766_v3 = vpop.f32.mrb[113].mxu0 }
 0x6c2   :  { %v22666_v13 = vadd.f32 %v16766_v3, %v16765_v10  ;;  %v16768_v48 = vpop.f32.mrb[114].mxu0 }
 0x6c3   :  { %v16769_v59 = vpop.f32.mrb[115].mxu0 }
 0x6c4   :  { %v22668_v58 = vadd.f32 %v16769_v59, %v16768_v48 }
 0x6c5   :  { %8483 = vmatmul.mubr.bf16.gmra.mrb[220].mxu0 %v19678_v49 }
 0x6c6   :  { %8490 = vmatprep.mubr.bf16.mxu0 %v19679_v45 }
 0x6c8   :  { %v16771_v36 = vpop.f32.mrb[116].mxu0 }
 0x6c9   :  { %v16772_v15 = vpop.f32.mrb[117].mxu0 }
 0x6ca   :  { %v22673_v57 = vadd.f32 %v16772_v15, %v16771_v36  ;;  %v16774_v20 = vpop.f32.mrb[118].mxu0 }
 0x6cb   :  { %v16775_v8 = vpop.f32.mrb[119].mxu0 }
 0x6cc   :  { %v22678_v21 = vadd.f32 %v16775_v8, %v16774_v20  ;;  %v19693_v20 = vld [vmem:[%s24688_s16 + $0x278] ss:$12 sps:$4 sm:$0xff]  }
 0x6cd   :  { %8491 = vmatmul.mubr.bf16.gmra.mrb[224].mxu0 %v19681_v28 }
 0x6ce   :  { %8498 = vmatprep.mubr.bf16.mxu0 %v19682_v25 }
 0x6d0   :  { %v16777_v16 = vpop.f32.mrb[120].mxu0 }
 0x6d1   :  { %v16778_v56 = vpop.f32.mrb[121].mxu0 }
 0x6d2   :  { %v22683_v35 = vadd.f32 %v16778_v56, %v16777_v16  ;;  %v16780_v39 = vpop.f32.mrb[122].mxu0 }
 0x6d3   :  { %v16781_v34 = vpop.f32.mrb[123].mxu0 }
 0x6d4   :  { %v22688_v37 = vadd.f32 %v16781_v34, %v16780_v39 }
 0x6d5   :  { %8499 = vmatmul.mubr.bf16.gmra.mrb[228].mxu0 %v19684_v42  ;;  %v19694_v42 = vld [vmem:[%s24688_s16 + $0x290] ss:$12 sps:$4 sm:$0xff]  }
 0x6d6   :  { %8506 = vmatprep.mubr.bf16.mxu0 %v19685_v29 }
 0x6d8   :  { %v7797_v31 = vpop.f32.mrb[124].mxu0 }
 0x6d9   :  { %v7798_v62 = vadd.f32 %v22618_v41, %v7797_v31  ;;  %v18008_v33 = vpop.f32.mrb[125].mxu0  ;;  %v19688_v41 = vld [vmem:[%s24688_s16 + $0x200] ss:$12 sps:$4 sm:$0xff]  }
 0x6da   :  { %v7800_v60 = vpop.f32.mrb[126].mxu0 }
 0x6db   :  { %v7801_v0 = vadd.f32 %v22620_v61, %v7800_v60  ;;  %v18009_v5 = vpop.f32.mrb[127].mxu0 }
 0x6dd   :  { %v7852_v54 = vpack.c.bf16 %v7801_v0, %v7798_v62  ;;  %8507 = vmatmul.mubr.bf16.gmra.mrb[232].mxu0 %v19687_v63 }
 0x6de   :  { %18078 = vmatprep.mubr.msk.bf16.mxu0 %vm19991_vm12, %v19990_v40 }
 0x6df   :  { %7866 = vrot.lane.b32.xlu0 %v7852_v54, %s19992_s27 }
 0x6e0   :  { %v7805_v47 = vpop.f32.mrb[128].mxu0 }
 0x6e1   :  { %v7806_v55 = vadd.f32 %v22629_v4, %v7805_v47  ;;  %v18012_v52 = vpop.f32.mrb[129].mxu0  ;;  %v19689_v4 = vld [vmem:[%s24688_s16 + $0x218] ss:$12 sps:$4 sm:$0xff]  }
 0x6e2   :  { %v7808_v26 = vpop.f32.mrb[130].mxu0 }
 0x6e3   :  { %v7809_v6 = vadd.f32 %v22631_v18, %v7808_v26  ;;  %v18013_v61 = vpop.f32.mrb[131].mxu0 }
 0x6e5   :  { %v7853_v43 = vpack.c.bf16 %v7809_v6, %v7806_v55  ;;  %18079 = vmatmul.mubr.msk.bf16.vlgmr.msra.gmra.mrb[236].mxu0 %vm7305_vm13, %v19688_v41 }
 0x6e6   :  { %18082 = vmatprep.mubr.msk.bf16.mxu0 %vm19991_vm12, %v19990_v40 }
 0x6e7   :  { %7868 = vrot.lane.b32.xlu1 %v7853_v43, %s19992_s27 }
 0x6e8   :  { %v7813_v30 = vpop.f32.mrb[132].mxu0 }
 0x6e9   :  { %v7814_v27 = vadd.f32 %v22642_v51, %v7813_v30  ;;  %v18016_v46 = vpop.f32.mrb[133].mxu0  ;;  %v19690_v51 = vld [vmem:[%s24688_s16 + $0x230] ss:$12 sps:$4 sm:$0xff]  }
 0x6ea   :  { %v7816_v32 = vpop.f32.mrb[134].mxu0 }
 0x6eb   :  { %v7817_v14 = vadd.f32 %v22645_v2, %v7816_v32  ;;  %v18017_v18 = vpop.f32.mrb[135].mxu0 }
 0x6ed   :  { %v7854_v24 = vpack.c.bf16 %v7817_v14, %v7814_v27  ;;  %18083 = vmatmul.mubr.msk.bf16.gmra.mrb[240].mxu0 %vm7305_vm13, %v19689_v4 }
 0x6ee   :  { %18086 = vmatprep.mubr.msk.bf16.mxu0 %vm19991_vm12, %v19990_v40 }
 0x6ef   :  { %7870 = vrot.lane.b32.xlu1 %v7854_v24, %s19992_s27 }
 0x6f0   :  { %v7821_v23 = vpop.f32.mrb[136].mxu0 }
 0x6f1   :  { %v22717_v1 = vadd.f32 %v22656_v44, %v7821_v23  ;;  %v18020_v50 = vpop.f32.mrb[137].mxu0  ;;  %v19691_v44 = vld [vmem:[%s24688_s16 + $0x248] ss:$12 sps:$4 sm:$0xff]  }
 0x6f2   :  { %v7824_v22 = vpop.f32.mrb[138].mxu0 }
 0x6f3   :  { %v22723_v17 = vadd.f32 %v22658_v53, %v7824_v22  ;;  %v18021_v2 = vpop.f32.mrb[139].mxu0 }
 0x6f5   :  { %v7855_v12 = vpack.c.bf16 %v22723_v17, %v22717_v1  ;;  %18087 = vmatmul.mubr.msk.bf16.gmra.mrb[244].mxu0 %vm7305_vm13, %v19690_v51 }
 0x6f6   :  { %18090 = vmatprep.mubr.msk.bf16.mxu0 %vm19991_vm12, %v19990_v40 }
 0x6f8   :  { %v7829_v11 = vpop.f32.mrb[140].mxu0 }
 0x6f9   :  { %v22731_v19 = vadd.f32 %v22666_v13, %v7829_v11  ;;  %v18024_v38 = vpop.f32.mrb[141].mxu0  ;;  %v19692_v13 = vld [vmem:[%s24688_s16 + $0x260] ss:$12 sps:$4 sm:$0xff]   ;;  %s19993_s16 = smov 64  }
 0x6fa   :  { %v7832_v7 = vpop.f32.mrb[142].mxu0 }
 0x6fb   :  { %v22737_v9 = vadd.f32 %v22668_v58, %v7832_v7  ;;  %v18025_v53 = vpop.f32.mrb[143].mxu0 }
 0x6fd   :  { %v7856_v10 = vpack.c.bf16 %v22737_v9, %v22731_v19  ;;  %18091 = vmatmul.mubr.msk.bf16.gmra.mrb[248].mxu0 %vm7305_vm13, %v19691_v44 }
 0x6fe   :  { %18094 = vmatprep.mubr.msk.bf16.mxu0 %vm19991_vm12, %v19990_v40 }
 0x700   :  { %v7837_v49 = vpop.f32.mrb[144].mxu0 }
 0x701   :  { %v22745_v3 = vadd.f32 %v22673_v57, %v7837_v49  ;;  %v18028_v45 = vpop.f32.mrb[145].mxu0 }
 0x702   :  { %v7840_v48 = vpop.f32.mrb[146].mxu0 }
 0x703   :  { %v22751_v59 = vadd.f32 %v22678_v21, %v7840_v48  ;;  %v18029_v58 = vpop.f32.mrb[147].mxu0 }
 0x705   :  { %v7857_v36 = vpack.c.bf16 %v22751_v59, %v22745_v3  ;;  %18095 = vmatmul.mubr.msk.bf16.gmra.mrb[252].mxu0 %vm7305_vm13, %v19692_v13  ;;  %v8647_v3 = vld [vmem:[%s24690_s10] sm:$0xff] }
 0x706   :  { %18098 = vmatprep.mubr.msk.bf16.mxu0 %vm19991_vm12, %v19990_v40 }
 0x708   :  { %v7845_v28 = vpop.f32.mrb[148].mxu0 }
 0x709   :  { %v22759_v15 = vadd.f32 %v22683_v35, %v7845_v28  ;;  %v18032_v57 = vpop.f32.mrb[149].mxu0 }
 0x70a   :  { %v7848_v25 = vpop.f32.mrb[150].mxu0 }
 0x70b   :  { %v22765_v8 = vadd.f32 %v22688_v37, %v7848_v25  ;;  %v18033_v21 = vpop.f32.mrb[151].mxu0 }
 0x70d   :  { %v7858_v16 = vpack.c.bf16 %v22765_v8, %v22759_v15  ;;  %18099 = vmatmul.mubr.msk.bf16.gmra.mrb[0].mxu0 %vm7305_vm13, %v19693_v20 }
 0x70e   :  { %18102 = vmatprep.mubr.msk.bf16.mxu0 %vm19991_vm12, %v19990_v40 }
 0x710   :  { %v16810_v56 = vpop.f32.mrb[152].mxu0 }
 0x711   :  { %v16811_v35 = vpop.f32.mrb[153].mxu0 }
 0x712   :  { %v16812_v39 = vadd.f32 %v16811_v35, %v16810_v56  ;;  %v16813_v29 = vpop.f32.mrb[154].mxu0 }
 0x713   :  { %v16814_v34 = vpop.f32.mrb[155].mxu0 }
 0x714   :  { %v16815_v37 = vadd.f32 %v16814_v34, %v16813_v29 }
 0x715   :  { %18103 = vmatmul.mubr.msk.bf16.gmra.mrb[4].mxu0 %vm7305_vm13, %v19694_v42 }
 0x718   :  { %v16816_v31 = vpop.f32.mrb[156].mxu0 }
 0x719   :  { %v16817_v62 = vpop.f32.mrb[157].mxu0 }
 0x71a   :  { %v16818_v33 = vadd.f32 %v16817_v62, %v16816_v31  ;;  %v16819_v63 = vpop.f32.mrb[158].mxu0 }
 0x71b   :  { %v16820_v60 = vpop.f32.mrb[159].mxu0 }
 0x71c   :  { %v16821_v0 = vadd.f32 %v16820_v60, %v16819_v63 }
 0x720   :  { %v16822_v5 = vpop.f32.mrb[160].mxu0 }
 0x721   :  { %v16823_v54 = vpop.f32.mrb[161].mxu0 }
 0x722   :  { %v16824_v47 = vadd.f32 %v16823_v54, %v16822_v5  ;;  %v16825_v55 = vpop.f32.mrb[162].mxu0 }
 0x723   :  { %v16826_v52 = vpop.f32.mrb[163].mxu0 }
 0x724   :  { %v16827_v41 = vadd.f32 %v16826_v52, %v16825_v55 }
 0x728   :  { %v16828_v26 = vpop.f32.mrb[164].mxu0 }
 0x729   :  { %v16829_v6 = vpop.f32.mrb[165].mxu0 }
 0x72a   :  { %v16830_v61 = vadd.f32 %v16829_v6, %v16828_v26  ;;  %v16831_v43 = vpop.f32.mrb[166].mxu0 }
 0x72b   :  { %v16832_v30 = vpop.f32.mrb[167].mxu0 }
 0x72c   :  { %v16833_v27 = vadd.f32 %v16832_v30, %v16831_v43 }
 0x730   :  { %v16834_v46 = vpop.f32.mrb[168].mxu0 }
 0x731   :  { %v16835_v4 = vpop.f32.mrb[169].mxu0 }
 0x732   :  { %v16836_v32 = vadd.f32 %v16835_v4, %v16834_v46  ;;  %v16837_v14 = vpop.f32.mrb[170].mxu0 }
 0x733   :  { %v16838_v18 = vpop.f32.mrb[171].mxu0 }
 0x734   :  { %v16839_v24 = vadd.f32 %v16838_v18, %v16837_v14 }
 0x738   :  { %v16840_v23 = vpop.f32.mrb[172].mxu0 }
 0x739   :  { %v16841_v50 = vpop.f32.mrb[173].mxu0 }
 0x73a   :  { %v16842_v51 = vadd.f32 %v16841_v50, %v16840_v23  ;;  %v16843_v22 = vpop.f32.mrb[174].mxu0 }
 0x73b   :  { %v16844_v2 = vpop.f32.mrb[175].mxu0 }
 0x73c   :  { %v16845_v11 = vadd.f32 %v16844_v2, %v16843_v22 }
 0x740   :  { %v16846_v38 = vpop.f32.mrb[176].mxu0 }
 0x741   :  { %v16847_v44 = vpop.f32.mrb[177].mxu0 }
 0x742   :  { %v22776_v7 = vadd.f32 %v16847_v44, %v16846_v38  ;;  %v16849_v53 = vpop.f32.mrb[178].mxu0 }
 0x743   :  { %v16850_v49 = vpop.f32.mrb[179].mxu0 }
 0x744   :  { %v22778_v45 = vadd.f32 %v16850_v49, %v16849_v53  ;;  %v8651_v53 = vld [vmem:[%s24690_s10 + $0x20] sm:$0xff] }
 0x748   :  { %v8173_v13 = vpop.f32.mrb[180].mxu0 }
 0x749   :  { %v8174_v48 = vadd.f32 %v16812_v39, %v8173_v13  ;;  %v18044_v58 = vpop.f32.mrb[181].mxu0 }
 0x74a   :  { %v8176_v28 = vpop.f32.mrb[182].mxu0 }
 0x74b   :  { %v8177_v57 = vadd.f32 %v16815_v37, %v8176_v28  ;;  %v18045_v20 = vpop.f32.mrb[183].mxu0  ;;  %v8653_v28 = vld [vmem:[%s24690_s10 + $0x30] sm:$0xff] }
 0x74c   :  { %v8655_v20 = vld [vmem:[%s24690_s10 + $0x40] sm:$0xff] }
 0x74d   :  { %v8228_v25 = vpack.c.bf16 %v8177_v57, %v8174_v48 }
 0x74f   :  { %8242 = vrot.lane.b32.xlu0 %v8228_v25, %s19993_s16 }
 0x750   :  { %v8181_v21 = vpop.f32.mrb[184].mxu0 }
 0x751   :  { %v8182_v56 = vadd.f32 %v16818_v33, %v8181_v21  ;;  %v18048_v42 = vpop.f32.mrb[185].mxu0  ;;  %v7867_v35 = vpop.permute.xlu0 %7866 }
 0x752   :  { %7888 = vst.msk [vmem:[#allocation2] sm:$0xff] %vm7887_vm14, %v7867_v35  ;;  %v8184_v29 = vpop.f32.mrb[186].mxu0 }
 0x753   :  { %v8185_v34 = vadd.f32 %v16821_v0, %v8184_v29  ;;  %v18049_v31 = vpop.f32.mrb[187].mxu0  ;;  %v8657_v29 = vld [vmem:[%s24690_s10 + $0x50] sm:$0xff] }
 0x754   :  { %v19695_v31 = vld [vmem:[%s24691_s6 + $0x40] sm:$0xff]  }
 0x755   :  { %v8229_v62 = vpack.c.bf16 %v8185_v34, %v8182_v56  ;;  %18106 = vmatprep.subr.bf16.mxu1 %v19695_v31 }
 0x756   :  { %18107 = vmatpush3.bf16.msra.mxu1 %v19695_v31 }
 0x757   :  { %8244 = vrot.lane.b32.xlu1 %v8229_v62, %s19993_s16 }
 0x758   :  { %v8189_v39 = vpop.f32.mrb[188].mxu0 }
 0x759   :  { %v8190_v37 = vadd.f32 %v16824_v47, %v8189_v39  ;;  %v18052_v63 = vpop.f32.mrb[189].mxu0  ;;  %v7869_v60 = vpop.permute.xlu1 %7868 }
 0x75a   :  { %7889 = vst.msk [vmem:[#allocation2 + $0x8] sm:$0xff] %vm7887_vm14, %v7869_v60  ;;  %v8192_v5 = vpop.f32.mrb[190].mxu0 }
 0x75b   :  { %v8193_v54 = vadd.f32 %v16827_v41, %v8192_v5  ;;  %v18053_v55 = vpop.f32.mrb[191].mxu0 }
 0x75d   :  { %v8230_v33 = vpack.c.bf16 %v8193_v54, %v8190_v37 }
 0x75f   :  { %8246 = vrot.lane.b32.xlu1 %v8230_v33, %s19993_s16 }
 0x760   :  { %v8197_v52 = vpop.f32.mrb[192].mxu0 }
 0x761   :  { %v22785_v26 = vadd.f32 %v16830_v61, %v8197_v52  ;;  %v18056_v0 = vpop.f32.mrb[193].mxu0  ;;  %v7871_v6 = vpop.permute.xlu1 %7870 }
 0x762   :  { %7890 = vst.msk [vmem:[#allocation2 + $0x10] sm:$0xff] %vm7887_vm14, %v7871_v6  ;;  %v8200_v43 = vpop.f32.mrb[194].mxu0 }
 0x763   :  { %v22788_v30 = vadd.f32 %v16833_v27, %v8200_v43  ;;  %7872 = vrot.lane.b32.xlu1 %v7855_v12, %s19992_s27  ;;  %v18057_v47 = vpop.f32.mrb[195].mxu0 }
 0x765   :  { %v8231_v41 = vpack.c.bf16 %v22788_v30, %v22785_v26 }
 0x767   :  { %7874 = vrot.lane.b32.xlu1 %v7856_v10, %s19992_s27 }
 0x768   :  { %v8205_v61 = vpop.f32.mrb[196].mxu0 }
 0x769   :  { %v8206_v46 = vadd.f32 %v16836_v32, %v8205_v61  ;;  %v18060_v4 = vpop.f32.mrb[197].mxu0 }
 0x76a   :  { %v8208_v14 = vpop.f32.mrb[198].mxu0 }
 0x76b   :  { %v8209_v27 = vadd.f32 %v16839_v24, %v8208_v14  ;;  %v18061_v18 = vpop.f32.mrb[199].mxu0 }
 0x76d   :  { %v8232_v23 = vpack.c.bf16 %v8209_v27, %v8206_v46 }
 0x76f   :  { %8250 = vrot.lane.b32.xlu1 %v8232_v23, %s19993_s16 }
 0x770   :  { %v8213_v1 = vpop.f32.mrb[200].mxu0 }
 0x771   :  { %v22801_v17 = vadd.f32 %v16842_v51, %v8213_v1  ;;  %v18064_v12 = vpop.f32.mrb[201].mxu0 }
 0x772   :  { %v8216_v50 = vpop.f32.mrb[202].mxu0  ;;  %v19696_v12 = vld [vmem:[%s24691_s6 + $0x48] sm:$0xff]  }
 0x773   :  { %v22803_v22 = vadd.f32 %v16845_v11, %v8216_v50  ;;  %7876 = vrot.lane.b32.xlu1 %v7857_v36, %s19992_s27  ;;  %v18065_v19 = vpop.f32.mrb[203].mxu0  ;;  %v19697_v50 = vld [vmem:[%s24691_s6 + $0x50] sm:$0xff]   ;;  %18108 = vmatprep.subr.bf16.mxu1 %v19696_v12 }
 0x774   :  { %18109 = vmatpush3.bf16.msra.mxu1 %v19696_v12 }
 0x775   :  { %v8233_v9 = vpack.c.bf16 %v22803_v22, %v22801_v17  ;;  %18110 = vmatprep.subr.bf16.mxu1 %v19697_v50 }
 0x777   :  { %7878 = vrot.lane.b32.xlu1 %v7858_v16, %s19992_s27  ;;  %v8649_v16 = vld [vmem:[%s24690_s10 + $0x10] sm:$0xff] }
 0x778   :  { %v8221_v10 = vpop.f32.mrb[204].mxu0  ;;  %18111 = vmatpush3.bf16.msra.mxu1 %v19697_v50 }
 0x779   :  { %v8222_v32 = vadd.f32 %v22776_v7, %v8221_v10  ;;  %v18068_v24 = vpop.f32.mrb[205].mxu0 }
 0x77a   :  { %v8224_v51 = vpop.f32.mrb[206].mxu0 }
 0x77b   :  { %v8225_v2 = vadd.f32 %v22778_v45, %v8224_v51  ;;  %v18069_v11 = vpop.f32.mrb[207].mxu0 }
 0x77c   :  { %v19698_v11 = vld [vmem:[%s24691_s6 + $0x58] sm:$0xff]  }
 0x77d   :  { %v8234_v38 = vpack.c.bf16 %v8225_v2, %v8222_v32  ;;  %18112 = vmatprep.subr.bf16.mxu1 %v19698_v11 }
 0x77e   :  { %18113 = vmatpush3.bf16.msra.mxu1 %v19698_v11  ;;  %v8654_v11 = vld [vmem:[%s24690_s10 + $0x38] sm:$0xff] }
 0x77f   :  { %8254 = vrot.lane.b32.xlu1 %v8234_v38, %s19993_s16  ;;  %v19699_v38 = vld [vmem:[%s24691_s6 + $0x60] sm:$0xff]  }
 0x780   :  { %v16879_v59 = vpop.f32.mrb[208].mxu0  ;;  %18114 = vmatprep.subr.bf16.mxu1 %v19699_v38 }
 0x781   :  { %v16880_v36 = vpop.f32.mrb[209].mxu0 }
 0x782   :  { %v16881_v44 = vadd.f32 %v16880_v36, %v16879_v59  ;;  %v16882_v15 = vpop.f32.mrb[210].mxu0  ;;  %18115 = vmatpush3.bf16.msra.mxu1 %v19699_v38  ;;  %v8656_v38 = vld [vmem:[%s24690_s10 + $0x48] sm:$0xff] }
 0x783   :  { %9469 = vperm.xlu1 %19389, %v8647_v3   ;;  %v16883_v8 = vpop.f32.mrb[211].mxu0 }
 0x784   :  { %v16884_v7 = vadd.f32 %v16883_v8, %v16882_v15 }
 0x787   :  { %9479 = vperm.xlu1 %19389, %v8649_v16  }
 0x788   :  { %v16885_v49 = vpop.f32.mrb[212].mxu0 }
 0x789   :  { %v16886_v45 = vpop.f32.mrb[213].mxu0 }
 0x78a   :  { %v22827_v13 = vadd.f32 %v16886_v45, %v16885_v49  ;;  %v16888_v48 = vpop.f32.mrb[214].mxu0 }
 0x78b   :  { %9489 = vperm.xlu1 %19389, %v8651_v53   ;;  %v16889_v58 = vpop.f32.mrb[215].mxu0 }
 0x78c   :  { %v22832_v57 = vadd.f32 %v16889_v58, %v16888_v48 }
 0x78f   :  { %9499 = vperm.xlu1 %19389, %v8653_v28  }
 0x790   :  { %v16891_v25 = vpop.f32.mrb[216].mxu0 }
 0x791   :  { %v16892_v21 = vpop.f32.mrb[217].mxu0 }
 0x792   :  { %v22837_v56 = vadd.f32 %v16892_v21, %v16891_v25  ;;  %v16894_v42 = vpop.f32.mrb[218].mxu0  ;;  %v19702_v21 = vld [vmem:[%s24691_s6 + $0x78] sm:$0xff]  }
 0x793   :  { %9509 = vperm.xlu1 %19389, %v8655_v20   ;;  %v16895_v35 = vpop.f32.mrb[219].mxu0 }
 0x794   :  { %v22842_v34 = vadd.f32 %v16895_v35, %v16894_v42 }
 0x797   :  { %9519 = vperm.xlu1 %19389, %v8657_v29  }
 0x798   :  { %v16897_v62 = vpop.f32.mrb[220].mxu0 }
 0x799   :  { %v16898_v39 = vpop.f32.mrb[221].mxu0 }
 0x79a   :  { %v22847_v37 = vadd.f32 %v16898_v39, %v16897_v62  ;;  %v16900_v63 = vpop.f32.mrb[222].mxu0 }
 0x79b   :  { %v16901_v60 = vpop.f32.mrb[223].mxu0 }
 0x79c   :  { %v22849_v5 = vadd.f32 %v16901_v60, %v16900_v63  ;;  %v22898_v60 = vld [vmem:[%s24691_s6] sm:$0xff]  }
 0x7a0   :  { %v16903_v54 = vpop.f32.mrb[224].mxu0 }
 0x7a1   :  { %v16904_v55 = vpop.f32.mrb[225].mxu0 }
 0x7a2   :  { %v22851_v33 = vadd.f32 %v16904_v55, %v16903_v54  ;;  %v16906_v52 = vpop.f32.mrb[226].mxu0 }
 0x7a3   :  { %v16907_v0 = vpop.f32.mrb[227].mxu0 }
 0x7a4   :  { %v22853_v6 = vadd.f32 %v16907_v0, %v16906_v52 }
 0x7a8   :  { %v16909_v43 = vpop.f32.mrb[228].mxu0 }
 0x7a9   :  { %v16910_v47 = vpop.f32.mrb[229].mxu0 }
 0x7aa   :  { %v22855_v61 = vadd.f32 %v16910_v47, %v16909_v43  ;;  %v16912_v46 = vpop.f32.mrb[230].mxu0 }
 0x7ab   :  { %v16913_v4 = vpop.f32.mrb[231].mxu0 }
 0x7ac   :  { %v22857_v14 = vadd.f32 %v16913_v4, %v16912_v46 }
 0x7b0   :  { %v16915_v27 = vpop.f32.mrb[232].mxu0 }
 0x7b1   :  { %v16916_v18 = vpop.f32.mrb[233].mxu0 }
 0x7b2   :  { %v22859_v23 = vadd.f32 %v16916_v18, %v16915_v27  ;;  %v16918_v1 = vpop.f32.mrb[234].mxu0 }
 0x7b3   :  { %v16919_v19 = vpop.f32.mrb[235].mxu0 }
 0x7b4   :  { %v22867_v10 = vadd.f32 %v16919_v19, %v16918_v1 }
 0x7b8   :  { %v8549_v32 = vpop.f32.mrb[236].mxu0 }
 0x7b9   :  { %v8550_v24 = vadd.f32 %v16881_v44, %v8549_v32  ;;  %v18080_v51 = vpop.f32.mrb[237].mxu0 }
 0x7ba   :  { %v8552_v2 = vpop.f32.mrb[238].mxu0 }
 0x7bb   :  { %v8553_v3 = vadd.f32 %v16884_v7, %v8552_v2  ;;  %v18081_v59 = vpop.f32.mrb[239].mxu0  ;;  %v19700_v7 = vld [vmem:[%s24691_s6 + $0x68] sm:$0xff]  }
 0x7bc   :  { %18116 = vmatprep.subr.bf16.mxu1 %v19700_v7 }
 0x7bd   :  { %v8604_v36 = vpack.c.bf16 %v8553_v3, %v8550_v24  ;;  %18117 = vmatpush3.bf16.msra.mxu1 %v19700_v7  ;;  %v8658_v3 = vld [vmem:[%s24690_s10 + $0x58] sm:$0xff] }
 0x7bf   :  { %8618 = vrot.lane.b32.xlu0 %v8604_v36, %s19994_s29 }
 0x7c0   :  { %v8557_v44 = vpop.f32.mrb[240].mxu0 }
 0x7c1   :  { %v8558_v15 = vadd.f32 %v22827_v13, %v8557_v44  ;;  %v18084_v8 = vpop.f32.mrb[241].mxu0  ;;  %v8243_v16 = vpop.permute.xlu0 %8242  ;;  %v19701_v13 = vld [vmem:[%s24691_s6 + $0x70] sm:$0xff]  }
 0x7c2   :  { %8264 = vst.msk [vmem:[#allocation2] sm:$0xff] %vm8263_vm15, %v8243_v16  ;;  %v8560_v53 = vpop.f32.mrb[242].mxu0  ;;  %18118 = vmatprep.subr.bf16.mxu1 %v19701_v13 }
 0x7c3   :  { %v8561_v49 = vadd.f32 %v22832_v57, %v8560_v53  ;;  %v18085_v45 = vpop.f32.mrb[243].mxu0  ;;  %18119 = vmatpush3.bf16.msra.mxu1 %v19701_v13 }
 0x7c4   :  { %18120 = vmatprep.subr.bf16.mxu1 %v19702_v21 }
 0x7c5   :  { %v8605_v48 = vpack.c.bf16 %v8561_v49, %v8558_v15 }
 0x7c7   :  { %8620 = vrot.lane.b32.xlu0 %v8605_v48, %s19994_s29  ;;  %18121 = vmatpush3.bf16.msra.mxu1 %v19702_v21 }
 0x7c8   :  { %v8565_v58 = vpop.f32.mrb[244].mxu0  ;;  %18134 = vmatprep.subr.bf16.mxu1 %v22898_v60 }
 0x7c9   :  { %v8566_v28 = vadd.f32 %v22837_v56, %v8565_v58  ;;  %v18088_v20 = vpop.f32.mrb[245].mxu0  ;;  %v8245_v25 = vpop.permute.xlu1 %8244 }
 0x7ca   :  { %8265 = vst.msk [vmem:[#allocation2 + $0x8] sm:$0xff] %vm8263_vm15, %v8245_v25  ;;  %v8568_v57 = vpop.f32.mrb[246].mxu0 }
 0x7cb   :  { %v8569_v42 = vadd.f32 %v22842_v34, %v8568_v57  ;;  %v18089_v35 = vpop.f32.mrb[247].mxu0 }
 0x7cd   :  { %v8606_v29 = vpack.c.bf16 %v8569_v42, %v8566_v28 }
 0x7cf   :  { %8622 = vrot.lane.b32.xlu0 %v8606_v29, %s19994_s29 }
 0x7d0   :  { %v8573_v31 = vpop.f32.mrb[248].mxu0 }
 0x7d1   :  { %v8574_v56 = vadd.f32 %v22847_v37, %v8573_v31  ;;  %v18092_v62 = vpop.f32.mrb[249].mxu0  ;;  %v8247_v39 = vpop.permute.xlu1 %8246 }
 0x7d2   :  { %8266 = vst.msk [vmem:[#allocation2 + $0x10] sm:$0xff] %vm8263_vm15, %v8247_v39  ;;  %v8576_v63 = vpop.f32.mrb[250].mxu0 }
 0x7d3   :  { %v8577_v34 = vadd.f32 %v22849_v5, %v8576_v63  ;;  %8248 = vrot.lane.b32.xlu0 %v8231_v41, %s19993_s16  ;;  %v18093_v54 = vpop.f32.mrb[251].mxu0 }
 0x7d5   :  { %v8607_v37 = vpack.c.bf16 %v8577_v34, %v8574_v56  ;;  %v7873_v55 = vpop.permute.xlu1 %7872 }
 0x7d6   :  { %7891 = vst.msk [vmem:[#allocation2 + $0x18] sm:$0xff] %vm7887_vm14, %v7873_v55  ;;  %v19704_v55 = vld [vmem:[%s24691_s6 + $0x8] sm:$0xff]  }
 0x7d7   :  { %8252 = vrot.lane.b32.xlu0 %v8233_v9, %s19993_s16 }
 0x7d8   :  { %v8581_v52 = vpop.f32.mrb[252].mxu0 }
 0x7d9   :  { %v8582_v5 = vadd.f32 %v22851_v33, %v8581_v52  ;;  %v18096_v0 = vpop.f32.mrb[253].mxu0  ;;  %v7875_v43 = vpop.permute.xlu1 %7874 }
 0x7da   :  { %7892 = vst.msk [vmem:[#allocation2 + $0x20] sm:$0xff] %vm7887_vm14, %v7875_v43  ;;  %v8584_v26 = vpop.f32.mrb[254].mxu0 }
 0x7db   :  { %v8585_v30 = vadd.f32 %v22853_v6, %v8584_v26  ;;  %8624 = vrot.lane.b32.xlu0 %v8607_v37, %s19994_s29  ;;  %v18097_v41 = vpop.f32.mrb[255].mxu0  ;;  %v19705_v26 = vld [vmem:[%s24691_s6 + $0x10] sm:$0xff]  }
 0x7dd   :  { %v8608_v47 = vpack.c.bf16 %v8585_v30, %v8582_v5 }
 0x7df   :  { %8626 = vrot.lane.b32.xlu0 %v8608_v47, %s19994_s29 }
 0x7e0   :  { %v8589_v46 = vpop.f32.mrb[0].mxu0 }
 0x7e1   :  { %v8590_v17 = vadd.f32 %v22855_v61, %v8589_v46  ;;  %v18100_v22 = vpop.f32.mrb[1].mxu0  ;;  %v8251_v9 = vpop.permute.xlu1 %8250 }
 0x7e2   :  { %8268 = vst.msk [vmem:[#allocation2 + $0x20] sm:$0xff] %vm8263_vm15, %v8251_v9  ;;  %v8592_v33 = vpop.f32.mrb[2].mxu0 }
 0x7e3   :  { %v8593_v4 = vadd.f32 %v22857_v14, %v8592_v33  ;;  %v18101_v27 = vpop.f32.mrb[3].mxu0  ;;  %v8648_v14 = vld [vmem:[%s24690_s10 + $0x8] sm:$0xff] }
 0x7e4   :  { %v19707_v27 = vld [vmem:[%s24691_s6 + $0x20] sm:$0xff]  }
 0x7e5   :  { %v8609_v18 = vpack.c.bf16 %v8593_v4, %v8590_v17  ;;  %v7877_v1 = vpop.permute.xlu1 %7876 }
 0x7e6   :  { %7893 = vst.msk [vmem:[#allocation2 + $0x28] sm:$0xff] %vm7887_vm14, %v7877_v1 }
 0x7e7   :  { %8628 = vrot.lane.b32.xlu0 %v8609_v18, %s19994_s29 }
 0x7e8   :  { %v8597_v6 = vpop.f32.mrb[4].mxu0 }
 0x7e9   :  { %v8598_v12 = vadd.f32 %v22859_v23, %v8597_v6  ;;  %v18104_v50 = vpop.f32.mrb[5].mxu0  ;;  %v7879_v19 = vpop.permute.xlu1 %7878  ;;  %v8650_v23 = vld [vmem:[%s24690_s10 + $0x18] sm:$0xff] }
 0x7ea   :  { %7894 = vst.msk [vmem:[#allocation2 + $0x30] sm:$0xff] %vm7887_vm14, %v7879_v19  ;;  %v8600_v61 = vpop.f32.mrb[6].mxu0  ;;  %vm24134_vm14 = vmand %vm9060_vm3, %vm118_vm7 }
 0x7eb   :  { %v8601_v32 = vadd.f32 %v22867_v10, %v8600_v61  ;;  %v18105_v24 = vpop.f32.mrb[7].mxu0  ;;  %v8652_v10 = vld [vmem:[%s24690_s10 + $0x28] sm:$0xff] }
 0x7ec   :  { %v19708_v24 = vld [vmem:[%s24691_s6 + $0x28] sm:$0xff]  }
 0x7ed   :  { %v8610_v51 = vpack.c.bf16 %v8601_v32, %v8598_v12 }
 0x7ef   :  { %8630 = vrot.lane.b32.xlu0 %v8610_v51, %s19994_s29 }
 0x7f1   :  { %v8255_v2 = vpop.permute.xlu1 %8254 }
 0x7f2   :  { %8270 = vst.msk [vmem:[#allocation2 + $0x30] sm:$0xff] %vm8263_vm15, %v8255_v2 }
 0x7f3   :  { %9474 = vperm.xlu0 %19388, %v8648_v14  }
 0x7f7   :  { %9484 = vperm.xlu0 %19388, %v8650_v23  }
 0x7fb   :  { %9494 = vperm.xlu0 %19388, %v8652_v10  }
 0x7ff   :  { %9504 = vperm.xlu0 %19388, %v8654_v11  }
 0x803   :  { %9514 = vperm.xlu0 %19388, %v8656_v38   ;;  %v19709_v38 = vld [vmem:[%s24691_s6 + $0x30] sm:$0xff]  }
 0x807   :  { %9524 = vperm.xlu0 %19388, %v8658_v3  }
 0x831   :  { %v8619_v59 = vpop.permute.xlu0 %8618 }
 0x832   :  { %8640 = vst.msk [vmem:[#allocation2] sm:$0xff] %vm8639_vm1, %v8619_v59 }
 0x839   :  { %v8621_v36 = vpop.permute.xlu0 %8620  ;;  %v22945_v44 = vld [vmem:[#allocation2] sm:$0xff] }
 0x83a   :  { %8641 = vst.msk [vmem:[#allocation2 + $0x8] sm:$0xff] %vm8639_vm1, %v8621_v36  ;;  %v8721_v15 = vshll.u32 %v22945_v44, 16  ;;  %v8719_v7 = vshrl.u32 %v22945_v44, 16 }
 0x83c   :  { %v8723_v8 = vrot.slane %v8721_v15, 1 }
 0x83e   :  { %v8724_v48 = vor.u32 %v8723_v8, %v8719_v7  ;;  %v19710_v7 = vld [vmem:[%s24691_s6 + $0x38] sm:$0xff]  }
 0x841   :  { %v8623_v16 = vpop.permute.xlu0 %8622  ;;  %v22949_v53 = vld [vmem:[#allocation2 + $0x8] sm:$0xff] }
 0x842   :  { %8642 = vst.msk [vmem:[#allocation2 + $0x10] sm:$0xff] %vm8639_vm1, %v8623_v16  ;;  %v8726_v49 = vshll.u32 %v22949_v53, 16  ;;  %v8730_v45 = vshrl.u32 %v22949_v53, 16  ;;  %v9062_v31 = vrot.slane %v22949_v53, 4 }
 0x844   :  { %v8728_v13 = vrot.slane %v8726_v49, 1  ;;  %v9248_v58 = vrot.slane %v8730_v45, 4  ;;  %v9249_v28 = vrot.slane %v8726_v49, 5 }
 0x845   :  { %v8249_v20 = vpop.permute.xlu0 %8248 }
 0x846   :  { %8267 = vst.msk [vmem:[#allocation2 + $0x18] sm:$0xff] %vm8263_vm15, %v8249_v20  ;;  %v8729_v25 = vsel %vm278_vm0, %v8724_v48, %v8728_v13  ;;  %v22957_v57 = vor.u32 %v9249_v28, %v9248_v58  ;;  %v8732_v62 = vor.u32 %v8730_v45, %v8728_v13  ;;  %v19711_v58 = vld [vmem:[%s24691_s6 + $0x80] sm:$0xff]  }
 0x847   :  { %18122 = vmatprep.mubr.bf16.mxu1 %v8729_v25 }
 0x849   :  { %v8253_v21 = vpop.permute.xlu0 %8252  ;;  %v22959_v42 = vld [vmem:[#allocation2 + $0x10] sm:$0xff] }
 0x84a   :  { %8269 = vst.msk [vmem:[#allocation2 + $0x28] sm:$0xff] %vm8263_vm15, %v8253_v21  ;;  %v8734_v35 = vshll.u32 %v22959_v42, 16  ;;  %v8738_v29 = vshrl.u32 %v22959_v42, 16  ;;  %v9064_v56 = vrot.slane %v22959_v42, 4 }
 0x84c   :  { %v8736_v39 = vrot.slane %v8734_v35, 1  ;;  %v9252_v63 = vrot.slane %v8738_v29, 4  ;;  %v22971_v34 = vsel %vm9060_vm3, %v9062_v31, %v9064_v56  ;;  %v9253_v54 = vrot.slane %v8734_v35, 5  ;;  %v19712_v35 = vld [vmem:[%s24691_s6 + $0x88] sm:$0xff]  }
 0x84d   :  { %v8625_v37 = vpop.permute.xlu0 %8624 }
 0x84e   :  { %8643 = vst.msk [vmem:[#allocation2 + $0x18] sm:$0xff] %vm8639_vm1, %v8625_v37  ;;  %v8737_v52 = vsel %vm278_vm0, %v8732_v62, %v8736_v39  ;;  %v9254_v5 = vor.u32 %v9253_v54, %v9252_v63  ;;  %v8740_v46 = vor.u32 %v8738_v29, %v8736_v39  ;;  %v19713_v29 = vld [vmem:[%s24691_s6 + $0x90] sm:$0xff]   ;;  %v19715_v62 = vld [vmem:[%s24691_s6 + $0xa0] sm:$0xff]   ;;  %v19716_v54 = vld [vmem:[%s24691_s6 + $0xa8] sm:$0xff]  }
 0x84f   :  { %18123 = vmatmul.mubr.bf16.vlgmr.msra.gmra.mrb[80].mxu1 %v8737_v52  ;;  %v9034_v39 = vld [vmem:[#allocation2] sm:$0xf0]  ;;  %v19718_v52 = vld [vmem:[%s24691_s6 + $0xb8] sm:$0xff]  }
 0x850   :  { %18135 = vmatpush3.bf16.msra.mxu1 %v22898_v60  ;;  %v22981_v0 = vsel %vm9239_vm5, %v22957_v57, %v9254_v5  ;;  %v19706_v60 = vld [vmem:[%s24691_s6 + $0x18] sm:$0xff]   ;;  %v9061_v63 = vrot.slane %v9034_v39, 4 }
 0x851   :  { %v8627_v43 = vpop.permute.xlu0 %8626  ;;  %18136 = vmatprep.subr.bf16.mxu1 %v19704_v55 }
 0x852   :  { %8644 = vst.msk [vmem:[#allocation2 + $0x20] sm:$0xff] %vm8639_vm1, %v8627_v43  ;;  %v9063_v37 = vsel %vm9060_vm3, %v9061_v63, %v9062_v31 }
 0x854   :  { %18137 = vmatpush3.bf16.msra.mxu1 %v19704_v55  ;;  %v19717_v55 = vld [vmem:[%s24691_s6 + $0xb0] sm:$0xff]  }
 0x855   :  { %v22987_v30 = vld [vmem:[#allocation2 + $0x18] sm:$0xff]  ;;  %18138 = vmatprep.subr.bf16.mxu1 %v19705_v26 }
 0x856   :  { %v8742_v41 = vshll.u32 %v22987_v30, 16  ;;  %v8746_v47 = vshrl.u32 %v22987_v30, 16  ;;  %v9066_v31 = vrot.slane %v22987_v30, 4 }
 0x858   :  { %v8744_v17 = vrot.slane %v8742_v41, 1  ;;  %18139 = vmatpush3.bf16.msra.mxu1 %v19705_v26  ;;  %v9256_v22 = vrot.slane %v8746_v47, 4  ;;  %v9257_v9 = vrot.slane %v8742_v41, 5  ;;  %v9067_v43 = vsel %vm9060_vm3, %v9064_v56, %v9066_v31  ;;  %v19721_v26 = vld [vmem:[%s24691_s6 + $0xd0] sm:$0xff]  }
 0x859   :  { %v8629_v33 = vpop.permute.xlu0 %8628  ;;  %v22994_v4 = vld [vmem:[#allocation2 + $0x20] sm:$0xff]  ;;  %18140 = vmatprep.subr.bf16.mxu1 %v19706_v60  ;;  %v9244_v41 = vshll.u32 %v9034_v39, 16 }
 0x85a   :  { %8645 = vst.msk [vmem:[#allocation2 + $0x28] sm:$0xff] %vm8639_vm1, %v8629_v33  ;;  %v8745_v18 = vsel %vm278_vm0, %v8740_v46, %v8744_v17  ;;  %v8750_v1 = vshll.u32 %v22994_v4, 16  ;;  %v8754_v6 = vshrl.u32 %v22994_v4, 16  ;;  %v9258_v12 = vor.u32 %v9257_v9, %v9256_v22 }
 0x85b   :  { %18126 = vmatprep.mubr.bf16.mxu1 %v8745_v18  ;;  %v8748_v50 = vor.u32 %v8746_v47, %v8744_v17  ;;  %v19723_v17 = vld [vmem:[%s24691_s6 + $0xe0] sm:$0xff]   ;;  %v9246_v9 = vrot.slane %v9244_v41, 5 }
 0x85c   :  { %v8752_v19 = vrot.slane %v8750_v1, 1  ;;  %18141 = vmatpush3.bf16.msra.mxu1 %v19706_v60  ;;  %v9260_v61 = vrot.slane %v8754_v6, 4  ;;  %v9261_v32 = vrot.slane %v8750_v1, 5  ;;  %v23007_v51 = vsel %vm9239_vm5, %v9254_v5, %v9258_v12  ;;  %v19720_v5 = vld [vmem:[%s24691_s6 + $0xc8] sm:$0xff]  }
 0x85d   :  { %18142 = vmatprep.subr.bf16.mxu1 %v19707_v27 }
 0x85e   :  { %v8753_v14 = vsel %vm278_vm0, %v8748_v50, %v8752_v19  ;;  %v9262_v2 = vor.u32 %v9261_v32, %v9260_v61  ;;  %v8756_v36 = vor.u32 %v8754_v6, %v8752_v19  ;;  %v19725_v6 = vld [vmem:[%s24691_s6 + $0xf0] sm:$0xff]  }
 0x85f   :  { %18127 = vmatmul.mubr.bf16.gmra.mrb[84].mxu1 %v8753_v14 }
 0x860   :  { %18143 = vmatpush3.bf16.msra.mxu1 %v19707_v27  ;;  %v23011_v23 = vsel %vm9239_vm5, %v9258_v12, %v9262_v2  ;;  %v19724_v27 = vld [vmem:[%s24691_s6 + $0xe8] sm:$0xff]   ;;  %v19726_v12 = vld [vmem:[%s24691_s6 + $0xf8] sm:$0xff]  }
 0x861   :  { %v8631_v10 = vpop.permute.xlu0 %8630  ;;  %v23013_v11 = vld [vmem:[#allocation2 + $0x28] sm:$0xff]  ;;  %18144 = vmatprep.subr.bf16.mxu1 %v19708_v24 }
 0x862   :  { %8646 = vst.msk [vmem:[#allocation2 + $0x30] sm:$0xff] %vm8639_vm1, %v8631_v10  ;;  %v8758_v3 = vshll.u32 %v23013_v11, 16  ;;  %v8762_v59 = vshrl.u32 %v23013_v11, 16  ;;  %v9070_v60 = vrot.slane %v23013_v11, 4 }
 0x864   :  { %v8760_v15 = vrot.slane %v8758_v3, 1  ;;  %18145 = vmatpush3.bf16.msra.mxu1 %v19708_v24  ;;  %v9264_v8 = vrot.slane %v8762_v59, 4  ;;  %v9265_v16 = vrot.slane %v8758_v3, 5  ;;  %v19728_v3 = vld [vmem:[%s24692_s8 + $0x28] sm:$0xff]  }
 0x865   :  { %18146 = vmatprep.subr.bf16.mxu1 %v19709_v38 }
 0x866   :  { %v8761_v49 = vsel %vm278_vm0, %v8756_v36, %v8760_v15  ;;  %v23025_v45 = vor.u32 %v9265_v16, %v9264_v8  ;;  %v8764_v20 = vor.u32 %v8762_v59, %v8760_v15  ;;  %v19729_v59 = vld [vmem:[%s24692_s8 + $0x30] sm:$0xff]   ;;  %v19734_v36 = vld [vmem:[%s24692_s8 + $0x38] sm:$0xff]   ;;  %v23140_v15 = vld [vmem:[%s24692_s8] sm:$0xff]   ;;  %v23143_v8 = vpop.permute.xlu1 %9469 }
 0x867   :  { %18130 = vmatprep.mubr.bf16.mxu1 %v8761_v49 }
 0x868   :  { %18147 = vmatpush3.bf16.msra.mxu1 %v19709_v38  ;;  %v23029_v48 = vsel %vm9239_vm5, %v9262_v2, %v23025_v45  ;;  %v8668_v2 = vld [vmem:[#allocation5 + $0x34] sm:$0xf]  ;;  %v19727_v38 = vld [vmem:[%s24692_s8 + $0x20] sm:$0xff]  }
 0x869   :  { %v8700_v13 = vld [vmem:[#allocation2 + $0x30] sm:$0x1]  ;;  %18148 = vmatprep.subr.bf16.mxu1 %v19710_v7  ;;  %v8669_v10 = vsel %vm23112_vm8, 0, %v8668_v2  ;;  %18218 = vmatprep.subr.bf16.mxu0 %v19727_v38 }
 0x86a   :  { %v8766_v28 = vshll.u32 %v8700_v13, 16  ;;  %v9035_v46 = vld [vmem:[#allocation2 + $0x30] sm:$0xf]  ;;  %8670 = vst [vmem:[#allocation5 + $0x34] sm:$0xf] %v8669_v10  ;;  %18219 = vmatpush3.bf16.msra.mxu0 %v19727_v38  ;;  %v23153_v13 = vpop.permute.xlu1 %9479 }
 0x86b   :  { %v9072_v33 = vrot.slane %v9035_v46, 4  ;;  %18220 = vmatprep.subr.bf16.mxu0 %v19728_v3 }
 0x86c   :  { %v8768_v25 = vrot.slane %v8766_v28, 1  ;;  %18149 = vmatpush3.bf16.msra.mxu1 %v19710_v7  ;;  %v23150_v7 = vld [vmem:[%s24693_s7] ss:$0 sm:$0xff] }
 0x86d   :  { %18162 = vmatprep.subr.bf16.mxu1 %v19711_v58  ;;  %v9073_v18 = vsel %vm9060_vm3, %v9070_v60, %v9072_v33 }
 0x86e   :  { %v8769_v21 = vsel %vm278_vm0, %v8764_v20, %v8768_v25  ;;  %18221 = vmatpush3.bf16.msra.mxu0 %v19728_v3 }
 0x86f   :  { %18131 = vmatmul.mubr.bf16.gmra.mrb[88].mxu1 %v8769_v21  ;;  %18222 = vmatprep.subr.bf16.mxu0 %v19729_v59 }
 0x870   :  { %18150 = vmatprep.mubr.bf16.mxu1 %v22945_v44  ;;  %v19714_v44 = vld [vmem:[%s24691_s6 + $0x98] sm:$0xff]  }
 0x872   :  { %18223 = vmatpush3.bf16.msra.mxu0 %v19729_v59  ;;  %v23145_v16 = vpop.permute.xlu0 %9474 }
 0x873   :  { %18224 = vmatprep.subr.bf16.mxu0 %v19734_v36 }
 0x876   :  { %18225 = vmatpush3.bf16.msra.mxu0 %v19734_v36 }
 0x877   :  { %18151 = vmatmul.mubr.bf16.vlgmr.msra.gmra.mrb[80].mxu1 %v22949_v53  ;;  %v19719_v53 = vld [vmem:[%s24691_s6 + $0xc0] sm:$0xff]   ;;  %18238 = vmatprep.subr.bf16.mxu0 %v23140_v15 }
 0x878   :  { %18163 = vmatpush3.bf16.msra.mxu1 %v19711_v58  ;;  %18154 = vmatprep.mubr.bf16.mxu1 %v22959_v42  ;;  %v9241_v42 = vshrl.u32 %v9034_v39, 16 }
 0x879   :  { %18164 = vmatprep.subr.bf16.mxu1 %v19712_v35 }
 0x87a   :  { %v9243_v22 = vrot.slane %v9241_v42, 4 }
 0x87c   :  { %18165 = vmatpush3.bf16.msra.mxu1 %v19712_v35  ;;  %v23157_v35 = vpop.permute.xlu0 %9484 }
 0x87d   :  { %18166 = vmatprep.subr.bf16.mxu1 %v19713_v29 }
 0x87f   :  { %18155 = vmatmul.mubr.bf16.gmra.mrb[84].mxu1 %v22987_v30  ;;  %v9068_v30 = vrot.slane %v22994_v4, 4 }
 0x880   :  { %18167 = vmatpush3.bf16.msra.mxu1 %v19713_v29  ;;  %18158 = vmatprep.mubr.bf16.mxu1 %v22994_v4  ;;  %v9247_v4 = vor.u32 %v9246_v9, %v9243_v22 }
 0x881   :  { %18168 = vmatprep.subr.bf16.mxu1 %v19714_v44  ;;  %v9069_v56 = vsel %vm9060_vm3, %v9066_v31, %v9068_v30  ;;  %v9071_v47 = vsel %vm9060_vm3, %v9068_v30, %v9070_v60 }
 0x882   :  { %v9251_v1 = vsel %vm9239_vm5, %v9247_v4, %v22957_v57  ;;  %v9221_v57 = vld [vmem:[#allocation2 + $0x30] sm:$0x1f] }
 0x883   :  { %v9269_v50 = vshrl.u32 %v9221_v57, 16  ;;  %v9272_v19 = vshll.u32 %v9221_v57, 16 }
 0x884   :  { %18169 = vmatpush3.bf16.msra.mxu1 %v19714_v44 }
 0x885   :  { %18170 = vmatprep.subr.bf16.mxu1 %v19715_v62  ;;  %v9271_v61 = vrot.slane %v9269_v50, 4  ;;  %v9274_v32 = vrot.slane %v9272_v19, 5 }
 0x887   :  { %18159 = vmatmul.mubr.bf16.gmra.mrb[88].mxu1 %v23013_v11  ;;  %v9275_v24 = vor.u32 %v9274_v32, %v9271_v61 }
 0x888   :  { %18171 = vmatpush3.bf16.msra.mxu1 %v19715_v62  ;;  %18178 = vmatprep.mubr.bf16.mxu1 %v9063_v37 }
 0x889   :  { %18172 = vmatprep.subr.bf16.mxu1 %v19716_v54  ;;  %v9276_v14 = vsel %vm9239_vm5, %v23025_v45, %v9275_v24 }
 0x88c   :  { %18173 = vmatpush3.bf16.msra.mxu1 %v19716_v54 }
 0x88d   :  { %18174 = vmatprep.subr.bf16.mxu1 %v19717_v55 }
 0x890   :  { %18175 = vmatpush3.bf16.msra.mxu1 %v19717_v55 }
 0x891   :  { %18176 = vmatprep.subr.bf16.mxu1 %v19718_v52 }
 0x894   :  { %18177 = vmatpush3.bf16.msra.mxu1 %v19718_v52  ;;  %v23161_v52 = vpop.permute.xlu1 %9489 }
 0x895   :  { %18190 = vmatprep.subr.bf16.mxu1 %v19719_v53 }
 0x897   :  { %18179 = vmatmul.mubr.bf16.vlgmr.msra.gmra.mrb[80].mxu1 %v22971_v34  ;;  %v19722_v34 = vld [vmem:[%s24691_s6 + $0xd8] sm:$0xff]  }
 0x898   :  { %18182 = vmatprep.mubr.bf16.mxu1 %v9067_v43  ;;  %18191 = vmatpush3.bf16.msra.mxu1 %v19719_v53  ;;  %v23170_v50 = vpop.permute.xlu1 %9499 }
 0x899   :  { %18192 = vmatprep.subr.bf16.mxu1 %v19720_v5 }
 0x89c   :  { %18193 = vmatpush3.bf16.msra.mxu1 %v19720_v5 }
 0x89d   :  { %18194 = vmatprep.subr.bf16.mxu1 %v19721_v26 }
 0x89f   :  { %18183 = vmatmul.mubr.bf16.gmra.mrb[84].mxu1 %v9069_v56 }
 0x8a0   :  { %18186 = vmatprep.mubr.bf16.mxu1 %v9071_v47  ;;  %18195 = vmatpush3.bf16.msra.mxu1 %v19721_v26 }
 0x8a1   :  { %18196 = vmatprep.subr.bf16.mxu1 %v19722_v34 }
 0x8a4   :  { %18197 = vmatpush3.bf16.msra.mxu1 %v19722_v34  ;;  %v23166_v34 = vpop.permute.xlu0 %9494 }
 0x8a5   :  { %18198 = vmatprep.subr.bf16.mxu1 %v19723_v17 }
 0x8a7   :  { %18187 = vmatmul.mubr.bf16.gmra.mrb[88].mxu1 %v9073_v18 }
 0x8a8   :  { %18199 = vmatpush3.bf16.msra.mxu1 %v19723_v17  ;;  %18206 = vmatprep.mubr.bf16.mxu1 %v9251_v1  ;;  %v23173_v38 = vpop.permute.xlu0 %9504 }
 0x8a9   :  { %18200 = vmatprep.subr.bf16.mxu1 %v19724_v27 }
 0x8ac   :  { %18201 = vmatpush3.bf16.msra.mxu1 %v19724_v27 }
 0x8ad   :  { %18202 = vmatprep.subr.bf16.mxu1 %v19725_v6 }
 0x8b0   :  { %18203 = vmatpush3.bf16.msra.mxu1 %v19725_v6 }
 0x8b1   :  { %18204 = vmatprep.subr.bf16.mxu1 %v19726_v12 }
 0x8b4   :  { %18205 = vmatpush3.bf16.msra.mxu1 %v19726_v12 }
 0x8b5   :  { %18398 = vmatprep.subr.bf16.mxu1 %v19990_v40 }
 0x8b7   :  { %18207 = vmatmul.mubr.bf16.vlgmr.msra.gmra.mrb[80].mxu1 %v22981_v0  ;;  %v8663_v0 = vld [vmem:[#allocation5 + $0x4] sm:$0x1] }
 0x8b8   :  { %18210 = vmatprep.mubr.bf16.mxu1 %v23007_v51  ;;  %v8664_v11 = vsel %vm23117_vm9, 0, %v8663_v0 }
 0x8b9   :  { %8665 = vst [vmem:[#allocation5 + $0x4] sm:$0x1] %v8664_v11 }
 0x8bf   :  { %18211 = vmatmul.mubr.bf16.gmra.mrb[84].mxu1 %v23011_v23  ;;  %v19742_v23 = vld [vmem:[%s24692_s8 + $0x8] sm:$0xff]  }
 0x8c0   :  { %18214 = vmatprep.mubr.bf16.mxu1 %v23029_v48  ;;  %v9695_v0 = vld [vmem:[#allocation5 + $0x4] sm:$0xf] }
 0x8c7   :  { %18215 = vmatmul.mubr.bf16.gmra.mrb[88].mxu1 %v9276_v14 }
 0x8c8   :  { %18410 = vmatprep.mubr.msk.bf16.mxu1 %vm19991_vm12, %v19990_v40 }
 0x98a   :  { %v18208_v49 = vpop.f32.mrb[80].mxu1 }
 0x98b   :  { %v9433_v45 = vadd.f32 %v18208_v49, %v23150_v7  ;;  %v9365_v48 = vpop.f32.mrb[81].mxu1 }
 0x98c   :  { %v9431_v58 = vadd.f32 %v23150_v7, %v9365_v48  ;;  %v18209_v28 = vpop.f32.mrb[82].mxu1 }
 0x98d   :  { %v9445_v20 = vmul.f32 0.01, %v9433_v45  ;;  %v9434_v25 = vadd.f32 %v18209_v28, %v23150_v7  ;;  %v9368_v21 = vpop.f32.mrb[83].mxu1 }
 0x98e   :  { %v9443_v29 = vmul.f32 0.01, %v9431_v58  ;;  %v9432_v44 = vadd.f32 %v23150_v7, %v9368_v21 }
 0x98f   :  { %v9457_v62 = vmax.f32 %v9433_v45, %v9445_v20  ;;  %v9446_v39 = vmul.f32 0.01, %v9434_v25 }
 0x990   :  { %v9455_v63 = vmax.f32 %v9431_v58, %v9443_v29  ;;  %v9444_v54 = vmul.f32 0.01, %v9432_v44 }
 0x991   :  { %v9529_v37 = vmul.f32 %v23153_v13, %v9457_v62  ;;  %v9458_v55 = vmax.f32 %v9434_v25, %v9446_v39 }
 0x992   :  { %v9527_v53 = vmul.f32 %v23143_v8, %v9455_v63  ;;  %v9456_v31 = vmax.f32 %v9432_v44, %v9444_v54  ;;  %v18212_v5 = vpop.f32.mrb[84].mxu1 }
 0x993   :  { %v16352_v43 = vpack.c.bf16 %v9529_v37, %v9529_v37  ;;  %v9530_v26 = vmul.f32 %v23157_v35, %v9458_v55  ;;  %v9437_v30 = vadd.f32 %v18212_v5, %v23150_v7  ;;  %v9381_v60 = vpop.f32.mrb[85].mxu1 }
 0x994   :  { %v16350_v42 = vpack.c.bf16 %v9527_v53, %v9527_v53  ;;  %v9528_v41 = vmul.f32 %v23145_v16, %v9456_v31  ;;  %v9435_v56 = vadd.f32 %v23150_v7, %v9381_v60  ;;  %v18213_v47 = vpop.f32.mrb[86].mxu1 }
 0x995   :  { %v9593_v46 = vshrl.u32 %v16352_v43, 16  ;;  %v16353_v17 = vpack.c.bf16 %v9530_v26, %v9530_v26  ;;  %v9449_v22 = vmul.f32 0.01, %v9437_v30  ;;  %v9384_v9 = vpop.f32.mrb[87].mxu1  ;;  %v9596_v33 = vshll.u32 %v16352_v43, 16 }
 0x996   :  { %v9576_v4 = vshrl.u32 %v16350_v42, 16  ;;  %v16351_v27 = vpack.c.bf16 %v9528_v41, %v9528_v41  ;;  %v9447_v18 = vmul.f32 0.01, %v9435_v56  ;;  %v9579_v6 = vshll.u32 %v16350_v42, 16 }
 0x997   :  { %v9595_v1 = vrot.slane %v9593_v46, 7  ;;  %v9602_v12 = vshrl.u32 %v16353_v17, 16  ;;  %v9461_v57 = vmax.f32 %v9437_v30, %v9449_v22  ;;  %v9605_v61 = vshll.u32 %v16353_v17, 16  ;;  %v23186_v30 = vpop.permute.xlu1 %9509 }
 0x998   :  { %v9578_v19 = vrot.slane %v9576_v4, 7  ;;  %v9584_v32 = vshrl.u32 %v16351_v27, 16  ;;  %v9459_v24 = vmax.f32 %v9435_v56, %v9447_v18  ;;  %v9587_v10 = vshll.u32 %v16351_v27, 16 }
 0x999   :  { %v9598_v14 = vor.u32 %v9596_v33, %v9595_v1  ;;  %v9604_v2 = vrot.slane %v9602_v12, 7  ;;  %v9533_v11 = vmul.f32 %v23170_v50, %v9461_v57  ;;  %v9600_v3 = vrot.slane %v9595_v1, 4 }
 0x99a   :  { %v9581_v59 = vor.u32 %v9579_v6, %v9578_v19  ;;  %v9586_v36 = vrot.slane %v9584_v32, 7  ;;  %v9531_v49 = vmul.f32 %v23161_v52, %v9459_v24  ;;  %v18216_v45 = vpop.f32.mrb[88].mxu1  ;;  %v9582_v48 = vrot.slane %v9578_v19, 4 }
 0x99b   :  { %v9607_v58 = vor.u32 %v9605_v61, %v9604_v2  ;;  %v16356_v28 = vpack.c.bf16 %v9533_v11, %v9533_v11  ;;  %v9438_v20 = vadd.f32 %v18213_v47, %v23150_v7  ;;  %v9397_v25 = vpop.f32.mrb[89].mxu1  ;;  %v9436_v41 = vadd.f32 %v23150_v7, %v9384_v9  ;;  %v23192_v47 = vpop.permute.xlu0 %9514 }
 0x99c   :  { %v9696_v21 = vsel %vm23112_vm8, %v9581_v59, %v9695_v0  ;;  %v9589_v29 = vor.u32 %v9587_v10, %v9586_v36  ;;  %v9591_v44 = vrot.slane %v9586_v36, 4  ;;  %v16354_v62 = vpack.c.bf16 %v9531_v49, %v9531_v49  ;;  %v18217_v39 = vpop.f32.mrb[90].mxu1 }
 0x99d   :  { %9697 = vst [vmem:[#allocation5 + $0x4] sm:$0xf] %v9696_v21  ;;  %v9608_v54 = vsel %vm20773_vm10, %v9600_v3, %v9607_v58  ;;  %v9629_v37 = vshrl.u32 %v16356_v28, 16  ;;  %v9632_v55 = vshll.u32 %v16356_v28, 16  ;;  %v9450_v53 = vmul.f32 0.01, %v9438_v20  ;;  %v23208_v3 = vpop.permute.xlu1 %9519 }
 0x99e   :  { %v9400_v31 = vpop.f32.mrb[91].mxu1  ;;  %9700 = vst.msk [vmem:[#allocation5 + $0x10] sm:$0xf] %vm8659_vm2, %v9608_v54  ;;  %v9590_v5 = vsel %vm20773_vm10, %v9582_v48, %v9589_v29  ;;  %v9599_v51 = vsel %vm20773_vm10, %v9591_v44, %v9598_v14  ;;  %v9611_v43 = vshrl.u32 %v16354_v62, 16  ;;  %v9614_v26 = vshll.u32 %v16354_v62, 16 }
 0x99f   :  { %9698 = vst.msk [vmem:[#allocation5 + $0x8] sm:$0xf] %vm8659_vm2, %v9590_v5  ;;  %9699 = vst.msk [vmem:[#allocation5 + $0xc] sm:$0xf] %vm8659_vm2, %v9599_v51  ;;  %v9631_v60 = vrot.slane %v9629_v37, 7  ;;  %v9462_v42 = vmax.f32 %v9438_v20, %v9450_v53  ;;  %v9441_v56 = vadd.f32 %v18216_v45, %v23150_v7  ;;  %v9439_v17 = vadd.f32 %v23150_v7, %v9397_v25  ;;  %v23212_v48 = vpop.permute.xlu0 %9524 }
 0x9a0   :  { %v23194_v46 = vrot.slane %v9611_v43, 7  ;;  %v9442_v22 = vadd.f32 %v18217_v39, %v23150_v7  ;;  %v9440_v33 = vadd.f32 %v23150_v7, %v9400_v31  ;;  %v9609_v4 = vrot.slane %v9604_v2, 4  ;;  %v9712_v14 = vld [vmem:[#allocation5] sm:$0xf] }
 0x9a1   :  { %v23199_v27 = vor.u32 %v9632_v55, %v9631_v60  ;;  %v9534_v18 = vmul.f32 %v23173_v38, %v9462_v42  ;;  %v9448_v1 = vmul.f32 0.01, %v9436_v41  ;;  %v9636_v6 = vrot.slane %v9631_v60, 4 }
 0x9a2   :  { %v9616_v9 = vor.u32 %v9614_v26, %v23194_v46  ;;  %v9453_v12 = vmul.f32 0.01, %v9441_v56  ;;  %v9451_v57 = vmul.f32 0.01, %v9439_v17  ;;  %v9454_v32 = vmul.f32 0.01, %v9442_v22 }
 0x9a3   :  { %v16357_v19 = vpack.c.bf16 %v9534_v18, %v9534_v18  ;;  %v9460_v61 = vmax.f32 %v9436_v41, %v9448_v1  ;;  %v9452_v24 = vmul.f32 0.01, %v9440_v33  ;;  %v9618_v7 = vrot.slane %v23194_v46, 4 }
 0x9a4   :  { %v9617_v0 = vsel %vm20773_vm10, %v9609_v4, %v9616_v9  ;;  %v9465_v2 = vmax.f32 %v9441_v56, %v9453_v12  ;;  %v9463_v10 = vmax.f32 %v9439_v17, %v9451_v57  ;;  %v23206_v11 = vld [vmem:[#allocation5 + $0x4] sm:$0xf]  ;;  %v9466_v45 = vmax.f32 %v9442_v22, %v9454_v32 }
 0x9a5   :  { %9701 = vst.msk [vmem:[#allocation5 + $0x14] sm:$0xf] %vm8659_vm2, %v9617_v0  ;;  %v9638_v59 = vshrl.u32 %v16357_v19, 16  ;;  %v9641_v36 = vshll.u32 %v16357_v19, 16  ;;  %v9532_v49 = vmul.f32 %v23166_v34, %v9460_v61  ;;  %v9464_v20 = vmax.f32 %v9440_v33, %v9452_v24 }
 0x9a6   :  { %v9537_v58 = vmul.f32 %v23208_v3, %v9465_v2  ;;  %v9535_v28 = vmul.f32 %v23186_v30, %v9463_v10  ;;  %v23216_v25 = vld [vmem:[#allocation5 + $0x8] sm:$0xf]  ;;  %v23218_v21 = vld [vmem:[#allocation5 + $0xc] sm:$0xf]  ;;  %v23221_v29 = vcombine.low %v9712_v14, %v23206_v11  ;;  %v9538_v39 = vmul.f32 %v23212_v48, %v9466_v45 }
 0x9a7   :  { %v9640_v44 = vrot.slane %v9638_v59, 7  ;;  %v16355_v62 = vpack.c.bf16 %v9532_v49, %v9532_v49  ;;  %v23226_v54 = vcombine.low %v23216_v25, %v23218_v21  ;;  %v9536_v53 = vmul.f32 %v23192_v47, %v9464_v20  ;;  %v23242_v49 = vld [vmem:[#allocation5 + $0x10] sm:$0xf] }
 0x9a8   :  { %v16360_v37 = vpack.c.bf16 %v9537_v58, %v9537_v58  ;;  %v16358_v55 = vpack.c.bf16 %v9535_v28, %v9535_v28  ;;  %v9776_v31 = vshrl.u32 %v23221_v29, 16  ;;  %v16361_v22 = vpack.c.bf16 %v9538_v39, %v9538_v39  ;;  %v9709_v58 = vld [vmem:[#allocation5 + $0x34] sm:$0x1] }
 0x9a9   :  { %v9643_v5 = vor.u32 %v9641_v36, %v9640_v44  ;;  %v9645_v51 = vrot.slane %v9640_v44, 4  ;;  %v9620_v43 = vshrl.u32 %v16355_v62, 16  ;;  %v9623_v26 = vshll.u32 %v16355_v62, 16 }
 0x9aa   :  { %v9665_v60 = vshrl.u32 %v16360_v37, 16  ;;  %v9668_v42 = vshll.u32 %v16360_v37, 16  ;;  %v9647_v41 = vshrl.u32 %v16358_v55, 16  ;;  %v9650_v56 = vshll.u32 %v16358_v55, 16 }
 0x9ab   :  { %v9644_v46 = vsel %vm20773_vm10, %v9636_v6, %v9643_v5  ;;  %v9622_v17 = vrot.slane %v9620_v43, 7  ;;  %v16359_v33 = vpack.c.bf16 %v9536_v53, %v9536_v53  ;;  %v9778_v1 = vshll.u32 %v23221_v29, 16 }
 0x9ac   :  { %9704 = vst.msk [vmem:[#allocation5 + $0x20] sm:$0xf] %vm8659_vm2, %v9644_v46  ;;  %v9667_v4 = vrot.slane %v9665_v60, 7  ;;  %v9649_v18 = vrot.slane %v9647_v41, 7  ;;  %v9783_v9 = vshll.u32 %v23226_v54, 16  ;;  %v9674_v19 = vshrl.u32 %v16361_v22, 16 }
 0x9ad   :  { %v9625_v12 = vor.u32 %v9623_v26, %v9622_v17  ;;  %v9627_v57 = vrot.slane %v9622_v17, 4  ;;  %v9677_v61 = vshll.u32 %v16361_v22, 16  ;;  %v23235_v32 = vld [vmem:[#allocation5 + $0x14] sm:$0xf]  ;;  %v9656_v36 = vshrl.u32 %v16359_v33, 16 }
 0x9ae   :  { %v9670_v24 = vor.u32 %v9668_v42, %v9667_v4  ;;  %v9672_v14 = vrot.slane %v9667_v4, 4  ;;  %v9652_v6 = vor.u32 %v9650_v56, %v9649_v18  ;;  %v9654_v0 = vrot.slane %v9649_v18, 4 }
 0x9af   :  { %v9626_v2 = vsel %vm20773_vm10, %v9618_v7, %v9625_v12  ;;  %v9635_v10 = vsel %vm20773_vm10, %v9627_v57, %v23199_v27  ;;  %v9676_v59 = vrot.slane %v9674_v19, 7  ;;  %v9659_v28 = vshll.u32 %v16359_v33, 16 }
 0x9b0   :  { %9702 = vst.msk [vmem:[#allocation5 + $0x18] sm:$0xf] %vm8659_vm2, %v9626_v2  ;;  %9703 = vst.msk [vmem:[#allocation5 + $0x1c] sm:$0xf] %vm8659_vm2, %v9635_v10  ;;  %v9653_v45 = vsel %vm20773_vm10, %v9645_v51, %v9652_v6  ;;  %v23250_v7 = vcombine.low %v23242_v49, %v23235_v32  ;;  %v9780_v20 = vrot.slane %v9778_v1, 1  ;;  %v9658_v62 = vrot.slane %v9656_v36, 7 }
 0x9b1   :  { %9705 = vst.msk [vmem:[#allocation5 + $0x24] sm:$0xf] %vm8659_vm2, %v9653_v45  ;;  %v9679_v27 = vor.u32 %v9677_v61, %v9676_v59  ;;  %v9681_v44 = vrot.slane %v9676_v59, 4  ;;  %v9785_v39 = vrot.slane %v9783_v9, 1  ;;  %v9787_v55 = vshrl.u32 %v23226_v54, 16  ;;  %v19744_v45 = vld [vmem:[%s24692_s8 + $0x18] sm:$0xff]  }
 0x9b2   :  { %v9781_v37 = vor.u32 %v9780_v20, %v9776_v31  ;;  %v9791_v53 = vshll.u32 %v23250_v7, 16  ;;  %v15714_v5 = vcombine.low %v23218_v21, %v23242_v49  ;;  %v9661_v26 = vor.u32 %v9659_v28, %v9658_v62 }
 0x9b3   :  { %v9680_v51 = vsel %vm20773_vm10, %v9672_v14, %v9679_v27  ;;  %v9710_v43 = vsel %vm23117_vm9, %v9681_v44, %v9709_v58  ;;  %v9663_v60 = vrot.slane %v9658_v62, 4  ;;  %v9789_v42 = vor.u32 %v9787_v55, %v9785_v39  ;;  %v23268_v17 = vld [vmem:[#allocation5 + $0x20] sm:$0xf]  ;;  %v19745_v55 = vld [vmem:[%s24692_s8 + $0x40] sm:$0xff]  }
 0x9b4   :  { %9708 = vst.msk [vmem:[#allocation5 + $0x30] sm:$0xf] %vm8659_vm2, %v9680_v51  ;;  %9711 = vst [vmem:[#allocation5 + $0x34] sm:$0x1] %v9710_v43  ;;  %v9786_v31 = vsel %vm278_vm0, %v9781_v37, %v9785_v39  ;;  %v9793_v41 = vrot.slane %v9791_v53, 1  ;;  %v9662_v56 = vsel %vm20773_vm10, %v9654_v0, %v9661_v26  ;;  %v15713_v33 = vcombine.low %v23206_v11, %v23216_v25 }
 0x9b5   :  { %v9671_v46 = vsel %vm20773_vm10, %v9663_v60, %v9670_v24  ;;  %18226 = vmatprep.mubr.msk.bf16.mxu0 %vm7305_vm13, %v9786_v31  ;;  %9706 = vst.msk [vmem:[#allocation5 + $0x28] sm:$0xf] %vm8659_vm2, %v9662_v56  ;;  %v9795_v12 = vshrl.u32 %v23250_v7, 16  ;;  %v19743_v24 = vld [vmem:[%s24692_s8 + $0x10] sm:$0xff]   ;;  %v19746_v56 = vld [vmem:[%s24692_s8 + $0x48] sm:$0xff]  }
 0x9b6   :  { %9707 = vst.msk [vmem:[#allocation5 + $0x2c] sm:$0xf] %vm8659_vm2, %v9671_v46  ;;  %v9794_v22 = vsel %vm278_vm0, %v9789_v42, %v9793_v41  ;;  %v19747_v46 = vld [vmem:[%s24692_s8 + $0x50] sm:$0xff]   ;;  %v23411_v25 = vld [vmem:[#allocation5 + $0xc] sm:$0xf]  ;;  %vm11436_vm2 = vcmask 785408  }
 0x9b7   :  { %18227 = vmatmul.mubr.msk.bf16.vlgmr.msra.gmra.mrb[8].mxu0 %vm7305_vm13, %v9794_v22  ;;  %v23279_v4 = vld [vmem:[#allocation5 + $0x18] sm:$0xf]  ;;  %v23281_v18 = vld [vmem:[#allocation5 + $0x1c] sm:$0xf]  ;;  %v9797_v14 = vor.u32 %v9795_v12, %v9793_v41  ;;  %v19750_v12 = vld [vmem:[%s24692_s8 + $0x60] sm:$0xff]  }
 0x9b8   :  { %v23283_v1 = vld [vmem:[#allocation5 + $0x24] sm:$0xf]  ;;  %v23287_v9 = vcombine.low %v23279_v4, %v23281_v18  ;;  %v15716_v57 = vcombine.low %v23281_v18, %v23268_v17  ;;  %18239 = vmatpush3.bf16.msra.mxu0 %v23140_v15  ;;  %v15715_v19 = vcombine.low %v23235_v32, %v23279_v4  ;;  %v23415_v49 = vld [vmem:[#allocation5 + $0x18] sm:$0xf]  ;;  %v23424_v4 = vld [vmem:[#allocation5 + $0x14] sm:$0xf] }
 0x9b9   :  { %v23297_v61 = vcombine.low %v23268_v17, %v23283_v1  ;;  %18240 = vmatprep.subr.bf16.mxu0 %v19742_v23  ;;  %v19768_v17 = vld [vmem:[%s24692_s8 + $0xa0] sm:$0xff]  }
 0x9ba   :  { %v9799_v6 = vshll.u32 %v23287_v9, 16  ;;  %v9803_v15 = vshrl.u32 %v23287_v9, 16 }
 0x9bb   :  { %v9807_v0 = vshll.u32 %v23297_v61, 16  ;;  %v23317_v27 = vld [vmem:[#allocation5 + $0x30] ss:$0 sps:$4 sm:$0x11]   ;;  %v9811_v44 = vshrl.u32 %v23297_v61, 16 }
 0x9bc   :  { %v9801_v2 = vrot.slane %v9799_v6, 1  ;;  %18241 = vmatpush3.bf16.msra.mxu0 %v19742_v23  ;;  %v23305_v59 = vld [vmem:[#allocation5 + $0x28] sm:$0xf]  ;;  %v9823_v26 = vshll.u32 %v23317_v27, 16  ;;  %v10067_v23 = vld [vmem:[#allocation5] sm:$0xe] }
 0x9bd   :  { %v9809_v10 = vrot.slane %v9807_v0, 1  ;;  %v23307_v36 = vld [vmem:[#allocation5 + $0x2c] sm:$0xf]  ;;  %18242 = vmatprep.subr.bf16.mxu0 %v19743_v24  ;;  %v15717_v53 = vcombine.low %v23283_v1, %v23305_v59  ;;  %v15694_v22 = vcombine.low %v10067_v23, %v23206_v11  ;;  %v10083_v0 = vrot.slane %v23250_v7, 1  ;;  %v19759_v11 = vld [vmem:[%s24692_s8 + $0x90] sm:$0xff]  }
 0x9be   :  { %v9802_v58 = vsel %vm278_vm0, %v9797_v14, %v9801_v2  ;;  %v9805_v28 = vor.u32 %v9803_v15, %v9801_v2  ;;  %v23315_v20 = vcombine.low %v23305_v59, %v23307_v36  ;;  %v9825_v42 = vrot.slane %v9823_v26, 1  ;;  %v19751_v15 = vld [vmem:[%s24692_s8 + $0x68] sm:$0xff]   ;;  %v23447_v1 = vld [vmem:[#allocation5 + $0x28] sm:$0xf] }
 0x9bf   :  { %18230 = vmatprep.mubr.msk.bf16.mxu0 %vm7305_vm13, %v9802_v58  ;;  %v9813_v39 = vor.u32 %v9811_v44, %v9809_v10  ;;  %v10080_v14 = vrot.slane %v15694_v22, 1  ;;  %v10085_v2 = vrot.slane %v23287_v9, 1  ;;  %v19754_v58 = vld [vmem:[%s24692_s8 + $0x78] sm:$0xff]   ;;  %v10228_v18 = vld [vmem:[#allocation5 + $0x30] sm:$0xf] }
 0x9c0   :  { %v9810_v62 = vsel %vm278_vm0, %v9805_v28, %v9809_v10  ;;  %v9815_v37 = vshll.u32 %v23315_v20, 16  ;;  %18243 = vmatpush3.bf16.msra.mxu0 %v19743_v24  ;;  %v9819_v43 = vshrl.u32 %v23315_v20, 16  ;;  %v10081_v24 = vrot.slane %v23226_v54, 1 }
 0x9c1   :  { %18231 = vmatmul.mubr.msk.bf16.gmra.mrb[12].mxu0 %vm7305_vm13, %v9810_v62  ;;  %18244 = vmatprep.subr.bf16.mxu0 %v19744_v45  ;;  %v10086_v10 = vsel %vm3792_vm11, %v10083_v0, %v10085_v2  ;;  %v15718_v59 = vcombine.low %v23307_v36, %v10228_v18 }
 0x9c2   :  { %v9817_v51 = vrot.slane %v9815_v37, 1  ;;  %v10082_v6 = vsel %vm3792_vm11, %v10080_v14, %v10081_v24  ;;  %v19758_v37 = vld [vmem:[%s24692_s8 + $0x88] sm:$0xff]  }
 0x9c3   :  { %v23468_v14 = vld [vmem:[#allocation5 + $0x30] sm:$0xf] }
 0x9c4   :  { %v9818_v60 = vsel %vm278_vm0, %v9813_v39, %v9817_v51  ;;  %v9821_v31 = vor.u32 %v9819_v43, %v9817_v51  ;;  %18245 = vmatpush3.bf16.msra.mxu0 %v19744_v45  ;;  %v10089_v45 = vrot.slane %v23315_v20, 1  ;;  %v23394_v39 = vld [vmem:[#allocation5 + $0x8] sm:$0xf] }
 0x9c5   :  { %18234 = vmatprep.mubr.msk.bf16.mxu0 %vm7305_vm13, %v9818_v60  ;;  %18258 = vmatprep.subr.bf16.mxu0 %v19745_v55  ;;  %v23444_v60 = vld [vmem:[#allocation5 + $0x20] sm:$0xf] }
 0x9c6   :  { %v9826_v41 = vsel %vm278_vm0, %v9821_v31, %v9825_v42 }
 0x9c9   :  { %18235 = vmatmul.mubr.msk.bf16.gmra.mrb[16].mxu0 %vm7305_vm13, %v9826_v41 }
 0x9ca   :  { %18246 = vmatprep.mubr.msk.bf16.mxu0 %vm7305_vm13, %v23221_v29  ;;  %v19749_v29 = vld [vmem:[%s24692_s8 + $0x58] sm:$0xff]  }
 0x9d1   :  { %18247 = vmatmul.mubr.msk.bf16.vlgmr.msra.gmra.mrb[8].mxu0 %vm7305_vm13, %v23226_v54  ;;  %v10084_v54 = vsel %vm3792_vm11, %v10081_v24, %v10083_v0  ;;  %v23466_v24 = vld [vmem:[#allocation5 + $0x2c] sm:$0xf] }
 0x9d2   :  { %18250 = vmatprep.mubr.msk.bf16.mxu0 %vm7305_vm13, %v23250_v7  ;;  %18259 = vmatpush3.bf16.msra.mxu0 %v19745_v55  ;;  %v19752_v7 = vld [vmem:[%s24692_s8 + $0x70] sm:$0xff]   ;;  %v10381_v55 = vld [vmem:[#allocation5 + $0x4] sm:$0xf] }
 0x9d3   :  { %18260 = vmatprep.subr.bf16.mxu0 %v19746_v56 }
 0x9d6   :  { %18261 = vmatpush3.bf16.msra.mxu0 %v19746_v56  ;;  %v23454_v56 = vld [vmem:[#allocation5 + $0x24] sm:$0xf] }
 0x9d7   :  { %18262 = vmatprep.subr.bf16.mxu0 %v19747_v46  ;;  %v23460_v23 = vcombine.low %v23454_v56, %v23447_v1 }
 0x9d9   :  { %18251 = vmatmul.mubr.msk.bf16.gmra.mrb[12].mxu0 %vm7305_vm13, %v23287_v9  ;;  %v10087_v9 = vrot.slane %v23297_v61, 1  ;;  %v10468_v0 = vshll.u32 %v23460_v23, 16 }
 0x9da   :  { %18254 = vmatprep.mubr.msk.bf16.mxu0 %vm7305_vm13, %v23297_v61  ;;  %18263 = vmatpush3.bf16.msra.mxu0 %v19747_v46  ;;  %v19756_v61 = vld [vmem:[%s24692_s8 + $0x80] sm:$0xff]  }
 0x9db   :  { %18264 = vmatprep.subr.bf16.mxu0 %v19749_v29  ;;  %v10088_v28 = vsel %vm3792_vm11, %v10085_v2, %v10087_v9  ;;  %v10090_v44 = vsel %vm3792_vm11, %v10087_v9, %v10089_v45 }
 0x9de   :  { %18265 = vmatpush3.bf16.msra.mxu0 %v19749_v29 }
 0x9df   :  { %18278 = vmatprep.subr.bf16.mxu0 %v19750_v12 }
 0x9e1   :  { %18255 = vmatmul.mubr.msk.bf16.gmra.mrb[16].mxu0 %vm7305_vm13, %v23315_v20  ;;  %v10091_v20 = vrot.slane %v23317_v27, 1  ;;  %v15737_v27 = vcombine.low %v10381_v55, %v23394_v39 }
 0x9e2   :  { %18266 = vmatprep.mubr.msk.bf16.mxu0 %vm7305_vm13, %v10082_v6 }
 0x9e3   :  { %v10092_v62 = vsel %vm3792_vm11, %v10089_v45, %v10091_v20  ;;  %v10439_v21 = vshll.u32 %v15737_v27, 16  ;;  %v10437_v43 = vshrl.u32 %v15737_v27, 16  ;;  %v10470_v45 = vrot.slane %v10468_v0, 1  ;;  %v19775_v27 = vld [vmem:[%s24692_s8 + $0xb8] sm:$0xff]  }
 0x9e4   :  { %v19780_v0 = vld [vmem:[%s24692_s8 + $0xd8] sm:$0xff]  }
 0x9e5   :  { %v10441_v51 = vrot.slane %v10439_v21, 1  ;;  %v10623_v21 = vld [vmem:[#allocation5 + $0x4] sm:$0xe] }
 0x9e7   :  { %v10442_v31 = vor.u32 %v10441_v51, %v10437_v43  ;;  %v15762_v51 = vcombine.low %v10623_v21, %v23394_v39 }
 0x9e9   :  { %18267 = vmatmul.mubr.msk.bf16.vlgmr.msra.gmra.mrb[8].mxu0 %vm7305_vm13, %v10084_v54  ;;  %v23473_v54 = vcombine.low %v23466_v24, %v23468_v14 }
 0x9ea   :  { %18270 = vmatprep.mubr.msk.bf16.mxu0 %vm7305_vm13, %v10086_v10  ;;  %18279 = vmatpush3.bf16.msra.mxu0 %v19750_v12  ;;  %v19772_v10 = vld [vmem:[%s24692_s8 + $0xa8] sm:$0xff]  }
 0x9eb   :  { %18280 = vmatprep.subr.bf16.mxu0 %v19751_v15  ;;  %v10480_v43 = vshrl.u32 %v23473_v54, 16 }
 0x9ee   :  { %18281 = vmatpush3.bf16.msra.mxu0 %v19751_v15 }
 0x9ef   :  { %18282 = vmatprep.subr.bf16.mxu0 %v19752_v7 }
 0x9f1   :  { %18271 = vmatmul.mubr.msk.bf16.gmra.mrb[12].mxu0 %vm7305_vm13, %v10088_v28  ;;  %v10476_v28 = vshll.u32 %v23473_v54, 16 }
 0x9f2   :  { %18274 = vmatprep.mubr.msk.bf16.mxu0 %vm7305_vm13, %v10090_v44  ;;  %18283 = vmatpush3.bf16.msra.mxu0 %v19752_v7  ;;  %v19773_v44 = vld [vmem:[%s24692_s8 + $0xb0] sm:$0xff]  }
 0x9f3   :  { %18284 = vmatprep.subr.bf16.mxu0 %v19754_v58  ;;  %v10478_v55 = vrot.slane %v10476_v28, 1  ;;  %v10937_v28 = vld [vmem:[#allocation5 + $0x8] sm:$0xf] }
 0x9f5   :  { %v10482_v18 = vor.u32 %v10480_v43, %v10478_v55 }
 0x9f6   :  { %18285 = vmatpush3.bf16.msra.mxu0 %v19754_v58  ;;  %v10472_v58 = vshrl.u32 %v23460_v23, 16 }
 0x9f7   :  { %18298 = vmatprep.subr.bf16.mxu0 %v19756_v61 }
 0x9f8   :  { %v10474_v20 = vor.u32 %v10472_v58, %v10470_v45 }
 0x9f9   :  { %18275 = vmatmul.mubr.msk.bf16.gmra.mrb[16].mxu0 %vm7305_vm13, %v10092_v62 }
 0x9fa   :  { %18286 = vmatprep.mubr.msk.bf16.mxu0 %vm7305_vm13, %v15713_v33  ;;  %v23413_v33 = vld [vmem:[#allocation5 + $0x10] sm:$0xf] }
 0x9fb   :  { %v23419_v32 = vcombine.low %v23411_v25, %v23413_v33 }
 0x9fd   :  { %v10444_v26 = vshll.u32 %v23419_v32, 16  ;;  %v10448_v12 = vshrl.u32 %v23419_v32, 16 }
 0xa01   :  { %18287 = vmatmul.mubr.msk.bf16.vlgmr.msra.gmra.mrb[8].mxu0 %vm7305_vm13, %v15714_v5  ;;  %v19764_v5 = vld [vmem:[%s24692_s8 + $0x98] sm:$0xff]  }
 0xa02   :  { %18290 = vmatprep.mubr.msk.bf16.mxu0 %vm7305_vm13, %v15715_v19  ;;  %18299 = vmatpush3.bf16.msra.mxu0 %v19756_v61  ;;  %v23432_v19 = vcombine.low %v23424_v4, %v23415_v49 }
 0xa03   :  { %18300 = vmatprep.subr.bf16.mxu0 %v19758_v37 }
 0xa04   :  { %v10452_v42 = vshll.u32 %v23432_v19, 16  ;;  %v10456_v36 = vshrl.u32 %v23432_v19, 16 }
 0xa06   :  { %18301 = vmatpush3.bf16.msra.mxu0 %v19758_v37  ;;  %v10454_v29 = vrot.slane %v10452_v42, 1  ;;  %v19770_v37 = vld [vmem:[#allocation5 + $0x34] ss:$0 sps:$4 sm:$0x11]   ;;  %v10637_v42 = vrot.slane %v23419_v32, 1 }
 0xa07   :  { %18302 = vmatprep.subr.bf16.mxu0 %v19759_v11 }
 0xa08   :  { %v10458_v6 = vor.u32 %v10456_v36, %v10454_v29 }
 0xa09   :  { %18291 = vmatmul.mubr.msk.bf16.gmra.mrb[12].mxu0 %vm7305_vm13, %v15716_v57  ;;  %v23442_v57 = vld [vmem:[#allocation5 + $0x1c] sm:$0xf] }
 0xa0a   :  { %18294 = vmatprep.mubr.msk.bf16.mxu0 %vm7305_vm13, %v15717_v53  ;;  %18303 = vmatpush3.bf16.msra.mxu0 %v19759_v11  ;;  %v10446_v53 = vrot.slane %v10444_v26, 1  ;;  %v23452_v41 = vcombine.low %v23442_v57, %v23444_v60  ;;  %v10484_v26 = vshll.u32 %v19770_v37, 16  ;;  %v15783_v58 = vcombine.low %v23415_v49, %v23442_v57  ;;  %v19789_v57 = vld [vmem:[%s24692_s8 + $0xf8] sm:$0xff]  }
 0xa0b   :  { %18304 = vmatprep.subr.bf16.mxu0 %v19764_v5  ;;  %v15784_v49 = vcombine.low %v23444_v60, %v23454_v56  ;;  %v19792_v60 = vld [vmem:[%s24692_s8 + $0x100] sm:$0xff]   ;;  %v10784_v56 = vld [vmem:[#allocation5 + $0x34] sm:$0xf] }
 0xa0c   :  { %v10447_v46 = vsel %vm278_vm0, %v10442_v31, %v10446_v53  ;;  %v10460_v22 = vshll.u32 %v23452_v41, 16  ;;  %v10450_v2 = vor.u32 %v10448_v12, %v10446_v53  ;;  %v10464_v61 = vshrl.u32 %v23452_v41, 16 }
 0xa0d   :  { %v10636_v31 = vrot.slane %v15762_v51, 1  ;;  %v10641_v36 = vrot.slane %v23452_v41, 1  ;;  %v10643_v41 = vrot.slane %v23460_v23, 1  ;;  %v19782_v23 = vld [vmem:[%s24692_s8 + $0xe0] sm:$0xff]  }
 0xa0e   :  { %18305 = vmatpush3.bf16.msra.mxu0 %v19764_v5  ;;  %v10462_v15 = vrot.slane %v10460_v22, 1  ;;  %v10455_v7 = vsel %vm278_vm0, %v10450_v2, %v10454_v29  ;;  %v10479_v5 = vsel %vm278_vm0, %v10474_v20, %v10478_v55  ;;  %v10639_v29 = vrot.slane %v23432_v19, 1  ;;  %v19777_v22 = vld [vmem:[%s24692_s8 + $0xc8] sm:$0xff]   ;;  %v19778_v19 = vld [vmem:[%s24692_s8 + $0xd0] sm:$0xff]  }
 0xa0f   :  { %18318 = vmatprep.subr.bf16.mxu0 %v19768_v17  ;;  %v10644_v2 = vsel %vm3792_vm11, %v10641_v36, %v10643_v41  ;;  %v19791_v51 = vld [vmem:[#allocation5 + $0x28] sm:$0xff]  }
 0xa10   :  { %v10463_v9 = vsel %vm278_vm0, %v10458_v6, %v10462_v15  ;;  %v10466_v62 = vor.u32 %v10464_v61, %v10462_v15  ;;  %v10640_v32 = vsel %vm3792_vm11, %v10637_v42, %v10639_v29  ;;  %v10642_v12 = vsel %vm3792_vm11, %v10639_v29, %v10641_v36 }
 0xa11   :  { %18295 = vmatmul.mubr.msk.bf16.gmra.mrb[16].mxu0 %vm7305_vm13, %v15718_v59  ;;  %v10486_v59 = vrot.slane %v10484_v26, 1  ;;  %v10645_v6 = vrot.slane %v23473_v54, 1  ;;  %v10647_v54 = vrot.slane %v19770_v37, 1  ;;  %v15785_v61 = vcombine.low %v23447_v1, %v23466_v24 }
 0xa12   :  { %18306 = vmatprep.mubr.msk.bf16.mxu0 %vm7305_vm13, %v10447_v46  ;;  %v10471_v11 = vsel %vm278_vm0, %v10466_v62, %v10470_v45  ;;  %v10638_v46 = vsel %vm3792_vm11, %v10636_v31, %v10637_v42  ;;  %v19784_v45 = vld [vmem:[%s24692_s8 + $0xe8] sm:$0xff]   ;;  %v23561_v62 = vld [vmem:[#allocation5 + $0x18] sm:$0xff]   ;;  %v15786_v1 = vcombine.low %v23468_v14, %v10784_v56  ;;  %v11024_v42 = vshll.u32 %v19791_v51, 16 }
 0xa13   :  { %v10487_v53 = vsel %vm278_vm0, %v10482_v18, %v10486_v59  ;;  %v10646_v15 = vsel %vm3792_vm11, %v10643_v41, %v10645_v6  ;;  %v11008_v21 = vshll.u32 %v23561_v62, 16  ;;  %v11012_v31 = vshrl.u32 %v23561_v62, 16  ;;  %v19796_v41 = vld [vmem:[%s24692_s8 + $0x110] sm:$0xff]  }
 0xa19   :  { %18307 = vmatmul.mubr.msk.bf16.vlgmr.msra.gmra.mrb[8].mxu0 %vm7305_vm13, %v10455_v7  ;;  %v15781_v7 = vcombine.low %v23394_v39, %v23411_v25  ;;  %v19785_v39 = vld [vmem:[%s24692_s8 + $0xf0] sm:$0xff]  }
 0xa1a   :  { %18310 = vmatprep.mubr.msk.bf16.mxu0 %vm7305_vm13, %v10463_v9  ;;  %18319 = vmatpush3.bf16.msra.mxu0 %v19768_v17  ;;  %v19776_v17 = vld [vmem:[%s24692_s8 + $0xc0] sm:$0xff]   ;;  %v15782_v9 = vcombine.low %v23413_v33, %v23424_v4  ;;  %v23549_v33 = vld [vmem:[#allocation5 + $0x10] sm:$0xff]  }
 0xa1b   :  { %18320 = vmatprep.subr.bf16.mxu0 %v19772_v10  ;;  %v11000_v20 = vshll.u32 %v23549_v33, 16  ;;  %v11004_v26 = vshrl.u32 %v23549_v33, 16 }
 0xa1e   :  { %18321 = vmatpush3.bf16.msra.mxu0 %v19772_v10  ;;  %v10648_v10 = vsel %vm3792_vm11, %v10645_v6, %v10647_v54 }
 0xa1f   :  { %18322 = vmatprep.subr.bf16.mxu0 %v19773_v44 }
 0xa21   :  { %18311 = vmatmul.mubr.msk.bf16.gmra.mrb[12].mxu0 %vm7305_vm13, %v10471_v11  ;;  %v23566_v11 = vld [vmem:[#allocation5 + $0x20] sm:$0xff]  }
 0xa22   :  { %18314 = vmatprep.mubr.msk.bf16.mxu0 %vm7305_vm13, %v10479_v5  ;;  %18323 = vmatpush3.bf16.msra.mxu0 %v19773_v44  ;;  %v23541_v44 = vld [vmem:[#allocation5 + $0xc] sm:$0xf]  ;;  %v11016_v43 = vshll.u32 %v23566_v11, 16 }
 0xa23   :  { %18324 = vmatprep.subr.bf16.mxu0 %v19775_v27  ;;  %v15805_v25 = vcombine.low %v10937_v28, %v23541_v44 }
 0xa24   :  { %v11018_v14 = vrot.slane %v11016_v43, 1 }
 0xa25   :  { %v10995_v4 = vshll.u32 %v15805_v25, 16  ;;  %v10993_v55 = vshrl.u32 %v15805_v25, 16  ;;  %v11193_v25 = vrot.slane %v23549_v33, 1 }
 0xa26   :  { %18325 = vmatpush3.bf16.msra.mxu0 %v19775_v27  ;;  %v11002_v27 = vrot.slane %v11000_v20, 1  ;;  %v11197_v20 = vrot.slane %v23566_v11, 1 }
 0xa27   :  { %18338 = vmatprep.subr.bf16.mxu0 %v19776_v17  ;;  %v10997_v37 = vrot.slane %v10995_v4, 1 }
 0xa28   :  { %v11006_v18 = vor.u32 %v11004_v26, %v11002_v27 }
 0xa29   :  { %18315 = vmatmul.mubr.msk.bf16.gmra.mrb[16].mxu0 %vm7305_vm13, %v10487_v53  ;;  %v10998_v24 = vor.u32 %v10997_v37, %v10993_v55  ;;  %v19793_v53 = vld [vmem:[#allocation5 + $0x30] sm:$0xff]   ;;  %v11199_v37 = vrot.slane %v19791_v51, 1 }
 0xa2a   :  { %18326 = vmatprep.mubr.msk.bf16.mxu0 %vm7305_vm13, %v10638_v46  ;;  %v19795_v46 = vld [vmem:[%s24692_s8 + $0x108] sm:$0xff]  }
 0xa2b   :  { %v11003_v5 = vsel %vm278_vm0, %v10998_v24, %v11002_v27  ;;  %v11200_v56 = vsel %vm3792_vm11, %v11197_v20, %v11199_v37 }
 0xa31   :  { %18327 = vmatmul.mubr.msk.bf16.vlgmr.msra.gmra.mrb[8].mxu0 %vm7305_vm13, %v10640_v32  ;;  %v11020_v32 = vshrl.u32 %v23566_v11, 16  ;;  %v15841_v11 = vld [vmem:[%s24695_s9] ss:$0 sm:$0xff] }
 0xa32   :  { %18330 = vmatprep.mubr.msk.bf16.mxu0 %vm7305_vm13, %v10642_v12  ;;  %18339 = vmatpush3.bf16.msra.mxu0 %v19776_v17  ;;  %v11010_v17 = vrot.slane %v11008_v21, 1  ;;  %v11028_v12 = vshrl.u32 %v19791_v51, 16 }
 0xa33   :  { %18340 = vmatprep.subr.bf16.mxu0 %v19777_v22  ;;  %v11022_v6 = vor.u32 %v11020_v32, %v11018_v14 }
 0xa34   :  { %v11014_v59 = vor.u32 %v11012_v31, %v11010_v17  ;;  %v11011_v29 = vsel %vm278_vm0, %v11006_v18, %v11010_v17 }
 0xa36   :  { %18341 = vmatpush3.bf16.msra.mxu0 %v19777_v22  ;;  %v11019_v36 = vsel %vm278_vm0, %v11014_v59, %v11018_v14  ;;  %v11026_v22 = vrot.slane %v11024_v42, 1 }
 0xa37   :  { %18342 = vmatprep.subr.bf16.mxu0 %v19778_v19 }
 0xa38   :  { %v11027_v54 = vsel %vm278_vm0, %v11022_v6, %v11026_v22 }
 0xa39   :  { %18331 = vmatmul.mubr.msk.bf16.gmra.mrb[12].mxu0 %vm7305_vm13, %v10644_v2  ;;  %v19794_v2 = vld [vmem:[#allocation5 + $0x38] ss:$0 sps:$4 sm:$0x11]  }
 0xa3a   :  { %18334 = vmatprep.mubr.msk.bf16.mxu0 %vm7305_vm13, %v10646_v15  ;;  %18343 = vmatpush3.bf16.msra.mxu0 %v19778_v19  ;;  %v11032_v19 = vshll.u32 %v19793_v53, 16 }
 0xa3b   :  { %18344 = vmatprep.subr.bf16.mxu0 %v19780_v0 }
 0xa3c   :  { %v11034_v15 = vrot.slane %v11032_v19, 1 }
 0xa3e   :  { %18345 = vmatpush3.bf16.msra.mxu0 %v19780_v0  ;;  %v11030_v0 = vor.u32 %v11028_v12, %v11026_v22 }
 0xa3f   :  { %18358 = vmatprep.subr.bf16.mxu0 %v19782_v23 }
 0xa41   :  { %18335 = vmatmul.mubr.msk.bf16.gmra.mrb[16].mxu0 %vm7305_vm13, %v10648_v10  ;;  %v11040_v10 = vshll.u32 %v19794_v2, 16 }
 0xa42   :  { %18346 = vmatprep.mubr.msk.bf16.mxu0 %vm7305_vm13, %v15781_v7  ;;  %v11179_v7 = vld [vmem:[#allocation5 + $0x8] sm:$0xe] }
 0xa49   :  { %18347 = vmatmul.mubr.msk.bf16.vlgmr.msra.gmra.mrb[8].mxu0 %vm7305_vm13, %v15782_v9  ;;  %v11035_v9 = vsel %vm278_vm0, %v11030_v0, %v11034_v15 }
 0xa4a   :  { %18350 = vmatprep.mubr.msk.bf16.mxu0 %vm7305_vm13, %v15783_v58  ;;  %18359 = vmatpush3.bf16.msra.mxu0 %v19782_v23  ;;  %v19798_v23 = vld [vmem:[%s24692_s8 + $0x118] sm:$0xff]   ;;  %v15830_v58 = vcombine.low %v11179_v7, %v23541_v44 }
 0xa4b   :  { %18360 = vmatprep.subr.bf16.mxu0 %v19784_v45 }
 0xa4e   :  { %18361 = vmatpush3.bf16.msra.mxu0 %v19784_v45  ;;  %v11036_v45 = vshrl.u32 %v19793_v53, 16 }
 0xa4f   :  { %18362 = vmatprep.subr.bf16.mxu0 %v19785_v39 }
 0xa50   :  { %v11038_v28 = vor.u32 %v11036_v45, %v11034_v15 }
 0xa51   :  { %18351 = vmatmul.mubr.msk.bf16.gmra.mrb[12].mxu0 %vm7305_vm13, %v15784_v49  ;;  %v11192_v49 = vrot.slane %v15830_v58, 1 }
 0xa52   :  { %18354 = vmatprep.mubr.msk.bf16.mxu0 %vm7305_vm13, %v15785_v61  ;;  %18363 = vmatpush3.bf16.msra.mxu0 %v19785_v39  ;;  %v11042_v39 = vrot.slane %v11040_v10, 1  ;;  %v11195_v61 = vrot.slane %v23561_v62, 1  ;;  %v11203_v62 = vrot.slane %v19794_v2, 1 }
 0xa53   :  { %18364 = vmatprep.subr.bf16.mxu0 %v19789_v57 }
 0xa54   :  { %v11043_v4 = vsel %vm278_vm0, %v11038_v28, %v11042_v39  ;;  %v11196_v44 = vsel %vm3792_vm11, %v11193_v25, %v11195_v61  ;;  %v11198_v33 = vsel %vm3792_vm11, %v11195_v61, %v11197_v20 }
 0xa56   :  { %18365 = vmatpush3.bf16.msra.mxu0 %v19789_v57  ;;  %v11194_v57 = vsel %vm3792_vm11, %v11192_v49, %v11193_v25 }
 0xa57   :  { %18378 = vmatprep.subr.bf16.mxu0 %v19792_v60 }
 0xa59   :  { %18355 = vmatmul.mubr.msk.bf16.gmra.mrb[16].mxu0 %vm7305_vm13, %v15786_v1 }
 0xa5a   :  { %18366 = vmatprep.mubr.msk.bf16.mxu0 %vm7305_vm13, %v11003_v5 }
 0xa61   :  { %18367 = vmatmul.mubr.msk.bf16.vlgmr.msra.gmra.mrb[8].mxu0 %vm7305_vm13, %v11011_v29 }
 0xa62   :  { %18370 = vmatprep.mubr.msk.bf16.mxu0 %vm7305_vm13, %v11019_v36  ;;  %18379 = vmatpush3.bf16.msra.mxu0 %v19792_v60  ;;  %v11201_v60 = vrot.slane %v19793_v53, 1 }
 0xa63   :  { %18380 = vmatprep.subr.bf16.mxu0 %v19795_v46 }
 0xa64   :  { %v11202_v55 = vsel %vm3792_vm11, %v11199_v37, %v11201_v60  ;;  %v11204_v27 = vsel %vm3792_vm11, %v11201_v60, %v11203_v62 }
 0xa66   :  { %18381 = vmatpush3.bf16.msra.mxu0 %v19795_v46 }
 0xa67   :  { %18382 = vmatprep.subr.bf16.mxu0 %v19796_v41 }
 0xa69   :  { %18371 = vmatmul.mubr.msk.bf16.gmra.mrb[12].mxu0 %vm7305_vm13, %v11027_v54 }
 0xa6a   :  { %18374 = vmatprep.mubr.msk.bf16.mxu0 %vm7305_vm13, %v11035_v9  ;;  %18383 = vmatpush3.bf16.msra.mxu0 %v19796_v41 }
 0xa6b   :  { %18384 = vmatprep.subr.bf16.mxu0 %v19798_v23 }
 0xa6e   :  { %18385 = vmatpush3.bf16.msra.mxu0 %v19798_v23 }
 0xa71   :  { %18375 = vmatmul.mubr.msk.bf16.gmra.mrb[16].mxu0 %vm7305_vm13, %v11043_v4 }
 0xa72   :  { %18386 = vmatprep.mubr.msk.bf16.mxu0 %vm7305_vm13, %v11194_v57 }
 0xa79   :  { %18387 = vmatmul.mubr.msk.bf16.vlgmr.msra.gmra.mrb[8].mxu0 %vm7305_vm13, %v11196_v44 }
 0xa7a   :  { %18390 = vmatprep.mubr.msk.bf16.mxu0 %vm7305_vm13, %v11198_v33 }
 0xa81   :  { %18391 = vmatmul.mubr.msk.bf16.gmra.mrb[12].mxu0 %vm7305_vm13, %v11200_v56 }
 0xa82   :  { %18394 = vmatprep.mubr.msk.bf16.mxu0 %vm7305_vm13, %v11202_v55 }
 0xa89   :  { %18395 = vmatmul.mubr.msk.bf16.gmra.mrb[16].mxu0 %vm7305_vm13, %v11204_v27 }
 0xb4c   :  { %v18388_v1 = vpop.f32.mrb[8].mxu0 }
 0xb4d   :  { %v11349_v24 = vadd.f32 %v18388_v1, %v15841_v11  ;;  %v11281_v21 = vpop.f32.mrb[9].mxu0 }
 0xb4e   :  { %v11347_v5 = vadd.f32 %v15841_v11, %v11281_v21  ;;  %v18389_v51 = vpop.f32.mrb[10].mxu0 }
 0xb4f   :  { %v11361_v43 = vmul.f32 0.01, %v11349_v24  ;;  %v11350_v26 = vadd.f32 %v18389_v51, %v15841_v11  ;;  %v11284_v17 = vpop.f32.mrb[11].mxu0 }
 0xb50   :  { %v11359_v18 = vmul.f32 0.01, %v11347_v5  ;;  %v11348_v31 = vadd.f32 %v15841_v11, %v11284_v17 }
 0xb51   :  { %v11373_v14 = vmax.f32 %v11349_v24, %v11361_v43  ;;  %v11362_v42 = vmul.f32 0.01, %v11350_v26 }
 0xb52   :  { %v11371_v59 = vmax.f32 %v11347_v5, %v11359_v18  ;;  %v11360_v53 = vmul.f32 0.01, %v11348_v31  ;;  %v19803_v18 = vld [vmem:[%s24694_s17 + $0x20] sm:$0xff]  }
 0xb53   :  { %v11374_v46 = vmax.f32 %v11350_v26, %v11362_v42  ;;  %v11385_v22 = vmul.f32 %v11373_v14, %v23153_v13  ;;  %v19805_v14 = vld [vmem:[%s24694_s17 + $0x30] sm:$0xff]   ;;  %v19806_v42 = vld [vmem:[%s24694_s17 + $0x38] sm:$0xff]  }
 0xb54   :  { %v11372_v29 = vmax.f32 %v11348_v31, %v11360_v53  ;;  %v18392_v36 = vpop.f32.mrb[12].mxu0  ;;  %v11383_v41 = vmul.f32 %v11371_v59, %v23143_v8  ;;  %v19804_v31 = vld [vmem:[%s24694_s17 + $0x28] sm:$0xff]   ;;  %v19807_v59 = vld [vmem:[%s24694_s17 + $0x40] sm:$0xff]  }
 0xb55   :  { %v11386_v32 = vmul.f32 %v11374_v46, %v23157_v35  ;;  %v11353_v12 = vadd.f32 %v18392_v36, %v15841_v11  ;;  %v11297_v19 = vpop.f32.mrb[13].mxu0  ;;  %v19808_v53 = vld [vmem:[%s24694_s17 + $0x48] sm:$0xff]   ;;  %v19809_v46 = vld [vmem:[%s24694_s17 + $0x50] sm:$0xff]   ;;  %v19811_v36 = vld [vmem:[%s24694_s17 + $0x60] sm:$0xff]  }
 0xb56   :  { %v11384_v6 = vmul.f32 %v11372_v29, %v23145_v16  ;;  %v11351_v0 = vadd.f32 %v15841_v11, %v11297_v19  ;;  %v18393_v2 = vpop.f32.mrb[14].mxu0  ;;  %v19810_v29 = vld [vmem:[%s24694_s17 + $0x58] sm:$0xff]   ;;  %v19815_v19 = vld [vmem:[%s24694_s17 + $0x80] sm:$0xff]  }
 0xb57   :  { %v23619_v15 = vpack.c.bf16 %v11386_v32, %v11385_v22  ;;  %v11365_v23 = vmul.f32 0.01, %v11353_v12  ;;  %v11354_v54 = vadd.f32 %v18393_v2, %v15841_v11  ;;  %v11300_v10 = vpop.f32.mrb[15].mxu0  ;;  %v19812_v22 = vld [vmem:[%s24694_s17 + $0x68] sm:$0xff]   ;;  %v19813_v32 = vld [vmem:[%s24694_s17 + $0x70] sm:$0xff]  }
 0xb58   :  { %v23621_v7 = vpack.c.bf16 %v11384_v6, %v11383_v41  ;;  %v11363_v9 = vmul.f32 0.01, %v11351_v0  ;;  %v11352_v45 = vadd.f32 %v15841_v11, %v11300_v10  ;;  %v19816_v41 = vld [vmem:[%s24694_s17 + $0x88] sm:$0xff]   ;;  %v19817_v6 = vld [vmem:[%s24694_s17 + $0x90] sm:$0xff]  }
 0xb59   :  { %v11377_v13 = vmax.f32 %v11353_v12, %v11365_v23  ;;  %v11366_v58 = vmul.f32 0.01, %v11354_v54  ;;  %v19814_v12 = vld [vmem:[%s24694_s17 + $0x78] sm:$0xff]  }
 0xb5a   :  { %v11375_v35 = vmax.f32 %v11351_v0, %v11363_v9  ;;  %v11364_v28 = vmul.f32 0.01, %v11352_v45  ;;  %18399 = vmatpush3.bf16.msra.mxu1 %v23621_v7  ;;  %v19818_v0 = vld [vmem:[%s24694_s17 + $0x98] sm:$0xff]  }
 0xb5b   :  { %v11378_v8 = vmax.f32 %v11354_v54, %v11366_v58  ;;  %18400 = vmatprep.subr.bf16.mxu1 %v19990_v40  ;;  %v11389_v25 = vmul.f32 %v11377_v13, %v23170_v50 }
 0xb5c   :  { %v11376_v16 = vmax.f32 %v11352_v45, %v11364_v28  ;;  %v18396_v39 = vpop.f32.mrb[16].mxu0  ;;  %v11387_v61 = vmul.f32 %v11375_v35, %v23161_v52 }
 0xb5d   :  { %v11390_v49 = vmul.f32 %v11378_v8, %v23173_v38  ;;  %v11357_v4 = vadd.f32 %v18396_v39, %v15841_v11  ;;  %v11313_v57 = vpop.f32.mrb[17].mxu0 }
 0xb5e   :  { %v11388_v20 = vmul.f32 %v11376_v16, %v23166_v34  ;;  %v11355_v44 = vadd.f32 %v15841_v11, %v11313_v57  ;;  %v18397_v33 = vpop.f32.mrb[18].mxu0  ;;  %18401 = vmatpush3.bf16.msra.mxu1 %v23619_v15 }
 0xb5f   :  { %v23630_v37 = vpack.c.bf16 %v11390_v49, %v11389_v25  ;;  %v11369_v60 = vmul.f32 0.01, %v11357_v4  ;;  %v11358_v56 = vadd.f32 %v18397_v33, %v15841_v11  ;;  %v11316_v55 = vpop.f32.mrb[19].mxu0  ;;  %18402 = vmatprep.subr.bf16.mxu1 %v19990_v40 }
 0xb60   :  { %v23633_v50 = vpack.c.bf16 %v11388_v20, %v11387_v61  ;;  %v11367_v38 = vmul.f32 0.01, %v11355_v44  ;;  %v11356_v62 = vadd.f32 %v15841_v11, %v11316_v55 }
 0xb61   :  { %v11381_v27 = vmax.f32 %v11357_v4, %v11369_v60  ;;  %v11370_v1 = vmul.f32 0.01, %v11358_v56 }
 0xb62   :  { %v11379_v52 = vmax.f32 %v11355_v44, %v11367_v38  ;;  %v11368_v24 = vmul.f32 0.01, %v11356_v62  ;;  %18403 = vmatpush3.bf16.msra.mxu1 %v23633_v50 }
 0xb63   :  { %v11382_v34 = vmax.f32 %v11358_v56, %v11370_v1  ;;  %18404 = vmatprep.subr.bf16.mxu1 %v19990_v40  ;;  %v11393_v5 = vmul.f32 %v11381_v27, %v23208_v3  ;;  %v19799_v3 = vld [vmem:[%s24694_s17] sm:$0xff]  }
 0xb64   :  { %v11380_v21 = vmax.f32 %v11356_v62, %v11368_v24  ;;  %v11391_v43 = vmul.f32 %v11379_v52, %v23186_v30  ;;  %v19800_v30 = vld [vmem:[%s24694_s17 + $0x8] sm:$0xff]  }
 0xb65   :  { %v11394_v51 = vmul.f32 %v11382_v34, %v23212_v48  ;;  %v19802_v48 = vld [vmem:[%s24694_s17 + $0x18] sm:$0xff]  }
 0xb66   :  { %v11392_v26 = vmul.f32 %v11380_v21, %v23192_v47  ;;  %18405 = vmatpush3.bf16.msra.mxu1 %v23630_v37  ;;  %v19801_v47 = vld [vmem:[%s24694_s17 + $0x10] sm:$0xff]  }
 0xb67   :  { %v23642_v11 = vpack.c.bf16 %v11394_v51, %v11393_v5  ;;  %18406 = vmatprep.subr.bf16.mxu1 %v19990_v40 }
 0xb68   :  { %v23645_v17 = vpack.c.bf16 %v11392_v26, %v11391_v43 }
 0xb6a   :  { %18407 = vmatpush3.bf16.msra.mxu1 %v23645_v17 }
 0xb6b   :  { %18408 = vmatprep.subr.bf16.mxu1 %v19990_v40 }
 0xb6e   :  { %18409 = vmatpush3.bf16.msra.mxu1 %v23642_v11 }
 0xb6f   :  { %18430 = vmatprep.subr.bf16.mxu1 %v19990_v40 }
 0xb71   :  { %18411 = vmatmul.mubr.msk.bf16.vlgmr.msra.gmra.mrb[92].mxu1 %vm11436_vm2, %v19799_v3 }
 0xb72   :  { %18431 = vmatpush3.bf16.msra.mxu1 %v23621_v7  ;;  %18414 = vmatprep.mubr.msk.bf16.mxu1 %vm19991_vm12, %v19990_v40 }
 0xb73   :  { %18432 = vmatprep.subr.bf16.mxu1 %v19990_v40 }
 0xb76   :  { %18433 = vmatpush3.bf16.msra.mxu1 %v23619_v15 }
 0xb77   :  { %18434 = vmatprep.subr.bf16.mxu1 %v19990_v40 }
 0xb79   :  { %18415 = vmatmul.mubr.msk.bf16.gmra.mrb[96].mxu1 %vm11436_vm2, %v19800_v30 }
 0xb7a   :  { %18435 = vmatpush3.bf16.msra.mxu1 %v23633_v50  ;;  %18418 = vmatprep.mubr.msk.bf16.mxu1 %vm19991_vm12, %v19990_v40 }
 0xb7b   :  { %18436 = vmatprep.subr.bf16.mxu1 %v19990_v40 }
 0xb7e   :  { %18437 = vmatpush3.bf16.msra.mxu1 %v23630_v37 }
 0xb7f   :  { %18438 = vmatprep.subr.bf16.mxu1 %v19990_v40 }
 0xb81   :  { %18419 = vmatmul.mubr.msk.bf16.gmra.mrb[100].mxu1 %vm11436_vm2, %v19801_v47 }
 0xb82   :  { %18439 = vmatpush3.bf16.msra.mxu1 %v23645_v17  ;;  %18422 = vmatprep.mubr.msk.bf16.mxu1 %vm19991_vm12, %v19990_v40 }
 0xb83   :  { %18440 = vmatprep.subr.bf16.mxu1 %v19990_v40 }
 0xb86   :  { %18441 = vmatpush3.bf16.msra.mxu1 %v23642_v11 }
 0xb87   :  { %18462 = vmatprep.subr.bf16.mxu1 %v19990_v40 }
 0xb89   :  { %18423 = vmatmul.mubr.msk.bf16.gmra.mrb[104].mxu1 %vm11436_vm2, %v19802_v48 }
 0xb8a   :  { %18426 = vmatprep.mubr.msk.bf16.mxu1 %vm19991_vm12, %v19990_v40 }
 0xb91   :  { %18427 = vmatmul.mubr.msk.bf16.gmra.mrb[108].mxu1 %vm11436_vm2, %v19803_v18 }
 0xb92   :  { %18442 = vmatprep.mubr.msk.bf16.mxu1 %vm19991_vm12, %v19990_v40 }
 0xb99   :  { %18443 = vmatmul.mubr.msk.bf16.vlgmr.msra.gmra.mrb[112].mxu1 %vm11436_vm2, %v19804_v31 }
 0xb9a   :  { %18463 = vmatpush3.bf16.msra.mxu1 %v23621_v7  ;;  %18446 = vmatprep.mubr.msk.bf16.mxu1 %vm19991_vm12, %v19990_v40 }
 0xb9b   :  { %18464 = vmatprep.subr.bf16.mxu1 %v19990_v40 }
 0xb9e   :  { %18465 = vmatpush3.bf16.msra.mxu1 %v23619_v15 }
 0xb9f   :  { %18466 = vmatprep.subr.bf16.mxu1 %v19990_v40 }
 0xba1   :  { %18447 = vmatmul.mubr.msk.bf16.gmra.mrb[116].mxu1 %vm11436_vm2, %v19805_v14 }
 0xba2   :  { %18467 = vmatpush3.bf16.msra.mxu1 %v23633_v50  ;;  %18450 = vmatprep.mubr.msk.bf16.mxu1 %vm19991_vm12, %v19990_v40 }
 0xba3   :  { %18468 = vmatprep.subr.bf16.mxu1 %v19990_v40 }
 0xba6   :  { %18469 = vmatpush3.bf16.msra.mxu1 %v23630_v37 }
 0xba7   :  { %18470 = vmatprep.subr.bf16.mxu1 %v19990_v40 }
 0xba9   :  { %18451 = vmatmul.mubr.msk.bf16.gmra.mrb[120].mxu1 %vm11436_vm2, %v19806_v42  ;;  %v11979_v42 = vld [vmem:[%s24696_s15 + $0x8] sm:$0xff] }
 0xbaa   :  { %18471 = vmatpush3.bf16.msra.mxu1 %v23645_v17  ;;  %18454 = vmatprep.mubr.msk.bf16.mxu1 %vm19991_vm12, %v19990_v40 }
 0xbab   :  { %18472 = vmatprep.subr.bf16.mxu1 %v19990_v40 }
 0xbae   :  { %18473 = vmatpush3.bf16.msra.mxu1 %v23642_v11 }
 0xbaf   :  { %18494 = vmatprep.subr.bf16.mxu1 %v19990_v40 }
 0xbb1   :  { %18455 = vmatmul.mubr.msk.bf16.gmra.mrb[124].mxu1 %vm11436_vm2, %v19807_v59 }
 0xbb2   :  { %18458 = vmatprep.mubr.msk.bf16.mxu1 %vm19991_vm12, %v19990_v40 }
 0xbb9   :  { %18459 = vmatmul.mubr.msk.bf16.gmra.mrb[128].mxu1 %vm11436_vm2, %v19808_v53 }
 0xbba   :  { %18474 = vmatprep.mubr.msk.bf16.mxu1 %vm19991_vm12, %v19990_v40 }
 0xbc1   :  { %18475 = vmatmul.mubr.msk.bf16.vlgmr.msra.gmra.mrb[132].mxu1 %vm11436_vm2, %v19809_v46  ;;  %v11981_v46 = vld [vmem:[%s24696_s15 + $0x18] sm:$0xff] }
 0xbc2   :  { %18495 = vmatpush3.bf16.msra.mxu1 %v23621_v7  ;;  %18478 = vmatprep.mubr.msk.bf16.mxu1 %vm19991_vm12, %v19990_v40 }
 0xbc3   :  { %18496 = vmatprep.subr.bf16.mxu1 %v19990_v40 }
 0xbc6   :  { %18497 = vmatpush3.bf16.msra.mxu1 %v23619_v15 }
 0xbc7   :  { %18498 = vmatprep.subr.bf16.mxu1 %v19990_v40 }
 0xbc9   :  { %18479 = vmatmul.mubr.msk.bf16.gmra.mrb[136].mxu1 %vm11436_vm2, %v19810_v29 }
 0xbca   :  { %18499 = vmatpush3.bf16.msra.mxu1 %v23633_v50  ;;  %18482 = vmatprep.mubr.msk.bf16.mxu1 %vm19991_vm12, %v19990_v40 }
 0xbcb   :  { %18500 = vmatprep.subr.bf16.mxu1 %v19990_v40 }
 0xbce   :  { %18501 = vmatpush3.bf16.msra.mxu1 %v23630_v37 }
 0xbcf   :  { %18502 = vmatprep.subr.bf16.mxu1 %v19990_v40 }
 0xbd1   :  { %18483 = vmatmul.mubr.msk.bf16.gmra.mrb[140].mxu1 %vm11436_vm2, %v19811_v36 }
 0xbd2   :  { %18503 = vmatpush3.bf16.msra.mxu1 %v23645_v17  ;;  %18486 = vmatprep.mubr.msk.bf16.mxu1 %vm19991_vm12, %v19990_v40 }
 0xbd3   :  { %18504 = vmatprep.subr.bf16.mxu1 %v19990_v40 }
 0xbd6   :  { %18505 = vmatpush3.bf16.msra.mxu1 %v23642_v11 }
 0xbd9   :  { %18487 = vmatmul.mubr.msk.bf16.gmra.mrb[144].mxu1 %vm11436_vm2, %v19812_v22 }
 0xbda   :  { %18490 = vmatprep.mubr.msk.bf16.mxu1 %vm19991_vm12, %v19990_v40 }
 0xbe1   :  { %18491 = vmatmul.mubr.msk.bf16.gmra.mrb[148].mxu1 %vm11436_vm2, %v19813_v32  ;;  %v11983_v32 = vld [vmem:[%s24696_s15 + $0x28] sm:$0xff] }
 0xbe2   :  { %18506 = vmatprep.mubr.msk.bf16.mxu1 %vm19991_vm12, %v19990_v40 }
 0xbe9   :  { %18507 = vmatmul.mubr.msk.bf16.vlgmr.msra.gmra.mrb[152].mxu1 %vm11436_vm2, %v19814_v12  ;;  %v11985_v12 = vld [vmem:[%s24696_s15 + $0x38] sm:$0xff] }
 0xbea   :  { %18510 = vmatprep.mubr.msk.bf16.mxu1 %vm19991_vm12, %v19990_v40 }
 0xbf1   :  { %18511 = vmatmul.mubr.msk.bf16.gmra.mrb[156].mxu1 %vm11436_vm2, %v19815_v19 }
 0xbf2   :  { %18514 = vmatprep.mubr.msk.bf16.mxu1 %vm19991_vm12, %v19990_v40 }
 0xbf9   :  { %18515 = vmatmul.mubr.msk.bf16.gmra.mrb[160].mxu1 %vm11436_vm2, %v19816_v41 }
 0xbfa   :  { %18518 = vmatprep.mubr.msk.bf16.mxu1 %vm19991_vm12, %v19990_v40 }
 0xc01   :  { %18519 = vmatmul.mubr.msk.bf16.gmra.mrb[164].mxu1 %vm11436_vm2, %v19817_v6  ;;  %v19819_v6 = vld [vmem:[%s24697_s11 + $0x40] sm:$0xff]  }
 0xc02   :  { %18522 = vmatprep.mubr.msk.bf16.mxu1 %vm19991_vm12, %v19990_v40  ;;  %17162 = vmatprep.subr.bf16.mxu1 %v19819_v6  ;;  %vm11684_vm12 = vcmask 1048064  }
 0xc09   :  { %18523 = vmatmul.mubr.msk.bf16.gmra.mrb[168].mxu1 %vm11436_vm2, %v19818_v0 }
 0xc44   :  { %v11486_v2 = vpop.f32.mrb[92].mxu1 }
 0xc45   :  { %v18412_v15 = vpop.f32.mrb[93].mxu1 }
 0xc46   :  { %v11489_v23 = vpop.f32.mrb[94].mxu1 }
 0xc47   :  { %v11525_v54 = vpack.c.bf16 %v11489_v23, %v11486_v2  ;;  %v18413_v10 = vpop.f32.mrb[95].mxu1  ;;  %v19820_v2 = vld [vmem:[%s24697_s11] sm:$0xff]  }
 0xc48   :  { %17163 = vmatpush3.bf16.msra.mxu1 %v19820_v2  ;;  %v19822_v10 = vld [vmem:[%s24697_s11 + $0x8] sm:$0xff]  }
 0xc49   :  { %11530 = vst.msk [vmem:[#allocation3] sm:$0xff] %vm7305_vm13, %v11525_v54  ;;  %v19821_v54 = vld [vmem:[%s24697_s11 + $0x48] sm:$0xff]  }
 0xc4a   :  { %17164 = vmatprep.subr.bf16.mxu1 %v19821_v54 }
 0xc4c   :  { %v11494_v7 = vpop.f32.mrb[96].mxu1  ;;  %17165 = vmatpush3.bf16.msra.mxu1 %v19822_v10 }
 0xc4d   :  { %v18416_v9 = vpop.f32.mrb[97].mxu1 }
 0xc4e   :  { %v11497_v45 = vpop.f32.mrb[98].mxu1  ;;  %v19824_v9 = vld [vmem:[%s24697_s11 + $0x10] sm:$0xff]  }
 0xc4f   :  { %v11526_v13 = vpack.c.bf16 %v11497_v45, %v11494_v7  ;;  %v18417_v58 = vpop.f32.mrb[99].mxu1  ;;  %v19823_v7 = vld [vmem:[%s24697_s11 + $0x50] sm:$0xff]  }
 0xc50   :  { %17166 = vmatprep.subr.bf16.mxu1 %v19823_v7 }
 0xc51   :  { %11531 = vst.msk [vmem:[#allocation3 + $0x10] sm:$0xff] %vm7305_vm13, %v11526_v13  ;;  %v19825_v13 = vld [vmem:[%s24697_s11 + $0x58] sm:$0xff]   ;;  %17167 = vmatpush3.bf16.msra.mxu1 %v19824_v9 }
 0xc52   :  { %17168 = vmatprep.subr.bf16.mxu1 %v19825_v13 }
 0xc54   :  { %v11502_v40 = vpop.f32.mrb[100].mxu1 }
 0xc55   :  { %v18420_v35 = vpop.f32.mrb[101].mxu1 }
 0xc56   :  { %v11505_v28 = vpop.f32.mrb[102].mxu1 }
 0xc57   :  { %v11527_v8 = vpack.c.bf16 %v11505_v28, %v11502_v40  ;;  %v18421_v16 = vpop.f32.mrb[103].mxu1  ;;  %v19826_v40 = vld [vmem:[%s24697_s11 + $0xc0] sm:$0xff]   ;;  %v19827_v28 = vld [vmem:[%s24697_s11 + $0x18] sm:$0xff]  }
 0xc58   :  { %17122 = vmatprep.subr.bf16.mxu0 %v19826_v40  ;;  %17169 = vmatpush3.bf16.msra.mxu1 %v19827_v28  ;;  %v11978_v28 = vld [vmem:[%s24696_s15] sm:$0xff] }
 0xc59   :  { %11532 = vst.msk [vmem:[#allocation3 + $0x20] sm:$0xff] %vm7305_vm13, %v11527_v8 }
 0xc5c   :  { %v11510_v39 = vpop.f32.mrb[104].mxu1 }
 0xc5d   :  { %v18424_v25 = vpop.f32.mrb[105].mxu1 }
 0xc5e   :  { %v11513_v49 = vpop.f32.mrb[106].mxu1  ;;  %v19829_v25 = vld [vmem:[%s24697_s11 + $0x60] sm:$0xff]  }
 0xc5f   :  { %v11528_v4 = vpack.c.bf16 %v11513_v49, %v11510_v39  ;;  %v18425_v57 = vpop.f32.mrb[107].mxu1  ;;  %v19828_v39 = vld [vmem:[%s24697_s11 + $0x80] sm:$0xff]   ;;  %v19830_v49 = vld [vmem:[%s24697_s11 + $0xc8] sm:$0xff]   ;;  %17170 = vmatprep.subr.bf16.mxu1 %v19829_v25 }
 0xc60   :  { %17123 = vmatpush3.bf16.msra.mxu0 %v19828_v39  ;;  %v19832_v57 = vld [vmem:[%s24697_s11 + $0x88] sm:$0xff]   ;;  %v11982_v39 = vld [vmem:[%s24696_s15 + $0x20] sm:$0xff] }
 0xc61   :  { %11533 = vst.msk [vmem:[#allocation3 + $0x30] sm:$0xff] %vm7305_vm13, %v11528_v4  ;;  %v19831_v4 = vld [vmem:[%s24697_s11 + $0x20] sm:$0xff]   ;;  %17124 = vmatprep.subr.bf16.mxu0 %v19830_v49  ;;  %v11984_v49 = vld [vmem:[%s24696_s15 + $0x30] sm:$0xff] }
 0xc62   :  { %17171 = vmatpush3.bf16.msra.mxu1 %v19831_v4 }
 0xc64   :  { %v11518_v61 = vpop.f32.mrb[108].mxu1  ;;  %17125 = vmatpush3.bf16.msra.mxu0 %v19832_v57 }
 0xc65   :  { %v18428_v20 = vpop.f32.mrb[109].mxu1 }
 0xc66   :  { %v11521_v44 = vpop.f32.mrb[110].mxu1  ;;  %v19833_v20 = vld [vmem:[%s24697_s11 + $0x68] sm:$0xff]  }
 0xc67   :  { %v11529_v33 = vpack.c.bf16 %v11521_v44, %v11518_v61  ;;  %v18429_v37 = vpop.f32.mrb[111].mxu1  ;;  %17172 = vmatprep.subr.bf16.mxu1 %v19833_v20 }
 0xc69   :  { %11534 = vst.msk [vmem:[#allocation3 + $0x40] sm:$0xff] %vm7305_vm13, %v11529_v33  ;;  %v19834_v33 = vld [vmem:[%s24697_s11 + $0xd0] sm:$0xff]  }
 0xc6a   :  { %17126 = vmatprep.subr.bf16.mxu0 %v19834_v33 }
 0xc6c   :  { %v11620_v60 = vpop.f32.mrb[112].mxu1 }
 0xc6d   :  { %v18444_v56 = vpop.f32.mrb[113].mxu1 }
 0xc6e   :  { %v11623_v55 = vpop.f32.mrb[114].mxu1 }
 0xc6f   :  { %v11659_v50 = vpack.c.bf16 %v11623_v55, %v11620_v60  ;;  %v18445_v38 = vpop.f32.mrb[115].mxu1  ;;  %v19835_v60 = vld [vmem:[%s24697_s11 + $0x28] sm:$0xff]  }
 0xc70   :  { %17173 = vmatpush3.bf16.msra.mxu1 %v19835_v60  ;;  %v19849_v60 = vld [vmem:[%s24697_s11 + $0x1c8] sm:$0xff]  }
 0xc71   :  { %11669 = vrot.lane.b32.xlu0 %v11659_v50, %s19993_s16  ;;  %v19836_v50 = vld [vmem:[%s24697_s11 + $0x90] sm:$0xff]  }
 0xc72   :  { %17127 = vmatpush3.bf16.msra.mxu0 %v19836_v50 }
 0xc74   :  { %v11628_v62 = vpop.f32.mrb[116].mxu1 }
 0xc75   :  { %v18448_v27 = vpop.f32.mrb[117].mxu1 }
 0xc76   :  { %v11631_v1 = vpop.f32.mrb[118].mxu1  ;;  %v19838_v27 = vld [vmem:[%s24697_s11 + $0xd8] sm:$0xff]  }
 0xc77   :  { %v11660_v52 = vpack.c.bf16 %v11631_v1, %v11628_v62  ;;  %v18449_v24 = vpop.f32.mrb[119].mxu1  ;;  %v19837_v62 = vld [vmem:[%s24697_s11 + $0x70] sm:$0xff]   ;;  %17128 = vmatprep.subr.bf16.mxu0 %v19838_v27 }
 0xc78   :  { %v19839_v1 = vld [vmem:[%s24697_s11 + $0x30] sm:$0xff]   ;;  %v19840_v24 = vld [vmem:[%s24697_s11 + $0x98] sm:$0xff]   ;;  %17174 = vmatprep.subr.bf16.mxu1 %v19837_v62 }
 0xc79   :  { %11671 = vrot.lane.b32.xlu0 %v11660_v52, %s19993_s16  ;;  %17129 = vmatpush3.bf16.msra.mxu0 %v19840_v24  ;;  %v19853_v62 = vld [vmem:[%s24697_s11 + $0x1d0] sm:$0xff]  }
 0xc7a   :  { %17175 = vmatpush3.bf16.msra.mxu1 %v19839_v1 }
 0xc7c   :  { %v11636_v34 = vpop.f32.mrb[120].mxu1 }
 0xc7d   :  { %v18452_v21 = vpop.f32.mrb[121].mxu1 }
 0xc7e   :  { %v11639_v5 = vpop.f32.mrb[122].mxu1  ;;  %v19842_v21 = vld [vmem:[%s24697_s11 + $0xe0] sm:$0xff]  }
 0xc7f   :  { %v11661_v51 = vpack.c.bf16 %v11639_v5, %v11636_v34  ;;  %v18453_v43 = vpop.f32.mrb[123].mxu1  ;;  %v19841_v34 = vld [vmem:[%s24697_s11 + $0x78] sm:$0xff]   ;;  %17130 = vmatprep.subr.bf16.mxu0 %v19842_v21 }
 0xc80   :  { %17176 = vmatprep.subr.bf16.mxu1 %v19841_v34 }
 0xc81   :  { %11673 = vrot.lane.b32.xlu0 %v11661_v51, %s19993_s16  ;;  %v19843_v51 = vld [vmem:[%s24697_s11 + $0x38] sm:$0xff]  }
 0xc82   :  { %17177 = vmatpush3.bf16.msra.mxu1 %v19843_v51 }
 0xc84   :  { %v11644_v26 = vpop.f32.mrb[124].mxu1 }
 0xc85   :  { %v18456_v11 = vpop.f32.mrb[125].mxu1 }
 0xc86   :  { %v11647_v17 = vpop.f32.mrb[126].mxu1  ;;  %v19844_v11 = vld [vmem:[%s24697_s11 + $0xa0] sm:$0xff]  }
 0xc87   :  { %v11662_v3 = vpack.c.bf16 %v11647_v17, %v11644_v26  ;;  %v18457_v30 = vpop.f32.mrb[127].mxu1  ;;  %17131 = vmatpush3.bf16.msra.mxu0 %v19844_v11 }
 0xc88   :  { %v19845_v30 = vld [vmem:[%s24697_s11 + $0x1c0] sm:$0xff]  }
 0xc89   :  { %11675 = vrot.lane.b32.xlu0 %v11662_v3, %s19993_s16  ;;  %17242 = vmatprep.subr.bf16.mxu1 %v19845_v30 }
 0xc8c   :  { %v11652_v47 = vpop.f32.mrb[128].mxu1 }
 0xc8d   :  { %v18460_v48 = vpop.f32.mrb[129].mxu1 }
 0xc8e   :  { %v11655_v18 = vpop.f32.mrb[130].mxu1 }
 0xc8f   :  { %v11663_v31 = vpack.c.bf16 %v11655_v18, %v11652_v47  ;;  %v18461_v14 = vpop.f32.mrb[131].mxu1  ;;  %v19846_v47 = vld [vmem:[%s24697_s11 + $0xe8] sm:$0xff]  }
 0xc90   :  { %v19848_v18 = vld [vmem:[%s24697_s11 + $0xa8] sm:$0xff]   ;;  %17132 = vmatprep.subr.bf16.mxu0 %v19846_v47  ;;  %v19859_v47 = vld [vmem:[%s24697_s11 + $0x198] sm:$0xff]  }
 0xc91   :  { %11677 = vrot.lane.b32.xlu0 %v11663_v31, %s19993_s16  ;;  %17133 = vmatpush3.bf16.msra.mxu0 %v19848_v18 }
 0xc94   :  { %v11775_v59 = vpop.f32.mrb[132].mxu1 }
 0xc95   :  { %13032 = vperm.xlu0 %19388, %v11979_v42   ;;  %v18476_v53 = vpop.f32.mrb[133].mxu1  ;;  %v19850_v42 = vld [vmem:[%s24697_s11 + $0xf0] sm:$0xff]  }
 0xc96   :  { %v11778_v29 = vpop.f32.mrb[134].mxu1  ;;  %17134 = vmatprep.subr.bf16.mxu0 %v19850_v42 }
 0xc97   :  { %v11814_v36 = vpack.c.bf16 %v11778_v29, %v11775_v59  ;;  %v18477_v22 = vpop.f32.mrb[135].mxu1  ;;  %v19852_v59 = vld [vmem:[%s24697_s11 + $0xb0] sm:$0xff]   ;;  %v19854_v29 = vld [vmem:[%s24697_s11 + $0xf8] sm:$0xff]  }
 0xc98   :  { %17135 = vmatpush3.bf16.msra.mxu0 %v19852_v59  ;;  %v19856_v22 = vld [vmem:[%s24697_s11 + $0xb8] sm:$0xff]   ;;  %v19862_v59 = vld [vmem:[%s24697_s11 + $0x148] sm:$0xff]  }
 0xc99   :  { %13042 = vperm.xlu0 %19388, %v11981_v46   ;;  %11819 = vst.msk [vmem:[#allocation3 + $0x8] sm:$0xff] %vm7305_vm13, %v11814_v36  ;;  %17136 = vmatprep.subr.bf16.mxu0 %v19854_v29 }
 0xc9c   :  { %v11783_v19 = vpop.f32.mrb[136].mxu1  ;;  %17137 = vmatpush3.bf16.msra.mxu0 %v19856_v22  ;;  %v19863_v22 = vld [vmem:[%s24697_s11 + $0x1a0] sm:$0xff]  }
 0xc9d   :  { %13052 = vperm.xlu0 %19388, %v11983_v32   ;;  %v18480_v41 = vpop.f32.mrb[137].mxu1 }
 0xc9e   :  { %v11786_v0 = vpop.f32.mrb[138].mxu1 }
 0xc9f   :  { %v11815_v15 = vpack.c.bf16 %v11786_v0, %v11783_v19  ;;  %v18481_v23 = vpop.f32.mrb[139].mxu1  ;;  %v19858_v19 = vld [vmem:[%s24697_s11 + $0x140] sm:$0xff]  }
 0xca0   :  { %17202 = vmatprep.subr.bf16.mxu0 %v19858_v19  ;;  %v19864_v19 = vld [vmem:[%s24697_s11 + $0x108] sm:$0xff]  }
 0xca1   :  { %13062 = vperm.xlu0 %19388, %v11985_v12   ;;  %11820 = vst.msk [vmem:[#allocation3 + $0x18] sm:$0xff] %vm7305_vm13, %v11815_v15 }
 0xca4   :  { %v11791_v45 = vpop.f32.mrb[140].mxu1 }
 0xca5   :  { %v18484_v58 = vpop.f32.mrb[141].mxu1 }
 0xca6   :  { %v11794_v35 = vpop.f32.mrb[142].mxu1 }
 0xca7   :  { %v11816_v8 = vpack.c.bf16 %v11794_v35, %v11791_v45  ;;  %v18485_v16 = vpop.f32.mrb[143].mxu1 }
 0xca8   :  { %v11980_v16 = vld [vmem:[%s24696_s15 + $0x10] sm:$0xff] }
 0xca9   :  { %11821 = vst.msk [vmem:[#allocation3 + $0x28] sm:$0xff] %vm7305_vm13, %v11816_v8 }
 0xcac   :  { %v11799_v61 = vpop.f32.mrb[144].mxu1 }
 0xcad   :  { %v18488_v44 = vpop.f32.mrb[145].mxu1 }
 0xcae   :  { %v11802_v37 = vpop.f32.mrb[146].mxu1  ;;  %v19847_v44 = vld [vmem:[%s24697_s11 + $0x180] sm:$0xff]  }
 0xcaf   :  { %v11817_v56 = vpack.c.bf16 %v11802_v37, %v11799_v61  ;;  %v18489_v55 = vpop.f32.mrb[147].mxu1 }
 0xcb0   :  { %v19851_v55 = vld [vmem:[%s24697_s11 + $0x188] sm:$0xff]  }
 0xcb1   :  { %11822 = vst.msk [vmem:[#allocation3 + $0x38] sm:$0xff] %vm7305_vm13, %v11817_v56 }
 0xcb4   :  { %v11807_v38 = vpop.f32.mrb[148].mxu1 }
 0xcb5   :  { %v18492_v52 = vpop.f32.mrb[149].mxu1 }
 0xcb6   :  { %v11810_v5 = vpop.f32.mrb[150].mxu1  ;;  %v19855_v52 = vld [vmem:[%s24697_s11 + $0x190] sm:$0xff]  }
 0xcb7   :  { %v11818_v43 = vpack.c.bf16 %v11810_v5, %v11807_v38  ;;  %v18493_v26 = vpop.f32.mrb[151].mxu1  ;;  %v19857_v5 = vld [vmem:[%s24697_s11 + $0x1d8] sm:$0xff]  }
 0xcb9   :  { %11823 = vst.msk [vmem:[#allocation3 + $0x48] sm:$0xff] %vm7305_vm13, %v11818_v43  ;;  %vm11987_vm13 = vcmask 1040384  }
 0xcba   :  { %vm24139_vm15 = vmand %vm11987_vm13, %vm112_vm4 }
 0xcbc   :  { %v11909_v17 = vpop.f32.mrb[152].mxu1 }
 0xcbd   :  { %v18508_v3 = vpop.f32.mrb[153].mxu1 }
 0xcbe   :  { %v11912_v48 = vpop.f32.mrb[154].mxu1 }
 0xcbf   :  { %v11948_v31 = vpack.c.bf16 %v11912_v48, %v11909_v17  ;;  %v18509_v14 = vpop.f32.mrb[155].mxu1 }
 0xcc0   :  { %v19861_v14 = vld [vmem:[%s24697_s11 + $0x1e0] sm:$0xff]  }
 0xcc1   :  { %11958 = vrot.lane.b32.xlu1 %v11948_v31, %s19993_s16  ;;  %v19860_v31 = vld [vmem:[%s24697_s11 + $0x100] sm:$0xff]  }
 0xcc4   :  { %v11917_v53 = vpop.f32.mrb[156].mxu1 }
 0xcc5   :  { %v18512_v46 = vpop.f32.mrb[157].mxu1 }
 0xcc6   :  { %v11920_v36 = vpop.f32.mrb[158].mxu1 }
 0xcc7   :  { %v11949_v32 = vpack.c.bf16 %v11920_v36, %v11917_v53  ;;  %v18513_v12 = vpop.f32.mrb[159].mxu1 }
 0xcc9   :  { %11960 = vrot.lane.b32.xlu1 %v11949_v32, %s19993_s16 }
 0xccc   :  { %v11925_v41 = vpop.f32.mrb[160].mxu1 }
 0xccd   :  { %v18516_v6 = vpop.f32.mrb[161].mxu1 }
 0xcce   :  { %v11928_v0 = vpop.f32.mrb[162].mxu1 }
 0xccf   :  { %v11950_v2 = vpack.c.bf16 %v11928_v0, %v11925_v41  ;;  %v18517_v15 = vpop.f32.mrb[163].mxu1  ;;  %v19865_v41 = vld [vmem:[%s24697_s11 + $0x1e8] sm:$0xff]  }
 0xcd0   :  { %v19866_v15 = vld [vmem:[%s24697_s11 + $0x150] sm:$0xff]  }
 0xcd1   :  { %11962 = vrot.lane.b32.xlu1 %v11950_v2, %s19993_s16 }
 0xcd4   :  { %v11933_v23 = vpop.f32.mrb[164].mxu1 }
 0xcd5   :  { %v18520_v54 = vpop.f32.mrb[165].mxu1 }
 0xcd6   :  { %v11936_v10 = vpop.f32.mrb[166].mxu1 }
 0xcd7   :  { %v11951_v7 = vpack.c.bf16 %v11936_v10, %v11933_v23  ;;  %v18521_v9 = vpop.f32.mrb[167].mxu1 }
 0xcd9   :  { %11964 = vrot.lane.b32.xlu1 %v11951_v7, %s19993_s16 }
 0xcdc   :  { %v11941_v45 = vpop.f32.mrb[168].mxu1 }
 0xcdd   :  { %v18524_v13 = vpop.f32.mrb[169].mxu1 }
 0xcde   :  { %v11944_v58 = vpop.f32.mrb[170].mxu1 }
 0xcdf   :  { %v11952_v40 = vpack.c.bf16 %v11944_v58, %v11941_v45  ;;  %v18525_v35 = vpop.f32.mrb[171].mxu1  ;;  %v19867_v58 = vld [vmem:[%s24697_s11 + $0x1a8] sm:$0xff]  }
 0xce1   :  { %11966 = vrot.lane.b32.xlu1 %v11952_v40, %s19993_s16 }
 0xce3   :  { %v11670_v8 = vpop.permute.xlu0 %11669 }
 0xce4   :  { %11685 = vst.msk [vmem:[#allocation3] sm:$0xff] %vm11684_vm12, %v11670_v8  ;;  %v19869_v8 = vld [vmem:[%s24697_s11 + $0x1f0] sm:$0xff]  }
 0xce5   :  { %13027 = vperm.xlu1 %19389, %v11978_v28   ;;  %v19868_v28 = vld [vmem:[%s24697_s11 + $0x110] sm:$0xff]  }
 0xce9   :  { %13037 = vperm.xlu1 %19389, %v11980_v16  }
 0xceb   :  { %v11672_v25 = vpop.permute.xlu0 %11671  ;;  %v11997_v56 = vld [vmem:[#allocation3] sm:$0xff] }
 0xcec   :  { %11686 = vst.msk [vmem:[#allocation3 + $0x10] sm:$0xff] %vm11684_vm12, %v11672_v25  ;;  %v12083_v27 = vshll.u32 %v11997_v56, 16  ;;  %v12081_v11 = vshrl.u32 %v11997_v56, 16  ;;  %v24029_v9 = vld [vmem:[#allocation3] sm:$0xf0] }
 0xced   :  { %13047 = vperm.xlu1 %19389, %v11982_v39  }
 0xcee   :  { %v12085_v51 = vrot.slane %v12083_v27, 1 }
 0xcf0   :  { %v12086_v18 = vor.u32 %v12085_v51, %v12081_v11 }
 0xcf1   :  { %13057 = vperm.xlu1 %19389, %v11984_v49   ;;  %v19870_v49 = vld [vmem:[%s24697_s11 + $0x158] sm:$0xff]  }
 0xcf3   :  { %v11674_v4 = vpop.permute.xlu0 %11673  ;;  %v23966_v50 = vld [vmem:[#allocation3 + $0x10] sm:$0xff] }
 0xcf4   :  { %11687 = vst.msk [vmem:[#allocation3 + $0x20] sm:$0xff] %vm11684_vm12, %v11674_v4  ;;  %v12088_v1 = vshll.u32 %v23966_v50, 16  ;;  %v12104_v23 = vshrl.u32 %v23966_v50, 16  ;;  %v12760_v4 = vshrl.u32 %v24029_v9, 16 }
 0xcf6   :  { %v12090_v17 = vrot.slane %v12088_v1, 1  ;;  %v12767_v27 = vrot.slane %v12104_v23, 4  ;;  %v12762_v51 = vrot.slane %v12760_v4, 4 }
 0xcf8   :  { %v12091_v46 = vsel %vm278_vm0, %v12086_v18, %v12090_v17  ;;  %v12106_v35 = vor.u32 %v12104_v23, %v12090_v17 }
 0xcfb   :  { %v11676_v57 = vpop.permute.xlu0 %11675  ;;  %v23989_v48 = vld [vmem:[#allocation3 + $0x20] sm:$0xff] }
 0xcfc   :  { %11688 = vst.msk [vmem:[#allocation3 + $0x30] sm:$0xff] %vm11684_vm12, %v11676_v57  ;;  %v12108_v36 = vshll.u32 %v23989_v48, 16  ;;  %v12763_v57 = vshll.u32 %v24029_v9, 16 }
 0xcfe   :  { %v12110_v54 = vrot.slane %v12108_v36, 1 }
 0xd03   :  { %v11678_v61 = vpop.permute.xlu0 %11677  ;;  %v24034_v40 = vld [vmem:[#allocation3 + $0x30] sm:$0xff] }
 0xd04   :  { %11689 = vst.msk [vmem:[#allocation3 + $0x40] sm:$0xff] %vm11684_vm12, %v11678_v61  ;;  %v12111_v61 = vsel %vm278_vm0, %v12106_v35, %v12110_v54  ;;  %v12136_v23 = vshrl.u32 %v24034_v40, 16 }
 0xd0b   :  { %v12045_v18 = vld [vmem:[#allocation3 + $0x40] sm:$0x1] }
 0xd33   :  { %v11959_v20 = vpop.permute.xlu1 %11958 }
 0xd34   :  { %11973 = vst.msk [vmem:[#allocation3 + $0x8] sm:$0xff] %vm11684_vm12, %v11959_v20 }
 0xd3b   :  { %v11961_v33 = vpop.permute.xlu1 %11960  ;;  %v11998_v37 = vld [vmem:[#allocation3 + $0x8] sm:$0xff] }
 0xd3c   :  { %11974 = vst.msk [vmem:[#allocation3 + $0x18] sm:$0xff] %vm11684_vm12, %v11961_v33  ;;  %12449 = vmatprep.mubr.bf16.mxu1 %v11998_v37  ;;  %v12095_v38 = vshll.u32 %v11998_v37, 16  ;;  %v12093_v43 = vshrl.u32 %v11998_v37, 16  ;;  %v24001_v53 = vld [vmem:[#allocation3 + $0x8] sm:$0xf0]  ;;  %v19871_v37 = vld [vmem:[%s24697_s11 + $0x1b0] sm:$0xff]  }
 0xd3d   :  { %12450 = vmatmul.mubr.bf16.vlgmr.msra.gmra.mrb[172].mxu1 %v11997_v56  ;;  %v12772_v6 = vshrl.u32 %v24001_v53, 16  ;;  %v12775_v0 = vshll.u32 %v24001_v53, 16 }
 0xd3e   :  { %17243 = vmatpush3.bf16.msra.mxu1 %v19847_v44  ;;  %v12097_v24 = vrot.slane %v12095_v38, 1  ;;  %v12124_v44 = vshll.u32 %v24034_v40, 16  ;;  %v19873_v38 = vld [vmem:[%s24697_s11 + $0x1f8] sm:$0xff]  }
 0xd3f   :  { %17244 = vmatprep.subr.bf16.mxu1 %v19849_v60  ;;  %v12774_v16 = vrot.slane %v12772_v6, 4  ;;  %v12777_v39 = vrot.slane %v12775_v0, 5  ;;  %v19878_v0 = vld [vmem:[%s24697_s11 + $0x128] sm:$0xff]  }
 0xd40   :  { %v12098_v3 = vor.u32 %v12097_v24, %v12093_v43  ;;  %v12765_v43 = vrot.slane %v12763_v57, 5  ;;  %v19881_v57 = vld [vmem:[%s24697_s11 + $0x178] sm:$0xff]  }
 0xd42   :  { %17245 = vmatpush3.bf16.msra.mxu1 %v19851_v55  ;;  %v19872_v55 = vld [vmem:[%s24697_s11 + $0x118] sm:$0xff]  }
 0xd43   :  { %v11963_v34 = vpop.permute.xlu1 %11962  ;;  %v23975_v21 = vld [vmem:[#allocation3 + $0x18] sm:$0xff]  ;;  %17246 = vmatprep.subr.bf16.mxu1 %v19853_v62  ;;  %v12778_v62 = vor.u32 %v12777_v39, %v12774_v16 }
 0xd44   :  { %11975 = vst.msk [vmem:[#allocation3 + $0x28] sm:$0xff] %vm11684_vm12, %v11963_v34  ;;  %12457 = vmatprep.mubr.bf16.mxu1 %v23975_v21  ;;  %v12100_v26 = vshll.u32 %v23975_v21, 16  ;;  %v12112_v29 = vshrl.u32 %v23975_v21, 16  ;;  %v12120_v34 = vshrl.u32 %v23989_v48, 16  ;;  %v12533_v16 = vrot.slane %v23975_v21, 4 }
 0xd45   :  { %12458 = vmatmul.mubr.bf16.gmra.mrb[176].mxu1 %v23966_v50 }
 0xd46   :  { %17247 = vmatpush3.bf16.msra.mxu1 %v19855_v52  ;;  %v12102_v30 = vrot.slane %v12100_v26, 1  ;;  %v12779_v10 = vrot.slane %v12112_v29, 4  ;;  %v12780_v7 = vrot.slane %v12100_v26, 5  ;;  %v12768_v52 = vrot.slane %v12088_v1, 5 }
 0xd47   :  { %17248 = vmatprep.subr.bf16.mxu1 %v19857_v5  ;;  %v19874_v5 = vld [vmem:[%s24697_s11 + $0x160] sm:$0xff]   ;;  %v12126_v1 = vrot.slane %v12124_v44, 1 }
 0xd48   :  { %v12103_v42 = vsel %vm278_vm0, %v12098_v3, %v12102_v30  ;;  %v12114_v45 = vor.u32 %v12112_v29, %v12102_v30  ;;  %v12781_v33 = vor.u32 %v12780_v7, %v12779_v10  ;;  %v19877_v29 = vld [vmem:[%s24697_s11 + $0x168] sm:$0xff]   ;;  %v12783_v10 = vrot.slane %v12120_v34, 4 }
 0xd49   :  { %12288 = vmatprep.mubr.bf16.mxu0 %v12103_v42  ;;  %v12769_v42 = vor.u32 %v12768_v52, %v12767_v27  ;;  %v12784_v7 = vrot.slane %v12108_v36, 5  ;;  %v12530_v27 = vrot.slane %v23966_v50, 4 }
 0xd4a   :  { %12289 = vmatmul.mubr.bf16.vlgmr.msra.gmra.mrb[20].mxu0 %v12091_v46  ;;  %17249 = vmatpush3.bf16.msra.mxu1 %v19859_v47  ;;  %v12782_v26 = vsel %vm9239_vm5, %v12778_v62, %v12781_v33  ;;  %v19875_v47 = vld [vmem:[%s24697_s11 + $0x1b8] sm:$0xff]   ;;  %v12766_v46 = vor.u32 %v12765_v43, %v12762_v51  ;;  %v12791_v62 = vrot.slane %v12136_v23, 4  ;;  %v12529_v43 = vrot.slane %v24029_v9, 4 }
 0xd4b   :  { %17203 = vmatpush3.bf16.msra.mxu0 %v19860_v31  ;;  %v11965_v32 = vpop.permute.xlu1 %11964  ;;  %v24009_v12 = vld [vmem:[#allocation3 + $0x28] sm:$0xff]  ;;  %17250 = vmatprep.subr.bf16.mxu1 %v19861_v14  ;;  %v12122_v31 = vor.u32 %v12120_v34, %v12110_v54  ;;  %v19879_v54 = vld [vmem:[%s24697_s11 + $0x170] sm:$0xff]   ;;  %v12785_v4 = vor.u32 %v12784_v7, %v12783_v10  ;;  %v19884_v10 = vld [vmem:[%s24698_s13 + $0x48] sm:$0xff]  }
 0xd4c   :  { %11976 = vst.msk [vmem:[#allocation3 + $0x38] sm:$0xff] %vm11684_vm12, %v11965_v32  ;;  %12465 = vmatprep.mubr.bf16.mxu1 %v24009_v12  ;;  %17204 = vmatprep.subr.bf16.mxu0 %v19862_v59  ;;  %v12116_v2 = vshll.u32 %v24009_v12, 16  ;;  %v12128_v20 = vshrl.u32 %v24009_v12, 16  ;;  %v19876_v14 = vld [vmem:[%s24697_s11 + $0x120] sm:$0xff]   ;;  %v12770_v6 = vsel %vm9239_vm5, %v12766_v46, %v12769_v42  ;;  %v12537_v51 = vrot.slane %v24009_v12, 4  ;;  %v19885_v7 = vld [vmem:[%s24698_s13 + $0x50] sm:$0xff]  }
 0xd4d   :  { %12466 = vmatmul.mubr.bf16.gmra.mrb[180].mxu1 %v23989_v48  ;;  %v12535_v12 = vrot.slane %v23989_v48, 4 }
 0xd4e   :  { %17251 = vmatpush3.bf16.msra.mxu1 %v19863_v22  ;;  %v12118_v13 = vrot.slane %v12116_v2, 1  ;;  %v12787_v11 = vrot.slane %v12128_v20, 4  ;;  %v12788_v17 = vrot.slane %v12116_v2, 5  ;;  %v12127_v22 = vsel %vm278_vm0, %v12122_v31, %v12126_v1 }
 0xd4f   :  { %17205 = vmatpush3.bf16.msra.mxu0 %v19864_v19  ;;  %17252 = vmatprep.subr.bf16.mxu1 %v19865_v41  ;;  %v12140_v19 = vshll.u32 %v12045_v18, 16  ;;  %v12538_v50 = vsel %vm9060_vm3, %v12533_v16, %v12537_v51 }
 0xd50   :  { %v12119_v25 = vsel %vm278_vm0, %v12114_v45, %v12118_v13  ;;  %17206 = vmatprep.subr.bf16.mxu0 %v19866_v15  ;;  %v12130_v3 = vor.u32 %v12128_v20, %v12118_v13  ;;  %v12789_v41 = vor.u32 %v12788_v17, %v12787_v11  ;;  %v12531_v17 = vsel %vm9060_vm3, %v12529_v43, %v12530_v27 }
 0xd51   :  { %12296 = vmatprep.mubr.bf16.mxu0 %v12119_v25  ;;  %v12142_v45 = vrot.slane %v12140_v19, 1  ;;  %v12138_v25 = vor.u32 %v12136_v23, %v12126_v1 }
 0xd52   :  { %12297 = vmatmul.mubr.bf16.gmra.mrb[24].mxu0 %v12111_v61  ;;  %17253 = vmatpush3.bf16.msra.mxu1 %v19867_v58  ;;  %v12790_v13 = vsel %vm9239_vm5, %v12781_v33, %v12789_v41  ;;  %v12532_v61 = vrot.slane %v24001_v53, 4  ;;  %v12792_v53 = vrot.slane %v12124_v44, 5 }
 0xd53   :  { %17207 = vmatpush3.bf16.msra.mxu0 %v19868_v28  ;;  %v11967_v60 = vpop.permute.xlu1 %11966  ;;  %v24054_v56 = vld [vmem:[#allocation3 + $0x38] sm:$0xff]  ;;  %17254 = vmatprep.subr.bf16.mxu1 %v19869_v8  ;;  %v12143_v21 = vsel %vm278_vm0, %v12138_v25, %v12142_v45  ;;  %v19886_v45 = vld [vmem:[%s24698_s13 + $0x58] sm:$0xff]  }
 0xd54   :  { %11977 = vst.msk [vmem:[#allocation3 + $0x48] sm:$0xff] %vm11684_vm12, %v11967_v60  ;;  %12473 = vmatprep.mubr.bf16.mxu1 %v24054_v56  ;;  %17208 = vmatprep.subr.bf16.mxu0 %v19870_v49  ;;  %v12132_v24 = vshll.u32 %v24054_v56, 16  ;;  %v12144_v32 = vshrl.u32 %v24054_v56, 16  ;;  %v19880_v49 = vld [vmem:[%s24697_s11 + $0x130] sm:$0xff]   ;;  %v12534_v60 = vsel %vm9060_vm3, %v12532_v61, %v12533_v16  ;;  %v12793_v1 = vor.u32 %v12792_v53, %v12791_v62 }
 0xd55   :  { %12474 = vmatmul.mubr.bf16.gmra.mrb[184].mxu1 %v24034_v40  ;;  %v12541_v18 = vrot.slane %v24054_v56, 4  ;;  %v12484_v56 = vld [vmem:[#allocation3 + $0x40] sm:$0xf] }
 0xd56   :  { %17255 = vmatpush3.bf16.msra.mxu1 %v19871_v37  ;;  %v12134_v30 = vrot.slane %v12132_v24, 1  ;;  %12953 = vmatprep.mubr.bf16.mxu1 %v12782_v26  ;;  %v12795_v58 = vrot.slane %v12144_v32, 4  ;;  %v12796_v35 = vrot.slane %v12132_v24, 5  ;;  %v12543_v19 = vrot.slane %v12484_v56, 4 }
 0xd57   :  { %17209 = vmatpush3.bf16.msra.mxu0 %v19872_v55  ;;  %17256 = vmatprep.subr.bf16.mxu1 %v19873_v38  ;;  %v19882_v55 = vld [vmem:[%s24697_s11 + $0x138] sm:$0xff]   ;;  %v12786_v38 = vsel %vm9239_vm5, %v12769_v42, %v12785_v4  ;;  %v12542_v42 = vsel %vm9060_vm3, %v12537_v51, %v12541_v18 }
 0xd58   :  { %v12135_v59 = vsel %vm278_vm0, %v12130_v3, %v12134_v30  ;;  %17210 = vmatprep.subr.bf16.mxu0 %v19874_v5  ;;  %v12146_v28 = vor.u32 %v12144_v32, %v12134_v30  ;;  %v12797_v20 = vor.u32 %v12796_v35, %v12795_v58  ;;  %v12724_v5 = vld [vmem:[#allocation3 + $0x40] sm:$0x1f]  ;;  %v12794_v3 = vsel %vm9239_vm5, %v12785_v4, %v12793_v1  ;;  %v19888_v58 = vld [vmem:[%s24698_s13 + $0x68] sm:$0xff]   ;;  %v19889_v35 = vld [vmem:[%s24698_s13 + $0x70] sm:$0xff]  }
 0xd59   :  { %12304 = vmatprep.mubr.bf16.mxu0 %v12135_v59  ;;  %v12800_v26 = vshrl.u32 %v12724_v5, 16  ;;  %v12803_v11 = vshll.u32 %v12724_v5, 16 }
 0xd5a   :  { %12305 = vmatmul.mubr.bf16.gmra.mrb[28].mxu0 %v12127_v22  ;;  %17257 = vmatpush3.bf16.msra.mxu1 %v19875_v47  ;;  %v12798_v52 = vsel %vm9239_vm5, %v12789_v41, %v12797_v20 }
 0xd5b   :  { %17211 = vmatpush3.bf16.msra.mxu0 %v19876_v14  ;;  %v12046_v2 = vld [vmem:[#allocation3 + $0x48] sm:$0x1]  ;;  %v12802_v30 = vrot.slane %v12800_v26, 4  ;;  %v12805_v47 = vrot.slane %v12803_v11, 5  ;;  %v12536_v14 = vsel %vm9060_vm3, %v12530_v27, %v12535_v12 }
 0xd5c   :  { %17212 = vmatprep.subr.bf16.mxu0 %v19877_v29  ;;  %v12148_v15 = vshll.u32 %v12046_v2, 16  ;;  %v12725_v39 = vld [vmem:[#allocation3 + $0x48] sm:$0x1f]  ;;  %v12539_v29 = vrot.slane %v24034_v40, 4  ;;  %v11993_v40 = vld [vmem:[#allocation6 + $0x24] sm:$0xf] }
 0xd5d   :  { %12954 = vmatmul.mubr.bf16.vlgmr.msra.gmra.mrb[188].mxu1 %v12770_v6  ;;  %v12809_v33 = vshrl.u32 %v12725_v39, 16  ;;  %v12812_v37 = vshll.u32 %v12725_v39, 16  ;;  %v12806_v31 = vor.u32 %v12805_v47, %v12802_v30  ;;  %v12485_v59 = vld [vmem:[#allocation3 + $0x48] sm:$0xf]  ;;  %v11989_v6 = vld [vmem:[#allocation6 + $0x4] sm:$0x1] }
 0xd5e   :  { %v12150_v8 = vrot.slane %v12148_v15, 1  ;;  %12961 = vmatprep.mubr.bf16.mxu1 %v12790_v13  ;;  %v12545_v22 = vrot.slane %v12485_v59, 4  ;;  %v12540_v48 = vsel %vm9060_vm3, %v12535_v12, %v12539_v29  ;;  %v12544_v41 = vsel %vm9060_vm3, %v12539_v29, %v12543_v19  ;;  %v19887_v13 = vld [vmem:[%s24698_s13 + $0x60] sm:$0xff]  }
 0xd5f   :  { %17213 = vmatpush3.bf16.msra.mxu0 %v19878_v0  ;;  %v12811_v24 = vrot.slane %v12809_v33, 4  ;;  %v12814_v34 = vrot.slane %v12812_v37, 5  ;;  %v12807_v46 = vsel %vm9239_vm5, %v12793_v1, %v12806_v31  ;;  %v11994_v15 = vsel %vm24134_vm14, 0, %v11993_v40 }
 0xd60   :  { %v12151_v36 = vsel %vm278_vm0, %v12146_v28, %v12150_v8  ;;  %17214 = vmatprep.subr.bf16.mxu0 %v19879_v54  ;;  %v12546_v32 = vsel %vm9060_vm3, %v12541_v18, %v12545_v22  ;;  %v11990_v23 = vsel %vm24139_vm15, 0, %v11989_v6  ;;  %11995 = vst [vmem:[#allocation6 + $0x24] sm:$0xf] %v11994_v15  ;;  %v19883_v54 = vld [vmem:[%s24698_s13 + $0x40] sm:$0xff]   ;;  %v19894_v28 = vld [vmem:[%s24698_s13 + $0x78] sm:$0xff]  }
 0xd61   :  { %12312 = vmatprep.mubr.bf16.mxu0 %v12151_v36  ;;  %v12815_v44 = vor.u32 %v12814_v34, %v12811_v24  ;;  %11991 = vst [vmem:[#allocation6 + $0x4] sm:$0x1] %v11990_v23  ;;  %v24174_v8 = vld [vmem:[%s24698_s13] sm:$0xff]  }
 0xd62   :  { %12313 = vmatmul.mubr.bf16.gmra.mrb[32].mxu0 %v12143_v21 }
 0xd63   :  { %17215 = vmatpush3.bf16.msra.mxu0 %v19880_v49  ;;  %12683 = vmatprep.mubr.bf16.mxu0 %v12534_v60  ;;  %v12816_v9 = vsel %vm9239_vm5, %v12797_v20, %v12815_v44 }
 0xd64   :  { %17216 = vmatprep.subr.bf16.mxu0 %v19881_v57 }
 0xd65   :  { %12962 = vmatmul.mubr.bf16.gmra.mrb[192].mxu1 %v12786_v38 }
 0xd66   :  { %12969 = vmatprep.mubr.bf16.mxu1 %v12798_v52 }
 0xd67   :  { %17217 = vmatpush3.bf16.msra.mxu0 %v19882_v55 }
 0xd68   :  { %18526 = vmatprep.subr.bf16.mxu0 %v19883_v54 }
 0xd6a   :  { %12684 = vmatmul.mubr.bf16.vlgmr.msra.gmra.mrb[36].mxu0 %v12531_v17 }
 0xd6b   :  { %12691 = vmatprep.mubr.bf16.mxu0 %v12538_v50  ;;  %18527 = vmatpush3.bf16.msra.mxu0 %v19883_v54 }
 0xd6c   :  { %18528 = vmatprep.subr.bf16.mxu0 %v19884_v10 }
 0xd6d   :  { %12970 = vmatmul.mubr.bf16.gmra.mrb[196].mxu1 %v12794_v3 }
 0xd6e   :  { %12977 = vmatprep.mubr.bf16.mxu1 %v12816_v9 }
 0xd6f   :  { %18529 = vmatpush3.bf16.msra.mxu0 %v19884_v10 }
 0xd70   :  { %18530 = vmatprep.subr.bf16.mxu0 %v19885_v7 }
 0xd72   :  { %12692 = vmatmul.mubr.bf16.gmra.mrb[40].mxu0 %v12536_v14 }
 0xd73   :  { %12699 = vmatprep.mubr.bf16.mxu0 %v12542_v42  ;;  %18531 = vmatpush3.bf16.msra.mxu0 %v19885_v7 }
 0xd74   :  { %18532 = vmatprep.subr.bf16.mxu0 %v19886_v45 }
 0xd75   :  { %12978 = vmatmul.mubr.bf16.gmra.mrb[200].mxu1 %v12807_v46 }
 0xd77   :  { %18533 = vmatpush3.bf16.msra.mxu0 %v19886_v45 }
 0xd78   :  { %18534 = vmatprep.subr.bf16.mxu0 %v19887_v13 }
 0xd7a   :  { %12700 = vmatmul.mubr.bf16.gmra.mrb[44].mxu0 %v12540_v48 }
 0xd7b   :  { %12707 = vmatprep.mubr.bf16.mxu0 %v12546_v32  ;;  %18535 = vmatpush3.bf16.msra.mxu0 %v19887_v13 }
 0xd7c   :  { %18536 = vmatprep.subr.bf16.mxu0 %v19888_v58 }
 0xd7f   :  { %18537 = vmatpush3.bf16.msra.mxu0 %v19888_v58 }
 0xd80   :  { %18538 = vmatprep.subr.bf16.mxu0 %v19889_v35 }
 0xd82   :  { %12708 = vmatmul.mubr.bf16.gmra.mrb[48].mxu0 %v12544_v41 }
 0xd83   :  { %18539 = vmatpush3.bf16.msra.mxu0 %v19889_v35 }
 0xd84   :  { %18540 = vmatprep.subr.bf16.mxu0 %v19894_v28 }
 0xd87   :  { %18541 = vmatpush3.bf16.msra.mxu0 %v19894_v28 }
 0xd88   :  { %18550 = vmatprep.subr.bf16.mxu0 %v24174_v8 }
 0xe10   :  { %v17178_v16 = vpop.f32.mrb[172].mxu1 }
 0xe11   :  { %v17179_v39 = vpop.f32.mrb[173].mxu1 }
 0xe12   :  { %v17180_v25 = vadd.f32 %v17179_v39, %v17178_v16  ;;  %v17181_v49 = vpop.f32.mrb[174].mxu1 }
 0xe13   :  { %v17182_v36 = vpop.f32.mrb[175].mxu1 }
 0xe14   :  { %v17183_v4 = vadd.f32 %v17182_v36, %v17181_v49 }
 0xe18   :  { %v17184_v57 = vpop.f32.mrb[176].mxu1 }
 0xe19   :  { %v17185_v61 = vpop.f32.mrb[177].mxu1 }
 0xe1a   :  { %v17186_v21 = vadd.f32 %v17185_v61, %v17184_v57  ;;  %v17187_v20 = vpop.f32.mrb[178].mxu1 }
 0xe1b   :  { %v17188_v33 = vpop.f32.mrb[179].mxu1 }
 0xe1c   :  { %v17189_v37 = vadd.f32 %v17188_v33, %v17187_v20 }
 0xe1d   :  { %v17138_v60 = vpop.f32.mrb[20].mxu0 }
 0xe1e   :  { %v17139_v55 = vpop.f32.mrb[21].mxu0 }
 0xe1f   :  { %v17140_v38 = vadd.f32 %v17139_v55, %v17138_v60  ;;  %v17141_v62 = vpop.f32.mrb[22].mxu0 }
 0xe20   :  { %v17142_v53 = vpop.f32.mrb[23].mxu0  ;;  %v17190_v27 = vpop.f32.mrb[180].mxu1 }
 0xe21   :  { %v12452_v52 = vadd.f32 %v17180_v25, %v17140_v38  ;;  %v17143_v24 = vadd.f32 %v17142_v53, %v17141_v62  ;;  %v17191_v34 = vpop.f32.mrb[181].mxu1 }
 0xe22   :  { %v17192_v5 = vadd.f32 %v17191_v34, %v17190_v27  ;;  %v17193_v51 = vpop.f32.mrb[182].mxu1  ;;  %v24192_v27 = vld [vmem:[%s24699_s12] ss:$0 sm:$0xff] }
 0xe23   :  { %v12455_v43 = vadd.f32 %v17183_v4, %v17143_v24  ;;  %v17194_v1 = vpop.f32.mrb[183].mxu1 }
 0xe24   :  { %v17195_v26 = vadd.f32 %v17194_v1, %v17193_v51 }
 0xe25   :  { %v17144_v11 = vpop.f32.mrb[24].mxu0 }
 0xe26   :  { %v17145_v17 = vpop.f32.mrb[25].mxu0 }
 0xe27   :  { %v17146_v44 = vadd.f32 %v17145_v17, %v17144_v11  ;;  %v17147_v50 = vpop.f32.mrb[26].mxu0 }
 0xe28   :  { %v17148_v3 = vpop.f32.mrb[27].mxu0  ;;  %v17196_v30 = vpop.f32.mrb[184].mxu1 }
 0xe29   :  { %v24177_v47 = vadd.f32 %v17186_v21, %v17146_v44  ;;  %v17149_v12 = vadd.f32 %v17148_v3, %v17147_v50  ;;  %v17197_v9 = vpop.f32.mrb[185].mxu1 }
 0xe2a   :  { %v17198_v18 = vadd.f32 %v17197_v9, %v17196_v30  ;;  %v17199_v31 = vpop.f32.mrb[186].mxu1 }
 0xe2b   :  { %v24179_v14 = vadd.f32 %v17189_v37, %v17149_v12  ;;  %v17200_v42 = vpop.f32.mrb[187].mxu1 }
 0xe2c   :  { %v17201_v59 = vadd.f32 %v17200_v42, %v17199_v31 }
 0xe2d   :  { %v17150_v46 = vpop.f32.mrb[28].mxu0 }
 0xe2e   :  { %v17151_v29 = vpop.f32.mrb[29].mxu0 }
 0xe2f   :  { %v17152_v22 = vadd.f32 %v17151_v29, %v17150_v46  ;;  %v17153_v48 = vpop.f32.mrb[30].mxu0  ;;  %v24199_v29 = vpop.permute.xlu1 %13027 }
 0xe30   :  { %v17154_v32 = vpop.f32.mrb[31].mxu0  ;;  %v17258_v56 = vpop.f32.mrb[188].mxu1 }
 0xe31   :  { %v24181_v19 = vadd.f32 %v17192_v5, %v17152_v22  ;;  %v17155_v41 = vadd.f32 %v17154_v32, %v17153_v48  ;;  %v17259_v6 = vpop.f32.mrb[189].mxu1 }
 0xe32   :  { %v17260_v40 = vadd.f32 %v17259_v6, %v17258_v56  ;;  %v17261_v15 = vpop.f32.mrb[190].mxu1 }
 0xe33   :  { %v24183_v23 = vadd.f32 %v17195_v26, %v17155_v41  ;;  %v17262_v54 = vpop.f32.mrb[191].mxu1 }
 0xe34   :  { %v17263_v10 = vadd.f32 %v17262_v54, %v17261_v15  ;;  %v24205_v15 = vpop.permute.xlu0 %13032 }
 0xe35   :  { %v17156_v7 = vpop.f32.mrb[32].mxu0 }
 0xe36   :  { %v17157_v45 = vpop.f32.mrb[33].mxu0 }
 0xe37   :  { %v17158_v13 = vadd.f32 %v17157_v45, %v17156_v7  ;;  %v17159_v58 = vpop.f32.mrb[34].mxu0 }
 0xe38   :  { %v17160_v35 = vpop.f32.mrb[35].mxu0  ;;  %v17264_v28 = vpop.f32.mrb[192].mxu1 }
 0xe39   :  { %v24185_v16 = vadd.f32 %v17198_v18, %v17158_v13  ;;  %v17161_v39 = vadd.f32 %v17160_v35, %v17159_v58  ;;  %v17265_v25 = vpop.f32.mrb[193].mxu1 }
 0xe3a   :  { %v17266_v49 = vadd.f32 %v17265_v25, %v17264_v28  ;;  %v17267_v36 = vpop.f32.mrb[194].mxu1 }
 0xe3b   :  { %v24187_v4 = vadd.f32 %v17201_v59, %v17161_v39  ;;  %v17268_v57 = vpop.f32.mrb[195].mxu1 }
 0xe3c   :  { %v17269_v61 = vadd.f32 %v17268_v57, %v17267_v36 }
 0xe3d   :  { %v17218_v21 = vpop.f32.mrb[36].mxu0 }
 0xe3e   :  { %v17219_v20 = vpop.f32.mrb[37].mxu0 }
 0xe3f   :  { %v17220_v33 = vadd.f32 %v17219_v20, %v17218_v21  ;;  %v17221_v37 = vpop.f32.mrb[38].mxu0 }
 0xe40   :  { %v17222_v60 = vpop.f32.mrb[39].mxu0  ;;  %v17270_v55 = vpop.f32.mrb[196].mxu1 }
 0xe41   :  { %v12716_v38 = vadd.f32 %v17220_v33, %v12452_v52  ;;  %v17223_v62 = vadd.f32 %v17222_v60, %v17221_v37  ;;  %v17271_v53 = vpop.f32.mrb[197].mxu1  ;;  %v24212_v37 = vpop.permute.xlu1 %13037  ;;  %v13177_v60 = vld [vmem:[#allocation6 + $0x4] sm:$0xf] }
 0xe42   :  { %v17272_v24 = vadd.f32 %v17271_v53, %v17270_v55  ;;  %v17273_v34 = vpop.f32.mrb[198].mxu1 }
 0xe43   :  { %v12986_v5 = vadd.f32 %v17260_v40, %v12716_v38  ;;  %v12717_v51 = vadd.f32 %v17223_v62, %v12455_v43  ;;  %v17274_v1 = vpop.f32.mrb[199].mxu1 }
 0xe44   :  { %v24194_v26 = vadd.f32 %v17274_v1, %v17273_v34 }
 0xe45   :  { %v13001_v11 = vadd.f32 %v24192_v27, %v12986_v5  ;;  %v12987_v17 = vadd.f32 %v17263_v10, %v12717_v51  ;;  %v17224_v44 = vpop.f32.mrb[40].mxu0 }
 0xe46   :  { %v17225_v50 = vpop.f32.mrb[41].mxu0 }
 0xe47   :  { %v13009_v52 = vmul.f32 0.01, %v13001_v11  ;;  %v13002_v3 = vadd.f32 %v24192_v27, %v12987_v17  ;;  %v17226_v30 = vadd.f32 %v17225_v50, %v17224_v44  ;;  %v17227_v12 = vpop.f32.mrb[42].mxu0  ;;  %v24217_v17 = vpop.permute.xlu0 %13042 }
 0xe48   :  { %v17228_v9 = vpop.f32.mrb[43].mxu0  ;;  %v17276_v18 = vpop.f32.mrb[200].mxu1 }
 0xe49   :  { %v13017_v31 = vmax.f32 %v13001_v11, %v13009_v52  ;;  %v13010_v42 = vmul.f32 0.01, %v13002_v3  ;;  %v12718_v59 = vadd.f32 %v17226_v30, %v24177_v47  ;;  %v17229_v43 = vadd.f32 %v17228_v9, %v17227_v12  ;;  %v17277_v46 = vpop.f32.mrb[201].mxu1 }
 0xe4a   :  { %v24201_v22 = vadd.f32 %v17277_v46, %v17276_v18  ;;  %v17279_v48 = vpop.f32.mrb[202].mxu1 }
 0xe4b   :  { %v13065_v32 = vmul.f32 %v24199_v29, %v13017_v31  ;;  %v13018_v56 = vmax.f32 %v13002_v3, %v13010_v42  ;;  %v12988_v41 = vadd.f32 %v17266_v49, %v12718_v59  ;;  %v12719_v6 = vadd.f32 %v17229_v43, %v24179_v14  ;;  %v17280_v40 = vpop.f32.mrb[203].mxu1 }
 0xe4c   :  { %v24207_v54 = vadd.f32 %v17280_v40, %v17279_v48 }
 0xe4d   :  { %v16362_v10 = vpack.c.bf16 %v13065_v32, %v13065_v32  ;;  %v13066_v47 = vmul.f32 %v24205_v15, %v13018_v56  ;;  %v13003_v7 = vadd.f32 %v24192_v27, %v12988_v41  ;;  %v12989_v45 = vadd.f32 %v17269_v61, %v12719_v6  ;;  %v17230_v13 = vpop.f32.mrb[44].mxu0 }
 0xe4e   :  { %v17231_v58 = vpop.f32.mrb[45].mxu0 }
 0xe4f   :  { %v13098_v35 = vshrl.u32 %v16362_v10, 16  ;;  %v16363_v28 = vpack.c.bf16 %v13066_v47, %v13066_v47  ;;  %v13011_v39 = vmul.f32 0.01, %v13003_v7  ;;  %v17233_v25 = vpop.f32.mrb[46].mxu0  ;;  %v13004_v49 = vadd.f32 %v24192_v27, %v12989_v45 }
 0xe50   :  { %v17232_v14 = vadd.f32 %v17231_v58, %v17230_v13  ;;  %v17234_v36 = vpop.f32.mrb[47].mxu0  ;;  %v13101_v21 = vshll.u32 %v16362_v10, 16  ;;  %v24228_v10 = vpop.permute.xlu1 %13047 }
 0xe51   :  { %v13100_v57 = vrot.slane %v13098_v35, 7  ;;  %v13106_v20 = vshrl.u32 %v16363_v28, 16  ;;  %v13019_v33 = vmax.f32 %v13003_v7, %v13011_v39  ;;  %v13012_v55 = vmul.f32 0.01, %v13004_v49 }
 0xe52   :  { %v12720_v61 = vadd.f32 %v17232_v14, %v24181_v19  ;;  %v17235_v38 = vadd.f32 %v17234_v36, %v17233_v25  ;;  %v13109_v34 = vshll.u32 %v16363_v28, 16  ;;  %v13190_v25 = vld [vmem:[#allocation6] sm:$0xf] }
 0xe53   :  { %v13103_v62 = vor.u32 %v13101_v21, %v13100_v57  ;;  %v13108_v53 = vrot.slane %v13106_v20, 7  ;;  %v13067_v5 = vmul.f32 %v24212_v37, %v13019_v33  ;;  %v13020_v51 = vmax.f32 %v13004_v49, %v13012_v55  ;;  %v24233_v49 = vpop.permute.xlu0 %13052 }
 0xe54   :  { %v12990_v1 = vadd.f32 %v17272_v24, %v12720_v61  ;;  %v12721_v11 = vadd.f32 %v17235_v38, %v24183_v23  ;;  %v13104_v44 = vrot.slane %v13100_v57, 4 }
 0xe55   :  { %v13178_v50 = vsel %vm24134_vm14, %v13103_v62, %v13177_v60  ;;  %v13111_v52 = vor.u32 %v13109_v34, %v13108_v53  ;;  %v16364_v3 = vpack.c.bf16 %v13067_v5, %v13067_v5  ;;  %v17236_v30 = vpop.f32.mrb[48].mxu0  ;;  %v13068_v19 = vmul.f32 %v24217_v17, %v13020_v51  ;;  %v24251_v51 = vpop.permute.xlu1 %13057 }
 0xe56   :  { %13179 = vst [vmem:[#allocation6 + $0x4] sm:$0xf] %v13178_v50  ;;  %v13005_v12 = vadd.f32 %v24192_v27, %v12990_v1  ;;  %v12991_v9 = vadd.f32 %v24194_v26, %v12721_v11  ;;  %v17237_v18 = vpop.f32.mrb[49].mxu0  ;;  %v13113_v47 = vrot.slane %v13108_v53, 4 }
 0xe57   :  { %v13112_v23 = vsel %vm20773_vm10, %v13104_v44, %v13111_v52  ;;  %v13115_v24 = vshrl.u32 %v16364_v3, 16  ;;  %v17238_v31 = vadd.f32 %v17237_v18, %v17236_v30  ;;  %v17239_v42 = vpop.f32.mrb[50].mxu0  ;;  %v16365_v0 = vpack.c.bf16 %v13068_v19, %v13068_v19 }
 0xe58   :  { %13180 = vst [vmem:[#allocation6 + $0x8] sm:$0xf] %v13112_v23  ;;  %v13013_v59 = vmul.f32 0.01, %v13005_v12  ;;  %v13006_v43 = vadd.f32 %v24192_v27, %v12991_v9  ;;  %v17240_v46 = vpop.f32.mrb[51].mxu0  ;;  %v13118_v32 = vshll.u32 %v16364_v3, 16  ;;  %v24256_v3 = vpop.permute.xlu0 %13062 }
 0xe59   :  { %v13117_v48 = vrot.slane %v13115_v24, 7  ;;  %v12722_v56 = vadd.f32 %v17238_v31, %v24185_v16  ;;  %v17241_v41 = vadd.f32 %v17240_v46, %v17239_v42  ;;  %v13124_v6 = vshrl.u32 %v16365_v0, 16 }
 0xe5a   :  { %v13021_v26 = vmax.f32 %v13005_v12, %v13013_v59  ;;  %v13014_v40 = vmul.f32 0.01, %v13006_v43  ;;  %v13127_v35 = vshll.u32 %v16365_v0, 16 }
 0xe5b   :  { %v13120_v7 = vor.u32 %v13118_v32, %v13117_v48  ;;  %v12992_v45 = vadd.f32 %v24201_v22, %v12722_v56  ;;  %v12723_v13 = vadd.f32 %v17241_v41, %v24187_v4  ;;  %v13126_v58 = vrot.slane %v13124_v6, 7 }
 0xe5c   :  { %v13069_v28 = vmul.f32 %v24228_v10, %v13021_v26  ;;  %v13022_v39 = vmax.f32 %v13006_v43, %v13014_v40  ;;  %v13122_v22 = vrot.slane %v13117_v48, 4 }
 0xe5d   :  { %v13121_v16 = vsel %vm20773_vm10, %v13113_v47, %v13120_v7  ;;  %v13007_v14 = vadd.f32 %v24192_v27, %v12992_v45  ;;  %v12993_v36 = vadd.f32 %v24207_v54, %v12723_v13  ;;  %v24239_v57 = vld [vmem:[#allocation6 + $0x4] sm:$0xf]  ;;  %v13129_v4 = vor.u32 %v13127_v35, %v13126_v58 }
 0xe5e   :  { %13181 = vst [vmem:[#allocation6 + $0xc] sm:$0xf] %v13121_v16  ;;  %v16366_v21 = vpack.c.bf16 %v13069_v28, %v13069_v28  ;;  %v13070_v20 = vmul.f32 %v24233_v49, %v13022_v39  ;;  %v24244_v55 = vcombine.low %v13190_v25, %v24239_v57  ;;  %v13131_v30 = vrot.slane %v13126_v58, 4  ;;  %v13187_v16 = vld [vmem:[#allocation6 + $0x24] sm:$0x1] }
 0xe5f   :  { %v13015_v33 = vmul.f32 0.01, %v13007_v14  ;;  %v13008_v60 = vadd.f32 %v24192_v27, %v12993_v36  ;;  %v13130_v61 = vsel %vm20773_vm10, %v13122_v22, %v13129_v4  ;;  %v24248_v54 = vld [vmem:[#allocation6 + $0x8] sm:$0xf] }
 0xe60   :  { %v13133_v38 = vshrl.u32 %v16366_v21, 16  ;;  %v16367_v62 = vpack.c.bf16 %v13070_v20, %v13070_v20  ;;  %13182 = vst [vmem:[#allocation6 + $0x10] sm:$0xf] %v13130_v61  ;;  %v13258_v5 = vshll.u32 %v24244_v55, 16  ;;  %v13136_v11 = vshll.u32 %v16366_v21, 16 }
 0xe61   :  { %v13023_v53 = vmax.f32 %v13007_v14, %v13015_v33  ;;  %v13016_v34 = vmul.f32 0.01, %v13008_v60  ;;  %v16159_v52 = vcombine.low %v24239_v57, %v24248_v54  ;;  %v13256_v41 = vshrl.u32 %v24244_v55, 16  ;;  %v24280_v20 = vld [vmem:[#allocation6 + $0x8] sm:$0xf] }
 0xe62   :  { %v13135_v1 = vrot.slane %v13133_v38, 7  ;;  %v13142_v27 = vshrl.u32 %v16367_v62, 16  ;;  %v13145_v9 = vshll.u32 %v16367_v62, 16  ;;  %v13260_v31 = vrot.slane %v13258_v5, 1 }
 0xe63   :  { %v13071_v44 = vmul.f32 %v24251_v51, %v13023_v53  ;;  %v13024_v50 = vmax.f32 %v13008_v60, %v13016_v34 }
 0xe64   :  { %v13138_v19 = vor.u32 %v13136_v11, %v13135_v1  ;;  %v13144_v12 = vrot.slane %v13142_v27, 7  ;;  %v13140_v0 = vrot.slane %v13135_v1, 4  ;;  %v13261_v45 = vor.u32 %v13260_v31, %v13256_v41  ;;  %v19897_v31 = vld [vmem:[%s24698_s13 + $0x10] sm:$0xff]  }
 0xe65   :  { %v16368_v18 = vpack.c.bf16 %v13071_v44, %v13071_v44  ;;  %v13072_v23 = vmul.f32 %v24256_v3, %v13024_v50  ;;  %v24259_v24 = vld [vmem:[#allocation6 + $0xc] sm:$0xf]  ;;  %v19896_v50 = vld [vmem:[%s24698_s13 + $0x8] sm:$0xff]  }
 0xe66   :  { %v13139_v42 = vsel %vm20773_vm10, %v13131_v30, %v13138_v19  ;;  %v13147_v59 = vor.u32 %v13145_v9, %v13144_v12  ;;  %v24265_v43 = vcombine.low %v24248_v54, %v24259_v24  ;;  %v13149_v58 = vrot.slane %v13144_v12, 4  ;;  %v24275_v25 = vld [vmem:[#allocation6 + $0xc] sm:$0xf]  ;;  %v13829_v54 = vld [vmem:[#allocation6 + $0x4] sm:$0xf] }
 0xe67   :  { %13183 = vst [vmem:[#allocation6 + $0x14] sm:$0xf] %v13139_v42  ;;  %v13151_v46 = vshrl.u32 %v16368_v18, 16  ;;  %v16369_v48 = vpack.c.bf16 %v13072_v23, %v13072_v23  ;;  %v24269_v56 = vld [vmem:[#allocation6 + $0x10] sm:$0xf]  ;;  %v13154_v40 = vshll.u32 %v16368_v18, 16  ;;  %v16241_v38 = vcombine.low %v24280_v20, %v24275_v25 }
 0xe68   :  { %v13148_v32 = vsel %vm20773_vm10, %v13140_v0, %v13147_v59  ;;  %v13263_v6 = vshll.u32 %v24265_v43, 16  ;;  %v16160_v7 = vcombine.low %v24259_v24, %v24269_v56  ;;  %v24284_v60 = vld [vmem:[#allocation6 + $0x10] sm:$0xf]  ;;  %v13267_v11 = vshrl.u32 %v24265_v43, 16 }
 0xe69   :  { %13184 = vst [vmem:[#allocation6 + $0x18] sm:$0xf] %v13148_v32  ;;  %v13153_v26 = vrot.slane %v13151_v46, 7  ;;  %v13160_v47 = vshrl.u32 %v16369_v48, 16  ;;  %v13163_v39 = vshll.u32 %v16369_v48, 16 }
 0xe6a   :  { %v13265_v13 = vrot.slane %v13263_v6, 1 }
 0xe6b   :  { %v13156_v35 = vor.u32 %v13154_v40, %v13153_v26  ;;  %v13162_v28 = vrot.slane %v13160_v47, 7  ;;  %v13158_v22 = vrot.slane %v13153_v26, 4  ;;  %v19901_v40 = vld [vmem:[%s24698_s13 + $0x18] sm:$0xff]  }
 0xe6c   :  { %v13266_v14 = vsel %vm278_vm0, %v13261_v45, %v13265_v13  ;;  %v13269_v2 = vor.u32 %v13267_v11, %v13265_v13  ;;  %v19902_v45 = vld [vmem:[%s24698_s13 + $0x20] sm:$0xff]   ;;  %v19903_v13 = vld [vmem:[%s24698_s13 + $0x28] sm:$0xff]   ;;  %v19914_v11 = vld [vmem:[%s24698_s13 + $0xb8] sm:$0xff]  }
 0xe6d   :  { %v13157_v36 = vsel %vm20773_vm10, %v13149_v58, %v13156_v35  ;;  %v13165_v4 = vor.u32 %v13163_v39, %v13162_v28  ;;  %v13167_v21 = vrot.slane %v13162_v28, 4  ;;  %18542 = vmatprep.mubr.bf16.mxu0 %v13266_v14  ;;  %v19904_v58 = vld [vmem:[%s24698_s13 + $0x30] sm:$0xff]   ;;  %v19905_v35 = vld [vmem:[%s24698_s13 + $0x38] sm:$0xff]   ;;  %v19907_v28 = vld [vmem:[%s24698_s13 + $0x88] sm:$0xff]  }
 0xe6e   :  { %13185 = vst [vmem:[#allocation6 + $0x1c] sm:$0xf] %v13157_v36  ;;  %v24282_v33 = vld [vmem:[#allocation6 + $0x14] sm:$0xf]  ;;  %v13525_v39 = vld [vmem:[#allocation6] sm:$0xe] }
 0xe6f   :  { %v24286_v61 = vld [vmem:[#allocation6 + $0x14] sm:$0xf]  ;;  %v13166_v62 = vsel %vm20773_vm10, %v13158_v22, %v13165_v4  ;;  %v13188_v53 = vsel %vm24139_vm15, %v13167_v21, %v13187_v16  ;;  %v24296_v34 = vcombine.low %v24269_v56, %v24282_v33  ;;  %v19908_v16 = vld [vmem:[%s24698_s13 + $0x90] sm:$0xff]   ;;  %v16134_v14 = vcombine.low %v13525_v39, %v24239_v57  ;;  %v19910_v4 = vld [vmem:[%s24698_s13 + $0x98] sm:$0xff]  }
 0xe70   :  { %v16242_v5 = vcombine.low %v24284_v60, %v24286_v61  ;;  %13186 = vst [vmem:[#allocation6 + $0x20] sm:$0xf] %v13166_v62  ;;  %13189 = vst [vmem:[#allocation6 + $0x24] sm:$0x1] %v13188_v53  ;;  %v24300_v1 = vld [vmem:[#allocation6 + $0x18] sm:$0xf] }
 0xe71   :  { %v13271_v27 = vshll.u32 %v24296_v34, 16  ;;  %v16161_v63 = vcombine.low %v24282_v33, %v24300_v1  ;;  %v24309_v30 = vld [vmem:[#allocation6 + $0x18] sm:$0xf]  ;;  %v13275_v42 = vshrl.u32 %v24296_v34, 16  ;;  %v13547_v36 = vrot.slane %v24265_v43, 1  ;;  %v19911_v62 = vld [vmem:[%s24698_s13 + $0xa0] sm:$0xff]  }
 0xe72   :  { %v13546_v22 = vrot.slane %v16134_v14, 1  ;;  %v19913_v53 = vld [vmem:[%s24698_s13 + $0xb0] sm:$0xff]   ;;  %v19923_v57 = vld [vmem:[%s24698_s13 + $0xf8] sm:$0xff]  }
 0xe73   :  { %v13273_v44 = vrot.slane %v13271_v27, 1  ;;  %v19915_v27 = vld [vmem:[%s24698_s13 + $0xc0] sm:$0xff]  }
 0xe74   :  { %v13548_v21 = vsel %vm3792_vm11, %v13546_v22, %v13547_v36  ;;  %v19937_v22 = vld [vmem:[%s24698_s13 + $0x140] sm:$0xff]  }
 0xe75   :  { %v13274_v19 = vsel %vm278_vm0, %v13269_v2, %v13273_v44  ;;  %v24312_v12 = vld [vmem:[#allocation6 + $0x1c] sm:$0xf]  ;;  %v13277_v46 = vor.u32 %v13275_v42, %v13273_v44  ;;  %v13549_v2 = vrot.slane %v24296_v34, 1  ;;  %v19919_v42 = vld [vmem:[%s24698_s13 + $0xd8] sm:$0xff]  }
 0xe76   :  { %v24314_v9 = vld [vmem:[#allocation6 + $0x1c] sm:$0xf]  ;;  %18543 = vmatmul.mubr.bf16.vlgmr.msra.gmra.mrb[52].mxu0 %v13274_v19  ;;  %v24318_v18 = vcombine.low %v24300_v1, %v24312_v12  ;;  %v19933_v1 = vld [vmem:[%s24698_s13 + $0x120] sm:$0xff]  }
 0xe77   :  { %v16243_v23 = vcombine.low %v24309_v30, %v24314_v9  ;;  %18551 = vmatpush3.bf16.msra.mxu0 %v24174_v8  ;;  %v24328_v59 = vld [vmem:[#allocation6 + $0x20] ss:$0 sps:$4 sm:$0x11]   ;;  %v13550_v19 = vsel %vm3792_vm11, %v13547_v36, %v13549_v2 }
 0xe78   :  { %18552 = vmatprep.subr.bf16.mxu0 %v19896_v50  ;;  %v13279_v0 = vshll.u32 %v24318_v18, 16  ;;  %v13283_v32 = vshrl.u32 %v24318_v18, 16  ;;  %v13287_v41 = vshll.u32 %v24328_v59, 16  ;;  %v13551_v44 = vrot.slane %v24318_v18, 1 }
 0xe7a   :  { %v13281_v48 = vrot.slane %v13279_v0, 1  ;;  %v13289_v26 = vrot.slane %v13287_v41, 1  ;;  %v24419_v41 = vcombine.low %v24275_v25, %v24284_v60  ;;  %v19957_v25 = vld [vmem:[%s24698_s13 + $0x1b8] sm:$0xff]  }
 0xe7b   :  { %18553 = vmatpush3.bf16.msra.mxu0 %v19896_v50  ;;  %v19916_v50 = vld [vmem:[%s24698_s13 + $0xc8] sm:$0xff]  }
 0xe7c   :  { %18554 = vmatprep.subr.bf16.mxu0 %v19897_v31  ;;  %v13282_v8 = vsel %vm278_vm0, %v13277_v46, %v13281_v48  ;;  %v13285_v6 = vor.u32 %v13283_v32, %v13281_v48  ;;  %v19920_v46 = vld [vmem:[%s24698_s13 + $0xe0] sm:$0xff]   ;;  %v19922_v48 = vld [vmem:[%s24698_s13 + $0xf0] sm:$0xff]   ;;  %v16187_v32 = vcombine.low %v13829_v54, %v24280_v20 }
 0xe7d   :  { %18546 = vmatprep.mubr.bf16.mxu0 %v13282_v8  ;;  %v19926_v8 = vld [vmem:[%s24698_s13 + $0x108] sm:$0xff]  }
 0xe7e   :  { %v13290_v47 = vsel %vm278_vm0, %v13285_v6, %v13289_v26  ;;  %v13881_v6 = vshll.u32 %v16187_v32, 16  ;;  %v13886_v26 = vshll.u32 %v24419_v41, 16 }
 0xe7f   :  { %18555 = vmatpush3.bf16.msra.mxu0 %v19897_v31  ;;  %v13552_v31 = vsel %vm3792_vm11, %v13549_v2, %v13551_v44 }
 0xe80   :  { %18547 = vmatmul.mubr.bf16.gmra.mrb[56].mxu0 %v13290_v47  ;;  %18556 = vmatprep.subr.bf16.mxu0 %v19901_v40  ;;  %v13883_v47 = vrot.slane %v13881_v6, 1  ;;  %v19949_v6 = vld [vmem:[%s24698_s13 + $0x180] sm:$0xff]  }
 0xe81   :  { %18566 = vmatprep.mubr.bf16.mxu0 %v24244_v55  ;;  %v19906_v55 = vld [vmem:[%s24698_s13 + $0x80] sm:$0xff]  }
 0xe83   :  { %18557 = vmatpush3.bf16.msra.mxu0 %v19901_v40  ;;  %v19927_v40 = vld [vmem:[%s24698_s13 + $0x110] sm:$0xff]  }
 0xe84   :  { %18558 = vmatprep.subr.bf16.mxu0 %v19902_v45 }
 0xe87   :  { %18559 = vmatpush3.bf16.msra.mxu0 %v19902_v45  ;;  %v13680_v45 = vld [vmem:[#allocation6 + $0x20] sm:$0xf] }
 0xe88   :  { %18560 = vmatprep.subr.bf16.mxu0 %v19903_v13  ;;  %v16162_v24 = vcombine.low %v24312_v12, %v13680_v45  ;;  %v24445_v12 = vld [vmem:[#allocation6 + $0x20] sm:$0xf] }
 0xe8b   :  { %18561 = vmatpush3.bf16.msra.mxu0 %v19903_v13  ;;  %v13879_v13 = vshrl.u32 %v16187_v32, 16  ;;  %v19946_v32 = vld [vmem:[%s24698_s13 + $0x168] sm:$0xff]  }
 0xe8c   :  { %18562 = vmatprep.subr.bf16.mxu0 %v19904_v58 }
 0xe8d   :  { %v13884_v56 = vor.u32 %v13883_v47, %v13879_v13  ;;  %v19950_v47 = vld [vmem:[%s24698_s13 + $0x188] sm:$0xff]  }
 0xe8f   :  { %18563 = vmatpush3.bf16.msra.mxu0 %v19904_v58  ;;  %v13888_v58 = vrot.slane %v13886_v26, 1 }
 0xe90   :  { %18564 = vmatprep.subr.bf16.mxu0 %v19905_v35 }
 0xe91   :  { %v13889_v33 = vsel %vm278_vm0, %v13884_v56, %v13888_v58  ;;  %v19953_v56 = vld [vmem:[%s24698_s13 + $0x198] sm:$0xff]  }
 0xe93   :  { %18565 = vmatpush3.bf16.msra.mxu0 %v19905_v35  ;;  %v24449_v35 = vcombine.low %v24286_v61, %v24309_v30 }
 0xe94   :  { %18574 = vmatprep.subr.bf16.mxu0 %v19906_v55 }
 0xe95   :  { %v13894_v39 = vshll.u32 %v24449_v35, 16  ;;  %v14063_v26 = vrot.slane %v24449_v35, 1 }
 0xe96   :  { %18567 = vmatmul.mubr.bf16.vlgmr.msra.gmra.mrb[52].mxu0 %v24265_v43  ;;  %v19912_v43 = vld [vmem:[%s24698_s13 + $0xa8] sm:$0xff]  }
 0xe97   :  { %18570 = vmatprep.mubr.bf16.mxu0 %v24296_v34  ;;  %18575 = vmatpush3.bf16.msra.mxu0 %v19906_v55  ;;  %v19917_v34 = vld [vmem:[%s24698_s13 + $0xd0] sm:$0xff]   ;;  %v13896_v36 = vrot.slane %v13894_v39, 1  ;;  %v19960_v39 = vld [vmem:[%s24698_s13 + $0x1c8] sm:$0xff]  }
 0xe98   :  { %18576 = vmatprep.subr.bf16.mxu0 %v19907_v28  ;;  %v19935_v55 = vld [vmem:[%s24698_s13 + $0x130] sm:$0xff]  }
 0xe9b   :  { %18577 = vmatpush3.bf16.msra.mxu0 %v19907_v28  ;;  %v24456_v28 = vcombine.low %v24314_v9, %v24445_v12  ;;  %v19966_v9 = vld [vmem:[%s24698_s13 + $0x1e0] sm:$0xff]  }
 0xe9c   :  { %18578 = vmatprep.subr.bf16.mxu0 %v19908_v16 }
 0xe9d   :  { %v13902_v14 = vshll.u32 %v24456_v28, 16 }
 0xe9e   :  { %18571 = vmatmul.mubr.bf16.gmra.mrb[56].mxu0 %v24318_v18  ;;  %v13553_v18 = vrot.slane %v24328_v59, 1  ;;  %v19921_v59 = vld [vmem:[%s24698_s13 + $0xe8] sm:$0xff]  }
 0xe9f   :  { %18579 = vmatpush3.bf16.msra.mxu0 %v19908_v16  ;;  %18590 = vmatprep.mubr.bf16.mxu0 %v13548_v21  ;;  %v19936_v16 = vld [vmem:[%s24698_s13 + $0x138] sm:$0xff]   ;;  %v13898_v21 = vshrl.u32 %v24449_v35, 16  ;;  %v19958_v35 = vld [vmem:[%s24698_s13 + $0x1c0] sm:$0xff]  }
 0xea0   :  { %18580 = vmatprep.subr.bf16.mxu0 %v19910_v4  ;;  %v13554_v0 = vsel %vm3792_vm11, %v13551_v44, %v13553_v18 }
 0xea3   :  { %18581 = vmatpush3.bf16.msra.mxu0 %v19910_v4  ;;  %v13890_v4 = vshrl.u32 %v24419_v41, 16 }
 0xea4   :  { %18582 = vmatprep.subr.bf16.mxu0 %v19911_v62 }
 0xea7   :  { %18583 = vmatpush3.bf16.msra.mxu0 %v19911_v62  ;;  %v13904_v62 = vrot.slane %v13902_v14, 1 }
 0xea8   :  { %18584 = vmatprep.subr.bf16.mxu0 %v19912_v43 }
 0xeab   :  { %18585 = vmatpush3.bf16.msra.mxu0 %v19912_v43  ;;  %v13892_v43 = vor.u32 %v13890_v4, %v13888_v58  ;;  %v19951_v58 = vld [vmem:[%s24698_s13 + $0x190] sm:$0xff]   ;;  %v14194_v4 = vld [vmem:[#allocation6 + $0x24] sm:$0xf] }
 0xeac   :  { %18586 = vmatprep.subr.bf16.mxu0 %v19913_v53  ;;  %v16244_v60 = vcombine.low %v24445_v12, %v14194_v4  ;;  %v24560_v12 = vld [vmem:[#allocation6 + $0x18] sm:$0xff]  }
 0xead   :  { %v13897_v2 = vsel %vm278_vm0, %v13892_v43, %v13896_v36  ;;  %v19968_v43 = vld [vmem:[%s24698_s13 + $0x1f0] sm:$0xff]  }
 0xeaf   :  { %18587 = vmatpush3.bf16.msra.mxu0 %v19913_v53  ;;  %v19941_v53 = vld [vmem:[#allocation6 + $0x24] ss:$0 sps:$4 sm:$0x11]  }
 0xeb0   :  { %18588 = vmatprep.subr.bf16.mxu0 %v19914_v11 }
 0xeb3   :  { %18589 = vmatpush3.bf16.msra.mxu0 %v19914_v11  ;;  %v13900_v11 = vor.u32 %v13898_v21, %v13896_v36  ;;  %v19961_v36 = vld [vmem:[%s24698_s13 + $0x1d0] sm:$0xff]  }
 0xeb4   :  { %18598 = vmatprep.subr.bf16.mxu0 %v19915_v27 }
 0xeb5   :  { %v13905_v44 = vsel %vm278_vm0, %v13900_v11, %v13904_v62  ;;  %v24566_v11 = vld [vmem:[#allocation6 + $0x20] sm:$0xff]  }
 0xeb6   :  { %18591 = vmatmul.mubr.bf16.vlgmr.msra.gmra.mrb[52].mxu0 %v13550_v19  ;;  %v13910_v19 = vshll.u32 %v19941_v53, 16 }
 0xeb7   :  { %18594 = vmatprep.mubr.bf16.mxu0 %v13552_v31  ;;  %18599 = vmatpush3.bf16.msra.mxu0 %v19915_v27  ;;  %v19940_v27 = vld [vmem:[%s24698_s13 + $0x148] sm:$0xff]   ;;  %v14039_v31 = vld [vmem:[#allocation6 + $0x4] sm:$0xe] }
 0xeb8   :  { %18600 = vmatprep.subr.bf16.mxu0 %v19916_v50  ;;  %v16216_v18 = vcombine.low %v14039_v31, %v24280_v20  ;;  %v24528_v20 = vld [vmem:[#allocation6 + $0xc] sm:$0xf] }
 0xebb   :  { %18601 = vmatpush3.bf16.msra.mxu0 %v19916_v50  ;;  %v13906_v50 = vshrl.u32 %v24456_v28, 16 }
 0xebc   :  { %18602 = vmatprep.subr.bf16.mxu0 %v19917_v34 }
 0xebe   :  { %18595 = vmatmul.mubr.bf16.gmra.mrb[56].mxu0 %v13554_v0  ;;  %v14061_v0 = vrot.slane %v24419_v41, 1  ;;  %v19947_v41 = vld [vmem:[%s24698_s13 + $0x170] sm:$0xff]  }
 0xebf   :  { %18603 = vmatpush3.bf16.msra.mxu0 %v19917_v34  ;;  %18614 = vmatprep.mubr.bf16.mxu0 %v16159_v52  ;;  %v19924_v52 = vld [vmem:[%s24698_s13 + $0x100] sm:$0xff]   ;;  %v19942_v34 = vld [vmem:[%s24698_s13 + $0x150] sm:$0xff]  }
 0xec0   :  { %18604 = vmatprep.subr.bf16.mxu0 %v19919_v42  ;;  %v14064_v45 = vsel %vm3792_vm11, %v14061_v0, %v14063_v26 }
 0xec3   :  { %18605 = vmatpush3.bf16.msra.mxu0 %v19919_v42  ;;  %v13908_v42 = vor.u32 %v13906_v50, %v13904_v62  ;;  %v19970_v50 = vld [vmem:[%s24698_s13 + $0x200] sm:$0xff]  }
 0xec4   :  { %18606 = vmatprep.subr.bf16.mxu0 %v19920_v46 }
 0xec7   :  { %18607 = vmatpush3.bf16.msra.mxu0 %v19920_v46  ;;  %v13912_v46 = vrot.slane %v13910_v19, 1  ;;  %v14412_v19 = vshrl.u32 %v24560_v12, 16 }
 0xec8   :  { %18608 = vmatprep.subr.bf16.mxu0 %v19921_v59 }
 0xecb   :  { %18609 = vmatpush3.bf16.msra.mxu0 %v19921_v59  ;;  %v14060_v59 = vrot.slane %v16216_v18, 1 }
 0xecc   :  { %18610 = vmatprep.subr.bf16.mxu0 %v19922_v48 }
 0xecd   :  { %v14062_v54 = vsel %vm3792_vm11, %v14060_v59, %v14061_v0  ;;  %v19973_v0 = vld [vmem:[#allocation6 + $0x28] ss:$0 sps:$4 sm:$0x11]  }
 0xecf   :  { %18611 = vmatpush3.bf16.msra.mxu0 %v19922_v48  ;;  %v19944_v48 = vld [vmem:[%s24698_s13 + $0x158] sm:$0xff]  }
 0xed0   :  { %18612 = vmatprep.subr.bf16.mxu0 %v19923_v57 }
 0xed3   :  { %18613 = vmatpush3.bf16.msra.mxu0 %v19923_v57  ;;  %v13913_v57 = vsel %vm278_vm0, %v13908_v42, %v13912_v46  ;;  %v19972_v46 = vld [vmem:[%s24698_s13 + $0x208] sm:$0xff]  }
 0xed4   :  { %18622 = vmatprep.subr.bf16.mxu0 %v19924_v52 }
 0xed6   :  { %18615 = vmatmul.mubr.bf16.vlgmr.msra.gmra.mrb[52].mxu0 %v16160_v7  ;;  %v19932_v7 = vld [vmem:[%s24698_s13 + $0x118] sm:$0xff]  }
 0xed7   :  { %18618 = vmatprep.mubr.bf16.mxu0 %v16161_v63  ;;  %18623 = vmatpush3.bf16.msra.mxu0 %v19924_v52  ;;  %v19934_v63 = vld [vmem:[%s24698_s13 + $0x128] sm:$0xff]   ;;  %v19945_v52 = vld [vmem:[%s24698_s13 + $0x160] sm:$0xff]  }
 0xed8   :  { %18624 = vmatprep.subr.bf16.mxu0 %v19926_v8 }
 0xedb   :  { %18625 = vmatpush3.bf16.msra.mxu0 %v19926_v8  ;;  %v19948_v8 = vld [vmem:[%s24698_s13 + $0x178] sm:$0xff]  }
 0xedc   :  { %18626 = vmatprep.subr.bf16.mxu0 %v19927_v40 }
 0xede   :  { %18619 = vmatmul.mubr.bf16.gmra.mrb[56].mxu0 %v16162_v24  ;;  %v14067_v24 = vrot.slane %v19941_v53, 1  ;;  %v14408_v53 = vshll.u32 %v24560_v12, 16 }
 0xedf   :  { %18627 = vmatpush3.bf16.msra.mxu0 %v19927_v40  ;;  %18638 = vmatprep.mubr.bf16.mxu0 %v13889_v33  ;;  %v14065_v40 = vrot.slane %v24456_v28, 1  ;;  %v19954_v33 = vld [vmem:[%s24698_s13 + $0x1a0] sm:$0xff]   ;;  %v24534_v28 = vld [vmem:[#allocation6 + $0x10] sm:$0xff]  }
 0xee0   :  { %18628 = vmatprep.subr.bf16.mxu0 %v19932_v7  ;;  %v14400_v14 = vshll.u32 %v24534_v28, 16  ;;  %v14404_v31 = vshrl.u32 %v24534_v28, 16 }
 0xee1   :  { %v14066_v13 = vsel %vm3792_vm11, %v14063_v26, %v14065_v40  ;;  %v14575_v26 = vrot.slane %v24534_v28, 1 }
 0xee2   :  { %v14402_v62 = vrot.slane %v14400_v14, 1 }
 0xee3   :  { %18629 = vmatpush3.bf16.msra.mxu0 %v19932_v7  ;;  %v14068_v7 = vsel %vm3792_vm11, %v14065_v40, %v14067_v24  ;;  %v19978_v24 = vld [vmem:[%s24698_s13 + $0x228] sm:$0xff]  }
 0xee4   :  { %18630 = vmatprep.subr.bf16.mxu0 %v19933_v1  ;;  %v14406_v42 = vor.u32 %v14404_v31, %v14402_v62 }
 0xee7   :  { %18631 = vmatpush3.bf16.msra.mxu0 %v19933_v1  ;;  %v19955_v1 = vld [vmem:[%s24698_s13 + $0x1a8] sm:$0xff]  }
 0xee8   :  { %18632 = vmatprep.subr.bf16.mxu0 %v19934_v63 }
 0xeeb   :  { %18633 = vmatpush3.bf16.msra.mxu0 %v19934_v63  ;;  %v19956_v63 = vld [vmem:[%s24698_s13 + $0x1b0] sm:$0xff]  }
 0xeec   :  { %18634 = vmatprep.subr.bf16.mxu0 %v19935_v55 }
 0xeef   :  { %18635 = vmatpush3.bf16.msra.mxu0 %v19935_v55 }
 0xef0   :  { %18636 = vmatprep.subr.bf16.mxu0 %v19936_v16 }
 0xef3   :  { %18637 = vmatpush3.bf16.msra.mxu0 %v19936_v16 }
 0xef4   :  { %18646 = vmatprep.subr.bf16.mxu0 %v19937_v22 }
 0xef6   :  { %18639 = vmatmul.mubr.bf16.vlgmr.msra.gmra.mrb[52].mxu0 %v13897_v2  ;;  %v14410_v2 = vrot.slane %v14408_v53, 1 }
 0xef7   :  { %18642 = vmatprep.mubr.bf16.mxu0 %v13905_v44  ;;  %18647 = vmatpush3.bf16.msra.mxu0 %v19937_v22  ;;  %v14416_v44 = vshll.u32 %v24566_v11, 16 }
 0xef8   :  { %18648 = vmatprep.subr.bf16.mxu0 %v19940_v27  ;;  %v14411_v59 = vsel %vm278_vm0, %v14406_v42, %v14410_v2 }
 0xef9   :  { %v14418_v18 = vrot.slane %v14416_v44, 1 }
 0xefb   :  { %18649 = vmatpush3.bf16.msra.mxu0 %v19940_v27  ;;  %v19969_v27 = vld [vmem:[%s24698_s13 + $0x1f8] sm:$0xff]  }
 0xefc   :  { %18650 = vmatprep.subr.bf16.mxu0 %v19942_v34 }
 0xefe   :  { %18643 = vmatmul.mubr.bf16.gmra.mrb[56].mxu0 %v13913_v57 }
 0xeff   :  { %18651 = vmatpush3.bf16.msra.mxu0 %v19942_v34  ;;  %18662 = vmatprep.mubr.bf16.mxu0 %v14062_v54  ;;  %v14414_v34 = vor.u32 %v14412_v19, %v14410_v2  ;;  %v14420_v54 = vshrl.u32 %v24566_v11, 16 }
 0xf00   :  { %18652 = vmatprep.subr.bf16.mxu0 %v19944_v48 }
 0xf01   :  { %v14419_v57 = vsel %vm278_vm0, %v14414_v34, %v14418_v18 }
 0xf03   :  { %18653 = vmatpush3.bf16.msra.mxu0 %v19944_v48  ;;  %v14424_v48 = vshll.u32 %v19973_v0, 16 }
 0xf04   :  { %18654 = vmatprep.subr.bf16.mxu0 %v19945_v52 }
 0xf07   :  { %18655 = vmatpush3.bf16.msra.mxu0 %v19945_v52  ;;  %v14553_v52 = vld [vmem:[#allocation6 + $0x8] sm:$0xe] }
 0xf08   :  { %18656 = vmatprep.subr.bf16.mxu0 %v19946_v32 }
 0xf0b   :  { %18657 = vmatpush3.bf16.msra.mxu0 %v19946_v32  ;;  %v19974_v32 = vld [vmem:[%s24698_s13 + $0x210] sm:$0xff]  }
 0xf0c   :  { %18658 = vmatprep.subr.bf16.mxu0 %v19947_v41 }
 0xf0f   :  { %18659 = vmatpush3.bf16.msra.mxu0 %v19947_v41  ;;  %v16298_v41 = vcombine.low %v14553_v52, %v24528_v20 }
 0xf10   :  { %18660 = vmatprep.subr.bf16.mxu0 %v19948_v8 }
 0xf11   :  { %v14574_v40 = vrot.slane %v16298_v41, 1 }
 0xf13   :  { %18661 = vmatpush3.bf16.msra.mxu0 %v19948_v8  ;;  %v14422_v8 = vor.u32 %v14420_v54, %v14418_v18 }
 0xf14   :  { %18670 = vmatprep.subr.bf16.mxu0 %v19949_v6 }
 0xf16   :  { %18663 = vmatmul.mubr.bf16.vlgmr.msra.gmra.mrb[52].mxu0 %v14064_v45 }
 0xf17   :  { %18666 = vmatprep.mubr.bf16.mxu0 %v14066_v13  ;;  %18671 = vmatpush3.bf16.msra.mxu0 %v19949_v6  ;;  %v14426_v6 = vrot.slane %v14424_v48, 1  ;;  %v14576_v13 = vsel %vm3792_vm11, %v14574_v40, %v14575_v26 }
 0xf18   :  { %18672 = vmatprep.subr.bf16.mxu0 %v19950_v47 }
 0xf19   :  { %v14427_v45 = vsel %vm278_vm0, %v14422_v8, %v14426_v6 }
 0xf1b   :  { %18673 = vmatpush3.bf16.msra.mxu0 %v19950_v47  ;;  %v19976_v47 = vld [vmem:[%s24698_s13 + $0x218] sm:$0xff]  }
 0xf1c   :  { %18674 = vmatprep.subr.bf16.mxu0 %v19951_v58 }
 0xf1e   :  { %18667 = vmatmul.mubr.bf16.gmra.mrb[56].mxu0 %v14068_v7  ;;  %v19980_v7 = vld [vmem:[%s24698_s13 + $0x238] sm:$0xff]  }
 0xf1f   :  { %18675 = vmatpush3.bf16.msra.mxu0 %v19951_v58  ;;  %18686 = vmatprep.mubr.bf16.mxu0 %v16241_v38  ;;  %v14343_v38 = vld [vmem:[#allocation6 + $0x8] sm:$0xf] }
 0xf20   :  { %18676 = vmatprep.subr.bf16.mxu0 %v19953_v56  ;;  %v16269_v55 = vcombine.low %v14343_v38, %v24528_v20  ;;  %v19977_v58 = vld [vmem:[%s24698_s13 + $0x220] sm:$0xff]   ;;  %v14581_v20 = vrot.slane %v19973_v0, 1 }
 0xf22   :  { %v14395_v16 = vshll.u32 %v16269_v55, 16  ;;  %v14393_v21 = vshrl.u32 %v16269_v55, 16  ;;  %v16307_v55 = vld [vmem:[%s24701_s14] ss:$0 sm:$0xff] }
 0xf23   :  { %18677 = vmatpush3.bf16.msra.mxu0 %v19953_v56  ;;  %v19979_v56 = vld [vmem:[%s24698_s13 + $0x230] sm:$0xff]  }
 0xf24   :  { %18678 = vmatprep.subr.bf16.mxu0 %v19954_v33  ;;  %v14397_v22 = vrot.slane %v14395_v16, 1 }
 0xf26   :  { %v14398_v61 = vor.u32 %v14397_v22, %v14393_v21 }
 0xf27   :  { %18679 = vmatpush3.bf16.msra.mxu0 %v19954_v33  ;;  %v14577_v33 = vrot.slane %v24560_v12, 1 }
 0xf28   :  { %18680 = vmatprep.subr.bf16.mxu0 %v19955_v1  ;;  %v14403_v30 = vsel %vm278_vm0, %v14398_v61, %v14402_v62  ;;  %vm14809_vm0 = vcmask 7168  }
 0xf2b   :  { %18681 = vmatpush3.bf16.msra.mxu0 %v19955_v1  ;;  %v14579_v1 = vrot.slane %v24566_v11, 1 }
 0xf2c   :  { %18682 = vmatprep.subr.bf16.mxu0 %v19956_v63 }
 0xf2d   :  { %v14582_v38 = vsel %vm3792_vm11, %v14579_v1, %v14581_v20 }
 0xf2f   :  { %18683 = vmatpush3.bf16.msra.mxu0 %v19956_v63  ;;  %v14578_v63 = vsel %vm3792_vm11, %v14575_v26, %v14577_v33 }
 0xf30   :  { %18684 = vmatprep.subr.bf16.mxu0 %v19957_v25 }
 0xf33   :  { %18685 = vmatpush3.bf16.msra.mxu0 %v19957_v25  ;;  %v14580_v25 = vsel %vm3792_vm11, %v14577_v33, %v14579_v1 }
 0xf34   :  { %18694 = vmatprep.subr.bf16.mxu0 %v19958_v35 }
 0xf36   :  { %18687 = vmatmul.mubr.bf16.vlgmr.msra.gmra.mrb[52].mxu0 %v16242_v5  ;;  %v19965_v5 = vld [vmem:[%s24698_s13 + $0x1d8] sm:$0xff]  }
 0xf37   :  { %18690 = vmatprep.mubr.bf16.mxu0 %v16243_v23  ;;  %18695 = vmatpush3.bf16.msra.mxu0 %v19958_v35  ;;  %v19967_v23 = vld [vmem:[%s24698_s13 + $0x1e8] sm:$0xff]   ;;  %v25_v35 = vstv %s24700_s19 }
 0xf38   :  { %18696 = vmatprep.subr.bf16.mxu0 %v19960_v39  ;;  %26 = vst [vmem:[#allocation7] sm:$0x1] %v25_v35 }
 0xf3b   :  { %18697 = vmatpush3.bf16.msra.mxu0 %v19960_v39 }
 0xf3c   :  { %18698 = vmatprep.subr.bf16.mxu0 %v19961_v36 }
 0xf3e   :  { %18691 = vmatmul.mubr.bf16.gmra.mrb[56].mxu0 %v16244_v60 }
 0xf3f   :  { %18699 = vmatpush3.bf16.msra.mxu0 %v19961_v36  ;;  %18710 = vmatprep.mubr.bf16.mxu0 %v14403_v30 }
 0xf40   :  { %18700 = vmatprep.subr.bf16.mxu0 %v19965_v5 }
 0xf43   :  { %18701 = vmatpush3.bf16.msra.mxu0 %v19965_v5 }
 0xf44   :  { %18702 = vmatprep.subr.bf16.mxu0 %v19966_v9 }
 0xf47   :  { %18703 = vmatpush3.bf16.msra.mxu0 %v19966_v9 }
 0xf48   :  { %18704 = vmatprep.subr.bf16.mxu0 %v19967_v23 }
 0xf4b   :  { %18705 = vmatpush3.bf16.msra.mxu0 %v19967_v23  ;;  %v16308_v23 = vld [vmem:[%s24702_s18] ss:$0 sm:$0xff] }
 0xf4c   :  { %18706 = vmatprep.subr.bf16.mxu0 %v19968_v43 }
 0xf4f   :  { %18707 = vmatpush3.bf16.msra.mxu0 %v19968_v43 }
 0xf50   :  { %18708 = vmatprep.subr.bf16.mxu0 %v19969_v27 }
 0xf53   :  { %18709 = vmatpush3.bf16.msra.mxu0 %v19969_v27 }
 0xf54   :  { %18718 = vmatprep.subr.bf16.mxu0 %v19970_v50 }
 0xf56   :  { %18711 = vmatmul.mubr.bf16.vlgmr.msra.gmra.mrb[52].mxu0 %v14411_v59 }
 0xf57   :  { %18714 = vmatprep.mubr.bf16.mxu0 %v14419_v57  ;;  %18719 = vmatpush3.bf16.msra.mxu0 %v19970_v50 }
 0xf58   :  { %18720 = vmatprep.subr.bf16.mxu0 %v19972_v46 }
 0xf5b   :  { %18721 = vmatpush3.bf16.msra.mxu0 %v19972_v46 }
 0xf5c   :  { %18722 = vmatprep.subr.bf16.mxu0 %v19974_v32 }
 0xf5e   :  { %18715 = vmatmul.mubr.bf16.gmra.mrb[56].mxu0 %v14427_v45 }
 0xf5f   :  { %18723 = vmatpush3.bf16.msra.mxu0 %v19974_v32  ;;  %18734 = vmatprep.mubr.bf16.mxu0 %v14576_v13 }
 0xf60   :  { %18724 = vmatprep.subr.bf16.mxu0 %v19976_v47 }
 0xf63   :  { %18725 = vmatpush3.bf16.msra.mxu0 %v19976_v47 }
 0xf64   :  { %18726 = vmatprep.subr.bf16.mxu0 %v19977_v58 }
 0xf67   :  { %18727 = vmatpush3.bf16.msra.mxu0 %v19977_v58 }
 0xf68   :  { %18728 = vmatprep.subr.bf16.mxu0 %v19978_v24 }
 0xf6b   :  { %18729 = vmatpush3.bf16.msra.mxu0 %v19978_v24  ;;  %v16309_v24 = vld [vmem:[#allocation7] ss:$0 sm:$0xff] }
 0xf6c   :  { %18730 = vmatprep.subr.bf16.mxu0 %v19979_v56 }
 0xf6f   :  { %18731 = vmatpush3.bf16.msra.mxu0 %v19979_v56  ;;  %v14795_v56 = vld [vmem:[%s24696_s15 + $0x10] sm:$0xff] }
 0xf70   :  { %18732 = vmatprep.subr.bf16.mxu0 %v19980_v7 }
 0xf73   :  { %18733 = vmatpush3.bf16.msra.mxu0 %v19980_v7 }
 0xf76   :  { %18735 = vmatmul.mubr.bf16.vlgmr.msra.gmra.mrb[52].mxu0 %v14578_v63  ;;  %v14794_v63 = vld [vmem:[%s24696_s15 + $0x8] sm:$0xff] }
 0xf77   :  { %18738 = vmatprep.mubr.bf16.mxu0 %v14580_v25 }
 0xf7e   :  { %18739 = vmatmul.mubr.bf16.gmra.mrb[56].mxu0 %v14582_v38  ;;  %v14796_v38 = vld [vmem:[%s24696_s15 + $0x18] sm:$0xff] }
0x1049   :  { %v18736_v28 = vpop.f32.mrb[52].mxu0 }
0x104a   :  { %v14717_v39 = vadd.f32 %v18736_v28, %v16307_v55  ;;  %v14669_v16 = vpop.f32.mrb[53].mxu0 }
0x104b   :  { %v14715_v14 = vadd.f32 %v16307_v55, %v14669_v16  ;;  %v18737_v36 = vpop.f32.mrb[54].mxu0  ;;  %v14797_v16 = vld [vmem:[%s24696_s15 + $0x20] sm:$0xff] }
0x104c   :  { %v14725_v22 = vmul.f32 0.01, %v14717_v39  ;;  %v14718_v4 = vadd.f32 %v18737_v36, %v16307_v55  ;;  %v14672_v21 = vpop.f32.mrb[55].mxu0 }
0x104d   :  { %v14723_v62 = vmul.f32 0.01, %v14715_v14  ;;  %v14716_v60 = vadd.f32 %v16307_v55, %v14672_v21 }
0x104e   :  { %v14733_v61 = vmax.f32 %v14717_v39, %v14725_v22  ;;  %v14726_v5 = vmul.f32 0.01, %v14718_v4  ;;  %v14798_v22 = vld [vmem:[%s24696_s15 + $0x28] sm:$0xff] }
0x104f   :  { %v14731_v30 = vmax.f32 %v14715_v14, %v14723_v62  ;;  %v14724_v9 = vmul.f32 0.01, %v14716_v60 }
0x1050   :  { %v14734_v12 = vmax.f32 %v14718_v4, %v14726_v5  ;;  %v14741_v43 = vmul.f32 %v14733_v61, %v24212_v37 }
0x1051   :  { %v14732_v53 = vmax.f32 %v14716_v60, %v14724_v9  ;;  %v18740_v11 = vpop.f32.mrb[56].mxu0  ;;  %v14739_v27 = vmul.f32 %v14731_v30, %v24199_v29  ;;  %v14799_v60 = vld [vmem:[%s24696_s15 + $0x30] sm:$0xff]  ;;  %v14800_v9 = vld [vmem:[%s24696_s15 + $0x38] sm:$0xff] }
0x1052   :  { %v14721_v2 = vadd.f32 %v18740_v11, %v16307_v55  ;;  %v14685_v44 = vpop.f32.mrb[57].mxu0  ;;  %v14756_v50 = vmul.f32 %v16308_v23, %v14741_v43  ;;  %v14742_v42 = vmul.f32 %v14734_v12, %v24217_v17 }
0x1053   :  { %v14719_v19 = vadd.f32 %v16307_v55, %v14685_v44  ;;  %v18741_v31 = vpop.f32.mrb[58].mxu0  ;;  %v14754_v34 = vmul.f32 %v16308_v23, %v14739_v27  ;;  %v14740_v18 = vmul.f32 %v14732_v53, %v24205_v15 }
0x1054   :  { %v14729_v0 = vmul.f32 0.01, %v14721_v2  ;;  %v14722_v46 = vadd.f32 %v18741_v31, %v16307_v55  ;;  %14766 = vadd.xlane.f32.xlu0 %v14756_v50  ;;  %v14688_v59 = vpop.f32.mrb[59].mxu0  ;;  %v14757_v41 = vmul.f32 %v16308_v23, %v14742_v42 }
0x1055   :  { %v14727_v48 = vmul.f32 0.01, %v14719_v19  ;;  %v14720_v37 = vadd.f32 %v16307_v55, %v14688_v59  ;;  %14762 = vadd.xlane.f32.xlu1 %v14754_v34  ;;  %v14755_v57 = vmul.f32 %v16308_v23, %v14740_v18 }
0x1056   :  { %v14730_v54 = vmul.f32 0.01, %v14722_v46  ;;  %v14737_v29 = vmax.f32 %v14721_v2, %v14729_v0 }
0x1057   :  { %v14735_v52 = vmax.f32 %v14719_v19, %v14727_v48  ;;  %v14728_v32 = vmul.f32 0.01, %v14720_v37 }
0x1058   :  { %14764 = vadd.xlane.f32.xlu0 %v14755_v57  ;;  %v14738_v8 = vmax.f32 %v14722_v46, %v14730_v54  ;;  %v14745_v17 = vmul.f32 %v14737_v29, %v24251_v51 }
0x1059   :  { %v14736_v6 = vmax.f32 %v14720_v37, %v14728_v32  ;;  %14768 = vadd.xlane.f32.xlu1 %v14757_v41  ;;  %v14743_v15 = vmul.f32 %v14735_v52, %v24228_v10 }
0x105a   :  { %v14746_v45 = vmul.f32 %v14738_v8, %v24256_v3  ;;  %v14760_v13 = vmul.f32 %v16308_v23, %v14745_v17 }
0x105b   :  { %v14758_v26 = vmul.f32 %v16308_v23, %v14743_v15  ;;  %v14744_v40 = vmul.f32 %v14736_v6, %v24233_v49  ;;  %v14793_v49 = vld [vmem:[%s24696_s15] sm:$0xff] }
0x105c   :  { %v14761_v58 = vmul.f32 %v16308_v23, %v14746_v45 }
0x105d   :  { %14770 = vadd.xlane.f32.xlu0 %v14758_v26  ;;  %v14759_v47 = vmul.f32 %v16308_v23, %v14744_v40 }
0x105f   :  { %14772 = vadd.xlane.f32.xlu1 %v14759_v47 }
0x1061   :  { %14774 = vadd.xlane.f32.xlu0 %v14760_v13 }
0x1063   :  { %14776 = vadd.xlane.f32.xlu1 %v14761_v58 }
0x10e1   :  { %v14767_v10 = vpop.xlane.xlu0 %14766 }
0x10e2   :  { %v14787_v7 = vadd.f32 %v16309_v24, %v14767_v10  ;;  %v14763_v51 = vpop.xlane.xlu1 %14762 }
0x10e3   :  { %v14785_v33 = vadd.f32 %v16309_v24, %v14763_v51 }
0x10e4   :  { %v14803_v3 = vmul.f32 %v14795_v56, %v14787_v7 }
0x10e5   :  { %v14801_v1 = vmul.f32 %v14793_v49, %v14785_v33  ;;  %v14765_v25 = vpop.xlane.xlu0 %14764 }
0x10e6   :  { %14812 = vst.msk [vmem:[%s24703_s20 + $0x10] sm:$0xff] %vm14809_vm0, %v14803_v3  ;;  %v14786_v20 = vadd.f32 %v16309_v24, %v14765_v25  ;;  %v14769_v35 = vpop.xlane.xlu1 %14768 }
0x10e7   :  { %14810 = vst.msk [vmem:[%s24703_s20] sm:$0xff] %vm14809_vm0, %v14801_v1  ;;  %v14788_v55 = vadd.f32 %v16309_v24, %v14769_v35 }
0x10e8   :  { %v14802_v28 = vmul.f32 %v14794_v63, %v14786_v20 }
0x10e9   :  { %v14804_v39 = vmul.f32 %v14796_v38, %v14788_v55 }
0x10ea   :  { %14811 = vst.msk [vmem:[%s24703_s20 + $0x8] sm:$0xff] %vm14809_vm0, %v14802_v28  ;;  %v14771_v14 = vpop.xlane.xlu0 %14770 }
0x10eb   :  { %14813 = vst.msk [vmem:[%s24703_s20 + $0x18] sm:$0xff] %vm14809_vm0, %v14804_v39  ;;  %v14789_v36 = vadd.f32 %v16309_v24, %v14771_v14 }
0x10ec   :  { %v14773_v4 = vpop.xlane.xlu1 %14772 }
0x10ed   :  { %v14805_v21 = vmul.f32 %v14797_v16, %v14789_v36  ;;  %v14790_v62 = vadd.f32 %v16309_v24, %v14773_v4 }
0x10ee   :  { %v14775_v61 = vpop.xlane.xlu0 %14774 }
0x10ef   :  { %14814 = vst.msk [vmem:[%s24703_s20 + $0x20] sm:$0xff] %vm14809_vm0, %v14805_v21  ;;  %v14806_v5 = vmul.f32 %v14798_v22, %v14790_v62  ;;  %v14791_v30 = vadd.f32 %v16309_v24, %v14775_v61 }
0x10f0   :  { %v14777_v23 = vpop.xlane.xlu1 %14776 }
0x10f1   :  { %14815 = vst.msk [vmem:[%s24703_s20 + $0x28] sm:$0xff] %vm14809_vm0, %v14806_v5  ;;  %v14807_v12 = vmul.f32 %v14799_v60, %v14791_v30  ;;  %v14792_v43 = vadd.f32 %v16309_v24, %v14777_v23 }
0x10f3   :  { %14816 = vst.msk [vmem:[%s24703_s20 + $0x30] sm:$0xff] %vm14809_vm0, %v14807_v12  ;;  %v14808_v53 = vmul.f32 %v14800_v9, %v14792_v43 }
0x10f5   :  { %14817 = vst.msk [vmem:[%s24703_s20 + $0x38] sm:$0xff] %vm14809_vm0, %v14808_v53 }

</bundles_post_ra>
